<compile_context>
chip_gen: v5e
topology: v5e:2x2
jax: 0.10.0
libtpu: 0.0.40
codegen_flags: <defaults>
</compile_context>

<pallas_src>
import functools

import jax
import jax.numpy as jnp
from jax import lax
from jax.experimental import pallas as pl
from jax.experimental.pallas import tpu as pltpu


def _round_up(x, m):
    return (x + m - 1) // m * m


# ----------------------------- Pallas kernel -------------------------------

def _conv_block_kernel(*refs, use_inorm, spp, p_spatial, act, relu_slope, eps):
    """One grid step of the fused conv-as-matmul block.

    Grid = (OC_pad // TOC, M // TM); K is a single full-extent block (no
    reduction grid axis, no accumulator scratch).

    refs (use_inorm=True ): x_ref (TM, K), w_ref (K, TOC), o_ref (TM, TOC)
    refs (use_inorm=False): x_ref (TM, K), w_ref (K, TOC), b_ref (1, TOC), o_ref
    """
    if use_inorm:
        x_ref, w_ref, o_ref = refs
    else:
        x_ref, w_ref, b_ref, o_ref = refs

    acc = jnp.dot(x_ref[...], w_ref[...], preferred_element_type=jnp.float32)

    if use_inorm:
        # nn.InstanceNorm2d(affine=False): per-(sample, channel) normalization
        # over the spatial extent, biased variance.  Conv bias is skipped: the
        # mean subtraction cancels it exactly.
        tm, toc = acc.shape
        if spp == 1:
            # Block holds exactly one sample: reduce over all rows.
            mean = jnp.mean(acc, axis=0, keepdims=True)
            xc = acc - mean
            var = jnp.mean(xc * xc, axis=0, keepdims=True)
            x = xc * lax.rsqrt(var + eps)
        else:
            # Block holds `spp` whole samples of P rows each.
            a = acc.reshape(spp, p_spatial, toc)
            mean = jnp.mean(a, axis=1, keepdims=True)
            ac = a - mean
            var = jnp.mean(ac * ac, axis=1, keepdims=True)
            x = (ac * lax.rsqrt(var + eps)).reshape(tm, toc)
    else:
        x = acc + b_ref[...]                       # (1, TOC) broadcasts over (TM, TOC)

    if act == "leaky_relu":
        x = jnp.where(x >= 0.0, x, relu_slope * x)
    else:  # sigmoid: exp + approx reciprocal both go to the EUP slot
        x = pl.reciprocal(1.0 + jnp.exp(-x), approx=True)

    o_ref[...] = x.astype(o_ref.dtype)


def conv_block_pallas(patches, w_mat, bias_2d, *, use_inorm, act, tm, toc, spp,
                      p_spatial, relu_slope=0.2, eps=1e-5,
                      out_dtype=jnp.float32):
    """patches (M, K) bf16 with M = N*P; w_mat (K, OC_pad) bf16; bias (1, OC_pad) f32."""
    m, k = patches.shape
    k_w, oc_pad = w_mat.shape
    assert k == k_w and m % tm == 0 and oc_pad % toc == 0
    nm = m // tm
    noc = oc_pad // toc

    kernel = functools.partial(_conv_block_kernel, use_inorm=use_inorm, spp=spp,
                               p_spatial=p_spatial, act=act,
                               relu_slope=relu_slope, eps=eps)

    # Weight is invariant along the inner (M) grid axis -> stays VMEM-resident.
    in_specs = [
        pl.BlockSpec((tm, k), lambda j, i: (i, 0)),     # patch tile (full K extent)
        pl.BlockSpec((k, toc), lambda j, i: (0, j)),    # weight slab
    ]
    inputs = [patches, w_mat]
    if not use_inorm:
        in_specs.append(pl.BlockSpec((1, toc), lambda j, i: (0, j)))
        inputs.append(bias_2d)

    out_bytes = jnp.dtype(out_dtype).itemsize
    # Actual resident bytes: double-buffered patch / weight / (bias) / output tiles.
    resident = (2 * tm * k * patches.dtype.itemsize
                + 2 * k * toc * w_mat.dtype.itemsize
                + 2 * tm * toc * out_bytes)
    if not use_inorm:
        resident += 2 * toc * 4
    # ~2x headroom; floor 32 MiB (fits v7x's 64 MiB), cap 96 MiB for v5e/v6e.
    vmem_limit = int(min(max(2 * resident, 32 << 20), 96 << 20))

    cost = pl.CostEstimate(
        flops=int(2 * m * k * oc_pad),
        transcendentals=int(m * oc_pad if act == "sigmoid" else 0),
        bytes_accessed=int(noc * patches.size * patches.dtype.itemsize
                           + w_mat.size * w_mat.dtype.itemsize
                           + m * oc_pad * out_bytes),
    )

    grid_spec = pltpu.PrefetchScalarGridSpec(
        num_scalar_prefetch=0,
        grid=(noc, nm),
        in_specs=in_specs,
        out_specs=pl.BlockSpec((tm, toc), lambda j, i: (i, j)),
    )

    return pl.pallas_call(
        kernel,
        out_shape=jax.ShapeDtypeStruct((m, oc_pad), out_dtype),
        grid_spec=grid_spec,
        compiler_params=pltpu.CompilerParams(
            dimension_semantics=("parallel", "parallel"),
            vmem_limit_bytes=vmem_limit),
        cost_estimate=cost,
    )(*inputs)


# ------------------------------- JAX glue -----------------------------------

def _im2col_nhwc_reflect(x_nhwc, ksize, stride, pad):
    """Reflect-pad (PyTorch padding_mode='reflect') and extract KxK patches.

    Returns (N, OH*OW, K*K*C); K-index ordering = (kh*K + kw)*C + c, matching
    the weight layout produced by prepare_params.
    """
    # TODO(synk): fuse patch extraction into the kernel (reduction over the 16
    # (kh,kw) taps with shifted/strided index_maps) to avoid the im2col HBM
    # expansion on large inputs; negligible at these small shapes.
    x = jnp.pad(x_nhwc, ((0, 0), (pad, pad), (pad, pad), (0, 0)), mode="reflect")
    n, h, w, c = x.shape
    oh = (h - ksize) // stride + 1
    ow = (w - ksize) // stride + 1
    cols = []
    for kh in range(ksize):
        for kw in range(ksize):
            cols.append(x[:, kh:kh + stride * oh:stride,
                           kw:kw + stride * ow:stride, :])
    p = jnp.stack(cols, axis=3)                          # (N, OH, OW, KK, C)
    return p.reshape(n, oh * ow, ksize * ksize * c), oh, ow


def init_discriminator_params(key, in_channels=3, num_of_blocks=3):
    """Deterministic synthetic parameters matching the PyTorch module's shapes."""
    layer_cfg = [(in_channels, 64, 2, False)]            # initial block (no IN)
    nf = 64
    for i in range(num_of_blocks):
        # Matches the reference exactly: `1 if i == num_of_blocks else 2` is always 2.
        stride = 1 if i == num_of_blocks else 2
        layer_cfg.append((nf, nf * 2, stride, True))
        nf *= 2
    layer_cfg.append((nf, 1, 1, False))                  # final conv (no IN)

    params = []
    for (ic, oc, stride, use_in) in layer_cfg:
        key, kw_, kb_ = jax.random.split(key, 3)
        fan_in = ic * 4 * 4
        w = jax.random.normal(kw_, (oc, ic, 4, 4), jnp.float32) / jnp.sqrt(float(fan_in))
        b = jax.random.normal(kb_, (oc,), jnp.float32) * 0.01
        params.append(dict(w=w, b=b, stride=stride, use_inorm=use_in))
    return params


def prepare_params(params, *, toc_max=256):
    """Convert conv weights to padded bf16 matmul form (done once, outside jit)."""
    prepared = []
    for p in params:
        oc, ic, kh, kw = p["w"].shape
        k = kh * kw * ic                          # natural (unpadded) K; full-extent block
        oc_pad = _round_up(oc, 128)               # lane-dense OC
        toc = min(toc_max, oc_pad)                # 256-wide tiles on the 256x256 MXU where possible
        # (OC, IC, KH, KW) -> (KH, KW, IC, OC) -> (K, OC): matches im2col ordering.
        w_mat = jnp.transpose(p["w"], (2, 3, 1, 0)).reshape(k, oc)
        w_mat = jnp.pad(w_mat, ((0, 0), (0, oc_pad - oc))).astype(jnp.bfloat16)
        b_2d = jnp.pad(p["b"], (0, oc_pad - oc)).reshape(1, oc_pad).astype(jnp.float32)
        prepared.append(dict(w_mat=w_mat, b=b_2d, k=k, oc=oc, toc=toc,
                             stride=p["stride"], use_inorm=p["use_inorm"]))
    return prepared


def _choose_m_tile(n, p_spatial, use_inorm):
    """Pick (TM, samples_per_block) for the merged M = N*P axis."""
    m = n * p_spatial
    if use_inorm:
        # IN blocks must contain whole samples so the per-sample stats are exact.
        if p_spatial % 8 == 0:
            return p_spatial, 1            # one sample per block (>=2 parallel M blocks)
        # TODO(synk): for very large images implement a two-pass (sum/sumsq)
        # tiled-P InstanceNorm instead of a full-extent block (needed on v7x's
        # 64 MiB VMEM for big inputs).
        return m, n                        # full-extent block (always legal)
    # No IN: any multiple-of-8 divisor of M works; prefer >=2 blocks, cap rows.
    for tm in (2048, 1024, 512, 256, 128, 64, 32, 16, 8):
        if m % tm == 0 and m // tm >= 2:
            return tm, 1
    return m, 1


def discriminator_forward(prepared, x_nchw):
    """Eval-mode forward of Discriminator; returns the sigmoid patch map in NCHW (f32)."""
    # TODO(synk): training-mode gaussian input noise (torch.randn_like * noise_std)
    # is intentionally omitted (eval-mode semantics).
    x = jnp.transpose(x_nchw, (0, 2, 3, 1)).astype(jnp.bfloat16)   # NCHW -> NHWC once
    n = x.shape[0]
    n_layers = len(prepared)
    for idx, lp in enumerate(prepared):
        is_final = idx == n_layers - 1
        patches, oh, ow = _im2col_nhwc_reflect(x, 4, lp["stride"], 1)
        p_spatial = oh * ow
        patches = patches.reshape(n * p_spatial, lp["k"])          # merge batch into M
        tm, spp = _choose_m_tile(n, p_spatial, lp["use_inorm"])
        out = conv_block_pallas(
            patches, lp["w_mat"], lp["b"],
            use_inorm=lp["use_inorm"],
            act="sigmoid" if is_final else "leaky_relu",
            tm=tm, toc=lp["toc"], spp=spp, p_spatial=p_spatial,
            out_dtype=jnp.float32 if is_final else jnp.bfloat16)
        x = out[:, :lp["oc"]].reshape(n, oh, ow, lp["oc"])         # drop OC pad, stay NHWC
    return jnp.transpose(x, (0, 3, 1, 2))                          # NHWC -> NCHW at the boundary


# --------------------------------- main --------------------------------------

if __name__ == "__main__":
    key = jax.random.PRNGKey(0)
    kp, kx = jax.random.split(key)

    params = init_discriminator_params(kp, in_channels=3, num_of_blocks=3)
    prepared = prepare_params(params)

    # Smallest spatial size for which the 5-conv stack is valid:
    # 32 -> 16 -> 8 -> 4 -> 2 (four stride-2 convs) -> 1 (final stride-1 k=4 conv).
    x = jax.random.normal(kx, (2, 3, 32, 32), jnp.float32)

    fwd = jax.jit(lambda inp: discriminator_forward(prepared, inp))
    y = fwd(x)
    jax.block_until_ready(y)

    assert y.shape == (2, 1, 1, 1), y.shape
    assert bool(jnp.all(jnp.isfinite(y)))
    # sigmoid output (small tolerance for the approx-reciprocal epilogue)
    assert bool(jnp.all((y >= -1e-3) & (y <= 1.0 + 1e-3)))
    print("KERNEL_OK")
</pallas_src>

<mosaic_0001>
module attributes {stable_mosaic.version = 11 : i64} {
  func.func @_conv_block_kernel(%arg0: i32, %arg1: i32, %arg2: memref<256x48xbf16, #tpu.memory_space<vmem>>, %arg3: memref<48x128xbf16, #tpu.memory_space<vmem>>, %arg4: memref<1x128xf32, #tpu.memory_space<vmem>>, %arg5: memref<256x128xbf16, #tpu.memory_space<vmem>>) attributes {dimension_semantics = [#tpu.dimension_semantics<parallel>, #tpu.dimension_semantics<parallel>], iteration_bounds = array<i64: 1, 2>, scalar_prefetch = 0 : i64, scratch_operands = 0 : i64, tpu.core_type = #tpu.core_type<tc>, window_params = [{transform_indices = @transform_0, window_bounds = array<i64: 256, 48>}, {transform_indices = @transform_1, window_bounds = array<i64: 48, 128>}, {transform_indices = @transform_2, window_bounds = array<i64: 1, 128>}, {transform_indices = @transform_3, window_bounds = array<i64: 256, 128>}]} {
    %c0 = arith.constant 0 : index
    %c0_0 = arith.constant 0 : index
    %0 = vector.load %arg2[%c0, %c0_0] : memref<256x48xbf16, #tpu.memory_space<vmem>>, vector<256x48xbf16>
    %c0_1 = arith.constant 0 : index
    %c0_2 = arith.constant 0 : index
    %1 = vector.load %arg3[%c0_1, %c0_2] : memref<48x128xbf16, #tpu.memory_space<vmem>>, vector<48x128xbf16>
    %cst = arith.constant dense<0.000000e+00> : vector<256x128xf32>
    %2 = tpu.matmul %0, %1, %cst {dimension_numbers = #tpu.dot_dimension_numbers<[1], [0], [0], [1], [0, 0, 1, 1], [], []>} : vector<256x48xbf16>, vector<48x128xbf16>, vector<256x128xf32> -> vector<256x128xf32>
    %c0_3 = arith.constant 0 : index
    %c0_4 = arith.constant 0 : index
    %3 = vector.load %arg4[%c0_3, %c0_4] : memref<1x128xf32, #tpu.memory_space<vmem>>, vector<1x128xf32>
    %4 = vector.broadcast %3 : vector<1x128xf32> to vector<256x128xf32>
    %5 = arith.addf %2, %4 : vector<256x128xf32>
    %cst_5 = arith.constant 0.000000e+00 : f32
    %6 = vector.broadcast %cst_5 : f32 to vector<256x128xf32>
    %7 = arith.cmpf oge, %5, %6 : vector<256x128xf32>
    %cst_6 = arith.constant 2.000000e-01 : f32
    %8 = vector.broadcast %cst_6 : f32 to vector<256x128xf32>
    %9 = arith.mulf %8, %5 : vector<256x128xf32>
    %10 = arith.select %7, %5, %9 : vector<256x128xi1>, vector<256x128xf32>
    %11 = arith.truncf %10 : vector<256x128xf32> to vector<256x128xbf16>
    %c0_7 = arith.constant 0 : index
    %c0_8 = arith.constant 0 : index
    %12 = vector.load %arg5[%c0_7, %c0_8] : memref<256x128xbf16, #tpu.memory_space<vmem>>, vector<256x128xbf16>
    tpu.vector_store %arg5[%c0_7, %c0_8], %11 {strides = array<i32>} : memref<256x128xbf16, #tpu.memory_space<vmem>>, vector<256x128xbf16>,
    return
  }
  func.func @transform_0(%arg0: i32, %arg1: i32) -> (i32, i32) {
    %c0_i32 = arith.constant 0 : i32
    %c0_i32_0 = arith.constant 0 : i32
    return %arg1, %c0_i32 : i32, i32
  }
  func.func @transform_1(%arg0: i32, %arg1: i32) -> (i32, i32) {
    %c0_i32 = arith.constant 0 : i32
    %c0_i32_0 = arith.constant 0 : i32
    return %c0_i32, %arg0 : i32, i32
  }
  func.func @transform_2(%arg0: i32, %arg1: i32) -> (i32, i32) {
    %c0_i32 = arith.constant 0 : i32
    %c0_i32_0 = arith.constant 0 : i32
    return %c0_i32, %arg0 : i32, i32
  }
  func.func @transform_3(%arg0: i32, %arg1: i32) -> (i32, i32) {
    %c0_i32 = arith.constant 0 : i32
    return %arg1, %arg0 : i32, i32
  }
}

module attributes {stable_mosaic.version = 11 : i64} {
  func.func @_conv_block_kernel(%arg0: i32, %arg1: i32, %arg2: memref<64x1024xbf16, #tpu.memory_space<vmem>>, %arg3: memref<1024x128xbf16, #tpu.memory_space<vmem>>, %arg4: memref<64x128xbf16, #tpu.memory_space<vmem>>) attributes {dimension_semantics = [#tpu.dimension_semantics<parallel>, #tpu.dimension_semantics<parallel>], iteration_bounds = array<i64: 1, 2>, scalar_prefetch = 0 : i64, scratch_operands = 0 : i64, tpu.core_type = #tpu.core_type<tc>, window_params = [{transform_indices = @transform_0, window_bounds = array<i64: 64, 1024>}, {transform_indices = @transform_1, window_bounds = array<i64: 1024, 128>}, {transform_indices = @transform_2, window_bounds = array<i64: 64, 128>}]} {
    %c0 = arith.constant 0 : index
    %c0_0 = arith.constant 0 : index
    %0 = vector.load %arg2[%c0, %c0_0] : memref<64x1024xbf16, #tpu.memory_space<vmem>>, vector<64x1024xbf16>
    %c0_1 = arith.constant 0 : index
    %c0_2 = arith.constant 0 : index
    %1 = vector.load %arg3[%c0_1, %c0_2] : memref<1024x128xbf16, #tpu.memory_space<vmem>>, vector<1024x128xbf16>
    %cst = arith.constant dense<0.000000e+00> : vector<64x128xf32>
    %2 = tpu.matmul %0, %1, %cst {dimension_numbers = #tpu.dot_dimension_numbers<[1], [0], [0], [1], [0, 0, 1, 1], [], []>} : vector<64x1024xbf16>, vector<1024x128xbf16>, vector<64x128xf32> -> vector<64x128xf32>
    %cst_3 = arith.constant dense<0.000000e+00> : vector<128xf32>
    %3 = vector.multi_reduction <add>, %2, %cst_3 [0] : vector<64x128xf32> to vector<128xf32>
    %4 = vector.shape_cast %3 : vector<128xf32> to vector<1x128xf32>
    %cst_4 = arith.constant 6.400000e+01 : f32
    %5 = vector.broadcast %cst_4 : f32 to vector<1x128xf32>
    %6 = arith.divf %4, %5 : vector<1x128xf32>
    %7 = vector.broadcast %6 : vector<1x128xf32> to vector<64x128xf32>
    %8 = arith.subf %2, %7 : vector<64x128xf32>
    %9 = arith.mulf %8, %8 : vector<64x128xf32>
    %cst_5 = arith.constant dense<0.000000e+00> : vector<128xf32>
    %10 = vector.multi_reduction <add>, %9, %cst_5 [0] : vector<64x128xf32> to vector<128xf32>
    %11 = vector.shape_cast %10 : vector<128xf32> to vector<1x128xf32>
    %cst_6 = arith.constant 6.400000e+01 : f32
    %12 = vector.broadcast %cst_6 : f32 to vector<1x128xf32>
    %13 = arith.divf %11, %12 : vector<1x128xf32>
    %cst_7 = arith.constant 9.99999974E-6 : f32
    %14 = vector.broadcast %cst_7 : f32 to vector<1x128xf32>
    %15 = arith.addf %13, %14 : vector<1x128xf32>
    %16 = math.rsqrt %15 : vector<1x128xf32>
    %17 = vector.broadcast %16 : vector<1x128xf32> to vector<64x128xf32>
    %18 = arith.mulf %8, %17 : vector<64x128xf32>
    %cst_8 = arith.constant 0.000000e+00 : f32
    %19 = vector.broadcast %cst_8 : f32 to vector<64x128xf32>
    %20 = arith.cmpf oge, %18, %19 : vector<64x128xf32>
    %cst_9 = arith.constant 2.000000e-01 : f32
    %21 = vector.broadcast %cst_9 : f32 to vector<64x128xf32>
    %22 = arith.mulf %21, %18 : vector<64x128xf32>
    %23 = arith.select %20, %18, %22 : vector<64x128xi1>, vector<64x128xf32>
    %24 = arith.truncf %23 : vector<64x128xf32> to vector<64x128xbf16>
    %c0_10 = arith.constant 0 : index
    %c0_11 = arith.constant 0 : index
    %25 = vector.load %arg4[%c0_10, %c0_11] : memref<64x128xbf16, #tpu.memory_space<vmem>>, vector<64x128xbf16>
    tpu.vector_store %arg4[%c0_10, %c0_11], %24 {strides = array<i32>} : memref<64x128xbf16, #tpu.memory_space<vmem>>, vector<64x128xbf16>,
    return
  }
  func.func @transform_0(%arg0: i32, %arg1: i32) -> (i32, i32) {
    %c0_i32 = arith.constant 0 : i32
    %c0_i32_0 = arith.constant 0 : i32
    return %arg1, %c0_i32 : i32, i32
  }
  func.func @transform_1(%arg0: i32, %arg1: i32) -> (i32, i32) {
    %c0_i32 = arith.constant 0 : i32
    %c0_i32_0 = arith.constant 0 : i32
    return %c0_i32, %arg0 : i32, i32
  }
  func.func @transform_2(%arg0: i32, %arg1: i32) -> (i32, i32) {
    %c0_i32 = arith.constant 0 : i32
    return %arg1, %arg0 : i32, i32
  }
}

module attributes {stable_mosaic.version = 11 : i64} {
  func.func @_conv_block_kernel(%arg0: i32, %arg1: i32, %arg2: memref<16x2048xbf16, #tpu.memory_space<vmem>>, %arg3: memref<2048x256xbf16, #tpu.memory_space<vmem>>, %arg4: memref<16x256xbf16, #tpu.memory_space<vmem>>) attributes {dimension_semantics = [#tpu.dimension_semantics<parallel>, #tpu.dimension_semantics<parallel>], iteration_bounds = array<i64: 1, 2>, scalar_prefetch = 0 : i64, scratch_operands = 0 : i64, tpu.core_type = #tpu.core_type<tc>, window_params = [{transform_indices = @transform_0, window_bounds = array<i64: 16, 2048>}, {transform_indices = @transform_1, window_bounds = array<i64: 2048, 256>}, {transform_indices = @transform_2, window_bounds = array<i64: 16, 256>}]} {
    %c0 = arith.constant 0 : index
    %c0_0 = arith.constant 0 : index
    %0 = vector.load %arg2[%c0, %c0_0] : memref<16x2048xbf16, #tpu.memory_space<vmem>>, vector<16x2048xbf16>
    %c0_1 = arith.constant 0 : index
    %c0_2 = arith.constant 0 : index
    %1 = vector.load %arg3[%c0_1, %c0_2] : memref<2048x256xbf16, #tpu.memory_space<vmem>>, vector<2048x256xbf16>
    %cst = arith.constant dense<0.000000e+00> : vector<16x256xf32>
    %2 = tpu.matmul %0, %1, %cst {dimension_numbers = #tpu.dot_dimension_numbers<[1], [0], [0], [1], [0, 0, 1, 1], [], []>} : vector<16x2048xbf16>, vector<2048x256xbf16>, vector<16x256xf32> -> vector<16x256xf32>
    %cst_3 = arith.constant dense<0.000000e+00> : vector<256xf32>
    %3 = vector.multi_reduction <add>, %2, %cst_3 [0] : vector<16x256xf32> to vector<256xf32>
    %4 = vector.shape_cast %3 : vector<256xf32> to vector<1x256xf32>
    %cst_4 = arith.constant 1.600000e+01 : f32
    %5 = vector.broadcast %cst_4 : f32 to vector<1x256xf32>
    %6 = arith.divf %4, %5 : vector<1x256xf32>
    %7 = vector.broadcast %6 : vector<1x256xf32> to vector<16x256xf32>
    %8 = arith.subf %2, %7 : vector<16x256xf32>
    %9 = arith.mulf %8, %8 : vector<16x256xf32>
    %cst_5 = arith.constant dense<0.000000e+00> : vector<256xf32>
    %10 = vector.multi_reduction <add>, %9, %cst_5 [0] : vector<16x256xf32> to vector<256xf32>
    %11 = vector.shape_cast %10 : vector<256xf32> to vector<1x256xf32>
    %cst_6 = arith.constant 1.600000e+01 : f32
    %12 = vector.broadcast %cst_6 : f32 to vector<1x256xf32>
    %13 = arith.divf %11, %12 : vector<1x256xf32>
    %cst_7 = arith.constant 9.99999974E-6 : f32
    %14 = vector.broadcast %cst_7 : f32 to vector<1x256xf32>
    %15 = arith.addf %13, %14 : vector<1x256xf32>
    %16 = math.rsqrt %15 : vector<1x256xf32>
    %17 = vector.broadcast %16 : vector<1x256xf32> to vector<16x256xf32>
    %18 = arith.mulf %8, %17 : vector<16x256xf32>
    %cst_8 = arith.constant 0.000000e+00 : f32
    %19 = vector.broadcast %cst_8 : f32 to vector<16x256xf32>
    %20 = arith.cmpf oge, %18, %19 : vector<16x256xf32>
    %cst_9 = arith.constant 2.000000e-01 : f32
    %21 = vector.broadcast %cst_9 : f32 to vector<16x256xf32>
    %22 = arith.mulf %21, %18 : vector<16x256xf32>
    %23 = arith.select %20, %18, %22 : vector<16x256xi1>, vector<16x256xf32>
    %24 = arith.truncf %23 : vector<16x256xf32> to vector<16x256xbf16>
    %c0_10 = arith.constant 0 : index
    %c0_11 = arith.constant 0 : index
    %25 = vector.load %arg4[%c0_10, %c0_11] : memref<16x256xbf16, #tpu.memory_space<vmem>>, vector<16x256xbf16>
    tpu.vector_store %arg4[%c0_10, %c0_11], %24 {strides = array<i32>} : memref<16x256xbf16, #tpu.memory_space<vmem>>, vector<16x256xbf16>,
    return
  }
  func.func @transform_0(%arg0: i32, %arg1: i32) -> (i32, i32) {
    %c0_i32 = arith.constant 0 : i32
    %c0_i32_0 = arith.constant 0 : i32
    return %arg1, %c0_i32 : i32, i32
  }
  func.func @transform_1(%arg0: i32, %arg1: i32) -> (i32, i32) {
    %c0_i32 = arith.constant 0 : i32
    %c0_i32_0 = arith.constant 0 : i32
    return %c0_i32, %arg0 : i32, i32
  }
  func.func @transform_2(%arg0: i32, %arg1: i32) -> (i32, i32) {
    %c0_i32 = arith.constant 0 : i32
    return %arg1, %arg0 : i32, i32
  }
}

module attributes {stable_mosaic.version = 11 : i64} {
  func.func @_conv_block_kernel(%arg0: i32, %arg1: i32, %arg2: memref<8x4096xbf16, #tpu.memory_space<vmem>>, %arg3: memref<4096x256xbf16, #tpu.memory_space<vmem>>, %arg4: memref<8x256xbf16, #tpu.memory_space<vmem>>) attributes {dimension_semantics = [#tpu.dimension_semantics<parallel>, #tpu.dimension_semantics<parallel>], iteration_bounds = array<i64: 2, 1>, scalar_prefetch = 0 : i64, scratch_operands = 0 : i64, tpu.core_type = #tpu.core_type<tc>, window_params = [{transform_indices = @transform_0, window_bounds = array<i64: 8, 4096>}, {transform_indices = @transform_1, window_bounds = array<i64: 4096, 256>}, {transform_indices = @transform_2, window_bounds = array<i64: 8, 256>}]} {
    %c0 = arith.constant 0 : index
    %c0_0 = arith.constant 0 : index
    %0 = vector.load %arg2[%c0, %c0_0] : memref<8x4096xbf16, #tpu.memory_space<vmem>>, vector<8x4096xbf16>
    %c0_1 = arith.constant 0 : index
    %c0_2 = arith.constant 0 : index
    %1 = vector.load %arg3[%c0_1, %c0_2] : memref<4096x256xbf16, #tpu.memory_space<vmem>>, vector<4096x256xbf16>
    %cst = arith.constant dense<0.000000e+00> : vector<8x256xf32>
    %2 = tpu.matmul %0, %1, %cst {dimension_numbers = #tpu.dot_dimension_numbers<[1], [0], [0], [1], [0, 0, 1, 1], [], []>} : vector<8x4096xbf16>, vector<4096x256xbf16>, vector<8x256xf32> -> vector<8x256xf32>
    %3 = vector.shape_cast %2 : vector<8x256xf32> to vector<2x4x256xf32>
    %cst_3 = arith.constant dense<0.000000e+00> : vector<2x256xf32>
    %4 = vector.multi_reduction <add>, %3, %cst_3 [1] : vector<2x4x256xf32> to vector<2x256xf32>
    %5 = vector.shape_cast %4 : vector<2x256xf32> to vector<2x1x256xf32>
    %cst_4 = arith.constant 4.000000e+00 : f32
    %6 = vector.broadcast %cst_4 : f32 to vector<2x1x256xf32>
    %7 = arith.divf %5, %6 : vector<2x1x256xf32>
    %8 = vector.broadcast %7 : vector<2x1x256xf32> to vector<2x4x256xf32>
    %9 = arith.subf %3, %8 : vector<2x4x256xf32>
    %10 = arith.mulf %9, %9 : vector<2x4x256xf32>
    %cst_5 = arith.constant dense<0.000000e+00> : vector<2x256xf32>
    %11 = vector.multi_reduction <add>, %10, %cst_5 [1] : vector<2x4x256xf32> to vector<2x256xf32>
    %12 = vector.shape_cast %11 : vector<2x256xf32> to vector<2x1x256xf32>
    %cst_6 = arith.constant 4.000000e+00 : f32
    %13 = vector.broadcast %cst_6 : f32 to vector<2x1x256xf32>
    %14 = arith.divf %12, %13 : vector<2x1x256xf32>
    %cst_7 = arith.constant 9.99999974E-6 : f32
    %15 = vector.broadcast %cst_7 : f32 to vector<2x1x256xf32>
    %16 = arith.addf %14, %15 : vector<2x1x256xf32>
    %17 = math.rsqrt %16 : vector<2x1x256xf32>
    %18 = vector.broadcast %17 : vector<2x1x256xf32> to vector<2x4x256xf32>
    %19 = arith.mulf %9, %18 : vector<2x4x256xf32>
    %20 = vector.shape_cast %19 : vector<2x4x256xf32> to vector<8x256xf32>
    %cst_8 = arith.constant 0.000000e+00 : f32
    %21 = vector.broadcast %cst_8 : f32 to vector<8x256xf32>
    %22 = arith.cmpf oge, %20, %21 : vector<8x256xf32>
    %cst_9 = arith.constant 2.000000e-01 : f32
    %23 = vector.broadcast %cst_9 : f32 to vector<8x256xf32>
    %24 = arith.mulf %23, %20 : vector<8x256xf32>
    %25 = arith.select %22, %20, %24 : vector<8x256xi1>, vector<8x256xf32>
    %26 = arith.truncf %25 : vector<8x256xf32> to vector<8x256xbf16>
    %c0_10 = arith.constant 0 : index
    %c0_11 = arith.constant 0 : index
    %27 = vector.load %arg4[%c0_10, %c0_11] : memref<8x256xbf16, #tpu.memory_space<vmem>>, vector<8x256xbf16>
    tpu.vector_store %arg4[%c0_10, %c0_11], %26 {strides = array<i32>} : memref<8x256xbf16, #tpu.memory_space<vmem>>, vector<8x256xbf16>,
    return
  }
  func.func @transform_0(%arg0: i32, %arg1: i32) -> (i32, i32) {
    %c0_i32 = arith.constant 0 : i32
    %c0_i32_0 = arith.constant 0 : i32
    return %arg1, %c0_i32 : i32, i32
  }
  func.func @transform_1(%arg0: i32, %arg1: i32) -> (i32, i32) {
    %c0_i32 = arith.constant 0 : i32
    %c0_i32_0 = arith.constant 0 : i32
    return %c0_i32, %arg0 : i32, i32
  }
  func.func @transform_2(%arg0: i32, %arg1: i32) -> (i32, i32) {
    %c0_i32 = arith.constant 0 : i32
    return %arg1, %arg0 : i32, i32
  }
}

module attributes {stable_mosaic.version = 11 : i64} {
  func.func @_conv_block_kernel(%arg0: i32, %arg1: i32, %arg2: memref<2x8192xbf16, #tpu.memory_space<vmem>>, %arg3: memref<8192x128xbf16, #tpu.memory_space<vmem>>, %arg4: memref<1x128xf32, #tpu.memory_space<vmem>>, %arg5: memref<2x128xf32, #tpu.memory_space<vmem>>) attributes {dimension_semantics = [#tpu.dimension_semantics<parallel>, #tpu.dimension_semantics<parallel>], iteration_bounds = array<i64: 1, 1>, scalar_prefetch = 0 : i64, scratch_operands = 0 : i64, tpu.core_type = #tpu.core_type<tc>, window_params = [{transform_indices = @transform_0, window_bounds = array<i64: 2, 8192>}, {transform_indices = @transform_1, window_bounds = array<i64: 8192, 128>}, {transform_indices = @transform_2, window_bounds = array<i64: 1, 128>}, {transform_indices = @transform_3, window_bounds = array<i64: 2, 128>}]} {
    %c0 = arith.constant 0 : index
    %c0_0 = arith.constant 0 : index
    %0 = vector.load %arg2[%c0, %c0_0] : memref<2x8192xbf16, #tpu.memory_space<vmem>>, vector<2x8192xbf16>
    %c0_1 = arith.constant 0 : index
    %c0_2 = arith.constant 0 : index
    %1 = vector.load %arg3[%c0_1, %c0_2] : memref<8192x128xbf16, #tpu.memory_space<vmem>>, vector<8192x128xbf16>
    %cst = arith.constant dense<0.000000e+00> : vector<2x128xf32>
    %2 = tpu.matmul %0, %1, %cst {dimension_numbers = #tpu.dot_dimension_numbers<[1], [0], [0], [1], [0, 0, 1, 1], [], []>} : vector<2x8192xbf16>, vector<8192x128xbf16>, vector<2x128xf32> -> vector<2x128xf32>
    %c0_3 = arith.constant 0 : index
    %c0_4 = arith.constant 0 : index
    %3 = vector.load %arg4[%c0_3, %c0_4] : memref<1x128xf32, #tpu.memory_space<vmem>>, vector<1x128xf32>
    %4 = vector.broadcast %3 : vector<1x128xf32> to vector<2x128xf32>
    %5 = arith.addf %2, %4 : vector<2x128xf32>
    %cst_5 = arith.constant 0.000000e+00 : f32
    %6 = vector.broadcast %cst_5 : f32 to vector<2x128xf32>
    %7 = arith.subf %6, %5 : vector<2x128xf32>
    %8 = math.exp %7 : vector<2x128xf32>
    %cst_6 = arith.constant 1.000000e+00 : f32
    %9 = vector.broadcast %cst_6 : f32 to vector<2x128xf32>
    %10 = arith.addf %9, %8 : vector<2x128xf32>
    %11 = tpu.reciprocal %10 {approx = true} : vector<2x128xf32> -> vector<2x128xf32>
    %c0_7 = arith.constant 0 : index
    %c0_8 = arith.constant 0 : index
    %12 = vector.load %arg5[%c0_7, %c0_8] : memref<2x128xf32, #tpu.memory_space<vmem>>, vector<2x128xf32>
    tpu.vector_store %arg5[%c0_7, %c0_8], %11 {strides = array<i32>} : memref<2x128xf32, #tpu.memory_space<vmem>>, vector<2x128xf32>,
    return
  }
  func.func @transform_0(%arg0: i32, %arg1: i32) -> (i32, i32) {
    %c0_i32 = arith.constant 0 : i32
    %c0_i32_0 = arith.constant 0 : i32
    return %arg1, %c0_i32 : i32, i32
  }
  func.func @transform_1(%arg0: i32, %arg1: i32) -> (i32, i32) {
    %c0_i32 = arith.constant 0 : i32
    %c0_i32_0 = arith.constant 0 : i32
    return %c0_i32, %arg0 : i32, i32
  }
  func.func @transform_2(%arg0: i32, %arg1: i32) -> (i32, i32) {
    %c0_i32 = arith.constant 0 : i32
    %c0_i32_0 = arith.constant 0 : i32
    return %c0_i32, %arg0 : i32, i32
  }
  func.func @transform_3(%arg0: i32, %arg1: i32) -> (i32, i32) {
    %c0_i32 = arith.constant 0 : i32
    return %arg1, %arg0 : i32, i32
  }
}

</mosaic_0001>

<bundles_post_ra>
// kernel: _lambda_.5
= control target key start
LH: loop header
LB: loop body
LE: loop exit
PB: predicated region body
PF: predicated region fallthrough
CT: control target
= control target key end

     0   :  { %8 = vsyncpa [#allocation3], 0  ;;  %s1330_s0 = inlined_call_operand.vmem [shape: bf16[512,48], index: 0, kind: input, shape index: {}]   ;;  %s1331_s1 = inlined_call_operand.hbm [shape: bf16[48,128], index: 1, kind: input, shape index: {}]   ;;  %s1332_s2 = inlined_call_operand.hbm [shape: f32[1,128], index: 2, kind: input, shape index: {}]   ;;  %s1333_s3 = inlined_call_operand.vmem [shape: bf16[512,128], index: 3, kind: output, shape index: {}]  }
   0x1   :  { %9 = vsyncpa [#allocation5], 0  ;;  %s1172_s12 = smov 0   ;;  %s1174_s13 = smov 0  }
   0x2   :  { %s1176_s14 = smov 0  }
   0x3 LB: > { %s778_s15 = sadd.s32 4294967295, %s1146_s14   ;;  %s24_s16 = sadd.s32 1, %s1142_s13  ;;  %s1146_s14 = sphi %s1176_s14, %s15_s14   ;;  %s1142_s13 = sphi %s1174_s13, %s1337_s13   ;;  %s1138_s12 = sphi %s1172_s12, %s1336_s12  }
   0x4   : > { %p25_p0 = scmp.ge.s32.totalorder %s24_s16, 2  ;;  %p780_p1 = scmp.ge.s32.totalorder %s1146_s14, 1 }
   0x5   : > { %p138_p2 = scmp.lt.s32.totalorder %s1146_s14, 3  ;;  %p1197_p4 = scmp.eq.s32.totalorder %s778_s15, 0 }
   0x6   : > { %s1339_s16 = smov (%p25_p0, %s24_s16), 0  ;;  %s151_s21 = sshll.u32 %s1331_s1, 4  ;;  %s152_s21 = int_to_ptr.hbm [resolvable:$true] %s151_s21 }
   0x7   : > { %p1193_p3 = pnand %p780_p1, %p138_p2  ;;  %s1148_s22 = smov [#allocation2]  }
   0x8   : > { %s153_s23 = sshll.u32 %s1148_s22, 4  ;;  %s167_s26 = sshll.u32 %s1332_s2, 4  ;;  %s154_s23 = int_to_ptr.vmem [resolvable:$true] %s153_s23  ;;  %s168_s26 = int_to_ptr.hbm [resolvable:$true] %s167_s26 }
   0x9   : > { %p1016_p5 = pneg %p1193_p3  ;;  %s1149_s27 = smov 64  }
   0xa   : > { %s1150_s28 = smov 4   ;;  %s1151_s29 = smov [#allocation4]  }
   0xb   : > { %p1017_p6 = pnand %p1197_p4, %p1016_p5  ;;  %s169_s30 = sshll.u32 %s1151_s29, 4  ;;  %s170_s30 = int_to_ptr.vmem [resolvable:$true] %s169_s30 }
   0xc   : > { %191 = sbr.rel (%p1193_p3) target bundleno = 230 (0xe6), region = 32 }
   0xd   : > { %1019 = dma.hbm_to_vmem [thread:$0]  (!%p1017_p6), %s152_s21, 384, %s154_s23, [#allocation3], %s1149_s27, %s1149_s27, %s1150_s28  }
   0xe   : > { %1022 = dma.hbm_to_vmem [thread:$0]  (!%p1017_p6), %s168_s26, 16, %s170_s30, [#allocation5]  }
  0x11   : > { %1129 = dma.done.wait (%p1197_p4), [#allocation3], 384  }
  0x12   : > { %1131 = vsyncadd (%p1197_p4), [#allocation3], 4294966912 }
  0x13   : > { %1133 = dma.done.wait (%p1197_p4), [#allocation5], 16  }
  0x14   : > { %1135 = vsyncadd (%p1197_p4), [#allocation5], 4294967280  ;;  %s787_s4 = sshll.u32 %s1138_s12, 5  ;;  %v903_v0 = vld [vmem:[#allocation2 + $0x10] sm:$0xff]  ;;  %v902_v1 = vld [vmem:[#allocation2 + $0x8] sm:$0xff]  ;;  %vm380_vm0 = vcmask 392192  }
  0x15   : > { %p225_p7 = scmp.lt.s32.totalorder %s787_s4, 63  ;;  %434 = vmatpush.bf16.msra.mxu0 %v903_v0  ;;  %999 = vmatpush.bf16.msra.mxu1 %v903_v0  ;;  %v901_v2 = vld [vmem:[#allocation2] sm:$0xff]  ;;  %v1264_v21 = vld [vmem:[#allocation4] ss:$0 sm:$0xff] }
  0x16   : > { %1000 = vmatpush.bf16.msra.mxu2 %v903_v0  ;;  %1001 = vmatpush.bf16.msra.mxu3 %v903_v0 }
  0x17   : > { %s1341_s4 = smov (!%p225_p7, %s787_s4), 63 }
  0x18   : > { %s788_s5 = sshll.u32 %s1341_s4, 2 }
  0x19   : > { %435 = vmatpush.bf16.msra.mxu0 %v902_v1  ;;  %1002 = vmatpush.bf16.msra.mxu1 %v902_v1  ;;  %s1230_s8 = scalar_lea.vmem %s1330_s0, %s788_s5  ;;  %s1277_s11 = scalar_lea.vmem %s1333_s3, %s788_s5 }
  0x1a   : > { %1003 = vmatpush.bf16.msra.mxu2 %v902_v1  ;;  %1004 = vmatpush.bf16.msra.mxu3 %v902_v1  ;;  %v885_v3 = vld [vmem:[%s1230_s8] sm:$0xff]  ;;  %v886_v7 = vld [vmem:[%s1230_s8 + $0x8] sm:$0xff]  ;;  %v887_v11 = vld [vmem:[%s1230_s8 + $0x10] sm:$0xff] }
  0x1b   : > { %v889_v4 = vld [vmem:[%s1230_s8 + $0x20] sm:$0xff]  ;;  %v890_v8 = vld [vmem:[%s1230_s8 + $0x28] sm:$0xff]  ;;  %v891_v12 = vld [vmem:[%s1230_s8 + $0x30] sm:$0xff] }
  0x1c   : > { %v893_v5 = vld [vmem:[%s1230_s8 + $0x40] sm:$0xff]  ;;  %v894_v9 = vld [vmem:[%s1230_s8 + $0x48] sm:$0xff]  ;;  %v895_v13 = vld [vmem:[%s1230_s8 + $0x50] sm:$0xff] }
  0x1d   : > { %436 = vmatpush.bf16.msra.mxu0 %v901_v2  ;;  %1005 = vmatpush.bf16.msra.mxu1 %v901_v2  ;;  %v897_v6 = vld [vmem:[%s1230_s8 + $0x60] sm:$0xff]  ;;  %v898_v10 = vld [vmem:[%s1230_s8 + $0x68] sm:$0xff]  ;;  %v899_v14 = vld [vmem:[%s1230_s8 + $0x70] sm:$0xff] }
  0x1e   : > { %1006 = vmatpush.bf16.msra.mxu2 %v901_v2  ;;  %1007 = vmatpush.bf16.msra.mxu3 %v901_v2  ;;  %v888_v15 = vld [vmem:[%s1230_s8 + $0x18] sm:$0xff] }
  0x1f   : > { %v892_v16 = vld [vmem:[%s1230_s8 + $0x38] sm:$0xff] }
  0x20   : > { %867 = vmatmul.msk.bf16.vlgmr.msra.gmra.mxu0 %vm380_vm0, %v885_v3  ;;  %871 = vmatmul.msk.bf16.vlgmr.msra.gmra.mxu1 %vm380_vm0, %v889_v4  ;;  %v896_v17 = vld [vmem:[%s1230_s8 + $0x58] sm:$0xff] }
  0x21   : > { %875 = vmatmul.msk.bf16.vlgmr.msra.gmra.mxu2 %vm380_vm0, %v893_v5  ;;  %879 = vmatmul.msk.bf16.vlgmr.msra.gmra.mxu3 %vm380_vm0, %v897_v6  ;;  %v900_v18 = vld [vmem:[%s1230_s8 + $0x78] sm:$0xff] }
  0x30   : > { %868 = vmatmul.msk.bf16.gmra.mxu0 %vm380_vm0, %v886_v7  ;;  %872 = vmatmul.msk.bf16.gmra.mxu1 %vm380_vm0, %v890_v8 }
  0x31   : > { %876 = vmatmul.msk.bf16.gmra.mxu2 %vm380_vm0, %v894_v9  ;;  %880 = vmatmul.msk.bf16.gmra.mxu3 %vm380_vm0, %v898_v10 }
  0x40   : > { %869 = vmatmul.msk.bf16.gmra.mxu0 %vm380_vm0, %v887_v11  ;;  %873 = vmatmul.msk.bf16.gmra.mxu1 %vm380_vm0, %v891_v12 }
  0x41   : > { %877 = vmatmul.msk.bf16.gmra.mxu2 %vm380_vm0, %v895_v13  ;;  %881 = vmatmul.msk.bf16.gmra.mxu3 %vm380_vm0, %v899_v14 }
  0x50   : > { %870 = vmatmul.msk.bf16.gmra.mxu0 %vm380_vm0, %v888_v15  ;;  %874 = vmatmul.msk.bf16.gmra.mxu1 %vm380_vm0, %v892_v16 }
  0x51   : > { %878 = vmatmul.msk.bf16.gmra.mxu2 %vm380_vm0, %v896_v17  ;;  %882 = vmatmul.msk.bf16.gmra.mxu3 %vm380_vm0, %v900_v18 }
  0x9d   : > { %v438_v19 = vpop.f32.mrf.mxu0  ;;  %v458_v20 = vpop.f32.mrf.mxu1 }
  0x9e   : > { %v439_v22 = vadd.f32 %v1264_v21, %v438_v19  ;;  %v459_v23 = vadd.f32 %v1264_v21, %v458_v20 }
  0xa0   : > { %v550_v28 = vmul.f32 0.2, %v439_v22  ;;  %v558_v29 = vmul.f32 0.2, %v459_v23  ;;  %vm518_vm1 = vcmp.ge.f32.partialorder %v439_v22, 0.0  ;;  %vm526_vm2 = vcmp.ge.f32.partialorder %v459_v23, 0.0 }
  0xa2   : > { %v582_v36 = vsel %vm518_vm1, %v439_v22, %v550_v28  ;;  %v590_v37 = vsel %vm526_vm2, %v459_v23, %v558_v29 }
  0xa4   : > { %v478_v24 = vpop.f32.mrf.mxu2  ;;  %v498_v25 = vpop.f32.mrf.mxu3 }
  0xa5   : > { %v440_v26 = vpop.f32.mrf.mxu0  ;;  %v460_v27 = vpop.f32.mrf.mxu1  ;;  %v479_v34 = vadd.f32 %v1264_v21, %v478_v24  ;;  %v499_v35 = vadd.f32 %v1264_v21, %v498_v25 }
  0xa6   : > { %v441_v30 = vadd.f32 %v1264_v21, %v440_v26  ;;  %v461_v31 = vadd.f32 %v1264_v21, %v460_v27 }
  0xa7   : > { %v566_v44 = vmul.f32 0.2, %v479_v34  ;;  %v574_v45 = vmul.f32 0.2, %v499_v35  ;;  %vm534_vm5 = vcmp.ge.f32.partialorder %v479_v34, 0.0  ;;  %vm542_vm6 = vcmp.ge.f32.partialorder %v499_v35, 0.0 }
  0xa8   : > { %vm519_vm3 = vcmp.ge.f32.partialorder %v441_v30, 0.0  ;;  %v551_v32 = vmul.f32 0.2, %v441_v30  ;;  %vm527_vm4 = vcmp.ge.f32.partialorder %v461_v31, 0.0  ;;  %v559_v33 = vmul.f32 0.2, %v461_v31 }
  0xa9   : > { %v598_v52 = vsel %vm534_vm5, %v479_v34, %v566_v44  ;;  %v606_v53 = vsel %vm542_vm6, %v499_v35, %v574_v45 }
  0xaa   : > { %v583_v38 = vsel %vm519_vm3, %v441_v30, %v551_v32  ;;  %v591_v39 = vsel %vm527_vm4, %v461_v31, %v559_v33 }
  0xab   : > { %v907_v40 = vpack.c.bf16 %v583_v38, %v582_v36  ;;  %v927_v41 = vpack.c.bf16 %v591_v39, %v590_v37 }
  0xac   : > { %v480_v42 = vpop.f32.mrf.mxu2  ;;  %v500_v43 = vpop.f32.mrf.mxu3 }
  0xad   : > { %908 = vst [vmem:[%s1277_s11] sm:$0xff] %v907_v40   ;;  %v481_v46 = vadd.f32 %v1264_v21, %v480_v42  ;;  %v501_v47 = vadd.f32 %v1264_v21, %v500_v43  ;;  %v443_v48 = vpop.f32.mrf.mxu0  ;;  %v463_v49 = vpop.f32.mrf.mxu1 }
  0xae   : > { %987 = vst [vmem:[%s1277_s11 + $0x20] sm:$0xff] %v927_v41   ;;  %v444_v58 = vadd.f32 %v1264_v21, %v443_v48  ;;  %v464_v59 = vadd.f32 %v1264_v21, %v463_v49 }
  0xaf   : > { %vm535_vm7 = vcmp.ge.f32.partialorder %v481_v46, 0.0  ;;  %v567_v50 = vmul.f32 0.2, %v481_v46  ;;  %vm543_vm8 = vcmp.ge.f32.partialorder %v501_v47, 0.0  ;;  %v575_v51 = vmul.f32 0.2, %v501_v47 }
  0xb0   : > { %v552_v0 = vmul.f32 0.2, %v444_v58  ;;  %v560_v1 = vmul.f32 0.2, %v464_v59  ;;  %vm520_vm9 = vcmp.ge.f32.partialorder %v444_v58, 0.0  ;;  %vm528_vm10 = vcmp.ge.f32.partialorder %v464_v59, 0.0 }
  0xb1   : > { %v599_v54 = vsel %vm535_vm7, %v481_v46, %v567_v50  ;;  %v607_v55 = vsel %vm543_vm8, %v501_v47, %v575_v51 }
  0xb2   : > { %v947_v56 = vpack.c.bf16 %v599_v54, %v598_v52  ;;  %v967_v57 = vpack.c.bf16 %v607_v55, %v606_v53  ;;  %v584_v8 = vsel %vm520_vm9, %v444_v58, %v552_v0  ;;  %v592_v9 = vsel %vm528_vm10, %v464_v59, %v560_v1 }
  0xb4   : > { %991 = vst [vmem:[%s1277_s11 + $0x40] sm:$0xff] %v947_v56   ;;  %v483_v60 = vpop.f32.mrf.mxu2  ;;  %v503_v61 = vpop.f32.mrf.mxu3 }
  0xb5   : > { %995 = vst [vmem:[%s1277_s11 + $0x60] sm:$0xff] %v967_v57   ;;  %v445_v62 = vpop.f32.mrf.mxu0  ;;  %v465_v63 = vpop.f32.mrf.mxu1  ;;  %v484_v6 = vadd.f32 %v1264_v21, %v483_v60  ;;  %v504_v7 = vadd.f32 %v1264_v21, %v503_v61 }
  0xb6   : > { %v446_v2 = vadd.f32 %v1264_v21, %v445_v62  ;;  %v466_v3 = vadd.f32 %v1264_v21, %v465_v63 }
  0xb7   : > { %v568_v16 = vmul.f32 0.2, %v484_v6  ;;  %v576_v17 = vmul.f32 0.2, %v504_v7  ;;  %vm536_vm13 = vcmp.ge.f32.partialorder %v484_v6, 0.0  ;;  %vm544_vm14 = vcmp.ge.f32.partialorder %v504_v7, 0.0 }
  0xb8   : > { %vm521_vm11 = vcmp.ge.f32.partialorder %v446_v2, 0.0  ;;  %v553_v4 = vmul.f32 0.2, %v446_v2  ;;  %vm529_vm12 = vcmp.ge.f32.partialorder %v466_v3, 0.0  ;;  %v561_v5 = vmul.f32 0.2, %v466_v3 }
  0xb9   : > { %v600_v25 = vsel %vm536_vm13, %v484_v6, %v568_v16  ;;  %v608_v26 = vsel %vm544_vm14, %v504_v7, %v576_v17 }
  0xba   : > { %v585_v10 = vsel %vm521_vm11, %v446_v2, %v553_v4  ;;  %v593_v11 = vsel %vm529_vm12, %v466_v3, %v561_v5 }
  0xbb   : > { %v912_v12 = vpack.c.bf16 %v585_v10, %v584_v8  ;;  %v932_v13 = vpack.c.bf16 %v593_v11, %v592_v9 }
  0xbc   : > { %v485_v14 = vpop.f32.mrf.mxu2  ;;  %v505_v15 = vpop.f32.mrf.mxu3 }
  0xbd   : > { %984 = vst [vmem:[%s1277_s11 + $0x8] sm:$0xff] %v912_v12   ;;  %v486_v18 = vadd.f32 %v1264_v21, %v485_v14  ;;  %v506_v19 = vadd.f32 %v1264_v21, %v505_v15  ;;  %v448_v20 = vpop.f32.mrf.mxu0  ;;  %v468_v22 = vpop.f32.mrf.mxu1 }
  0xbe   : > { %988 = vst [vmem:[%s1277_s11 + $0x28] sm:$0xff] %v932_v13   ;;  %v449_v31 = vadd.f32 %v1264_v21, %v448_v20  ;;  %v469_v32 = vadd.f32 %v1264_v21, %v468_v22 }
  0xbf   : > { %vm537_vm15 = vcmp.ge.f32.partialorder %v486_v18, 0.0  ;;  %v569_v23 = vmul.f32 0.2, %v486_v18  ;;  %vm545_vm0 = vcmp.ge.f32.partialorder %v506_v19, 0.0  ;;  %v577_v24 = vmul.f32 0.2, %v506_v19 }
  0xc0   : > { %v554_v37 = vmul.f32 0.2, %v449_v31  ;;  %v562_v38 = vmul.f32 0.2, %v469_v32  ;;  %vm522_vm1 = vcmp.ge.f32.partialorder %v449_v31, 0.0  ;;  %vm530_vm2 = vcmp.ge.f32.partialorder %v469_v32, 0.0 }
  0xc1   : > { %v601_v27 = vsel %vm537_vm15, %v486_v18, %v569_v23  ;;  %v609_v28 = vsel %vm545_vm0, %v506_v19, %v577_v24 }
  0xc2   : > { %v952_v29 = vpack.c.bf16 %v601_v27, %v600_v25  ;;  %v972_v30 = vpack.c.bf16 %v609_v28, %v608_v26  ;;  %v586_v45 = vsel %vm522_vm1, %v449_v31, %v554_v37  ;;  %v594_v46 = vsel %vm530_vm2, %v469_v32, %v562_v38 }
  0xc4   : > { %992 = vst [vmem:[%s1277_s11 + $0x48] sm:$0xff] %v952_v29   ;;  %v488_v33 = vpop.f32.mrf.mxu2  ;;  %v508_v34 = vpop.f32.mrf.mxu3 }
  0xc5   : > { %996 = vst [vmem:[%s1277_s11 + $0x68] sm:$0xff] %v972_v30   ;;  %v450_v35 = vpop.f32.mrf.mxu0  ;;  %v470_v36 = vpop.f32.mrf.mxu1  ;;  %v489_v43 = vadd.f32 %v1264_v21, %v488_v33  ;;  %v509_v44 = vadd.f32 %v1264_v21, %v508_v34 }
  0xc6   : > { %v451_v39 = vadd.f32 %v1264_v21, %v450_v35  ;;  %v471_v40 = vadd.f32 %v1264_v21, %v470_v36 }
  0xc7   : > { %v570_v53 = vmul.f32 0.2, %v489_v43  ;;  %v578_v54 = vmul.f32 0.2, %v509_v44  ;;  %vm538_vm5 = vcmp.ge.f32.partialorder %v489_v43, 0.0  ;;  %vm546_vm6 = vcmp.ge.f32.partialorder %v509_v44, 0.0 }
  0xc8   : > { %vm523_vm3 = vcmp.ge.f32.partialorder %v451_v39, 0.0  ;;  %v555_v41 = vmul.f32 0.2, %v451_v39  ;;  %vm531_vm4 = vcmp.ge.f32.partialorder %v471_v40, 0.0  ;;  %v563_v42 = vmul.f32 0.2, %v471_v40 }
  0xc9   : > { %v602_v61 = vsel %vm538_vm5, %v489_v43, %v570_v53  ;;  %v610_v62 = vsel %vm546_vm6, %v509_v44, %v578_v54 }
  0xca   : > { %v587_v47 = vsel %vm523_vm3, %v451_v39, %v555_v41  ;;  %v595_v48 = vsel %vm531_vm4, %v471_v40, %v563_v42 }
  0xcb   : > { %v917_v49 = vpack.c.bf16 %v587_v47, %v586_v45  ;;  %v937_v50 = vpack.c.bf16 %v595_v48, %v594_v46 }
  0xcc   : > { %v490_v51 = vpop.f32.mrf.mxu2  ;;  %v510_v52 = vpop.f32.mrf.mxu3 }
  0xcd   : > { %985 = vst [vmem:[%s1277_s11 + $0x10] sm:$0xff] %v917_v49   ;;  %v491_v55 = vadd.f32 %v1264_v21, %v490_v51  ;;  %v511_v56 = vadd.f32 %v1264_v21, %v510_v52  ;;  %v453_v57 = vpop.f32.mrf.mxu0  ;;  %v473_v58 = vpop.f32.mrf.mxu1 }
  0xce   : > { %989 = vst [vmem:[%s1277_s11 + $0x30] sm:$0xff] %v937_v50   ;;  %v454_v3 = vadd.f32 %v1264_v21, %v453_v57  ;;  %v474_v4 = vadd.f32 %v1264_v21, %v473_v58 }
  0xcf   : > { %vm539_vm7 = vcmp.ge.f32.partialorder %v491_v55, 0.0  ;;  %v571_v59 = vmul.f32 0.2, %v491_v55  ;;  %vm547_vm8 = vcmp.ge.f32.partialorder %v511_v56, 0.0  ;;  %v579_v60 = vmul.f32 0.2, %v511_v56 }
  0xd0   : > { %v556_v9 = vmul.f32 0.2, %v454_v3  ;;  %v564_v10 = vmul.f32 0.2, %v474_v4  ;;  %vm524_vm9 = vcmp.ge.f32.partialorder %v454_v3, 0.0  ;;  %vm532_vm10 = vcmp.ge.f32.partialorder %v474_v4, 0.0 }
  0xd1   : > { %v603_v63 = vsel %vm539_vm7, %v491_v55, %v571_v59  ;;  %v611_v0 = vsel %vm547_vm8, %v511_v56, %v579_v60 }
  0xd2   : > { %v957_v1 = vpack.c.bf16 %v603_v63, %v602_v61  ;;  %v977_v2 = vpack.c.bf16 %v611_v0, %v610_v62  ;;  %v588_v17 = vsel %vm524_vm9, %v454_v3, %v556_v9  ;;  %v596_v18 = vsel %vm532_vm10, %v474_v4, %v564_v10 }
  0xd4   : > { %993 = vst [vmem:[%s1277_s11 + $0x50] sm:$0xff] %v957_v1   ;;  %v493_v5 = vpop.f32.mrf.mxu2  ;;  %v513_v6 = vpop.f32.mrf.mxu3 }
  0xd5   : > { %997 = vst [vmem:[%s1277_s11 + $0x70] sm:$0xff] %v977_v2   ;;  %v455_v7 = vpop.f32.mrf.mxu0  ;;  %v475_v8 = vpop.f32.mrf.mxu1  ;;  %v494_v15 = vadd.f32 %v1264_v21, %v493_v5  ;;  %v514_v16 = vadd.f32 %v1264_v21, %v513_v6 }
  0xd6   : > { %v456_v11 = vadd.f32 %v1264_v21, %v455_v7  ;;  %v476_v12 = vadd.f32 %v1264_v21, %v475_v8 }
  0xd7   : > { %v572_v26 = vmul.f32 0.2, %v494_v15  ;;  %v580_v27 = vmul.f32 0.2, %v514_v16  ;;  %vm540_vm13 = vcmp.ge.f32.partialorder %v494_v15, 0.0  ;;  %vm548_vm14 = vcmp.ge.f32.partialorder %v514_v16, 0.0 }
  0xd8   : > { %vm525_vm11 = vcmp.ge.f32.partialorder %v456_v11, 0.0  ;;  %v557_v13 = vmul.f32 0.2, %v456_v11  ;;  %vm533_vm12 = vcmp.ge.f32.partialorder %v476_v12, 0.0  ;;  %v565_v14 = vmul.f32 0.2, %v476_v12 }
  0xd9   : > { %v604_v32 = vsel %vm540_vm13, %v494_v15, %v572_v26  ;;  %v612_v33 = vsel %vm548_vm14, %v514_v16, %v580_v27 }
  0xda   : > { %v589_v19 = vsel %vm525_vm11, %v456_v11, %v557_v13  ;;  %v597_v20 = vsel %vm533_vm12, %v476_v12, %v565_v14 }
  0xdb   : > { %v922_v22 = vpack.c.bf16 %v589_v19, %v588_v17  ;;  %v942_v23 = vpack.c.bf16 %v597_v20, %v596_v18 }
  0xdc   : > { %v495_v24 = vpop.f32.mrf.mxu2  ;;  %v515_v25 = vpop.f32.mrf.mxu3 }
  0xdd   : > { %986 = vst [vmem:[%s1277_s11 + $0x18] sm:$0xff] %v922_v22   ;;  %v496_v28 = vadd.f32 %v1264_v21, %v495_v24  ;;  %v516_v29 = vadd.f32 %v1264_v21, %v515_v25 }
  0xde   : > { %990 = vst [vmem:[%s1277_s11 + $0x38] sm:$0xff] %v942_v23  }
  0xdf   : > { %vm541_vm15 = vcmp.ge.f32.partialorder %v496_v28, 0.0  ;;  %v573_v30 = vmul.f32 0.2, %v496_v28  ;;  %vm549_vm0 = vcmp.ge.f32.partialorder %v516_v29, 0.0  ;;  %v581_v31 = vmul.f32 0.2, %v516_v29 }
  0xe1   : > { %v605_v34 = vsel %vm541_vm15, %v496_v28, %v573_v30  ;;  %v613_v35 = vsel %vm549_vm0, %v516_v29, %v581_v31 }
  0xe2   : > { %v962_v36 = vpack.c.bf16 %v605_v34, %v604_v32  ;;  %v982_v37 = vpack.c.bf16 %v613_v35, %v612_v33 }
  0xe4   : > { %994 = vst [vmem:[%s1277_s11 + $0x58] sm:$0xff] %v962_v36  }
  0xe5   : > { %998 = vst [vmem:[%s1277_s11 + $0x78] sm:$0xff] %v982_v37  }
  0xe6 PF: > { %s15_s14 = sadd.s32 1, %s1146_s14   ;;  %s1336_s12 = smov %s1142_s13 }
  0xe7   : > { %p12_p8 = scmp.ge.s32.totalorder %s15_s14, 4   ;;  %s1337_s13 = smov %s1339_s16 }
  0xe9   :  { %14 = sbr.rel (!%p12_p8) target bundleno = 3 (0x3), region = 73 }
  0xee   :  { %706 = vsyncpa [#allocation3], 1 }
  0xef   :  { %708 = vsyncpa [#allocation3 + $0x1], 1 }
  0xf0   :  { %709 = vsyncpa [#allocation5], 1 }

// kernel: _lambda_.6
= control target key start
LH: loop header
LB: loop body
LE: loop exit
PB: predicated region body
PF: predicated region fallthrough
CT: control target
= control target key end

     0   :  { %s1909_s9 = smov 0   ;;  %s1911_s10 = smov 0   ;;  %s2230_s0 = inlined_call_operand.vmem [shape: bf16[128,1024], index: 0, kind: input, shape index: {}]   ;;  %s2231_s1 = inlined_call_operand.vmem [shape: bf16[1024,128], index: 1, kind: input, shape index: {}]   ;;  %s2232_s2 = inlined_call_operand.vmem [shape: bf16[128,128], index: 2, kind: output, shape index: {}]  }
   0x1   :  { %s1913_s11 = smov 0  }
   0x2 LB: > { %s21_s12 = sadd.s32 1, %s1887_s10  ;;  %p1328_p0 = scmp.ge.s32.totalorder %s1891_s11, 1  ;;  %s1891_s11 = sphi %s1913_s11, %s12_s11   ;;  %s1887_s10 = sphi %s1911_s10, %s2234_s10   ;;  %s1883_s9 = sphi %s1909_s9, %s2233_s9  }
   0x3   : > { %p22_p1 = scmp.ge.s32.totalorder %s21_s12, 2  ;;  %p137_p2 = scmp.lt.s32.totalorder %s1891_s11, 3 }
   0x5   : > { %s2236_s12 = smov (%p22_p1, %s21_s12), 0  ;;  %p138_p3 = pnand %p1328_p0, %p137_p2 }
   0x6   : > { %s1329_s13 = sshll.u32 (!%p138_p3), %s1883_s9, 3 }
   0x7   : > { %141 = sbr.rel (%p138_p3) target bundleno = 384 (0x180), region = 28  ;;  %p168_p4 = scmp.lt.s32.totalorder (!%p138_p3), %s1329_s13, 15 }
   0xc   : > { %v1760_v0 = vld [vmem:[%s2231_s1 + $0x38] sm:$0xff]  ;;  %v1759_v4 = vld [vmem:[%s2231_s1 + $0x30] sm:$0xff]  ;;  %v1758_v8 = vld [vmem:[%s2231_s1 + $0x28] sm:$0xff]  ;;  %s2238_s13 = smov (!%p168_p4, %s1329_s13), 15 }
   0xd   : > { %v1768_v1 = vld [vmem:[%s2231_s1 + $0x78] sm:$0xff]  ;;  %891 = vmatpush.bf16.msra.mxu0 %v1760_v0  ;;  %v1767_v5 = vld [vmem:[%s2231_s1 + $0x70] sm:$0xff]  ;;  %v1766_v9 = vld [vmem:[%s2231_s1 + $0x68] sm:$0xff]  ;;  %s1720_s14 = sshll.u32 %s2238_s13, 5 }
   0xe   : > { %v1776_v2 = vld [vmem:[%s2231_s1 + $0xb8] sm:$0xff]  ;;  %920 = vmatpush.bf16.msra.mxu1 %v1768_v1  ;;  %v1775_v6 = vld [vmem:[%s2231_s1 + $0xb0] sm:$0xff]  ;;  %v1774_v10 = vld [vmem:[%s2231_s1 + $0xa8] sm:$0xff]  ;;  %s2014_s21 = scalar_lea.vmem %s2230_s0, %s1720_s14 }
   0xf   : > { %v1784_v3 = vld [vmem:[%s2231_s1 + $0xf8] sm:$0xff]  ;;  %949 = vmatpush.bf16.msra.mxu2 %v1776_v2  ;;  %v1783_v7 = vld [vmem:[%s2231_s1 + $0xf0] sm:$0xff]  ;;  %v1782_v11 = vld [vmem:[%s2231_s1 + $0xe8] sm:$0xff] }
  0x10   : > { %978 = vmatpush.bf16.msra.mxu3 %v1784_v3  ;;  %v1757_v12 = vld [vmem:[%s2231_s1 + $0x20] sm:$0xff]  ;;  %v1756_v16 = vld [vmem:[%s2231_s1 + $0x18] sm:$0xff]  ;;  %v1755_v20 = vld [vmem:[%s2231_s1 + $0x10] sm:$0xff] }
  0x11   : > { %892 = vmatpush.bf16.msra.mxu0 %v1759_v4  ;;  %v1765_v13 = vld [vmem:[%s2231_s1 + $0x60] sm:$0xff]  ;;  %v1764_v17 = vld [vmem:[%s2231_s1 + $0x58] sm:$0xff]  ;;  %v1763_v21 = vld [vmem:[%s2231_s1 + $0x50] sm:$0xff] }
  0x12   : > { %921 = vmatpush.bf16.msra.mxu1 %v1767_v5  ;;  %v1773_v14 = vld [vmem:[%s2231_s1 + $0xa0] sm:$0xff]  ;;  %v1772_v18 = vld [vmem:[%s2231_s1 + $0x98] sm:$0xff]  ;;  %v1771_v22 = vld [vmem:[%s2231_s1 + $0x90] sm:$0xff] }
  0x13   : > { %950 = vmatpush.bf16.msra.mxu2 %v1775_v6  ;;  %v1781_v15 = vld [vmem:[%s2231_s1 + $0xe0] sm:$0xff]  ;;  %v1780_v19 = vld [vmem:[%s2231_s1 + $0xd8] sm:$0xff]  ;;  %v1779_v23 = vld [vmem:[%s2231_s1 + $0xd0] sm:$0xff] }
  0x14   : > { %979 = vmatpush.bf16.msra.mxu3 %v1783_v7  ;;  %v1754_v24 = vld [vmem:[%s2231_s1 + $0x8] sm:$0xff]  ;;  %v1753_v28 = vld [vmem:[%s2231_s1] sm:$0xff]  ;;  %v1808_v40 = vld [vmem:[%s2231_s1 + $0x1b8] sm:$0xff] }
  0x15   : > { %893 = vmatpush.bf16.msra.mxu0 %v1758_v8  ;;  %v1762_v25 = vld [vmem:[%s2231_s1 + $0x48] sm:$0xff]  ;;  %v1761_v29 = vld [vmem:[%s2231_s1 + $0x40] sm:$0xff]  ;;  %v1792_v41 = vld [vmem:[%s2231_s1 + $0x138] sm:$0xff] }
  0x16   : > { %922 = vmatpush.bf16.msra.mxu1 %v1766_v9  ;;  %v1770_v26 = vld [vmem:[%s2231_s1 + $0x88] sm:$0xff]  ;;  %v1769_v30 = vld [vmem:[%s2231_s1 + $0x80] sm:$0xff]  ;;  %v1816_v46 = vld [vmem:[%s2231_s1 + $0x1f8] sm:$0xff] }
  0x17   : > { %951 = vmatpush.bf16.msra.mxu2 %v1774_v10  ;;  %v1778_v27 = vld [vmem:[%s2231_s1 + $0xc8] sm:$0xff]  ;;  %v1777_v31 = vld [vmem:[%s2231_s1 + $0xc0] sm:$0xff]  ;;  %v1800_v47 = vld [vmem:[%s2231_s1 + $0x178] sm:$0xff] }
  0x18   : > { %980 = vmatpush.bf16.msra.mxu3 %v1782_v11  ;;  %v1336_v32 = vld [vmem:[%s2014_s21] sm:$0xf]  ;;  %v1721_v34 = vld [vmem:[%s2014_s21 + $0x4] sm:$0xf]  ;;  %v1344_v36 = vld [vmem:[%s2014_s21 + $0x8] sm:$0xf] }
  0x19   : > { %894 = vmatpush.bf16.msra.mxu0 %v1757_v12  ;;  %v1725_v33 = vld [vmem:[%s2014_s21 + $0x1c] sm:$0xf0]  ;;  %v1338_v35 = vld [vmem:[%s2014_s21 + $0x20] sm:$0xf0]  ;;  %v1726_v37 = vld [vmem:[%s2014_s21 + $0x24] sm:$0xf0] }
  0x1a   : > { %923 = vmatpush.bf16.msra.mxu1 %v1765_v13  ;;  %v1722_v38 = vld [vmem:[%s2014_s21 + $0xc] sm:$0xf]  ;;  %v1337_v42 = vor.u32 %v1725_v33, %v1336_v32  ;;  %v1341_v43 = vor.u32 %v1721_v34, %v1338_v35  ;;  %v1345_v44 = vor.u32 %v1726_v37, %v1344_v36  ;;  %v1807_v48 = vld [vmem:[%s2231_s1 + $0x1b0] sm:$0xff]  ;;  %v1368_v56 = vld [vmem:[%s2014_s21 + $0x40] sm:$0xf] }
  0x1b   : > { %952 = vmatpush.bf16.msra.mxu2 %v1773_v14  ;;  %v1346_v39 = vld [vmem:[%s2014_s21 + $0x28] sm:$0xf0]  ;;  %v1791_v49 = vld [vmem:[%s2231_s1 + $0x130] sm:$0xff]  ;;  %v1805_v57 = vld [vmem:[%s2231_s1 + $0x1a0] sm:$0xff] }
  0x1c   : > { %981 = vmatpush.bf16.msra.mxu3 %v1781_v15  ;;  %v1349_v45 = vor.u32 %v1722_v38, %v1346_v39  ;;  %v1815_v50 = vld [vmem:[%s2231_s1 + $0x1f0] sm:$0xff]  ;;  %v1806_v52 = vld [vmem:[%s2231_s1 + $0x1a8] sm:$0xff]  ;;  %v1789_v58 = vld [vmem:[%s2231_s1 + $0x120] sm:$0xff] }
  0x1d   : > { %895 = vmatpush.bf16.msra.mxu0 %v1756_v16  ;;  %v1799_v51 = vld [vmem:[%s2231_s1 + $0x170] sm:$0xff]  ;;  %v1790_v53 = vld [vmem:[%s2231_s1 + $0x128] sm:$0xff]  ;;  %v1733_v59 = vld [vmem:[%s2014_s21 + $0x5c] sm:$0xf0] }
  0x1e   : > { %924 = vmatpush.bf16.msra.mxu1 %v1764_v17  ;;  %v1814_v54 = vld [vmem:[%s2231_s1 + $0x1e8] sm:$0xff]  ;;  %v1729_v60 = vld [vmem:[%s2014_s21 + $0x44] sm:$0xf]  ;;  %v1804_v4 = vld [vmem:[%s2231_s1 + $0x198] sm:$0xff]  ;;  %v1369_v6 = vor.u32 %v1733_v59, %v1368_v56 }
  0x1f   : > { %953 = vmatpush.bf16.msra.mxu2 %v1772_v18  ;;  %v1798_v55 = vld [vmem:[%s2231_s1 + $0x168] sm:$0xff]  ;;  %v1370_v61 = vld [vmem:[%s2014_s21 + $0x60] sm:$0xf0]  ;;  %v1788_v5 = vld [vmem:[%s2231_s1 + $0x118] sm:$0xff] }
  0x20   : > { %982 = vmatpush.bf16.msra.mxu3 %v1780_v19  ;;  %v1376_v62 = vld [vmem:[%s2014_s21 + $0x48] sm:$0xf]  ;;  %v1730_v0 = vld [vmem:[%s2014_s21 + $0x4c] sm:$0xf]  ;;  %v1813_v2 = vld [vmem:[%s2231_s1 + $0x1e0] sm:$0xff]  ;;  %v1373_v7 = vor.u32 %v1729_v60, %v1370_v61 }
  0x21   : > { %896 = vmatpush.bf16.msra.mxu0 %v1755_v20  ;;  %v1734_v63 = vld [vmem:[%s2014_s21 + $0x64] sm:$0xf0]  ;;  %v1378_v1 = vld [vmem:[%s2014_s21 + $0x68] sm:$0xf0]  ;;  %v1797_v3 = vld [vmem:[%s2231_s1 + $0x160] sm:$0xff] }
  0x22   : > { %925 = vmatpush.bf16.msra.mxu1 %v1763_v21  ;;  %v1377_v8 = vor.u32 %v1734_v63, %v1376_v62  ;;  %v1381_v9 = vor.u32 %v1730_v0, %v1378_v1  ;;  %v1812_v10 = vld [vmem:[%s2231_s1 + $0x1d8] sm:$0xff]  ;;  %v1803_v12 = vld [vmem:[%s2231_s1 + $0x190] sm:$0xff]  ;;  %v1802_v16 = vld [vmem:[%s2231_s1 + $0x188] sm:$0xff] }
  0x23   : > { %954 = vmatpush.bf16.msra.mxu2 %v1771_v22  ;;  %v1796_v11 = vld [vmem:[%s2231_s1 + $0x158] sm:$0xff]  ;;  %v1787_v13 = vld [vmem:[%s2231_s1 + $0x110] sm:$0xff]  ;;  %v1786_v17 = vld [vmem:[%s2231_s1 + $0x108] sm:$0xff] }
  0x24   : > { %983 = vmatpush.bf16.msra.mxu3 %v1779_v23  ;;  %v1811_v14 = vld [vmem:[%s2231_s1 + $0x1d0] sm:$0xff]  ;;  %v1810_v18 = vld [vmem:[%s2231_s1 + $0x1c8] sm:$0xff]  ;;  %v1400_v20 = vld [vmem:[%s2014_s21 + $0x80] sm:$0xf] }
  0x25   : > { %897 = vmatpush.bf16.msra.mxu0 %v1754_v24  ;;  %v1795_v15 = vld [vmem:[%s2231_s1 + $0x150] sm:$0xff]  ;;  %v1794_v19 = vld [vmem:[%s2231_s1 + $0x148] sm:$0xff]  ;;  %v1801_v21 = vld [vmem:[%s2231_s1 + $0x180] sm:$0xff] }
  0x26   : > { %926 = vmatpush.bf16.msra.mxu1 %v1762_v25  ;;  %v1785_v22 = vld [vmem:[%s2231_s1 + $0x100] sm:$0xff]  ;;  %v1384_v60 = vld [vmem:[%s2014_s21 + $0x50] sm:$0xf]  ;;  %v1731_v62 = vld [vmem:[%s2014_s21 + $0x54] sm:$0xf] }
  0x27   : > { %955 = vmatpush.bf16.msra.mxu2 %v1770_v26  ;;  %v1741_v23 = vld [vmem:[%s2014_s21 + $0x9c] sm:$0xf0]  ;;  %v1737_v24 = vld [vmem:[%s2014_s21 + $0x84] sm:$0xf]  ;;  %v1408_v26 = vld [vmem:[%s2014_s21 + $0x88] sm:$0xf] }
  0x28   : > { %984 = vmatpush.bf16.msra.mxu3 %v1778_v27  ;;  %v1402_v25 = vld [vmem:[%s2014_s21 + $0xa0] sm:$0xf0]  ;;  %v1742_v27 = vld [vmem:[%s2014_s21 + $0xa4] sm:$0xf0]  ;;  %v1401_v32 = vor.u32 %v1741_v23, %v1400_v20  ;;  %v1432_v36 = vld [vmem:[%s2014_s21 + $0xc0] sm:$0xf] }
  0x29   : > { %898 = vmatpush.bf16.msra.mxu0 %v1753_v28  ;;  %v1738_v28 = vld [vmem:[%s2014_s21 + $0x8c] sm:$0xf]  ;;  %v1405_v33 = vor.u32 %v1737_v24, %v1402_v25  ;;  %v1409_v34 = vor.u32 %v1742_v27, %v1408_v26  ;;  %v1749_v37 = vld [vmem:[%s2014_s21 + $0xdc] sm:$0xf0]  ;;  %v1745_v38 = vld [vmem:[%s2014_s21 + $0xc4] sm:$0xf] }
  0x2a   : > { %927 = vmatpush.bf16.msra.mxu1 %v1761_v29  ;;  %v1410_v29 = vld [vmem:[%s2014_s21 + $0xa8] sm:$0xf0]  ;;  %v1434_v39 = vld [vmem:[%s2014_s21 + $0xe0] sm:$0xf0]  ;;  %v1735_v61 = vld [vmem:[%s2014_s21 + $0x6c] sm:$0xf0] }
  0x2b   : > { %956 = vmatpush.bf16.msra.mxu2 %v1769_v30  ;;  %v1809_v30 = vld [vmem:[%s2231_s1 + $0x1c0] sm:$0xff]  ;;  %v1413_v35 = vor.u32 %v1738_v28, %v1410_v29  ;;  %v1386_v63 = vld [vmem:[%s2014_s21 + $0x70] sm:$0xf0]  ;;  %v1392_v0 = vld [vmem:[%s2014_s21 + $0x58] sm:$0xf] }
  0x2c   : > { %985 = vmatpush.bf16.msra.mxu3 %v1777_v31  ;;  %899 = vmatmul.bf16.vlgmr.msra.gmra.mxu0 %v1337_v42  ;;  %v1793_v31 = vld [vmem:[%s2231_s1 + $0x140] sm:$0xff]  ;;  %v1746_v42 = vld [vmem:[%s2014_s21 + $0xcc] sm:$0xf]  ;;  %v1736_v1 = vld [vmem:[%s2014_s21 + $0x74] sm:$0xf0] }
  0x2d   : > { %1007 = vmatpush.bf16.msrb.mxu0 %v1792_v41  ;;  %928 = vmatmul.bf16.vlgmr.msra.gmra.mxu1 %v1341_v43  ;;  %v1750_v41 = vld [vmem:[%s2014_s21 + $0xe4] sm:$0xf0]  ;;  %v1442_v43 = vld [vmem:[%s2014_s21 + $0xe8] sm:$0xf0]  ;;  %v1448_v20 = vld [vmem:[%s2014_s21 + $0xd0] sm:$0xf] }
  0x2e   : > { %957 = vmatmul.bf16.vlgmr.msra.gmra.mxu2 %v1345_v44  ;;  %1036 = vmatpush.bf16.msrb.mxu1 %v1800_v47  ;;  %v1433_v44 = vor.u32 %v1749_v37, %v1432_v36  ;;  %v1445_v47 = vor.u32 %v1746_v42, %v1442_v43  ;;  %v1450_v23 = vld [vmem:[%s2014_s21 + $0xf0] sm:$0xf0]  ;;  %v1456_v24 = vld [vmem:[%s2014_s21 + $0xd8] sm:$0xf]  ;;  %v1748_v26 = vld [vmem:[%s2014_s21 + $0xdc] sm:$0xf] }
  0x2f   : > { %1065 = vmatpush.bf16.msrb.mxu2 %v1808_v40  ;;  %986 = vmatmul.bf16.vlgmr.msra.gmra.mxu3 %v1349_v45  ;;  %v1440_v40 = vld [vmem:[%s2014_s21 + $0xc8] sm:$0xf]  ;;  %v1437_v45 = vor.u32 %v1745_v38, %v1434_v39  ;;  %v1752_v25 = vld [vmem:[%s2014_s21 + $0xf4] sm:$0xf0]  ;;  %v1458_v27 = vld [vmem:[%s2014_s21 + $0xf8] sm:$0xf0] }
  0x30   : > { %1094 = vmatpush.bf16.msrb.mxu3 %v1816_v46  ;;  %v1441_v46 = vor.u32 %v1750_v41, %v1440_v40 }
  0x31   : > { %1008 = vmatpush.bf16.msrb.mxu0 %v1791_v49  ;;  %v1727_v49 = vld [vmem:[%s2014_s21 + $0x2c] sm:$0xf0] }
  0x32   : > { %1037 = vmatpush.bf16.msrb.mxu1 %v1799_v51  ;;  %v1354_v51 = vld [vmem:[%s2014_s21 + $0x30] sm:$0xf0] }
  0x33   : > { %1066 = vmatpush.bf16.msrb.mxu2 %v1807_v48  ;;  %v1352_v48 = vld [vmem:[%s2014_s21 + $0x10] sm:$0xf] }
  0x34   : > { %1095 = vmatpush.bf16.msrb.mxu3 %v1815_v50  ;;  %v1723_v50 = vld [vmem:[%s2014_s21 + $0x14] sm:$0xf]  ;;  %v1353_v56 = vor.u32 %v1727_v49, %v1352_v48 }
  0x35   : > { %1009 = vmatpush.bf16.msrb.mxu0 %v1790_v53  ;;  %v1728_v53 = vld [vmem:[%s2014_s21 + $0x34] sm:$0xf0] }
  0x36   : > { %1038 = vmatpush.bf16.msrb.mxu1 %v1798_v55  ;;  %v1362_v55 = vld [vmem:[%s2014_s21 + $0x38] sm:$0xf0] }
  0x37   : > { %1067 = vmatpush.bf16.msrb.mxu2 %v1806_v52  ;;  %v1360_v52 = vld [vmem:[%s2014_s21 + $0x18] sm:$0xf] }
  0x38   : > { %1096 = vmatpush.bf16.msrb.mxu3 %v1814_v54  ;;  %v1724_v54 = vld [vmem:[%s2014_s21 + $0x1c] sm:$0xf] }
  0x39   : > { %1010 = vmatpush.bf16.msrb.mxu0 %v1789_v58  ;;  %v1361_v58 = vor.u32 %v1728_v53, %v1360_v52  ;;  %v1365_v59 = vor.u32 %v1724_v54, %v1362_v55 }
  0x3a   : > { %1039 = vmatpush.bf16.msrb.mxu1 %v1797_v3  ;;  %v1394_v3 = vld [vmem:[%s2014_s21 + $0x78] sm:$0xf0] }
  0x3b   : > { %1068 = vmatpush.bf16.msrb.mxu2 %v1805_v57  ;;  %v1357_v57 = vor.u32 %v1723_v50, %v1354_v51 }
  0x3c   : > { %1097 = vmatpush.bf16.msrb.mxu3 %v1813_v2  ;;  %904 = vmatmul.bf16.gmra.mxu0 %v1369_v6  ;;  %v1732_v2 = vld [vmem:[%s2014_s21 + $0x5c] sm:$0xf]  ;;  %v1393_v6 = vor.u32 %v1736_v1, %v1392_v0 }
  0x3d   : > { %1011 = vmatpush.bf16.msrb.mxu0 %v1788_v5  ;;  %933 = vmatmul.bf16.gmra.mxu1 %v1373_v7  ;;  %v1389_v5 = vor.u32 %v1731_v62, %v1386_v63  ;;  %v1397_v7 = vor.u32 %v1732_v2, %v1394_v3 }
  0x3e   : > { %962 = vmatmul.bf16.gmra.mxu2 %v1377_v8  ;;  %1040 = vmatpush.bf16.msrb.mxu1 %v1796_v11  ;;  %v1416_v8 = vld [vmem:[%s2014_s21 + $0x90] sm:$0xf]  ;;  %v1418_v11 = vld [vmem:[%s2014_s21 + $0xb0] sm:$0xf0] }
  0x3f   : > { %1069 = vmatpush.bf16.msrb.mxu2 %v1804_v4  ;;  %991 = vmatmul.bf16.gmra.mxu3 %v1381_v9  ;;  %v1385_v4 = vor.u32 %v1735_v61, %v1384_v60  ;;  %v1743_v9 = vld [vmem:[%s2014_s21 + $0xac] sm:$0xf0] }
  0x40   : > { %1098 = vmatpush.bf16.msrb.mxu3 %v1812_v10  ;;  %v1739_v10 = vld [vmem:[%s2014_s21 + $0x94] sm:$0xf] }
  0x41   : > { %1012 = vmatpush.bf16.msrb.mxu0 %v1787_v13  ;;  %v1744_v13 = vld [vmem:[%s2014_s21 + $0xb4] sm:$0xf0] }
  0x42   : > { %1041 = vmatpush.bf16.msrb.mxu1 %v1795_v15  ;;  %v1426_v15 = vld [vmem:[%s2014_s21 + $0xb8] sm:$0xf0] }
  0x43   : > { %1070 = vmatpush.bf16.msrb.mxu2 %v1803_v12  ;;  %v1424_v12 = vld [vmem:[%s2014_s21 + $0x98] sm:$0xf] }
  0x44   : > { %1099 = vmatpush.bf16.msrb.mxu3 %v1811_v14  ;;  %v1740_v14 = vld [vmem:[%s2014_s21 + $0x9c] sm:$0xf] }
  0x45   : > { %1013 = vmatpush.bf16.msrb.mxu0 %v1786_v17  ;;  %v1421_v17 = vor.u32 %v1739_v10, %v1418_v11 }
  0x46   : > { %1042 = vmatpush.bf16.msrb.mxu1 %v1794_v19  ;;  %v1429_v19 = vor.u32 %v1740_v14, %v1426_v15 }
  0x47   : > { %1071 = vmatpush.bf16.msrb.mxu2 %v1802_v16  ;;  %v1417_v16 = vor.u32 %v1743_v9, %v1416_v8 }
  0x48   : > { %1100 = vmatpush.bf16.msrb.mxu3 %v1810_v18  ;;  %v1425_v18 = vor.u32 %v1744_v13, %v1424_v12 }
  0x49   : > { %1014 = vmatpush.bf16.msrb.mxu0 %v1785_v22  ;;  %v1747_v22 = vld [vmem:[%s2014_s21 + $0xd4] sm:$0xf] }
  0x4a   : > { %1043 = vmatpush.bf16.msrb.mxu1 %v1793_v31  ;;  %v1453_v29 = vor.u32 %v1747_v22, %v1450_v23  ;;  %v1461_v31 = vor.u32 %v1748_v26, %v1458_v27 }
  0x4b   : > { %1072 = vmatpush.bf16.msrb.mxu2 %v1801_v21  ;;  %v1751_v21 = vld [vmem:[%s2014_s21 + $0xec] sm:$0xf0]  ;;  %s1333_s21 = sshll.u32 %s2238_s13, 2 }
  0x4c   : > { %1101 = vmatpush.bf16.msrb.mxu3 %v1809_v30  ;;  %909 = vmatmul.bf16.gmra.mxu0 %v1401_v32  ;;  %v1449_v28 = vor.u32 %v1751_v21, %v1448_v20  ;;  %v1457_v30 = vor.u32 %v1752_v25, %v1456_v24  ;;  %s185_s13 = scalar_lea.vmem %s2232_s2, %s1333_s21 }
  0x4d   : > { %938 = vmatmul.bf16.gmra.mxu1 %v1405_v33 }
  0x4e   : > { %967 = vmatmul.bf16.gmra.mxu2 %v1409_v34 }
  0x4f   : > { %996 = vmatmul.bf16.gmra.mxu3 %v1413_v35 }
  0x5c   : > { %914 = vmatmul.bf16.gmra.mxu0 %v1433_v44 }
  0x5d   : > { %943 = vmatmul.bf16.gmra.mxu1 %v1437_v45 }
  0x5e   : > { %972 = vmatmul.bf16.gmra.mxu2 %v1441_v46 }
  0x5f   : > { %1001 = vmatmul.bf16.gmra.mxu3 %v1445_v47 }
  0x6c   : > { %1015 = vmatmul.bf16.vlgmr.msrb.gmra.mxu0 %v1353_v56 }
  0x6d   : > { %1044 = vmatmul.bf16.vlgmr.msrb.gmra.mxu1 %v1357_v57 }
  0x6e   : > { %1073 = vmatmul.bf16.vlgmr.msrb.gmra.mxu2 %v1361_v58 }
  0x6f   : > { %1102 = vmatmul.bf16.vlgmr.msrb.gmra.mxu3 %v1365_v59 }
  0x7c   : > { %1020 = vmatmul.bf16.gmra.mxu0 %v1385_v4 }
  0x7d   : > { %1049 = vmatmul.bf16.gmra.mxu1 %v1389_v5 }
  0x7e   : > { %1078 = vmatmul.bf16.gmra.mxu2 %v1393_v6 }
  0x7f   : > { %1107 = vmatmul.bf16.gmra.mxu3 %v1397_v7 }
  0x8c   : > { %1025 = vmatmul.bf16.gmra.mxu0 %v1417_v16 }
  0x8d   : > { %1054 = vmatmul.bf16.gmra.mxu1 %v1421_v17 }
  0x8e   : > { %1083 = vmatmul.bf16.gmra.mxu2 %v1425_v18 }
  0x8f   : > { %1112 = vmatmul.bf16.gmra.mxu3 %v1429_v19 }
  0x9c   : > { %1030 = vmatmul.bf16.gmra.mxu0 %v1449_v28 }
  0x9d   : > { %1059 = vmatmul.bf16.gmra.mxu1 %v1453_v29 }
  0x9e   : > { %1088 = vmatmul.bf16.gmra.mxu2 %v1457_v30 }
  0x9f   : > { %1117 = vmatmul.bf16.gmra.mxu3 %v1461_v31 }
  0xa9   : > { %v900_v32 = vpop.f32.mrf.mxu0 }
  0xaa   : > { %v929_v33 = vpop.f32.mrf.mxu1 }
  0xab   : > { %v930_v34 = vadd.f32 %v929_v33, %v900_v32 }
  0xb1   : > { %v958_v35 = vpop.f32.mrf.mxu2  ;;  %v902_v38 = vpop.f32.mrf.mxu0 }
  0xb2   : > { %v987_v36 = vpop.f32.mrf.mxu3  ;;  %v959_v37 = vadd.f32 %v958_v35, %v930_v34  ;;  %v931_v39 = vpop.f32.mrf.mxu1 }
  0xb3   : > { %v932_v40 = vadd.f32 %v931_v39, %v902_v38 }
  0xb4   : > { %v988_v41 = vadd.f32 %v987_v36, %v959_v37 }
  0xb9   : > { %v960_v42 = vpop.f32.mrf.mxu2  ;;  %v905_v45 = vpop.f32.mrf.mxu0 }
  0xba   : > { %v989_v43 = vpop.f32.mrf.mxu3  ;;  %v961_v44 = vadd.f32 %v960_v42, %v932_v40  ;;  %v934_v46 = vpop.f32.mrf.mxu1 }
  0xbb   : > { %v935_v47 = vadd.f32 %v934_v46, %v905_v45 }
  0xbc   : > { %v990_v48 = vadd.f32 %v989_v43, %v961_v44 }
  0xc1   : > { %v963_v49 = vpop.f32.mrf.mxu2  ;;  %v907_v52 = vpop.f32.mrf.mxu0 }
  0xc2   : > { %v992_v50 = vpop.f32.mrf.mxu3  ;;  %v964_v51 = vadd.f32 %v963_v49, %v935_v47  ;;  %v936_v53 = vpop.f32.mrf.mxu1 }
  0xc3   : > { %v937_v54 = vadd.f32 %v936_v53, %v907_v52 }
  0xc4   : > { %v993_v55 = vadd.f32 %v992_v50, %v964_v51 }
  0xc9   : > { %v965_v56 = vpop.f32.mrf.mxu2  ;;  %v910_v59 = vpop.f32.mrf.mxu0 }
  0xca   : > { %v994_v57 = vpop.f32.mrf.mxu3  ;;  %v966_v58 = vadd.f32 %v965_v56, %v937_v54  ;;  %v939_v60 = vpop.f32.mrf.mxu1 }
  0xcb   : > { %v940_v61 = vadd.f32 %v939_v60, %v910_v59 }
  0xcc   : > { %v995_v62 = vadd.f32 %v994_v57, %v966_v58 }
  0xd1   : > { %v968_v63 = vpop.f32.mrf.mxu2  ;;  %v912_v2 = vpop.f32.mrf.mxu0 }
  0xd2   : > { %v997_v0 = vpop.f32.mrf.mxu3  ;;  %v969_v1 = vadd.f32 %v968_v63, %v940_v61  ;;  %v941_v3 = vpop.f32.mrf.mxu1 }
  0xd3   : > { %v942_v4 = vadd.f32 %v941_v3, %v912_v2 }
  0xd4   : > { %v998_v5 = vadd.f32 %v997_v0, %v969_v1 }
  0xd9   : > { %v970_v6 = vpop.f32.mrf.mxu2  ;;  %v915_v9 = vpop.f32.mrf.mxu0 }
  0xda   : > { %v999_v7 = vpop.f32.mrf.mxu3  ;;  %v971_v8 = vadd.f32 %v970_v6, %v942_v4  ;;  %v944_v10 = vpop.f32.mrf.mxu1 }
  0xdb   : > { %v945_v63 = vadd.f32 %v944_v10, %v915_v9 }
  0xdc   : > { %v1000_v11 = vadd.f32 %v999_v7, %v971_v8 }
  0xe1   : > { %v973_v12 = vpop.f32.mrf.mxu2  ;;  %v917_v14 = vpop.f32.mrf.mxu0 }
  0xe2   : > { %v1002_v13 = vpop.f32.mrf.mxu3  ;;  %v946_v15 = vpop.f32.mrf.mxu1  ;;  %v974_v1 = vadd.f32 %v973_v12, %v945_v63 }
  0xe4   : > { %v1003_v7 = vadd.f32 %v1002_v13, %v974_v1 }
  0xe9   : > { %v975_v16 = vpop.f32.mrf.mxu2  ;;  %v1016_v18 = vpop.f32.mrf.mxu0 }
  0xea   : > { %v2194_v17 = vpop.f32.mrf.mxu3  ;;  %v1045_v19 = vpop.f32.mrf.mxu1  ;;  %v1017_v22 = vadd.f32 %v1016_v18, %v988_v41 }
  0xec   : > { %v1046_v26 = vadd.f32 %v1045_v19, %v1017_v22  ;;  %v947_v19 = vadd.f32 %v946_v15, %v917_v14 }
  0xee   : > { %v976_v22 = vadd.f32 %v975_v16, %v947_v19 }
  0xf1   : > { %v1074_v20 = vpop.f32.mrf.mxu2  ;;  %v1018_v23 = vpop.f32.mrf.mxu0 }
  0xf2   : > { %v1103_v21 = vpop.f32.mrf.mxu3  ;;  %v1047_v24 = vpop.f32.mrf.mxu1  ;;  %v1019_v25 = vadd.f32 %v1018_v23, %v990_v48  ;;  %v1075_v27 = vadd.f32 %v1074_v20, %v1046_v26 }
  0xf4   : > { %v1048_v28 = vadd.f32 %v1047_v24, %v1019_v25  ;;  %v2196_v34 = vadd.f32 %v1103_v21, %v1075_v27  ;;  %v1893_v25 = vmov 64.0  }
  0xf5   : > { %1865 = vrcp.f32 %v1893_v25 }
  0xf9   : > { %v1076_v29 = vpop.f32.mrf.mxu2  ;;  %v1021_v32 = vpop.f32.mrf.mxu0 }
  0xfa   : > { %v1105_v30 = vpop.f32.mrf.mxu3  ;;  %v1077_v31 = vadd.f32 %v1076_v29, %v1048_v28  ;;  %v1050_v33 = vpop.f32.mrf.mxu1  ;;  %v1022_v36 = vadd.f32 %v1021_v32, %v993_v55 }
  0xfb   : > { %v1866_v13 = vpop.eup %1865 }
  0xfc   : > { %v2198_v35 = vadd.f32 %v1105_v30, %v1077_v31  ;;  %v1051_v38 = vadd.f32 %v1050_v33, %v1022_v36  ;;  %v1137_v31 = vmul.f32 64.0, %v1866_v13  ;;  %vm1141_vm0 = vweird.f32 %v1866_v13 }
  0xfe   : > { %v1123_v37 = vadd.f32 %v2198_v35, %v2196_v34  ;;  %v1138_v36 = vsub.f32 1.0, %v1137_v31 }
 0x101   : > { %v1079_v39 = vpop.f32.mrf.mxu2  ;;  %v1023_v42 = vpop.f32.mrf.mxu0 }
 0x102   : > { %v1108_v40 = vpop.f32.mrf.mxu3  ;;  %v1080_v41 = vadd.f32 %v1079_v39, %v1051_v38  ;;  %v1052_v43 = vpop.f32.mrf.mxu1  ;;  %v1024_v45 = vadd.f32 %v1023_v42, %v995_v62  ;;  %v1139_v39 = vmul.f32 %v1866_v13, %v1138_v36 }
 0x104   : > { %v2202_v44 = vadd.f32 %v1108_v40, %v1080_v41  ;;  %v1053_v47 = vadd.f32 %v1052_v43, %v1024_v45 }
 0x106   : > { %v1124_v46 = vadd.f32 %v1123_v37, %v2202_v44 }
 0x109   : > { %v1081_v48 = vpop.f32.mrf.mxu2  ;;  %v1026_v51 = vpop.f32.mrf.mxu0 }
 0x10a   : > { %v1110_v49 = vpop.f32.mrf.mxu3  ;;  %v1082_v50 = vadd.f32 %v1081_v48, %v1053_v47  ;;  %v1055_v52 = vpop.f32.mrf.mxu1  ;;  %v1027_v54 = vadd.f32 %v1026_v51, %v998_v5 }
 0x10c   : > { %v1111_v53 = vadd.f32 %v1110_v49, %v1082_v50  ;;  %v1056_v56 = vadd.f32 %v1055_v52, %v1027_v54 }
 0x10e   : > { %v1125_v55 = vadd.f32 %v1124_v46, %v1111_v53 }
 0x111   : > { %v1084_v57 = vpop.f32.mrf.mxu2  ;;  %v1028_v60 = vpop.f32.mrf.mxu0 }
 0x112   : > { %v1113_v58 = vpop.f32.mrf.mxu3  ;;  %v1085_v59 = vadd.f32 %v1084_v57, %v1056_v56  ;;  %v1057_v61 = vpop.f32.mrf.mxu1  ;;  %v1029_v62 = vadd.f32 %v1028_v60, %v1000_v11  ;;  %v1005_v11 = vadd.f32 %v2194_v17, %v976_v22  ;;  %v1140_v17 = vadd.f32 %v1866_v13, %v1139_v39 }
 0x114   : > { %v1114_v0 = vadd.f32 %v1113_v58, %v1085_v59  ;;  %v1058_v3 = vadd.f32 %v1057_v61, %v1029_v62  ;;  %v1142_v45 = vsel %vm1141_vm0, %v1866_v13, %v1140_v17 }
 0x116   : > { %v1126_v2 = vadd.f32 %v1125_v55, %v1114_v0 }
 0x119   : > { %v1086_v4 = vpop.f32.mrf.mxu2  ;;  %v1031_v18 = vpop.f32.mrf.mxu0 }
 0x11a   : > { %v1115_v6 = vpop.f32.mrf.mxu3  ;;  %v1087_v8 = vadd.f32 %v1086_v4, %v1058_v3  ;;  %v1032_v20 = vadd.f32 %v1031_v18, %v1003_v7  ;;  %v1060_v21 = vpop.f32.mrf.mxu1 }
 0x11c   : > { %v1116_v5 = vadd.f32 %v1115_v6, %v1087_v8  ;;  %v1061_v24 = vadd.f32 %v1060_v21, %v1032_v20 }
 0x11e   : > { %v1127_v23 = vadd.f32 %v1126_v2, %v1116_v5 }
 0x121   : > { %v1089_v9 = vpop.f32.mrf.mxu2  ;;  %v1033_v26 = vpop.f32.mrf.mxu0 }
 0x122   : > { %v1118_v10 = vpop.f32.mrf.mxu3  ;;  %v1090_v12 = vadd.f32 %v1089_v9, %v1061_v24  ;;  %v1034_v28 = vadd.f32 %v1033_v26, %v1005_v11  ;;  %v1062_v30 = vpop.f32.mrf.mxu1 }
 0x124   : > { %v1119_v27 = vadd.f32 %v1118_v10, %v1090_v12  ;;  %v1063_v14 = vadd.f32 %v1062_v30, %v1034_v28 }
 0x126   : > { %v1128_v29 = vadd.f32 %v1127_v23, %v1119_v27 }
 0x129   : > { %v1091_v15 = vpop.f32.mrf.mxu2 }
 0x12a   : > { %v1092_v32 = vadd.f32 %v1091_v15, %v1063_v14  ;;  %v1120_v16 = vpop.f32.mrf.mxu3 }
 0x12c   : > { %v1121_v33 = vadd.f32 %v1120_v16, %v1092_v32 }
 0x12e   : > { %v1129_v37 = vadd.f32 %v1128_v29, %v1121_v33 }
 0x130   : > { %v1130_v38 = vrot.slane %v1129_v37, 4 }
 0x132   : > { %v1131_v40 = vadd.f32 %v1130_v38, %v1129_v37 }
 0x134   : > { %v1132_v41 = vrot.slane %v1131_v40, 2 }
 0x136   : > { %v1133_v42 = vadd.f32 %v1132_v41, %v1131_v40 }
 0x138   : > { %v1134_v43 = vrot.slane %v1133_v42, 1 }
 0x13a   : > { %v1135_v46 = vadd.f32 %v1134_v43, %v1133_v42 }
 0x13c   : > { %v1143_v47 = vmul.f32 %v1142_v45, %v1135_v46 }
 0x13e   : > { %v1144_v48 = vsub.f32 %v2196_v34, %v1143_v47  ;;  %v1145_v49 = vsub.f32 %v2198_v35, %v1143_v47  ;;  %v1146_v50 = vsub.f32 %v2202_v44, %v1143_v47  ;;  %v1147_v51 = vsub.f32 %v1111_v53, %v1143_v47 }
 0x13f   : > { %v1148_v52 = vsub.f32 %v1114_v0, %v1143_v47  ;;  %v1149_v54 = vsub.f32 %v1116_v5, %v1143_v47  ;;  %v1150_v55 = vsub.f32 %v1119_v27, %v1143_v47  ;;  %v1151_v1 = vsub.f32 %v1121_v33, %v1143_v47 }
 0x140   : > { %v1152_v56 = vmul.f32 %v1144_v48, %v1144_v48  ;;  %v1153_v57 = vmul.f32 %v1145_v49, %v1145_v49  ;;  %v1154_v58 = vmul.f32 %v1146_v50, %v1146_v50  ;;  %v1155_v60 = vmul.f32 %v1147_v51, %v1147_v51 }
 0x141   : > { %v1156_v63 = vmul.f32 %v1148_v52, %v1148_v52  ;;  %v1157_v2 = vmul.f32 %v1149_v54, %v1149_v54  ;;  %v1158_v34 = vmul.f32 %v1150_v55, %v1150_v55  ;;  %v1159_v35 = vmul.f32 %v1151_v1, %v1151_v1 }
 0x142   : > { %v1160_v59 = vadd.f32 %v1153_v57, %v1152_v56 }
 0x144   : > { %v1161_v61 = vadd.f32 %v1160_v59, %v1154_v58 }
 0x146   : > { %v1162_v62 = vadd.f32 %v1161_v61, %v1155_v60 }
 0x148   : > { %v1163_v3 = vadd.f32 %v1162_v62, %v1156_v63 }
 0x14a   : > { %v1164_v4 = vadd.f32 %v1163_v3, %v1157_v2 }
 0x14c   : > { %v1165_v6 = vadd.f32 %v1164_v4, %v1158_v34 }
 0x14e   : > { %v1166_v44 = vadd.f32 %v1165_v6, %v1159_v35 }
 0x150   : > { %v1167_v53 = vrot.slane %v1166_v44, 4 }
 0x152   : > { %v1168_v0 = vadd.f32 %v1167_v53, %v1166_v44 }
 0x154   : > { %v1169_v7 = vrot.slane %v1168_v0, 2 }
 0x156   : > { %v1170_v8 = vadd.f32 %v1169_v7, %v1168_v0 }
 0x158   : > { %v1171_v18 = vrot.slane %v1170_v8, 1 }
 0x15a   : > { %v1172_v19 = vadd.f32 %v1171_v18, %v1170_v8 }
 0x15c   : > { %v1173_v5 = vmul.f32 %v1172_v19, %v1142_v45 }
 0x15e   : > { %v1174_v20 = vadd.f32 1e-05, %v1173_v5 }
 0x160   : > { %1867 = vrsqrt.f32 %v1174_v20  ;;  %vm1181_vm2 = vweird.f32 %v1174_v20 }
 0x166   : > { %v1868_v21 = vpop.eup %1867 }
 0x167   : > { %v1176_v22 = vmul.f32 %v1868_v21, %v1174_v20  ;;  %vm1182_vm1 = vweird.f32 %v1868_v21 }
 0x168   : > { %vm1183_vm3 = vmor %vm1181_vm2, %vm1182_vm1 }
 0x169   : > { %v1177_v23 = vmul.f32 %v1868_v21, %v1176_v22 }
 0x16b   : > { %v1178_v24 = vmul.f32 0.5, %v1177_v23 }
 0x16d   : > { %v1179_v25 = vsub.f32 1.5, %v1178_v24 }
 0x16f   : > { %v1180_v9 = vmul.f32 %v1868_v21, %v1179_v25 }
 0x171   : > { %v1184_v10 = vsel %vm1183_vm3, %v1868_v21, %v1180_v9 }
 0x172   : > { %v1185_v11 = vmul.f32 %v1184_v10, %v1144_v48  ;;  %v1186_v12 = vmul.f32 %v1184_v10, %v1145_v49  ;;  %v1187_v26 = vmul.f32 %v1184_v10, %v1146_v50  ;;  %v1188_v27 = vmul.f32 %v1184_v10, %v1147_v51 }
 0x173   : > { %v1189_v28 = vmul.f32 %v1184_v10, %v1148_v52  ;;  %v1190_v13 = vmul.f32 %v1184_v10, %v1149_v54  ;;  %v1191_v29 = vmul.f32 %v1184_v10, %v1150_v55  ;;  %v1192_v30 = vmul.f32 %v1184_v10, %v1151_v1 }
 0x174   : > { %vm1193_vm4 = vcmp.ge.f32.partialorder %v1185_v11, 0.0  ;;  %vm1194_vm5 = vcmp.ge.f32.partialorder %v1186_v12, 0.0  ;;  %vm1195_vm6 = vcmp.ge.f32.partialorder %v1187_v26, 0.0  ;;  %vm1196_vm7 = vcmp.ge.f32.partialorder %v1188_v27, 0.0 }
 0x175   : > { %vm1197_vm8 = vcmp.ge.f32.partialorder %v1189_v28, 0.0  ;;  %vm1198_vm9 = vcmp.ge.f32.partialorder %v1190_v13, 0.0  ;;  %vm1199_vm10 = vcmp.ge.f32.partialorder %v1191_v29, 0.0  ;;  %vm1200_vm11 = vcmp.ge.f32.partialorder %v1192_v30, 0.0 }
 0x176   : > { %v1201_v14 = vmul.f32 0.2, %v1185_v11  ;;  %v1202_v15 = vmul.f32 0.2, %v1186_v12  ;;  %v1203_v31 = vmul.f32 0.2, %v1187_v26 }
 0x177   : > { %v1204_v32 = vmul.f32 0.2, %v1188_v27  ;;  %v1205_v16 = vmul.f32 0.2, %v1189_v28  ;;  %v1206_v33 = vmul.f32 0.2, %v1190_v13 }
 0x178   : > { %v1207_v36 = vmul.f32 0.2, %v1191_v29  ;;  %v1208_v37 = vmul.f32 0.2, %v1192_v30  ;;  %v1209_v38 = vsel %vm1193_vm4, %v1185_v11, %v1201_v14  ;;  %v1210_v39 = vsel %vm1194_vm5, %v1186_v12, %v1202_v15 }
 0x179   : > { %v1211_v40 = vsel %vm1195_vm6, %v1187_v26, %v1203_v31  ;;  %v1212_v41 = vsel %vm1196_vm7, %v1188_v27, %v1204_v32  ;;  %v1213_v17 = vsel %vm1197_vm8, %v1189_v28, %v1205_v16  ;;  %v1214_v42 = vsel %vm1198_vm9, %v1190_v13, %v1206_v33 }
 0x17a   : > { %v1215_v43 = vsel %vm1199_vm10, %v1191_v29, %v1207_v36  ;;  %v1216_v45 = vsel %vm1200_vm11, %v1192_v30, %v1208_v37  ;;  %v1820_v46 = vpack.c.bf16 %v1210_v39, %v1209_v38  ;;  %v1825_v47 = vpack.c.bf16 %v1212_v41, %v1211_v40 }
 0x17b   : > { %v1830_v48 = vpack.c.bf16 %v1214_v42, %v1213_v17  ;;  %v1835_v49 = vpack.c.bf16 %v1216_v45, %v1215_v43 }
 0x17c   : > { %1821 = vst [vmem:[%s185_s13] sm:$0xff] %v1820_v46  }
 0x17d   : > { %1837 = vst [vmem:[%s185_s13 + $0x8] sm:$0xff] %v1825_v47  }
 0x17e   : > { %1838 = vst [vmem:[%s185_s13 + $0x10] sm:$0xff] %v1830_v48  }
 0x17f   : > { %1839 = vst [vmem:[%s185_s13 + $0x18] sm:$0xff] %v1835_v49  }
 0x180 PF: > { %s12_s11 = sadd.s32 1, %s1891_s11   ;;  %s2233_s9 = smov %s1887_s10 }
 0x181   : > { %p9_p5 = scmp.ge.s32.totalorder %s12_s11, 4   ;;  %s2234_s10 = smov %s2236_s12 }
 0x183   :  { %11 = sbr.rel (!%p9_p5) target bundleno = 2 (0x2), region = 61 }

// kernel: _lambda_.7
= control target key start
LH: loop header
LB: loop body
LE: loop exit
PB: predicated region body
PF: predicated region fallthrough
CT: control target
= control target key end

     0   :  { %s3912_s9 = smov 0   ;;  %s3914_s10 = smov 0   ;;  %s5608_s0 = inlined_call_operand.vmem [shape: bf16[32,2048], index: 0, kind: input, shape index: {}]   ;;  %s5609_s1 = inlined_call_operand.vmem [shape: bf16[2048,256], index: 1, kind: input, shape index: {}]   ;;  %s5610_s2 = inlined_call_operand.vmem [shape: bf16[32,256], index: 2, kind: output, shape index: {}]  }
   0x1   :  { %s3916_s11 = smov 0  }
   0x2 LB: > { %s21_s12 = sadd.s32 1, %s3890_s10  ;;  %p2470_p0 = scmp.ge.s32.totalorder %s3894_s11, 1  ;;  %s3894_s11 = sphi %s3916_s11, %s12_s11   ;;  %s3890_s10 = sphi %s3914_s10, %s5612_s10   ;;  %s3886_s9 = sphi %s3912_s9, %s5611_s9  }
   0x3   : > { %p22_p1 = scmp.ge.s32.totalorder %s21_s12, 2  ;;  %p139_p2 = scmp.lt.s32.totalorder %s3894_s11, 3 }
   0x5   : > { %s5614_s12 = smov (%p22_p1, %s21_s12), 0  ;;  %p140_p3 = pnand %p2470_p0, %p139_p2 }
   0x6   : > { %s2471_s29 = sshll.u32 (!%p140_p3), %s3886_s9, 1 }
   0x7   : > { %143 = sbr.rel (%p140_p3) target bundleno = 481 (0x1e1), region = 28  ;;  %p173_p4 = scmp.lt.s32.totalorder (!%p140_p3), %s2471_s29, 3 }
   0xc   : > { %v2599_v0 = vld [vmem:[%s5609_s1 + $0x70] sm:$0xf]  ;;  %v3600_v1 = vld [vmem:[%s5609_s1 + $0x74] sm:$0xf0]  ;;  %v2591_v11 = vld [vmem:[%s5609_s1 + $0x60] sm:$0xf] }
   0xd   : > { %v2663_v2 = vld [vmem:[%s5609_s1 + $0xf0] sm:$0xf]  ;;  %v2600_v3 = vor.u32 %v3600_v1, %v2599_v0  ;;  %v3616_v4 = vld [vmem:[%s5609_s1 + $0xf4] sm:$0xf0]  ;;  %v3598_v13 = vld [vmem:[%s5609_s1 + $0x64] sm:$0xf0] }
   0xe   : > { %v2727_v5 = vld [vmem:[%s5609_s1 + $0x170] sm:$0xf]  ;;  %v3632_v6 = vld [vmem:[%s5609_s1 + $0x174] sm:$0xf0]  ;;  %v2664_v7 = vor.u32 %v3616_v4, %v2663_v2  ;;  %v2655_v14 = vld [vmem:[%s5609_s1 + $0xe0] sm:$0xf]  ;;  %v2592_v16 = vor.u32 %v3598_v13, %v2591_v11 }
   0xf   : > { %v2728_v8 = vor.u32 %v3632_v6, %v2727_v5  ;;  %v2791_v9 = vld [vmem:[%s5609_s1 + $0x1f0] sm:$0xf]  ;;  %v3648_v10 = vld [vmem:[%s5609_s1 + $0x1f4] sm:$0xf0]  ;;  %1829 = vmatpush.bf16.msra.mxu0 %v2600_v3  ;;  %v3614_v15 = vld [vmem:[%s5609_s1 + $0xe4] sm:$0xf0] }
  0x10   : > { %v2792_v12 = vor.u32 %v3648_v10, %v2791_v9  ;;  %1843 = vmatpush.bf16.msra.mxu1 %v2664_v7  ;;  %v2656_v17 = vor.u32 %v3614_v15, %v2655_v14  ;;  %v2719_v18 = vld [vmem:[%s5609_s1 + $0x160] sm:$0xf]  ;;  %v3630_v19 = vld [vmem:[%s5609_s1 + $0x164] sm:$0xf0]  ;;  %v2583_v23 = vld [vmem:[%s5609_s1 + $0x50] sm:$0xf] }
  0x11   : > { %1857 = vmatpush.bf16.msra.mxu2 %v2728_v8  ;;  %v2783_v20 = vld [vmem:[%s5609_s1 + $0x1e0] sm:$0xf]  ;;  %v2720_v21 = vor.u32 %v3630_v19, %v2719_v18  ;;  %v3646_v22 = vld [vmem:[%s5609_s1 + $0x1e4] sm:$0xf0]  ;;  %v3596_v24 = vld [vmem:[%s5609_s1 + $0x54] sm:$0xf0] }
  0x12   : > { %1871 = vmatpush.bf16.msra.mxu3 %v2792_v12  ;;  %v2784_v25 = vor.u32 %v3646_v22, %v2783_v20  ;;  %v2647_v26 = vld [vmem:[%s5609_s1 + $0xd0] sm:$0xf]  ;;  %v3612_v27 = vld [vmem:[%s5609_s1 + $0xd4] sm:$0xf0]  ;;  %v2584_v29 = vor.u32 %v3596_v24, %v2583_v23  ;;  %v2575_v35 = vld [vmem:[%s5609_s1 + $0x40] sm:$0xf] }
  0x13   : > { %v2711_v28 = vld [vmem:[%s5609_s1 + $0x150] sm:$0xf]  ;;  %1830 = vmatpush.bf16.msra.mxu0 %v2592_v16  ;;  %v3628_v30 = vld [vmem:[%s5609_s1 + $0x154] sm:$0xf0]  ;;  %v2648_v33 = vor.u32 %v3612_v27, %v2647_v26  ;;  %v3594_v36 = vld [vmem:[%s5609_s1 + $0x44] sm:$0xf0] }
  0x14   : > { %v2775_v31 = vld [vmem:[%s5609_s1 + $0x1d0] sm:$0xf]  ;;  %v3644_v32 = vld [vmem:[%s5609_s1 + $0x1d4] sm:$0xf0]  ;;  %1844 = vmatpush.bf16.msra.mxu1 %v2656_v17  ;;  %v2712_v34 = vor.u32 %v3628_v30, %v2711_v28  ;;  %v2639_v37 = vld [vmem:[%s5609_s1 + $0xc0] sm:$0xf]  ;;  %v2576_v44 = vor.u32 %v3594_v36, %v2575_v35 }
  0x15   : > { %1858 = vmatpush.bf16.msra.mxu2 %v2720_v21  ;;  %v2776_v38 = vor.u32 %v3644_v32, %v2775_v31  ;;  %v3610_v39 = vld [vmem:[%s5609_s1 + $0xc4] sm:$0xf0]  ;;  %v2703_v40 = vld [vmem:[%s5609_s1 + $0x140] sm:$0xf]  ;;  %v2567_v47 = vld [vmem:[%s5609_s1 + $0x30] sm:$0xf] }
  0x16   : > { %1872 = vmatpush.bf16.msra.mxu3 %v2784_v25  ;;  %v3626_v41 = vld [vmem:[%s5609_s1 + $0x144] sm:$0xf0]  ;;  %v2767_v42 = vld [vmem:[%s5609_s1 + $0x1c0] sm:$0xf]  ;;  %v2640_v45 = vor.u32 %v3610_v39, %v2639_v37  ;;  %v3592_v48 = vld [vmem:[%s5609_s1 + $0x34] sm:$0xf0] }
  0x17   : > { %v3642_v43 = vld [vmem:[%s5609_s1 + $0x1c4] sm:$0xf0]  ;;  %1831 = vmatpush.bf16.msra.mxu0 %v2584_v29  ;;  %v2704_v46 = vor.u32 %v3626_v41, %v2703_v40  ;;  %v2631_v49 = vld [vmem:[%s5609_s1 + $0xb0] sm:$0xf]  ;;  %v3608_v51 = vld [vmem:[%s5609_s1 + $0xb4] sm:$0xf0]  ;;  %v2568_v56 = vor.u32 %v3592_v48, %v2567_v47 }
  0x18   : > { %1845 = vmatpush.bf16.msra.mxu1 %v2648_v33  ;;  %v2768_v50 = vor.u32 %v3642_v43, %v2767_v42  ;;  %v2695_v52 = vld [vmem:[%s5609_s1 + $0x130] sm:$0xf]  ;;  %v3624_v53 = vld [vmem:[%s5609_s1 + $0x134] sm:$0xf0]  ;;  %v2632_v57 = vor.u32 %v3608_v51, %v2631_v49  ;;  %v2559_v59 = vld [vmem:[%s5609_s1 + $0x20] sm:$0xf] }
  0x19   : > { %1859 = vmatpush.bf16.msra.mxu2 %v2712_v34  ;;  %v2759_v54 = vld [vmem:[%s5609_s1 + $0x1b0] sm:$0xf]  ;;  %v3640_v55 = vld [vmem:[%s5609_s1 + $0x1b4] sm:$0xf0]  ;;  %v2696_v58 = vor.u32 %v3624_v53, %v2695_v52  ;;  %v3590_v60 = vld [vmem:[%s5609_s1 + $0x24] sm:$0xf0] }
  0x1a   : > { %1873 = vmatpush.bf16.msra.mxu3 %v2776_v38  ;;  %v2623_v61 = vld [vmem:[%s5609_s1 + $0xa0] sm:$0xf]  ;;  %v2760_v62 = vor.u32 %v3640_v55, %v2759_v54  ;;  %v3606_v63 = vld [vmem:[%s5609_s1 + $0xa4] sm:$0xf0]  ;;  %v2560_v4 = vor.u32 %v3590_v60, %v2559_v59  ;;  %v2551_v7 = vld [vmem:[%s5609_s1 + $0x10] sm:$0xf] }
  0x1b   : > { %1832 = vmatpush.bf16.msra.mxu0 %v2576_v44  ;;  %v2687_v0 = vld [vmem:[%s5609_s1 + $0x120] sm:$0xf]  ;;  %v3622_v1 = vld [vmem:[%s5609_s1 + $0x124] sm:$0xf0]  ;;  %v2624_v5 = vor.u32 %v3606_v63, %v2623_v61  ;;  %v3588_v8 = vld [vmem:[%s5609_s1 + $0x14] sm:$0xf0] }
  0x1c   : > { %1846 = vmatpush.bf16.msra.mxu1 %v2640_v45  ;;  %v2751_v2 = vld [vmem:[%s5609_s1 + $0x1a0] sm:$0xf]  ;;  %v3638_v3 = vld [vmem:[%s5609_s1 + $0x1a4] sm:$0xf0]  ;;  %v2688_v6 = vor.u32 %v3622_v1, %v2687_v0  ;;  %v2615_v9 = vld [vmem:[%s5609_s1 + $0x90] sm:$0xf]  ;;  %v2552_v16 = vor.u32 %v3588_v8, %v2551_v7 }
  0x1d   : > { %1860 = vmatpush.bf16.msra.mxu2 %v2704_v46  ;;  %v2752_v10 = vor.u32 %v3638_v3, %v2751_v2  ;;  %v3604_v11 = vld [vmem:[%s5609_s1 + $0x94] sm:$0xf0]  ;;  %v2679_v12 = vld [vmem:[%s5609_s1 + $0x110] sm:$0xf]  ;;  %v2543_v17 = vld [vmem:[%s5609_s1] sm:$0xf] }
  0x1e   : > { %1874 = vmatpush.bf16.msra.mxu3 %v2768_v50  ;;  %v3620_v13 = vld [vmem:[%s5609_s1 + $0x114] sm:$0xf0]  ;;  %v2743_v14 = vld [vmem:[%s5609_s1 + $0x190] sm:$0xf]  ;;  %v3586_v18 = vld [vmem:[%s5609_s1 + $0x4] sm:$0xf0]  ;;  %v2616_v19 = vor.u32 %v3604_v11, %v2615_v9 }
  0x1f   : > { %1833 = vmatpush.bf16.msra.mxu0 %v2568_v56  ;;  %v3636_v15 = vld [vmem:[%s5609_s1 + $0x194] sm:$0xf0]  ;;  %v2680_v20 = vor.u32 %v3620_v13, %v2679_v12  ;;  %v2607_v21 = vld [vmem:[%s5609_s1 + $0x80] sm:$0xf]  ;;  %v3602_v22 = vld [vmem:[%s5609_s1 + $0x84] sm:$0xf0]  ;;  %v2544_v31 = vor.u32 %v3586_v18, %v2543_v17 }
  0x20   : > { %1847 = vmatpush.bf16.msra.mxu1 %v2632_v57  ;;  %v2671_v23 = vld [vmem:[%s5609_s1 + $0x100] sm:$0xf]  ;;  %v2744_v24 = vor.u32 %v3636_v15, %v2743_v14  ;;  %v3618_v25 = vld [vmem:[%s5609_s1 + $0x104] sm:$0xf0]  ;;  %v2855_v28 = vld [vmem:[%s5609_s1 + $0x270] sm:$0xf]  ;;  %v2608_v35 = vor.u32 %v3602_v22, %v2607_v21 }
  0x21   : > { %1861 = vmatpush.bf16.msra.mxu2 %v2696_v58  ;;  %v2735_v26 = vld [vmem:[%s5609_s1 + $0x180] sm:$0xf]  ;;  %v3634_v27 = vld [vmem:[%s5609_s1 + $0x184] sm:$0xf0]  ;;  %v3664_v29 = vld [vmem:[%s5609_s1 + $0x274] sm:$0xf0]  ;;  %v2672_v36 = vor.u32 %v3618_v25, %v2671_v23 }
  0x22   : > { %1875 = vmatpush.bf16.msra.mxu3 %v2760_v62  ;;  %v2919_v30 = vld [vmem:[%s5609_s1 + $0x2f0] sm:$0xf]  ;;  %v3680_v32 = vld [vmem:[%s5609_s1 + $0x2f4] sm:$0xf0]  ;;  %v2736_v39 = vor.u32 %v3634_v27, %v2735_v26  ;;  %v2856_v40 = vor.u32 %v3664_v29, %v2855_v28  ;;  %v2847_v43 = vld [vmem:[%s5609_s1 + $0x260] sm:$0xf] }
  0x23   : > { %1834 = vmatpush.bf16.msra.mxu0 %v2560_v4  ;;  %v2983_v33 = vld [vmem:[%s5609_s1 + $0x370] sm:$0xf]  ;;  %v3696_v34 = vld [vmem:[%s5609_s1 + $0x374] sm:$0xf0]  ;;  %v2920_v41 = vor.u32 %v3680_v32, %v2919_v30  ;;  %v3662_v44 = vld [vmem:[%s5609_s1 + $0x264] sm:$0xf0] }
  0x24   : > { %1848 = vmatpush.bf16.msra.mxu1 %v2624_v5  ;;  %v3047_v37 = vld [vmem:[%s5609_s1 + $0x3f0] sm:$0xf]  ;;  %v3712_v38 = vld [vmem:[%s5609_s1 + $0x3f4] sm:$0xf0]  ;;  %v2984_v42 = vor.u32 %v3696_v34, %v2983_v33  ;;  %v2911_v45 = vld [vmem:[%s5609_s1 + $0x2e0] sm:$0xf]  ;;  %v2848_v52 = vor.u32 %v3662_v44, %v2847_v43 }
  0x25   : > { %1862 = vmatpush.bf16.msra.mxu2 %v2688_v6  ;;  %v3048_v46 = vor.u32 %v3712_v38, %v3047_v37  ;;  %v3678_v47 = vld [vmem:[%s5609_s1 + $0x2e4] sm:$0xf0]  ;;  %v2975_v48 = vld [vmem:[%s5609_s1 + $0x360] sm:$0xf]  ;;  %v2839_v53 = vld [vmem:[%s5609_s1 + $0x250] sm:$0xf] }
  0x26   : > { %1876 = vmatpush.bf16.msra.mxu3 %v2752_v10  ;;  %v3694_v49 = vld [vmem:[%s5609_s1 + $0x364] sm:$0xf0]  ;;  %v3039_v50 = vld [vmem:[%s5609_s1 + $0x3e0] sm:$0xf]  ;;  %v3660_v54 = vld [vmem:[%s5609_s1 + $0x254] sm:$0xf0]  ;;  %v2912_v55 = vor.u32 %v3678_v47, %v2911_v45 }
  0x27   : > { %1835 = vmatpush.bf16.msra.mxu0 %v2552_v16  ;;  %v3710_v51 = vld [vmem:[%s5609_s1 + $0x3e4] sm:$0xf0]  ;;  %v2976_v56 = vor.u32 %v3694_v49, %v2975_v48  ;;  %v2903_v57 = vld [vmem:[%s5609_s1 + $0x2d0] sm:$0xf]  ;;  %v3676_v58 = vld [vmem:[%s5609_s1 + $0x2d4] sm:$0xf0]  ;;  %v2840_v2 = vor.u32 %v3660_v54, %v2839_v53 }
  0x28   : > { %1849 = vmatpush.bf16.msra.mxu1 %v2616_v19  ;;  %v2967_v59 = vld [vmem:[%s5609_s1 + $0x350] sm:$0xf]  ;;  %v3040_v60 = vor.u32 %v3710_v51, %v3039_v50  ;;  %v3692_v61 = vld [vmem:[%s5609_s1 + $0x354] sm:$0xf0]  ;;  %s5616_s29 = smov (!%p173_p4, %s2471_s29), 3  ;;  %v2904_v6 = vor.u32 %v3676_v58, %v2903_v57 }
  0x29   : > { %1863 = vmatpush.bf16.msra.mxu2 %v2680_v20  ;;  %v3031_v62 = vld [vmem:[%s5609_s1 + $0x3d0] sm:$0xf]  ;;  %v3708_v63 = vld [vmem:[%s5609_s1 + $0x3d4] sm:$0xf0]  ;;  %v2831_v0 = vld [vmem:[%s5609_s1 + $0x240] sm:$0xf]  ;;  %v2968_v7 = vor.u32 %v3692_v61, %v2967_v59 }
  0x2a   : > { %1877 = vmatpush.bf16.msra.mxu3 %v2744_v24  ;;  %v3658_v1 = vld [vmem:[%s5609_s1 + $0x244] sm:$0xf0]  ;;  %v2895_v3 = vld [vmem:[%s5609_s1 + $0x2c0] sm:$0xf]  ;;  %s3567_s4 = sshll.u32 %s5616_s29, 6  ;;  %v3032_v11 = vor.u32 %v3708_v63, %v3031_v62  ;;  %s3568_s23 = sshll.u32 %s5616_s29, 3 }
  0x2b   : > { %1836 = vmatpush.bf16.msra.mxu0 %v2544_v31  ;;  %v3674_v4 = vld [vmem:[%s5609_s1 + $0x2c4] sm:$0xf0]  ;;  %v2959_v5 = vld [vmem:[%s5609_s1 + $0x340] sm:$0xf]  ;;  %s4227_s16 = scalar_lea.vmem %s5608_s0, %s3567_s4  ;;  %v2832_v19 = vor.u32 %v3658_v1, %v2831_v0  ;;  %v2823_v26 = vld [vmem:[%s5609_s1 + $0x230] sm:$0xf]  ;;  %s194_s26 = scalar_lea.vmem %s5610_s2, %s3568_s23 }
  0x2c   : > { %1850 = vmatpush.bf16.msra.mxu1 %v2608_v35  ;;  %v3690_v8 = vld [vmem:[%s5609_s1 + $0x344] sm:$0xf0]  ;;  %v3023_v9 = vld [vmem:[%s5609_s1 + $0x3c0] sm:$0xf]  ;;  %v3569_v17 = vld [vmem:[%s4227_s16 + $0x4] sm:$0xf]  ;;  %v2896_v24 = vor.u32 %v3674_v4, %v2895_v3 }
  0x2d   : > { %1864 = vmatpush.bf16.msra.mxu2 %v2672_v36  ;;  %v3706_v10 = vld [vmem:[%s5609_s1 + $0x3c4] sm:$0xf0]  ;;  %v2479_v12 = vld [vmem:[%s4227_s16] sm:$0xf]  ;;  %v2481_v18 = vld [vmem:[%s4227_s16 + $0x40] sm:$0xf0]  ;;  %v2960_v25 = vor.u32 %v3690_v8, %v2959_v5 }
  0x2e   : > { %1878 = vmatpush.bf16.msra.mxu3 %v2736_v39  ;;  %v3577_v13 = vld [vmem:[%s4227_s16 + $0x3c] sm:$0xf0]  ;;  %v2487_v14 = vld [vmem:[%s4227_s16 + $0x8] sm:$0xf]  ;;  %v4239_v21 = vor.u32 %v3569_v17, %v2481_v18  ;;  %v3570_v22 = vld [vmem:[%s4227_s16 + $0xc] sm:$0xf]  ;;  %v3024_v30 = vor.u32 %v3706_v10, %v3023_v9 }
  0x2f   : > { %1885 = vmatpush.bf16.msrb.mxu0 %v2856_v40  ;;  %v4232_v15 = vor.u32 %v3577_v13, %v2479_v12  ;;  %v3578_v16 = vld [vmem:[%s4227_s16 + $0x44] sm:$0xf0]  ;;  %v2489_v23 = vld [vmem:[%s4227_s16 + $0x48] sm:$0xf0]  ;;  %v3656_v27 = vld [vmem:[%s5609_s1 + $0x234] sm:$0xf0] }
  0x30   : > { %1899 = vmatpush.bf16.msrb.mxu1 %v2920_v41  ;;  %v4237_v20 = vor.u32 %v3578_v16, %v2487_v14  ;;  %v2887_v28 = vld [vmem:[%s5609_s1 + $0x2b0] sm:$0xf]  ;;  %v4252_v29 = vor.u32 %v3570_v22, %v2489_v23  ;;  %v3672_v31 = vld [vmem:[%s5609_s1 + $0x2b4] sm:$0xf0]  ;;  %v2824_v36 = vor.u32 %v3656_v27, %v2823_v26  ;;  %v2815_v39 = vld [vmem:[%s5609_s1 + $0x220] sm:$0xf] }
  0x31   : > { %1913 = vmatpush.bf16.msrb.mxu2 %v2984_v42  ;;  %1837 = vmatmul.bf16.vlgmr.msra.gmra.mxu0 %v4232_v15  ;;  %v2951_v32 = vld [vmem:[%s5609_s1 + $0x330] sm:$0xf]  ;;  %v3688_v33 = vld [vmem:[%s5609_s1 + $0x334] sm:$0xf0]  ;;  %v2888_v37 = vor.u32 %v3672_v31, %v2887_v28  ;;  %v3654_v40 = vld [vmem:[%s5609_s1 + $0x224] sm:$0xf0] }
  0x32   : > { %1927 = vmatpush.bf16.msrb.mxu3 %v3048_v46  ;;  %1865 = vmatmul.bf16.vlgmr.msra.gmra.mxu2 %v4237_v20  ;;  %v3015_v34 = vld [vmem:[%s5609_s1 + $0x3b0] sm:$0xf]  ;;  %v3704_v35 = vld [vmem:[%s5609_s1 + $0x3b4] sm:$0xf0]  ;;  %v2952_v38 = vor.u32 %v3688_v33, %v2951_v32  ;;  %v2879_v41 = vld [vmem:[%s5609_s1 + $0x2a0] sm:$0xf]  ;;  %v2816_v48 = vor.u32 %v3654_v40, %v2815_v39 }
  0x33   : > { %1886 = vmatpush.bf16.msrb.mxu0 %v2848_v52  ;;  %1851 = vmatmul.bf16.vlgmr.msra.gmra.mxu1 %v4239_v21  ;;  %v3016_v42 = vor.u32 %v3704_v35, %v3015_v34  ;;  %v3670_v43 = vld [vmem:[%s5609_s1 + $0x2a4] sm:$0xf0]  ;;  %v2943_v44 = vld [vmem:[%s5609_s1 + $0x320] sm:$0xf]  ;;  %v2807_v49 = vld [vmem:[%s5609_s1 + $0x210] sm:$0xf] }
  0x34   : > { %1900 = vmatpush.bf16.msrb.mxu1 %v2912_v55  ;;  %1879 = vmatmul.bf16.vlgmr.msra.gmra.mxu3 %v4252_v29  ;;  %v3686_v45 = vld [vmem:[%s5609_s1 + $0x324] sm:$0xf0]  ;;  %v3007_v46 = vld [vmem:[%s5609_s1 + $0x3a0] sm:$0xf]  ;;  %v2880_v50 = vor.u32 %v3670_v43, %v2879_v41  ;;  %v3652_v52 = vld [vmem:[%s5609_s1 + $0x214] sm:$0xf0] }
  0x35   : > { %1914 = vmatpush.bf16.msrb.mxu2 %v2976_v56  ;;  %v3702_v47 = vld [vmem:[%s5609_s1 + $0x3a4] sm:$0xf0]  ;;  %v2944_v51 = vor.u32 %v3686_v45, %v2943_v44  ;;  %v2871_v53 = vld [vmem:[%s5609_s1 + $0x290] sm:$0xf]  ;;  %v3668_v54 = vld [vmem:[%s5609_s1 + $0x294] sm:$0xf0]  ;;  %v2808_v62 = vor.u32 %v3652_v52, %v2807_v49 }
  0x36   : > { %1928 = vmatpush.bf16.msrb.mxu3 %v3040_v60  ;;  %v3008_v55 = vor.u32 %v3702_v47, %v3007_v46  ;;  %v2935_v56 = vld [vmem:[%s5609_s1 + $0x310] sm:$0xf]  ;;  %v3684_v57 = vld [vmem:[%s5609_s1 + $0x314] sm:$0xf0]  ;;  %v2799_v60 = vld [vmem:[%s5609_s1 + $0x200] sm:$0xf]  ;;  %v2872_v3 = vor.u32 %v3668_v54, %v2871_v53 }
  0x37   : > { %1887 = vmatpush.bf16.msrb.mxu0 %v2840_v2  ;;  %v2999_v58 = vld [vmem:[%s5609_s1 + $0x390] sm:$0xf]  ;;  %v3700_v59 = vld [vmem:[%s5609_s1 + $0x394] sm:$0xf0]  ;;  %v3650_v61 = vld [vmem:[%s5609_s1 + $0x204] sm:$0xf0]  ;;  %v2936_v4 = vor.u32 %v3684_v57, %v2935_v56 }
  0x38   : > { %1901 = vmatpush.bf16.msrb.mxu1 %v2904_v6  ;;  %v2863_v63 = vld [vmem:[%s5609_s1 + $0x280] sm:$0xf]  ;;  %v3666_v0 = vld [vmem:[%s5609_s1 + $0x284] sm:$0xf0]  ;;  %v3000_v8 = vor.u32 %v3700_v59, %v2999_v58  ;;  %v3728_v9 = vld [vmem:[%s5609_s1 + $0x474] sm:$0xf0]  ;;  %v2800_v16 = vor.u32 %v3650_v61, %v2799_v60 }
  0x39   : > { %1915 = vmatpush.bf16.msrb.mxu2 %v2968_v7  ;;  %v2927_v1 = vld [vmem:[%s5609_s1 + $0x300] sm:$0xf]  ;;  %v3682_v2 = vld [vmem:[%s5609_s1 + $0x304] sm:$0xf0]  ;;  %v3111_v7 = vld [vmem:[%s5609_s1 + $0x470] sm:$0xf]  ;;  %v2864_v22 = vor.u32 %v3666_v0, %v2863_v63 }
  0x3a   : > { %1929 = vmatpush.bf16.msrb.mxu3 %v3032_v11  ;;  %v2991_v5 = vld [vmem:[%s5609_s1 + $0x380] sm:$0xf]  ;;  %v3698_v6 = vld [vmem:[%s5609_s1 + $0x384] sm:$0xf0]  ;;  %v3175_v10 = vld [vmem:[%s5609_s1 + $0x4f0] sm:$0xf]  ;;  %v2928_v23 = vor.u32 %v3682_v2, %v2927_v1  ;;  %v3112_v28 = vor.u32 %v3728_v9, %v3111_v7 }
  0x3b   : > { %1888 = vmatpush.bf16.msrb.mxu0 %v2832_v19  ;;  %v3744_v11 = vld [vmem:[%s5609_s1 + $0x4f4] sm:$0xf0]  ;;  %v3239_v12 = vld [vmem:[%s5609_s1 + $0x570] sm:$0xf]  ;;  %v3571_v26 = vld [vmem:[%s4227_s16 + $0x14] sm:$0xf]  ;;  %v2992_v27 = vor.u32 %v3698_v6, %v2991_v5 }
  0x3c   : > { %1902 = vmatpush.bf16.msrb.mxu1 %v2896_v24  ;;  %v3760_v13 = vld [vmem:[%s5609_s1 + $0x574] sm:$0xf0]  ;;  %v3303_v14 = vld [vmem:[%s5609_s1 + $0x5f0] sm:$0xf]  ;;  %v3572_v31 = vld [vmem:[%s4227_s16 + $0x1c] sm:$0xf]  ;;  %v3176_v33 = vor.u32 %v3744_v11, %v3175_v10 }
  0x3d   : > { %1916 = vmatpush.bf16.msrb.mxu2 %v2960_v25  ;;  %v3776_v17 = vld [vmem:[%s5609_s1 + $0x5f4] sm:$0xf0]  ;;  %v2495_v18 = vld [vmem:[%s4227_s16 + $0x10] sm:$0xf]  ;;  %v2505_v32 = vld [vmem:[%s4227_s16 + $0x58] sm:$0xf0]  ;;  %v3240_v34 = vor.u32 %v3760_v13, %v3239_v12 }
  0x3e   : > { %1930 = vmatpush.bf16.msrb.mxu3 %v3024_v30  ;;  %v3579_v19 = vld [vmem:[%s4227_s16 + $0x4c] sm:$0xf0]  ;;  %v2503_v24 = vld [vmem:[%s4227_s16 + $0x18] sm:$0xf]  ;;  %v2497_v30 = vld [vmem:[%s4227_s16 + $0x50] sm:$0xf0]  ;;  %v4407_v47 = vor.u32 %v3572_v31, %v2505_v32 }
  0x3f   : > { %1889 = vmatpush.bf16.msrb.mxu0 %v2824_v36  ;;  %v3580_v25 = vld [vmem:[%s4227_s16 + $0x54] sm:$0xf0]  ;;  %v3103_v35 = vld [vmem:[%s5609_s1 + $0x460] sm:$0xf]  ;;  %v3726_v36 = vld [vmem:[%s5609_s1 + $0x464] sm:$0xf0]  ;;  %v4386_v39 = vor.u32 %v3579_v19, %v2495_v18  ;;  %v4399_v44 = vor.u32 %v3571_v26, %v2497_v30 }
  0x40   : > { %1903 = vmatpush.bf16.msrb.mxu1 %v2888_v37  ;;  %v3167_v37 = vld [vmem:[%s5609_s1 + $0x4e0] sm:$0xf]  ;;  %v3742_v40 = vld [vmem:[%s5609_s1 + $0x4e4] sm:$0xf0]  ;;  %v4397_v43 = vor.u32 %v3580_v25, %v2503_v24  ;;  %v3724_v52 = vld [vmem:[%s5609_s1 + $0x454] sm:$0xf0] }
  0x41   : > { %1917 = vmatpush.bf16.msrb.mxu2 %v2952_v38  ;;  %v3304_v38 = vor.u32 %v3776_v17, %v3303_v14  ;;  %v3231_v41 = vld [vmem:[%s5609_s1 + $0x560] sm:$0xf]  ;;  %v3774_v46 = vld [vmem:[%s5609_s1 + $0x5e4] sm:$0xf0]  ;;  %v3168_v49 = vor.u32 %v3742_v40, %v3167_v37  ;;  %v3159_v53 = vld [vmem:[%s5609_s1 + $0x4d0] sm:$0xf] }
  0x42   : > { %1931 = vmatpush.bf16.msrb.mxu3 %v3016_v42  ;;  %v3758_v42 = vld [vmem:[%s5609_s1 + $0x564] sm:$0xf0]  ;;  %v3295_v45 = vld [vmem:[%s5609_s1 + $0x5e0] sm:$0xf]  ;;  %v3223_v56 = vld [vmem:[%s5609_s1 + $0x550] sm:$0xf] }
  0x43   : > { %1890 = vmatpush.bf16.msrb.mxu0 %v2816_v48  ;;  %v3104_v48 = vor.u32 %v3726_v36, %v3103_v35  ;;  %v3296_v54 = vor.u32 %v3774_v46, %v3295_v45  ;;  %v3756_v57 = vld [vmem:[%s5609_s1 + $0x554] sm:$0xf0]  ;;  %v3287_v58 = vld [vmem:[%s5609_s1 + $0x5d0] sm:$0xf]  ;;  %v3087_v63 = vld [vmem:[%s5609_s1 + $0x440] sm:$0xf] }
  0x44   : > { %1904 = vmatpush.bf16.msrb.mxu1 %v2880_v50  ;;  %v3232_v50 = vor.u32 %v3758_v42, %v3231_v41  ;;  %v3772_v59 = vld [vmem:[%s5609_s1 + $0x5d4] sm:$0xf0]  ;;  %v3722_v0 = vld [vmem:[%s5609_s1 + $0x444] sm:$0xf0]  ;;  %v3151_v1 = vld [vmem:[%s5609_s1 + $0x4c0] sm:$0xf] }
  0x45   : > { %1918 = vmatpush.bf16.msrb.mxu2 %v2944_v51  ;;  %v3095_v51 = vld [vmem:[%s5609_s1 + $0x450] sm:$0xf]  ;;  %v3288_v2 = vor.u32 %v3772_v59, %v3287_v58  ;;  %v3754_v5 = vld [vmem:[%s5609_s1 + $0x544] sm:$0xf0]  ;;  %v3279_v6 = vld [vmem:[%s5609_s1 + $0x5c0] sm:$0xf] }
  0x46   : > { %1932 = vmatpush.bf16.msrb.mxu3 %v3008_v55  ;;  %v3740_v55 = vld [vmem:[%s5609_s1 + $0x4d4] sm:$0xf0]  ;;  %v3096_v60 = vor.u32 %v3724_v52, %v3095_v51  ;;  %v3770_v7 = vld [vmem:[%s5609_s1 + $0x5c4] sm:$0xf0]  ;;  %v3079_v11 = vld [vmem:[%s5609_s1 + $0x430] sm:$0xf] }
  0x47   : > { %1891 = vmatpush.bf16.msrb.mxu0 %v2808_v62  ;;  %v3160_v61 = vor.u32 %v3740_v55, %v3159_v53  ;;  %v3224_v62 = vor.u32 %v3756_v57, %v3223_v56  ;;  %v3720_v12 = vld [vmem:[%s5609_s1 + $0x434] sm:$0xf0]  ;;  %v3143_v13 = vld [vmem:[%s5609_s1 + $0x4b0] sm:$0xf]  ;;  %v3280_v14 = vor.u32 %v3770_v7, %v3279_v6  ;;  %v3071_v26 = vld [vmem:[%s5609_s1 + $0x420] sm:$0xf] }
  0x48   : > { %1905 = vmatpush.bf16.msrb.mxu1 %v2872_v3  ;;  %v3738_v3 = vld [vmem:[%s5609_s1 + $0x4c4] sm:$0xf0]  ;;  %v3207_v17 = vld [vmem:[%s5609_s1 + $0x530] sm:$0xf]  ;;  %v3752_v18 = vld [vmem:[%s5609_s1 + $0x534] sm:$0xf0] }
  0x49   : > { %1919 = vmatpush.bf16.msrb.mxu2 %v2936_v4  ;;  %v3215_v4 = vld [vmem:[%s5609_s1 + $0x540] sm:$0xf]  ;;  %v3152_v9 = vor.u32 %v3738_v3, %v3151_v1  ;;  %v3271_v19 = vld [vmem:[%s5609_s1 + $0x5b0] sm:$0xf]  ;;  %v3208_v25 = vor.u32 %v3752_v18, %v3207_v17  ;;  %v3734_v31 = vld [vmem:[%s5609_s1 + $0x4a4] sm:$0xf0] }
  0x4a   : > { %1933 = vmatpush.bf16.msrb.mxu3 %v3000_v8  ;;  %v3088_v8 = vor.u32 %v3722_v0, %v3087_v63  ;;  %v3216_v10 = vor.u32 %v3754_v5, %v3215_v4  ;;  %v3199_v32 = vld [vmem:[%s5609_s1 + $0x520] sm:$0xf]  ;;  %v3766_v35 = vld [vmem:[%s5609_s1 + $0x5a4] sm:$0xf0]  ;;  %v3063_v37 = vld [vmem:[%s5609_s1 + $0x410] sm:$0xf] }
  0x4b   : > { %1892 = vmatpush.bf16.msrb.mxu0 %v2800_v16  ;;  %v3736_v16 = vld [vmem:[%s5609_s1 + $0x4b4] sm:$0xf0]  ;;  %v3127_v42 = vld [vmem:[%s5609_s1 + $0x490] sm:$0xf]  ;;  %v3055_v52 = vld [vmem:[%s5609_s1 + $0x400] sm:$0xf] }
  0x4c   : > { %1906 = vmatpush.bf16.msrb.mxu1 %v2864_v22  ;;  %v3768_v22 = vld [vmem:[%s5609_s1 + $0x5b4] sm:$0xf0]  ;;  %v3144_v24 = vor.u32 %v3736_v16, %v3143_v13  ;;  %v3714_v53 = vld [vmem:[%s5609_s1 + $0x404] sm:$0xf0]  ;;  %v3119_v55 = vld [vmem:[%s5609_s1 + $0x480] sm:$0xf] }
  0x4d   : > { %1920 = vmatpush.bf16.msrb.mxu2 %v2928_v23  ;;  %v3080_v23 = vor.u32 %v3720_v12, %v3079_v11  ;;  %v3272_v30 = vor.u32 %v3768_v22, %v3271_v19  ;;  %v3716_v41 = vld [vmem:[%s5609_s1 + $0x414] sm:$0xf0]  ;;  %v3730_v56 = vld [vmem:[%s5609_s1 + $0x484] sm:$0xf0]  ;;  %v3183_v57 = vld [vmem:[%s5609_s1 + $0x500] sm:$0xf]  ;;  %v3056_v7 = vor.u32 %v3714_v53, %v3055_v52 }
  0x4e   : > { %1934 = vmatpush.bf16.msrb.mxu3 %v2992_v27  ;;  %1893 = vmatmul.bf16.vlgmr.msrb.gmra.mxu0 %v4386_v39  ;;  %v3718_v27 = vld [vmem:[%s5609_s1 + $0x424] sm:$0xf0]  ;;  %v3732_v45 = vld [vmem:[%s5609_s1 + $0x494] sm:$0xf0]  ;;  %v3367_v63 = vld [vmem:[%s5609_s1 + $0x670] sm:$0xf]  ;;  %v3120_v11 = vor.u32 %v3730_v56, %v3119_v55 }
  0x4f   : > { %1941 = vmatpush.bf16.msra.mxu0 %v3112_v28  ;;  %1907 = vmatmul.bf16.vlgmr.msrb.gmra.mxu1 %v4399_v44  ;;  %v3135_v28 = vld [vmem:[%s5609_s1 + $0x4a0] sm:$0xf]  ;;  %v3072_v36 = vor.u32 %v3718_v27, %v3071_v26  ;;  %v3764_v51 = vld [vmem:[%s5609_s1 + $0x594] sm:$0xf0]  ;;  %v3746_v58 = vld [vmem:[%s5609_s1 + $0x504] sm:$0xf0]  ;;  %v3128_v59 = vor.u32 %v3732_v45, %v3127_v42 }
  0x50   : > { %1955 = vmatpush.bf16.msra.mxu1 %v3176_v33  ;;  %1921 = vmatmul.bf16.vlgmr.msrb.gmra.mxu2 %v4397_v43  ;;  %v3750_v33 = vld [vmem:[%s5609_s1 + $0x524] sm:$0xf0]  ;;  %v3792_v1 = vld [vmem:[%s5609_s1 + $0x674] sm:$0xf0]  ;;  %v3495_v4 = vld [vmem:[%s5609_s1 + $0x770] sm:$0xf]  ;;  %v3184_v12 = vor.u32 %v3746_v58, %v3183_v57 }
  0x51   : > { %1969 = vmatpush.bf16.msra.mxu2 %v3240_v34  ;;  %1935 = vmatmul.bf16.vlgmr.msrb.gmra.mxu3 %v4407_v47  ;;  %v3263_v34 = vld [vmem:[%s5609_s1 + $0x5a0] sm:$0xf]  ;;  %v3200_v40 = vor.u32 %v3750_v33, %v3199_v32  ;;  %v3808_v3 = vld [vmem:[%s5609_s1 + $0x6f4] sm:$0xf0]  ;;  %v3559_v6 = vld [vmem:[%s5609_s1 + $0x7f0] sm:$0xf]  ;;  %v3368_v18 = vor.u32 %v3792_v1, %v3367_v63 }
  0x52   : > { %1983 = vmatpush.bf16.msra.mxu3 %v3304_v38  ;;  %v3136_v38 = vor.u32 %v3734_v31, %v3135_v28  ;;  %v3264_v46 = vor.u32 %v3766_v35, %v3263_v34  ;;  %v3824_v5 = vld [vmem:[%s5609_s1 + $0x774] sm:$0xf0]  ;;  %v2519_v13 = vld [vmem:[%s4227_s16 + $0x28] sm:$0xf]  ;;  %v3573_v16 = vld [vmem:[%s4227_s16 + $0x24] sm:$0xf] }
  0x53   : > { %1942 = vmatpush.bf16.msra.mxu0 %v3104_v48  ;;  %v3191_v48 = vld [vmem:[%s5609_s1 + $0x510] sm:$0xf]  ;;  %v2513_v19 = vld [vmem:[%s4227_s16 + $0x60] sm:$0xf0]  ;;  %v3574_v22 = vld [vmem:[%s4227_s16 + $0x2c] sm:$0xf] }
  0x54   : > { %1956 = vmatpush.bf16.msra.mxu1 %v3168_v49  ;;  %v3748_v49 = vld [vmem:[%s5609_s1 + $0x514] sm:$0xf0]  ;;  %v3359_v26 = vld [vmem:[%s5609_s1 + $0x660] sm:$0xf]  ;;  %v3790_v27 = vld [vmem:[%s5609_s1 + $0x664] sm:$0xf0] }
  0x55   : > { %1970 = vmatpush.bf16.msra.mxu2 %v3232_v50  ;;  %v3255_v50 = vld [vmem:[%s5609_s1 + $0x590] sm:$0xf]  ;;  %v3423_v28 = vld [vmem:[%s5609_s1 + $0x6e0] sm:$0xf]  ;;  %v3806_v32 = vld [vmem:[%s5609_s1 + $0x6e4] sm:$0xf0] }
  0x56   : > { %1984 = vmatpush.bf16.msra.mxu3 %v3296_v54  ;;  %v3064_v54 = vor.u32 %v3716_v41, %v3063_v37  ;;  %v3256_v0 = vor.u32 %v3764_v51, %v3255_v50  ;;  %v3487_v33 = vld [vmem:[%s5609_s1 + $0x760] sm:$0xf]  ;;  %v3822_v34 = vld [vmem:[%s5609_s1 + $0x764] sm:$0xf0]  ;;  %v3360_v41 = vor.u32 %v3790_v27, %v3359_v26  ;;  %v3424_v42 = vor.u32 %v3806_v32, %v3423_v28  ;;  %v3804_v51 = vld [vmem:[%s5609_s1 + $0x6d4] sm:$0xf0] }
  0x57   : > { %1943 = vmatpush.bf16.msra.mxu0 %v3096_v60  ;;  %v3192_v60 = vor.u32 %v3748_v49, %v3191_v48  ;;  %v3551_v37 = vld [vmem:[%s5609_s1 + $0x7e0] sm:$0xf]  ;;  %v3488_v45 = vor.u32 %v3822_v34, %v3487_v33  ;;  %v3788_v48 = vld [vmem:[%s5609_s1 + $0x654] sm:$0xf0]  ;;  %v3415_v49 = vld [vmem:[%s5609_s1 + $0x6d0] sm:$0xf] }
  0x58   : > { %1957 = vmatpush.bf16.msra.mxu1 %v3160_v61  ;;  %v3247_v61 = vld [vmem:[%s5609_s1 + $0x580] sm:$0xf]  ;;  %v3479_v52 = vld [vmem:[%s5609_s1 + $0x750] sm:$0xf]  ;;  %v3820_v53 = vld [vmem:[%s5609_s1 + $0x754] sm:$0xf0]  ;;  %v3416_v57 = vor.u32 %v3804_v51, %v3415_v49 }
  0x59   : > { %1971 = vmatpush.bf16.msra.mxu2 %v3224_v62  ;;  %v3762_v62 = vld [vmem:[%s5609_s1 + $0x584] sm:$0xf0]  ;;  %v3836_v55 = vld [vmem:[%s5609_s1 + $0x7d4] sm:$0xf0]  ;;  %v3480_v58 = vor.u32 %v3820_v53, %v3479_v52  ;;  %v3455_v27 = vld [vmem:[%s5609_s1 + $0x720] sm:$0xf] }
  0x5a   : > { %1985 = vmatpush.bf16.msra.mxu3 %v3288_v2  ;;  %v3431_v2 = vld [vmem:[%s5609_s1 + $0x6f0] sm:$0xf]  ;;  %v3248_v17 = vor.u32 %v3762_v62, %v3247_v61  ;;  %v3407_v61 = vld [vmem:[%s5609_s1 + $0x6c0] sm:$0xf]  ;;  %v3802_v63 = vld [vmem:[%s5609_s1 + $0x6c4] sm:$0xf0] }
  0x5b   : > { %1944 = vmatpush.bf16.msra.mxu0 %v3088_v8  ;;  %v3840_v8 = vld [vmem:[%s5609_s1 + $0x7f4] sm:$0xf0]  ;;  %v3818_v1 = vld [vmem:[%s5609_s1 + $0x744] sm:$0xf0]  ;;  %v3319_v34 = vld [vmem:[%s5609_s1 + $0x610] sm:$0xf] }
  0x5c   : > { %1958 = vmatpush.bf16.msra.mxu1 %v3152_v9  ;;  %v2511_v9 = vld [vmem:[%s4227_s16 + $0x20] sm:$0xf]  ;;  %v3798_v26 = vld [vmem:[%s5609_s1 + $0x6a4] sm:$0xf0]  ;;  %v3812_v49 = vld [vmem:[%s5609_s1 + $0x714] sm:$0xf0] }
  0x5d   : > { %1972 = vmatpush.bf16.msra.mxu2 %v3216_v10  ;;  %v3581_v10 = vld [vmem:[%s4227_s16 + $0x5c] sm:$0xf0]  ;;  %v3814_v28 = vld [vmem:[%s5609_s1 + $0x724] sm:$0xf0]  ;;  %v3828_v51 = vld [vmem:[%s5609_s1 + $0x794] sm:$0xf0] }
  0x5e   : > { %1986 = vmatpush.bf16.msra.mxu3 %v3280_v14  ;;  %v3582_v14 = vld [vmem:[%s4227_s16 + $0x64] sm:$0xf0]  ;;  %v4598_v31 = vor.u32 %v3581_v10, %v2511_v9  ;;  %v3399_v9 = vld [vmem:[%s5609_s1 + $0x6b0] sm:$0xf]  ;;  %v3311_v52 = vld [vmem:[%s5609_s1 + $0x600] sm:$0xf] }
  0x5f   : > { %1945 = vmatpush.bf16.msra.mxu0 %v3080_v23  ;;  %v2521_v23 = vld [vmem:[%s4227_s16 + $0x68] sm:$0xf0]  ;;  %v4609_v35 = vor.u32 %v3582_v14, %v2519_v13  ;;  %v3816_v13 = vld [vmem:[%s5609_s1 + $0x734] sm:$0xf0]  ;;  %v3527_v14 = vld [vmem:[%s5609_s1 + $0x7b0] sm:$0xf] }
  0x60   : > { %1959 = vmatpush.bf16.msra.mxu1 %v3144_v24  ;;  %v3432_v24 = vor.u32 %v3808_v3, %v3431_v2  ;;  %v3535_v2 = vld [vmem:[%s5609_s1 + $0x7c0] sm:$0xf]  ;;  %v3834_v3 = vld [vmem:[%s5609_s1 + $0x7c4] sm:$0xf0] }
  0x61   : > { %1973 = vmatpush.bf16.msra.mxu2 %v3208_v25  ;;  %v3496_v25 = vor.u32 %v3824_v5, %v3495_v4  ;;  %v3408_v5 = vor.u32 %v3802_v63, %v3407_v61  ;;  %v3536_v10 = vor.u32 %v3834_v3, %v3535_v2  ;;  %v3830_v32 = vld [vmem:[%s5609_s1 + $0x7a4] sm:$0xf0]  ;;  %v3503_v61 = vld [vmem:[%s5609_s1 + $0x780] sm:$0xf]  ;;  %v3599_v63 = vld [vmem:[%s5609_s1 + $0x74] sm:$0xf] }
  0x62   : > { %1987 = vmatpush.bf16.msra.mxu3 %v3272_v30  ;;  %v3560_v30 = vor.u32 %v3840_v8, %v3559_v6  ;;  %v3784_v8 = vld [vmem:[%s5609_s1 + $0x634] sm:$0xf0]  ;;  %v3778_v53 = vld [vmem:[%s5609_s1 + $0x604] sm:$0xf0]  ;;  %v3615_v2 = vld [vmem:[%s5609_s1 + $0xf4] sm:$0xf] }
  0x63   : > { %1946 = vmatpush.bf16.msra.mxu0 %v3072_v36  ;;  %v4611_v36 = vor.u32 %v3573_v16, %v2513_v19  ;;  %v3832_v16 = vld [vmem:[%s5609_s1 + $0x7b4] sm:$0xf0]  ;;  %v2665_v3 = vld [vmem:[%s5609_s1 + $0xf8] sm:$0xf0] }
  0x64   : > { %1960 = vmatpush.bf16.msra.mxu1 %v3136_v38  ;;  %v3838_v38 = vld [vmem:[%s5609_s1 + $0x7e4] sm:$0xf0] }
  0x65   : > { %1974 = vmatpush.bf16.msra.mxu2 %v3200_v40  ;;  %v4619_v40 = vor.u32 %v3574_v22, %v2521_v23  ;;  %v3552_v50 = vor.u32 %v3838_v38, %v3551_v37  ;;  %v3327_v22 = vld [vmem:[%s5609_s1 + $0x620] sm:$0xf]  ;;  %v3782_v23 = vld [vmem:[%s5609_s1 + $0x624] sm:$0xf0]  ;;  %v3456_v38 = vor.u32 %v3814_v28, %v3455_v27  ;;  %v2593_v27 = vld [vmem:[%s5609_s1 + $0x68] sm:$0xf0] }
  0x66   : > { %1988 = vmatpush.bf16.msra.mxu3 %v3264_v46  ;;  %v3351_v46 = vld [vmem:[%s5609_s1 + $0x650] sm:$0xf]  ;;  %v3328_v33 = vor.u32 %v3782_v23, %v3327_v22  ;;  %v3576_v22 = vld [vmem:[%s4227_s16 + $0x3c] sm:$0xf]  ;;  %v3613_v28 = vld [vmem:[%s5609_s1 + $0xe4] sm:$0xf] }
  0x67   : > { %1947 = vmatpush.bf16.msra.mxu0 %v3064_v54  ;;  %v3543_v54 = vld [vmem:[%s5609_s1 + $0x7d0] sm:$0xf]  ;;  %v3352_v56 = vor.u32 %v3788_v48, %v3351_v46  ;;  %v2537_v23 = vld [vmem:[%s4227_s16 + $0x78] sm:$0xf0] }
  0x68   : > { %1961 = vmatpush.bf16.msra.mxu1 %v3128_v59  ;;  %v3343_v59 = vld [vmem:[%s5609_s1 + $0x640] sm:$0xf]  ;;  %v3544_v62 = vor.u32 %v3836_v55, %v3543_v54  ;;  %v3447_v48 = vld [vmem:[%s5609_s1 + $0x710] sm:$0xf] }
  0x69   : > { %1975 = vmatpush.bf16.msra.mxu2 %v3192_v60  ;;  %v3786_v60 = vld [vmem:[%s5609_s1 + $0x644] sm:$0xf0]  ;;  %v3375_v55 = vld [vmem:[%s5609_s1 + $0x680] sm:$0xf] }
  0x6a   : > { %1989 = vmatpush.bf16.msra.mxu3 %v3256_v0  ;;  %v3471_v0 = vld [vmem:[%s5609_s1 + $0x740] sm:$0xf]  ;;  %v3344_v4 = vor.u32 %v3786_v60, %v3343_v59  ;;  %v3448_v60 = vor.u32 %v3812_v49, %v3447_v48 }
  0x6b   : > { %1948 = vmatpush.bf16.msra.mxu0 %v3056_v7  ;;  %v3472_v6 = vor.u32 %v3818_v1, %v3471_v0  ;;  %v3335_v7 = vld [vmem:[%s5609_s1 + $0x630] sm:$0xf]  ;;  %v2601_v1 = vld [vmem:[%s5609_s1 + $0x78] sm:$0xf0] }
  0x6c   : > { %1962 = vmatpush.bf16.msra.mxu1 %v3120_v11  ;;  %v3800_v11 = vld [vmem:[%s5609_s1 + $0x6b4] sm:$0xf0] }
  0x6d   : > { %1976 = vmatpush.bf16.msra.mxu2 %v3184_v12  ;;  %v3463_v12 = vld [vmem:[%s5609_s1 + $0x730] sm:$0xf] }
  0x6e   : > { %1990 = vmatpush.bf16.msra.mxu3 %v3248_v17  ;;  %1949 = vmatmul.bf16.vlgmr.msra.gmra.mxu0 %v4598_v31  ;;  %v3336_v17 = vor.u32 %v3784_v8, %v3335_v7  ;;  %v3464_v19 = vor.u32 %v3816_v13, %v3463_v12  ;;  %v3312_v7 = vor.u32 %v3778_v53, %v3311_v52  ;;  %v2793_v8 = vld [vmem:[%s5609_s1 + $0x1f8] sm:$0xf0]  ;;  %v2535_v13 = vld [vmem:[%s4227_s16 + $0x38] sm:$0xf]  ;;  %v3611_v53 = vld [vmem:[%s5609_s1 + $0xd4] sm:$0xf] }
  0x6f   : > { %1997 = vmatpush.bf16.msrb.mxu0 %v3368_v18  ;;  %1963 = vmatmul.bf16.vlgmr.msra.gmra.mxu1 %v4611_v36  ;;  %v3400_v18 = vor.u32 %v3800_v11, %v3399_v9  ;;  %v2527_v9 = vld [vmem:[%s4227_s16 + $0x30] sm:$0xf]  ;;  %v2585_v52 = vld [vmem:[%s5609_s1 + $0x58] sm:$0xf0] }
  0x70   : > { %2011 = vmatpush.bf16.msrb.mxu1 %v3432_v24  ;;  %1977 = vmatmul.bf16.vlgmr.msra.gmra.mxu2 %v4609_v35  ;;  %v3391_v24 = vld [vmem:[%s5609_s1 + $0x6a0] sm:$0xf] }
  0x71   : > { %2025 = vmatpush.bf16.msrb.mxu2 %v3496_v25  ;;  %1991 = vmatmul.bf16.vlgmr.msra.gmra.mxu3 %v4619_v40  ;;  %v3528_v25 = vor.u32 %v3832_v16, %v3527_v14  ;;  %v3392_v37 = vor.u32 %v3798_v26, %v3391_v24  ;;  %v3584_v14 = vld [vmem:[%s4227_s16 + $0x74] sm:$0xf0]  ;;  %v3575_v16 = vld [vmem:[%s4227_s16 + $0x34] sm:$0xf]  ;;  %v2668_v24 = vor.u32 %v3615_v2, %v2665_v3  ;;  %v3597_v26 = vld [vmem:[%s5609_s1 + $0x64] sm:$0xf] }
  0x72   : > { %2039 = vmatpush.bf16.msrb.mxu3 %v3560_v30  ;;  %v3519_v30 = vld [vmem:[%s5609_s1 + $0x7a0] sm:$0xf]  ;;  %v2596_v48 = vor.u32 %v3597_v26, %v2593_v27  ;;  %v2641_v3 = vld [vmem:[%s5609_s1 + $0xc8] sm:$0xf0]  ;;  %v3589_v26 = vld [vmem:[%s5609_s1 + $0x24] sm:$0xf] }
  0x73   : > { %1998 = vmatpush.bf16.msrb.mxu0 %v3360_v41  ;;  %v3780_v41 = vld [vmem:[%s5609_s1 + $0x614] sm:$0xf0]  ;;  %v3520_v46 = vor.u32 %v3830_v32, %v3519_v30  ;;  %v2561_v27 = vld [vmem:[%s5609_s1 + $0x28] sm:$0xf0] }
  0x74   : > { %2012 = vmatpush.bf16.msrb.mxu1 %v3424_v42  ;;  %v3383_v42 = vld [vmem:[%s5609_s1 + $0x690] sm:$0xf]  ;;  %v3320_v54 = vor.u32 %v3780_v41, %v3319_v34  ;;  %v3629_v34 = vld [vmem:[%s5609_s1 + $0x164] sm:$0xf] }
  0x75   : > { %2026 = vmatpush.bf16.msrb.mxu2 %v3488_v45  ;;  %v3796_v45 = vld [vmem:[%s5609_s1 + $0x694] sm:$0xf0] }
  0x76   : > { %2040 = vmatpush.bf16.msrb.mxu3 %v3552_v50  ;;  %v3511_v50 = vld [vmem:[%s5609_s1 + $0x790] sm:$0xf]  ;;  %v3384_v59 = vor.u32 %v3796_v45, %v3383_v42  ;;  %v3645_v42 = vld [vmem:[%s5609_s1 + $0x1e4] sm:$0xf]  ;;  %v2785_v45 = vld [vmem:[%s5609_s1 + $0x1e8] sm:$0xf0] }
  0x77   : > { %1999 = vmatpush.bf16.msrb.mxu0 %v3352_v56  ;;  %v3794_v56 = vld [vmem:[%s5609_s1 + $0x684] sm:$0xf0]  ;;  %v3512_v0 = vor.u32 %v3828_v51, %v3511_v50  ;;  %v3595_v51 = vld [vmem:[%s5609_s1 + $0x54] sm:$0xf] }
  0x78   : > { %2013 = vmatpush.bf16.msrb.mxu1 %v3416_v57  ;;  %v3439_v57 = vld [vmem:[%s5609_s1 + $0x700] sm:$0xf]  ;;  %v3376_v11 = vor.u32 %v3794_v56, %v3375_v55  ;;  %v2649_v55 = vld [vmem:[%s5609_s1 + $0xd8] sm:$0xf0]  ;;  %v3627_v56 = vld [vmem:[%s5609_s1 + $0x154] sm:$0xf] }
  0x79   : > { %2027 = vmatpush.bf16.msrb.mxu2 %v3480_v58  ;;  %v3810_v58 = vld [vmem:[%s5609_s1 + $0x704] sm:$0xf0] }
  0x7a   : > { %2041 = vmatpush.bf16.msrb.mxu3 %v3544_v62  ;;  %v3826_v62 = vld [vmem:[%s5609_s1 + $0x784] sm:$0xf0]  ;;  %v3440_v12 = vor.u32 %v3810_v58, %v3439_v57  ;;  %v2713_v57 = vld [vmem:[%s5609_s1 + $0x158] sm:$0xf0]  ;;  %v3643_v58 = vld [vmem:[%s5609_s1 + $0x1d4] sm:$0xf] }
  0x7b   : > { %2000 = vmatpush.bf16.msrb.mxu0 %v3344_v4  ;;  %v3631_v4 = vld [vmem:[%s5609_s1 + $0x174] sm:$0xf] }
  0x7c   : > { %2014 = vmatpush.bf16.msrb.mxu1 %v3408_v5  ;;  %v2729_v5 = vld [vmem:[%s5609_s1 + $0x178] sm:$0xf0] }
  0x7d   : > { %2028 = vmatpush.bf16.msrb.mxu2 %v3472_v6  ;;  %v3647_v6 = vld [vmem:[%s5609_s1 + $0x1f4] sm:$0xf] }
  0x7e   : > { %2042 = vmatpush.bf16.msrb.mxu3 %v3536_v10  ;;  %v3583_v10 = vld [vmem:[%s4227_s16 + $0x6c] sm:$0xf0]  ;;  %v2796_v30 = vor.u32 %v3647_v6, %v2793_v8  ;;  %v3641_v6 = vld [vmem:[%s5609_s1 + $0x1c4] sm:$0xf] }
  0x7f   : > { %2001 = vmatpush.bf16.msrb.mxu0 %v3336_v17  ;;  %v3504_v17 = vor.u32 %v3826_v62, %v3503_v61  ;;  %v4810_v32 = vor.u32 %v3583_v10, %v2527_v9  ;;  %v2652_v61 = vor.u32 %v3611_v53, %v2649_v55  ;;  %v2716_v62 = vor.u32 %v3627_v56, %v2713_v57  ;;  %v3603_v53 = vld [vmem:[%s5609_s1 + $0x94] sm:$0xf]  ;;  %v2617_v55 = vld [vmem:[%s5609_s1 + $0x98] sm:$0xf0] }
  0x80   : > { %2015 = vmatpush.bf16.msrb.mxu1 %v3400_v18  ;;  %v2604_v18 = vor.u32 %v3599_v63, %v2601_v1  ;;  %v3593_v63 = vld [vmem:[%s5609_s1 + $0x44] sm:$0xf]  ;;  %v3619_v56 = vld [vmem:[%s5609_s1 + $0x114] sm:$0xf]  ;;  %v2681_v57 = vld [vmem:[%s5609_s1 + $0x118] sm:$0xf0] }
  0x81   : > { %2029 = vmatpush.bf16.msrb.mxu2 %v3464_v19  ;;  %v2529_v19 = vld [vmem:[%s4227_s16 + $0x70] sm:$0xf0]  ;;  %v3609_v1 = vld [vmem:[%s5609_s1 + $0xc4] sm:$0xf] }
  0x82   : > { %2043 = vmatpush.bf16.msrb.mxu3 %v3528_v25  ;;  %v2732_v25 = vor.u32 %v3631_v4, %v2729_v5  ;;  %v4823_v41 = vor.u32 %v3575_v16, %v2529_v19  ;;  %v3625_v4 = vld [vmem:[%s5609_s1 + $0x144] sm:$0xf]  ;;  %v2705_v5 = vld [vmem:[%s5609_s1 + $0x148] sm:$0xf0]  ;;  %v2644_v9 = vor.u32 %v3609_v1, %v2641_v3  ;;  %v2633_v16 = vld [vmem:[%s5609_s1 + $0xb8] sm:$0xf0] }
  0x83   : > { %2002 = vmatpush.bf16.msrb.mxu0 %v3328_v33  ;;  %v2657_v33 = vld [vmem:[%s5609_s1 + $0xe8] sm:$0xf0]  ;;  %v2708_v10 = vor.u32 %v3625_v4, %v2705_v5  ;;  %v3639_v19 = vld [vmem:[%s5609_s1 + $0x1b4] sm:$0xf]  ;;  %v3601_v1 = vld [vmem:[%s5609_s1 + $0x84] sm:$0xf] }
  0x84   : > { %2016 = vmatpush.bf16.msrb.mxu1 %v3392_v37  ;;  %v2721_v37 = vld [vmem:[%s5609_s1 + $0x168] sm:$0xf0]  ;;  %v2660_v49 = vor.u32 %v3613_v28, %v2657_v33  ;;  %v3605_v28 = vld [vmem:[%s5609_s1 + $0xa4] sm:$0xf] }
  0x85   : > { %2030 = vmatpush.bf16.msrb.mxu2 %v3456_v38  ;;  %v4821_v38 = vor.u32 %v3584_v14, %v2535_v13  ;;  %v2724_v50 = vor.u32 %v3629_v34, %v2721_v37  ;;  %v3607_v13 = vld [vmem:[%s5609_s1 + $0xb4] sm:$0xf]  ;;  %v2625_v33 = vld [vmem:[%s5609_s1 + $0xa8] sm:$0xf0]  ;;  %v3621_v34 = vld [vmem:[%s5609_s1 + $0x124] sm:$0xf] }
  0x86   : > { %2044 = vmatpush.bf16.msrb.mxu3 %v3520_v46  ;;  %v4831_v46 = vor.u32 %v3576_v22, %v2537_v23  ;;  %v2761_v22 = vld [vmem:[%s5609_s1 + $0x1b8] sm:$0xf0]  ;;  %v2689_v37 = vld [vmem:[%s5609_s1 + $0x128] sm:$0xf0]  ;;  %v3617_v3 = vld [vmem:[%s5609_s1 + $0x104] sm:$0xf] }
  0x87   : > { %2003 = vmatpush.bf16.msrb.mxu0 %v3320_v54  ;;  %v2788_v54 = vor.u32 %v3645_v42, %v2785_v45  ;;  %v3637_v42 = vld [vmem:[%s5609_s1 + $0x1a4] sm:$0xf]  ;;  %v2753_v45 = vld [vmem:[%s5609_s1 + $0x1a8] sm:$0xf0] }
  0x88   : > { %2017 = vmatpush.bf16.msrb.mxu1 %v3384_v59  ;;  %v2777_v59 = vld [vmem:[%s5609_s1 + $0x1d8] sm:$0xf0]  ;;  %v2673_v5 = vld [vmem:[%s5609_s1 + $0x108] sm:$0xf0] }
  0x89   : > { %2031 = vmatpush.bf16.msrb.mxu2 %v3448_v60  ;;  %v2588_v60 = vor.u32 %v3595_v51, %v2585_v52  ;;  %v2780_v2 = vor.u32 %v3643_v58, %v2777_v59  ;;  %v3587_v51 = vld [vmem:[%s5609_s1 + $0x14] sm:$0xf]  ;;  %v2553_v52 = vld [vmem:[%s5609_s1 + $0x18] sm:$0xf0] }
  0x8a   : > { %2045 = vmatpush.bf16.msrb.mxu3 %v3512_v0  ;;  %v2577_v0 = vld [vmem:[%s5609_s1 + $0x48] sm:$0xf0]  ;;  %v3635_v58 = vld [vmem:[%s5609_s1 + $0x194] sm:$0xf]  ;;  %v2745_v59 = vld [vmem:[%s5609_s1 + $0x198] sm:$0xf0] }
  0x8b   : > { %2004 = vmatpush.bf16.msrb.mxu0 %v3312_v7  ;;  %v2769_v7 = vld [vmem:[%s5609_s1 + $0x1c8] sm:$0xf0]  ;;  %v2580_v8 = vor.u32 %v3593_v63, %v2577_v0  ;;  %v2620_v63 = vor.u32 %v3603_v53, %v2617_v55  ;;  %v2684_v0 = vor.u32 %v3619_v56, %v2681_v57  ;;  %v2748_v4 = vor.u32 %v3635_v58, %v2745_v59  ;;  %v3675_v53 = vld [vmem:[%s5609_s1 + $0x2d4] sm:$0xf]  ;;  %v2905_v55 = vld [vmem:[%s5609_s1 + $0x2d8] sm:$0xf0] }
  0x8c   : > { %2018 = vmatpush.bf16.msrb.mxu1 %v3376_v11  ;;  %v3591_v11 = vld [vmem:[%s5609_s1 + $0x34] sm:$0xf]  ;;  %v2772_v14 = vor.u32 %v3641_v6, %v2769_v7  ;;  %v3633_v6 = vld [vmem:[%s5609_s1 + $0x184] sm:$0xf]  ;;  %v2737_v7 = vld [vmem:[%s5609_s1 + $0x188] sm:$0xf0] }
  0x8d   : > { %2032 = vmatpush.bf16.msrb.mxu2 %v3440_v12  ;;  %v2569_v12 = vld [vmem:[%s5609_s1 + $0x38] sm:$0xf0]  ;;  %v3691_v56 = vld [vmem:[%s5609_s1 + $0x354] sm:$0xf] }
  0x8e   : > { %2046 = vmatpush.bf16.msrb.mxu3 %v3504_v17  ;;  %2005 = vmatmul.bf16.vlgmr.msrb.gmra.mxu0 %v4810_v32  ;;  %v3623_v17 = vld [vmem:[%s5609_s1 + $0x134] sm:$0xf]  ;;  %v2572_v23 = vor.u32 %v3591_v11, %v2569_v12  ;;  %v2921_v12 = vld [vmem:[%s5609_s1 + $0x2f8] sm:$0xf0] }
  0x8f   : > { %2053 = vmatpush.bf16.msra.mxu0 %v2604_v18  ;;  %2019 = vmatmul.bf16.vlgmr.msrb.gmra.mxu1 %v4823_v41  ;;  %v2697_v18 = vld [vmem:[%s5609_s1 + $0x138] sm:$0xf0]  ;;  %v3707_v58 = vld [vmem:[%s5609_s1 + $0x3d4] sm:$0xf] }
  0x90   : > { %2067 = vmatpush.bf16.msra.mxu1 %v2668_v24  ;;  %2033 = vmatmul.bf16.vlgmr.msrb.gmra.mxu2 %v4821_v38  ;;  %v2636_v24 = vor.u32 %v3607_v13, %v2633_v16  ;;  %v3695_v13 = vld [vmem:[%s5609_s1 + $0x374] sm:$0xf]  ;;  %v2969_v57 = vld [vmem:[%s5609_s1 + $0x358] sm:$0xf0] }
  0x91   : > { %2081 = vmatpush.bf16.msra.mxu2 %v2732_v25  ;;  %2047 = vmatmul.bf16.vlgmr.msrb.gmra.mxu3 %v4831_v46  ;;  %v2700_v25 = vor.u32 %v3623_v17, %v2697_v18  ;;  %v2676_v17 = vor.u32 %v3617_v3, %v2673_v5  ;;  %v3711_v18 = vld [vmem:[%s5609_s1 + $0x3f4] sm:$0xf]  ;;  %v3033_v59 = vld [vmem:[%s5609_s1 + $0x3d8] sm:$0xf0]  ;;  %v3025_v3 = vld [vmem:[%s5609_s1 + $0x3c8] sm:$0xf0] }
  0x92   : > { %2095 = vmatpush.bf16.msra.mxu3 %v2796_v30  ;;  %v2764_v30 = vor.u32 %v3639_v19, %v2761_v22  ;;  %v3049_v19 = vld [vmem:[%s5609_s1 + $0x3f8] sm:$0xf0]  ;;  %v2740_v22 = vor.u32 %v3633_v6, %v2737_v7  ;;  %v3655_v7 = vld [vmem:[%s5609_s1 + $0x234] sm:$0xf] }
  0x93   : > { %2054 = vmatpush.bf16.msra.mxu0 %v2596_v48  ;;  %v2564_v48 = vor.u32 %v3589_v26, %v2561_v27  ;;  %v3661_v26 = vld [vmem:[%s5609_s1 + $0x264] sm:$0xf]  ;;  %v2849_v27 = vld [vmem:[%s5609_s1 + $0x268] sm:$0xf0] }
  0x94   : > { %2068 = vmatpush.bf16.msra.mxu1 %v2660_v49  ;;  %v2628_v49 = vor.u32 %v3605_v28, %v2625_v33  ;;  %v3677_v28 = vld [vmem:[%s5609_s1 + $0x2e4] sm:$0xf]  ;;  %v2913_v33 = vld [vmem:[%s5609_s1 + $0x2e8] sm:$0xf0] }
  0x95   : > { %2082 = vmatpush.bf16.msra.mxu2 %v2724_v50  ;;  %v2692_v50 = vor.u32 %v3621_v34, %v2689_v37  ;;  %v3693_v34 = vld [vmem:[%s5609_s1 + $0x364] sm:$0xf]  ;;  %v2977_v37 = vld [vmem:[%s5609_s1 + $0x368] sm:$0xf0] }
  0x96   : > { %2096 = vmatpush.bf16.msra.mxu3 %v2788_v54  ;;  %v2756_v54 = vor.u32 %v3637_v42, %v2753_v45  ;;  %v3709_v42 = vld [vmem:[%s5609_s1 + $0x3e4] sm:$0xf]  ;;  %v3041_v45 = vld [vmem:[%s5609_s1 + $0x3e8] sm:$0xf0] }
  0x97   : > { %2055 = vmatpush.bf16.msra.mxu0 %v2588_v60  ;;  %v2556_v60 = vor.u32 %v3587_v51, %v2553_v52  ;;  %v3659_v51 = vld [vmem:[%s5609_s1 + $0x254] sm:$0xf]  ;;  %v2841_v52 = vld [vmem:[%s5609_s1 + $0x258] sm:$0xf0] }
  0x98   : > { %2069 = vmatpush.bf16.msra.mxu1 %v2652_v61  ;;  %v3585_v61 = vld [vmem:[%s5609_s1 + $0x4] sm:$0xf] }
  0x99   : > { %2083 = vmatpush.bf16.msra.mxu2 %v2716_v62  ;;  %v2545_v62 = vld [vmem:[%s5609_s1 + $0x8] sm:$0xf0] }
  0x9a   : > { %2097 = vmatpush.bf16.msra.mxu3 %v2780_v2  ;;  %v2609_v2 = vld [vmem:[%s5609_s1 + $0x88] sm:$0xf0]  ;;  %v2548_v11 = vor.u32 %v3585_v61, %v2545_v62  ;;  %v2908_v61 = vor.u32 %v3675_v53, %v2905_v55  ;;  %v3657_v62 = vld [vmem:[%s5609_s1 + $0x244] sm:$0xf]  ;;  %v3683_v55 = vld [vmem:[%s5609_s1 + $0x314] sm:$0xf] }
  0x9b   : > { %2056 = vmatpush.bf16.msra.mxu0 %v2580_v8  ;;  %v3663_v8 = vld [vmem:[%s5609_s1 + $0x274] sm:$0xf]  ;;  %v2612_v16 = vor.u32 %v3601_v1, %v2609_v2  ;;  %v2961_v1 = vld [vmem:[%s5609_s1 + $0x348] sm:$0xf0]  ;;  %v3705_v2 = vld [vmem:[%s5609_s1 + $0x3c4] sm:$0xf] }
  0x9c   : > { %2070 = vmatpush.bf16.msra.mxu1 %v2644_v9  ;;  %v2857_v9 = vld [vmem:[%s5609_s1 + $0x278] sm:$0xf0] }
  0x9d   : > { %2084 = vmatpush.bf16.msra.mxu2 %v2708_v10  ;;  %v3679_v10 = vld [vmem:[%s5609_s1 + $0x2f4] sm:$0xf] }
  0x9e   : > { %2098 = vmatpush.bf16.msra.mxu3 %v2772_v14  ;;  %v2985_v14 = vld [vmem:[%s5609_s1 + $0x378] sm:$0xf0] }
  0x9f   : > { %2057 = vmatpush.bf16.msra.mxu0 %v2572_v23  ;;  %v2860_v23 = vor.u32 %v3663_v8, %v2857_v9  ;;  %v2825_v8 = vld [vmem:[%s5609_s1 + $0x238] sm:$0xf0]  ;;  %v3671_v9 = vld [vmem:[%s5609_s1 + $0x2b4] sm:$0xf] }
  0xa0   : > { %2071 = vmatpush.bf16.msra.mxu1 %v2636_v24  ;;  %v2924_v24 = vor.u32 %v3679_v10, %v2921_v12  ;;  %v3028_v10 = vor.u32 %v3705_v2, %v3025_v3  ;;  %v3687_v12 = vld [vmem:[%s5609_s1 + $0x334] sm:$0xf]  ;;  %v2993_v2 = vld [vmem:[%s5609_s1 + $0x388] sm:$0xf0] }
  0xa1   : > { %2085 = vmatpush.bf16.msra.mxu2 %v2700_v25  ;;  %v2988_v25 = vor.u32 %v3695_v13, %v2985_v14  ;;  %v2953_v13 = vld [vmem:[%s5609_s1 + $0x338] sm:$0xf0]  ;;  %v3703_v14 = vld [vmem:[%s5609_s1 + $0x3b4] sm:$0xf] }
  0xa2   : > { %2099 = vmatpush.bf16.msra.mxu3 %v2764_v30  ;;  %v3052_v30 = vor.u32 %v3711_v18, %v3049_v19  ;;  %v2956_v19 = vor.u32 %v3687_v12, %v2953_v13  ;;  %v3759_v12 = vld [vmem:[%s5609_s1 + $0x574] sm:$0xf]  ;;  %v3241_v13 = vld [vmem:[%s5609_s1 + $0x578] sm:$0xf0] }
  0xa3   : > { %2058 = vmatpush.bf16.msra.mxu0 %v2564_v48  ;;  %v2852_v48 = vor.u32 %v3661_v26, %v2849_v27  ;;  %v2881_v26 = vld [vmem:[%s5609_s1 + $0x2a8] sm:$0xf0]  ;;  %v3685_v27 = vld [vmem:[%s5609_s1 + $0x324] sm:$0xf] }
  0xa4   : > { %2072 = vmatpush.bf16.msra.mxu1 %v2628_v49  ;;  %v2916_v49 = vor.u32 %v3677_v28, %v2913_v33  ;;  %v2945_v28 = vld [vmem:[%s5609_s1 + $0x328] sm:$0xf0] }
  0xa5   : > { %2086 = vmatpush.bf16.msra.mxu2 %v2692_v50  ;;  %v2980_v50 = vor.u32 %v3693_v34, %v2977_v37  ;;  %v3009_v33 = vld [vmem:[%s5609_s1 + $0x3a8] sm:$0xf0] }
  0xa6   : > { %2100 = vmatpush.bf16.msra.mxu3 %v2756_v54  ;;  %v3044_v54 = vor.u32 %v3709_v42, %v3041_v45 }
  0xa7   : > { %2059 = vmatpush.bf16.msra.mxu0 %v2556_v60  ;;  %v2844_v60 = vor.u32 %v3659_v51, %v2841_v52  ;;  %v3667_v51 = vld [vmem:[%s5609_s1 + $0x294] sm:$0xf] }
  0xa8   : > { %2073 = vmatpush.bf16.msra.mxu1 %v2620_v63  ;;  %v2833_v63 = vld [vmem:[%s5609_s1 + $0x248] sm:$0xf0] }
  0xa9   : > { %2087 = vmatpush.bf16.msra.mxu2 %v2684_v0  ;;  %v3689_v0 = vld [vmem:[%s5609_s1 + $0x344] sm:$0xf] }
  0xaa   : > { %2101 = vmatpush.bf16.msra.mxu3 %v2748_v4  ;;  %v2836_v4 = vor.u32 %v3657_v62, %v2833_v63  ;;  %v2964_v6 = vor.u32 %v3689_v0, %v2961_v1  ;;  %v3665_v63 = vld [vmem:[%s5609_s1 + $0x284] sm:$0xf]  ;;  %v2929_v0 = vld [vmem:[%s5609_s1 + $0x308] sm:$0xf0] }
  0xab   : > { %2060 = vmatpush.bf16.msra.mxu0 %v2548_v11  ;;  %v2889_v11 = vld [vmem:[%s5609_s1 + $0x2b8] sm:$0xf0]  ;;  %v3697_v1 = vld [vmem:[%s5609_s1 + $0x384] sm:$0xf] }
  0xac   : > { %2074 = vmatpush.bf16.msra.mxu1 %v2612_v16  ;;  %v3017_v16 = vld [vmem:[%s5609_s1 + $0x3b8] sm:$0xf0]  ;;  %v2892_v18 = vor.u32 %v3671_v9, %v2889_v11 }
  0xad   : > { %2088 = vmatpush.bf16.msra.mxu2 %v2676_v17  ;;  %v2828_v17 = vor.u32 %v3655_v7, %v2825_v8  ;;  %v3177_v11 = vld [vmem:[%s5609_s1 + $0x4f8] sm:$0xf0] }
  0xae   : > { %2102 = vmatpush.bf16.msra.mxu3 %v2740_v22  ;;  %2061 = vmatmul.bf16.vlgmr.msra.gmra.mxu0 %v4232_v15  ;;  %v2972_v15 = vor.u32 %v3691_v56, %v2969_v57  ;;  %v3653_v22 = vld [vmem:[%s5609_s1 + $0x224] sm:$0xf]  ;;  %v1838_v34 = vpop.f32.mrf.mxu0  ;;  %v2937_v56 = vld [vmem:[%s5609_s1 + $0x318] sm:$0xf0]  ;;  %v3699_v57 = vld [vmem:[%s5609_s1 + $0x394] sm:$0xf] }
  0xaf   : > { %2109 = vmatpush.bf16.msrb.mxu0 %v2860_v23  ;;  %2075 = vmatmul.bf16.vlgmr.msra.gmra.mxu1 %v4239_v21  ;;  %v3036_v21 = vor.u32 %v3707_v58, %v3033_v59  ;;  %v2817_v23 = vld [vmem:[%s5609_s1 + $0x228] sm:$0xf0]  ;;  %v3001_v58 = vld [vmem:[%s5609_s1 + $0x398] sm:$0xf0]  ;;  %v2940_v62 = vor.u32 %v3683_v55, %v2937_v56  ;;  %v3739_v56 = vld [vmem:[%s5609_s1 + $0x4d4] sm:$0xf] }
  0xb0   : > { %2123 = vmatpush.bf16.msrb.mxu1 %v2924_v24  ;;  %2089 = vmatmul.bf16.vlgmr.msra.gmra.mxu2 %v4237_v20  ;;  %v3673_v20 = vld [vmem:[%s5609_s1 + $0x2c4] sm:$0xf]  ;;  %v2820_v37 = vor.u32 %v3653_v22, %v2817_v23  ;;  %v1852_v42 = vpop.f32.mrf.mxu1  ;;  %v3097_v55 = vld [vmem:[%s5609_s1 + $0x458] sm:$0xf0] }
  0xb1   : > { %2137 = vmatpush.bf16.msrb.mxu2 %v2988_v25  ;;  %2103 = vmatmul.bf16.vlgmr.msra.gmra.mxu3 %v4252_v29  ;;  %v2897_v29 = vld [vmem:[%s5609_s1 + $0x2c8] sm:$0xf0]  ;;  %v3669_v24 = vld [vmem:[%s5609_s1 + $0x2a4] sm:$0xf]  ;;  %v3020_v25 = vor.u32 %v3703_v14, %v3017_v16  ;;  %v1853_v52 = vadd.f32 %v1852_v42, %v1838_v34 }
  0xb2   : > { %2151 = vmatpush.bf16.msrb.mxu3 %v3052_v30  ;;  %v2900_v5 = vor.u32 %v3673_v20, %v2897_v29  ;;  %v3701_v30 = vld [vmem:[%s5609_s1 + $0x3a4] sm:$0xf]  ;;  %v2884_v45 = vor.u32 %v3669_v24, %v2881_v26  ;;  %v2865_v20 = vld [vmem:[%s5609_s1 + $0x288] sm:$0xf0]  ;;  %v3004_v29 = vor.u32 %v3699_v57, %v3001_v58  ;;  %v2996_v24 = vor.u32 %v3697_v1, %v2993_v2 }
  0xb3   : > { %2110 = vmatpush.bf16.msrb.mxu0 %v2852_v48  ;;  %v2948_v48 = vor.u32 %v3685_v27, %v2945_v28  ;;  %v3012_v53 = vor.u32 %v3701_v30, %v3009_v33  ;;  %v3244_v27 = vor.u32 %v3759_v12, %v3241_v13  ;;  %v3725_v28 = vld [vmem:[%s5609_s1 + $0x464] sm:$0xf]  ;;  %v3105_v30 = vld [vmem:[%s5609_s1 + $0x468] sm:$0xf0]  ;;  %v3719_v12 = vld [vmem:[%s5609_s1 + $0x434] sm:$0xf] }
  0xb4   : > { %2124 = vmatpush.bf16.msrb.mxu1 %v2916_v49  ;;  %v3651_v49 = vld [vmem:[%s5609_s1 + $0x214] sm:$0xf]  ;;  %v3741_v33 = vld [vmem:[%s5609_s1 + $0x4e4] sm:$0xf]  ;;  %v3153_v1 = vld [vmem:[%s5609_s1 + $0x4c8] sm:$0xf0] }
  0xb5   : > { %2138 = vmatpush.bf16.msrb.mxu2 %v2980_v50  ;;  %v2809_v50 = vld [vmem:[%s5609_s1 + $0x218] sm:$0xf0]  ;;  %v1866_v3 = vpop.f32.mrf.mxu2  ;;  %v3757_v42 = vld [vmem:[%s5609_s1 + $0x564] sm:$0xf] }
  0xb6   : > { %2152 = vmatpush.bf16.msrb.mxu3 %v3044_v54  ;;  %v2873_v54 = vld [vmem:[%s5609_s1 + $0x298] sm:$0xf0]  ;;  %v2812_v59 = vor.u32 %v3651_v49, %v2809_v50  ;;  %v1867_v7 = vadd.f32 %v1866_v3, %v1853_v52  ;;  %v1840_v14 = vpop.f32.mrf.mxu0  ;;  %v3297_v49 = vld [vmem:[%s5609_s1 + $0x5e8] sm:$0xf0]  ;;  %v3108_v50 = vor.u32 %v3725_v28, %v3105_v30  ;;  %v3753_v2 = vld [vmem:[%s5609_s1 + $0x544] sm:$0xf] }
  0xb7   : > { %2111 = vmatpush.bf16.msrb.mxu0 %v2844_v60  ;;  %v3649_v60 = vld [vmem:[%s5609_s1 + $0x204] sm:$0xf]  ;;  %v1880_v8 = vpop.f32.mrf.mxu3  ;;  %v3217_v3 = vld [vmem:[%s5609_s1 + $0x548] sm:$0xf0]  ;;  %v3081_v13 = vld [vmem:[%s5609_s1 + $0x438] sm:$0xf0] }
  0xb8   : > { %2125 = vmatpush.bf16.msrb.mxu1 %v2908_v61  ;;  %v2801_v61 = vld [vmem:[%s5609_s1 + $0x208] sm:$0xf0]  ;;  %v1854_v16 = vpop.f32.mrf.mxu1  ;;  %v1881_v22 = vadd.f32 %v1880_v8, %v1867_v7  ;;  %v3717_v28 = vld [vmem:[%s5609_s1 + $0x424] sm:$0xf] }
  0xb9   : > { %2139 = vmatpush.bf16.msrb.mxu2 %v2972_v15  ;;  %v2876_v15 = vor.u32 %v3667_v51, %v2873_v54  ;;  %v2804_v9 = vor.u32 %v3649_v60, %v2801_v61  ;;  %v1855_v23 = vadd.f32 %v1854_v16, %v1840_v14  ;;  %v3723_v54 = vld [vmem:[%s5609_s1 + $0x454] sm:$0xf]  ;;  %v3225_v61 = vld [vmem:[%s5609_s1 + $0x558] sm:$0xf0]  ;;  %v3073_v30 = vld [vmem:[%s5609_s1 + $0x428] sm:$0xf0] }
  0xba   : > { %2153 = vmatpush.bf16.msrb.mxu3 %v3036_v21  ;;  %v3681_v21 = vld [vmem:[%s5609_s1 + $0x304] sm:$0xf]  ;;  %v3755_v60 = vld [vmem:[%s5609_s1 + $0x554] sm:$0xf] }
  0xbb   : > { %2112 = vmatpush.bf16.msrb.mxu0 %v2836_v4  ;;  %v3727_v4 = vld [vmem:[%s5609_s1 + $0x474] sm:$0xf] }
  0xbc   : > { %2126 = vmatpush.bf16.msrb.mxu1 %v2900_v5  ;;  %v3113_v5 = vld [vmem:[%s5609_s1 + $0x478] sm:$0xf0]  ;;  %v3735_v14 = vld [vmem:[%s5609_s1 + $0x4b4] sm:$0xf] }
  0xbd   : > { %2140 = vmatpush.bf16.msrb.mxu2 %v2964_v6  ;;  %v3743_v6 = vld [vmem:[%s5609_s1 + $0x4f4] sm:$0xf]  ;;  %v1868_v51 = vpop.f32.mrf.mxu2 }
  0xbe   : > { %2154 = vmatpush.bf16.msrb.mxu3 %v3028_v10  ;;  %v2868_v10 = vor.u32 %v3665_v63, %v2865_v20  ;;  %v3180_v26 = vor.u32 %v3743_v6, %v3177_v11  ;;  %v1869_v57 = vadd.f32 %v1868_v51, %v1855_v23  ;;  %v3100_v20 = vor.u32 %v3723_v54, %v3097_v55  ;;  %v3281_v6 = vld [vmem:[%s5609_s1 + $0x5c8] sm:$0xf0]  ;;  %v3767_v23 = vld [vmem:[%s5609_s1 + $0x5b4] sm:$0xf] }
  0xbf   : > { %2113 = vmatpush.bf16.msrb.mxu0 %v2828_v17  ;;  %v2932_v17 = vor.u32 %v3681_v21, %v2929_v0  ;;  %v3737_v0 = vld [vmem:[%s5609_s1 + $0x4c4] sm:$0xf]  ;;  %v3220_v11 = vor.u32 %v3753_v2, %v3217_v3  ;;  %v3076_v55 = vor.u32 %v3717_v28, %v3073_v30 }
  0xc0   : > { %2127 = vmatpush.bf16.msrb.mxu1 %v2892_v18  ;;  %v3775_v18 = vld [vmem:[%s5609_s1 + $0x5f4] sm:$0xf]  ;;  %v3729_v3 = vld [vmem:[%s5609_s1 + $0x484] sm:$0xf] }
  0xc1   : > { %2141 = vmatpush.bf16.msrb.mxu2 %v2956_v19  ;;  %v3305_v19 = vld [vmem:[%s5609_s1 + $0x5f8] sm:$0xf0] }
  0xc2   : > { %2155 = vmatpush.bf16.msrb.mxu3 %v3020_v25  ;;  %v3116_v25 = vor.u32 %v3727_v4, %v3113_v5  ;;  %v3308_v34 = vor.u32 %v3775_v18, %v3305_v19  ;;  %v3769_v5 = vld [vmem:[%s5609_s1 + $0x5c4] sm:$0xf]  ;;  %v3145_v18 = vld [vmem:[%s5609_s1 + $0x4b8] sm:$0xf0]  ;;  %v3751_v19 = vld [vmem:[%s5609_s1 + $0x534] sm:$0xf] }
  0xc3   : > { %2114 = vmatpush.bf16.msrb.mxu0 %v2820_v37  ;;  %v3169_v37 = vld [vmem:[%s5609_s1 + $0x4e8] sm:$0xf0]  ;;  %v3284_v16 = vor.u32 %v3769_v5, %v3281_v6  ;;  %v3745_v5 = vld [vmem:[%s5609_s1 + $0x504] sm:$0xf] }
  0xc4   : > { %2128 = vmatpush.bf16.msrb.mxu1 %v2884_v45  ;;  %v3233_v45 = vld [vmem:[%s5609_s1 + $0x568] sm:$0xf0]  ;;  %v3172_v52 = vor.u32 %v3741_v33, %v3169_v37  ;;  %v3733_v33 = vld [vmem:[%s5609_s1 + $0x4a4] sm:$0xf] }
  0xc5   : > { %2142 = vmatpush.bf16.msrb.mxu2 %v2948_v48  ;;  %v3773_v48 = vld [vmem:[%s5609_s1 + $0x5e4] sm:$0xf] }
  0xc6   : > { %2156 = vmatpush.bf16.msrb.mxu3 %v3012_v53  ;;  %v3236_v53 = vor.u32 %v3757_v42, %v3233_v45  ;;  %v3300_v58 = vor.u32 %v3773_v48, %v3297_v49  ;;  %v3137_v42 = vld [vmem:[%s5609_s1 + $0x4a8] sm:$0xf0]  ;;  %v3749_v45 = vld [vmem:[%s5609_s1 + $0x524] sm:$0xf] }
  0xc7   : > { %2115 = vmatpush.bf16.msrb.mxu0 %v2812_v59  ;;  %v3161_v59 = vld [vmem:[%s5609_s1 + $0x4d8] sm:$0xf0]  ;;  %v3201_v48 = vld [vmem:[%s5609_s1 + $0x528] sm:$0xf0] }
  0xc8   : > { %2129 = vmatpush.bf16.msrb.mxu1 %v2876_v15  ;;  %v1882_v15 = vpop.f32.mrf.mxu3  ;;  %v3164_v21 = vor.u32 %v3739_v56, %v3161_v59  ;;  %v3204_v59 = vor.u32 %v3749_v45, %v3201_v48  ;;  %v3805_v45 = vld [vmem:[%s5609_s1 + $0x6e4] sm:$0xf] }
  0xc9   : > { %2143 = vmatpush.bf16.msrb.mxu2 %v2940_v62  ;;  %v3289_v62 = vld [vmem:[%s5609_s1 + $0x5d8] sm:$0xf0]  ;;  %v1883_v63 = vadd.f32 %v1882_v15, %v1869_v57  ;;  %v3731_v15 = vld [vmem:[%s5609_s1 + $0x494] sm:$0xf] }
  0xca   : > { %2157 = vmatpush.bf16.msrb.mxu3 %v3004_v29  ;;  %v3228_v29 = vor.u32 %v3755_v60, %v3225_v61  ;;  %v3715_v60 = vld [vmem:[%s5609_s1 + $0x414] sm:$0xf]  ;;  %v3065_v61 = vld [vmem:[%s5609_s1 + $0x418] sm:$0xf0] }
  0xcb   : > { %2116 = vmatpush.bf16.msrb.mxu0 %v2804_v9  ;;  %v1894_v4 = vpop.f32.mrf.mxu0 }
  0xcc   : > { %2130 = vmatpush.bf16.msrb.mxu1 %v2868_v10  ;;  %v1895_v7 = vadd.f32 %v1894_v4, %v1881_v22  ;;  %v1908_v9 = vpop.f32.mrf.mxu1  ;;  %v3156_v10 = vor.u32 %v3737_v0, %v3153_v1  ;;  %v3209_v22 = vld [vmem:[%s5609_s1 + $0x538] sm:$0xf0]  ;;  %v3713_v0 = vld [vmem:[%s5609_s1 + $0x404] sm:$0xf]  ;;  %v3121_v4 = vld [vmem:[%s5609_s1 + $0x488] sm:$0xf0] }
  0xcd   : > { %2144 = vmatpush.bf16.msrb.mxu2 %v2932_v17 }
  0xce   : > { %2158 = vmatpush.bf16.msrb.mxu3 %v2996_v24  ;;  %2117 = vmatmul.bf16.vlgmr.msrb.gmra.mxu0 %v4386_v39  ;;  %v3771_v39 = vld [vmem:[%s5609_s1 + $0x5d4] sm:$0xf]  ;;  %v1909_v17 = vadd.f32 %v1908_v9, %v1895_v7  ;;  %v3273_v24 = vld [vmem:[%s5609_s1 + $0x5b8] sm:$0xf0]  ;;  %v3761_v9 = vld [vmem:[%s5609_s1 + $0x584] sm:$0xf] }
  0xcf   : > { %2165 = vmatpush.bf16.msra.mxu0 %v3116_v25  ;;  %2131 = vmatmul.bf16.vlgmr.msrb.gmra.mxu1 %v4399_v44  ;;  %v3089_v44 = vld [vmem:[%s5609_s1 + $0x448] sm:$0xf0]  ;;  %v3084_v25 = vor.u32 %v3719_v12, %v3081_v13  ;;  %v3791_v13 = vld [vmem:[%s5609_s1 + $0x674] sm:$0xf] }
  0xd0   : > { %2179 = vmatpush.bf16.msra.mxu1 %v3180_v26  ;;  %2145 = vmatmul.bf16.vlgmr.msrb.gmra.mxu2 %v4397_v43  ;;  %v3721_v43 = vld [vmem:[%s5609_s1 + $0x444] sm:$0xf]  ;;  %v3148_v26 = vor.u32 %v3735_v14, %v3145_v18  ;;  %v3369_v14 = vld [vmem:[%s5609_s1 + $0x678] sm:$0xf0] }
  0xd1   : > { %2193 = vmatpush.bf16.msra.mxu2 %v3244_v27  ;;  %2159 = vmatmul.bf16.vlgmr.msrb.gmra.mxu3 %v4407_v47  ;;  %v3292_v47 = vor.u32 %v3771_v39, %v3289_v62  ;;  %v3092_v8 = vor.u32 %v3721_v43, %v3089_v44  ;;  %v3212_v27 = vor.u32 %v3751_v19, %v3209_v22  ;;  %v3257_v43 = vld [vmem:[%s5609_s1 + $0x598] sm:$0xf0]  ;;  %v3823_v19 = vld [vmem:[%s5609_s1 + $0x774] sm:$0xf] }
  0xd2   : > { %2207 = vmatpush.bf16.msra.mxu3 %v3308_v34  ;;  %v3276_v34 = vor.u32 %v3767_v23, %v3273_v24  ;;  %v3068_v44 = vor.u32 %v3715_v60, %v3065_v61  ;;  %v3433_v18 = vld [vmem:[%s5609_s1 + $0x6f8] sm:$0xf0]  ;;  %v3124_v24 = vor.u32 %v3729_v3, %v3121_v4  ;;  %v3372_v30 = vor.u32 %v3791_v13, %v3369_v14  ;;  %v3803_v60 = vld [vmem:[%s5609_s1 + $0x6d4] sm:$0xf]  ;;  %v3537_v3 = vld [vmem:[%s5609_s1 + $0x7c8] sm:$0xf0] }
  0xd3   : > { %2166 = vmatpush.bf16.msra.mxu0 %v3108_v50  ;;  %v1922_v37 = vpop.f32.mrf.mxu2  ;;  %v1896_v50 = vpop.f32.mrf.mxu0  ;;  %v3497_v22 = vld [vmem:[%s5609_s1 + $0x778] sm:$0xf0]  ;;  %v3815_v14 = vld [vmem:[%s5609_s1 + $0x734] sm:$0xf] }
  0xd4   : > { %2180 = vmatpush.bf16.msra.mxu1 %v3172_v52  ;;  %v1923_v49 = vadd.f32 %v1922_v37, %v1909_v17  ;;  %v1936_v51 = vpop.f32.mrf.mxu3  ;;  %v3765_v52 = vld [vmem:[%s5609_s1 + $0x5a4] sm:$0xf]  ;;  %v1897_v54 = vadd.f32 %v1896_v50, %v1883_v63  ;;  %v1910_v56 = vpop.f32.mrf.mxu1  ;;  %v3129_v63 = vld [vmem:[%s5609_s1 + $0x498] sm:$0xf0] }
  0xd5   : > { %2194 = vmatpush.bf16.msra.mxu2 %v3236_v53  ;;  %v3265_v53 = vld [vmem:[%s5609_s1 + $0x5a8] sm:$0xf0]  ;;  %v3132_v1 = vor.u32 %v3731_v15, %v3129_v63  ;;  %v3789_v37 = vld [vmem:[%s5609_s1 + $0x664] sm:$0xf]  ;;  %v3417_v15 = vld [vmem:[%s5609_s1 + $0x6d8] sm:$0xf0] }
  0xd6   : > { %2208 = vmatpush.bf16.msra.mxu3 %v3300_v58  ;;  %v5325_v57 = vadd.f32 %v1936_v51, %v1923_v49  ;;  %v3140_v58 = vor.u32 %v3733_v33, %v3137_v42  ;;  %v3268_v39 = vor.u32 %v3765_v52, %v3265_v53  ;;  %v1911_v62 = vadd.f32 %v1910_v56, %v1897_v54  ;;  %v3361_v42 = vld [vmem:[%s5609_s1 + $0x668] sm:$0xf0]  ;;  %v3821_v50 = vld [vmem:[%s5609_s1 + $0x764] sm:$0xf]  ;;  %v3545_v63 = vld [vmem:[%s5609_s1 + $0x7d8] sm:$0xf0] }
  0xd7   : > { %2167 = vmatpush.bf16.msra.mxu0 %v3100_v20  ;;  %v3747_v20 = vld [vmem:[%s5609_s1 + $0x514] sm:$0xf]  ;;  %v3425_v49 = vld [vmem:[%s5609_s1 + $0x6e8] sm:$0xf0]  ;;  %v3837_v52 = vld [vmem:[%s5609_s1 + $0x7e4] sm:$0xf]  ;;  %v3364_v54 = vor.u32 %v3789_v37, %v3361_v42 }
  0xd8   : > { %2181 = vmatpush.bf16.msra.mxu1 %v3164_v21  ;;  %v3193_v21 = vld [vmem:[%s5609_s1 + $0x518] sm:$0xf0]  ;;  %v3489_v51 = vld [vmem:[%s5609_s1 + $0x768] sm:$0xf0] }
  0xd9   : > { %2195 = vmatpush.bf16.msra.mxu2 %v3228_v29  ;;  %v3763_v29 = vld [vmem:[%s5609_s1 + $0x594] sm:$0xf]  ;;  %v3196_v2 = vor.u32 %v3747_v20, %v3193_v21  ;;  %v3553_v53 = vld [vmem:[%s5609_s1 + $0x7e8] sm:$0xf0]  ;;  %v3492_v56 = vor.u32 %v3821_v50, %v3489_v51  ;;  %v3420_v21 = vor.u32 %v3803_v60, %v3417_v15  ;;  %v3401_v13 = vld [vmem:[%s5609_s1 + $0x6b8] sm:$0xf0] }
  0xda   : > { %2209 = vmatpush.bf16.msra.mxu3 %v3292_v47  ;;  %v3057_v47 = vld [vmem:[%s5609_s1 + $0x408] sm:$0xf0]  ;;  %v3260_v6 = vor.u32 %v3763_v29, %v3257_v43  ;;  %v3556_v61 = vor.u32 %v3837_v52, %v3553_v53  ;;  %v3801_v43 = vld [vmem:[%s5609_s1 + $0x6c4] sm:$0xf]  ;;  %v3795_v60 = vld [vmem:[%s5609_s1 + $0x694] sm:$0xf] }
  0xdb   : > { %2168 = vmatpush.bf16.msra.mxu0 %v3092_v8  ;;  %v1924_v7 = vpop.f32.mrf.mxu2  ;;  %v3185_v8 = vld [vmem:[%s5609_s1 + $0x508] sm:$0xf0]  ;;  %v3060_v17 = vor.u32 %v3713_v0, %v3057_v47  ;;  %v3817_v0 = vld [vmem:[%s5609_s1 + $0x744] sm:$0xf]  ;;  %v3385_v15 = vld [vmem:[%s5609_s1 + $0x698] sm:$0xf0] }
  0xdc   : > { %2182 = vmatpush.bf16.msra.mxu1 %v3156_v10  ;;  %v3249_v10 = vld [vmem:[%s5609_s1 + $0x588] sm:$0xf0]  ;;  %v1938_v12 = vpop.f32.mrf.mxu3 }
  0xdd   : > { %2196 = vmatpush.bf16.msra.mxu2 %v3220_v11  ;;  %v1925_v11 = vadd.f32 %v1924_v7, %v1911_v62  ;;  %v3252_v28 = vor.u32 %v3761_v9, %v3249_v10  ;;  %v3481_v62 = vld [vmem:[%s5609_s1 + $0x758] sm:$0xf0]  ;;  %v3473_v47 = vld [vmem:[%s5609_s1 + $0x748] sm:$0xf0]  ;;  %v3783_v9 = vld [vmem:[%s5609_s1 + $0x634] sm:$0xf] }
  0xde   : > { %2210 = vmatpush.bf16.msra.mxu3 %v3284_v16  ;;  %v3807_v16 = vld [vmem:[%s5609_s1 + $0x6f4] sm:$0xf]  ;;  %v3337_v10 = vld [vmem:[%s5609_s1 + $0x638] sm:$0xf0]  ;;  %v3457_v37 = vld [vmem:[%s5609_s1 + $0x728] sm:$0xf0] }
  0xdf   : > { %2169 = vmatpush.bf16.msra.mxu0 %v3084_v25  ;;  %v5393_v23 = vadd.f32 %v1938_v12, %v1925_v11  ;;  %v3188_v25 = vor.u32 %v3745_v5, %v3185_v8  ;;  %v3436_v33 = vor.u32 %v3807_v16, %v3433_v18  ;;  %v3476_v8 = vor.u32 %v3817_v0, %v3473_v47  ;;  %v3799_v11 = vld [vmem:[%s5609_s1 + $0x6b4] sm:$0xf]  ;;  %v3465_v16 = vld [vmem:[%s5609_s1 + $0x738] sm:$0xf0]  ;;  %v3521_v50 = vld [vmem:[%s5609_s1 + $0x7a8] sm:$0xf0] }
  0xe0   : > { %2183 = vmatpush.bf16.msra.mxu1 %v3148_v26  ;;  %v3839_v26 = vld [vmem:[%s5609_s1 + $0x7f4] sm:$0xf]  ;;  %v3529_v18 = vld [vmem:[%s5609_s1 + $0x7b8] sm:$0xf0]  ;;  %v3377_v0 = vld [vmem:[%s5609_s1 + $0x688] sm:$0xf0] }
  0xe1   : > { %2197 = vmatpush.bf16.msra.mxu2 %v3212_v27  ;;  %v3561_v27 = vld [vmem:[%s5609_s1 + $0x7f8] sm:$0xf0]  ;;  %v3809_v47 = vld [vmem:[%s5609_s1 + $0x704] sm:$0xf] }
  0xe2   : > { %2211 = vmatpush.bf16.msra.mxu3 %v3276_v34  ;;  %v3500_v34 = vor.u32 %v3823_v19, %v3497_v22  ;;  %v3564_v48 = vor.u32 %v3839_v26, %v3561_v27  ;;  %v3340_v19 = vor.u32 %v3783_v9, %v3337_v10  ;;  %v3404_v22 = vor.u32 %v3799_v11, %v3401_v13  ;;  %v3329_v26 = vld [vmem:[%s5609_s1 + $0x628] sm:$0xf0]  ;;  %v3797_v27 = vld [vmem:[%s5609_s1 + $0x6a4] sm:$0xf] }
  0xe3   : > { %2170 = vmatpush.bf16.msra.mxu0 %v3076_v55  ;;  %v3428_v55 = vor.u32 %v3805_v45, %v3425_v49  ;;  %v3829_v49 = vld [vmem:[%s5609_s1 + $0x7a4] sm:$0xf] }
  0xe4   : > { %2184 = vmatpush.bf16.msra.mxu1 %v3140_v58  ;;  %v3787_v58 = vld [vmem:[%s5609_s1 + $0x654] sm:$0xf] }
  0xe5   : > { %2198 = vmatpush.bf16.msra.mxu2 %v3204_v59  ;;  %v3353_v59 = vld [vmem:[%s5609_s1 + $0x658] sm:$0xf0] }
  0xe6   : > { %2212 = vmatpush.bf16.msra.mxu3 %v3268_v39  ;;  %v3819_v39 = vld [vmem:[%s5609_s1 + $0x754] sm:$0xf]  ;;  %v3356_v20 = vor.u32 %v3787_v58, %v3353_v59  ;;  %v3321_v59 = vld [vmem:[%s5609_s1 + $0x618] sm:$0xf0] }
  0xe7   : > { %2171 = vmatpush.bf16.msra.mxu0 %v3068_v44  ;;  %v3484_v29 = vor.u32 %v3819_v39, %v3481_v62  ;;  %v3409_v44 = vld [vmem:[%s5609_s1 + $0x6c8] sm:$0xf0]  ;;  %v3779_v58 = vld [vmem:[%s5609_s1 + $0x614] sm:$0xf]  ;;  %v3449_v62 = vld [vmem:[%s5609_s1 + $0x718] sm:$0xf0] }
  0xe8   : > { %2185 = vmatpush.bf16.msra.mxu1 %v3132_v1  ;;  %v3412_v7 = vor.u32 %v3801_v43, %v3409_v44  ;;  %v3811_v39 = vld [vmem:[%s5609_s1 + $0x714] sm:$0xf]  ;;  %v3793_v43 = vld [vmem:[%s5609_s1 + $0x684] sm:$0xf] }
  0xe9   : > { %2199 = vmatpush.bf16.msra.mxu2 %v3196_v2  ;;  %v3833_v2 = vld [vmem:[%s5609_s1 + $0x7c4] sm:$0xf] }
  0xea   : > { %2213 = vmatpush.bf16.msra.mxu3 %v3260_v6 }
  0xeb   : > { %2172 = vmatpush.bf16.msra.mxu0 %v3060_v17  ;;  %v1950_v1 = vpop.f32.mrf.mxu0  ;;  %v3831_v17 = vld [vmem:[%s5609_s1 + $0x7b4] sm:$0xf] }
  0xec   : > { %2186 = vmatpush.bf16.msra.mxu1 %v3124_v24  ;;  %v1951_v4 = vadd.f32 %v1950_v1, %v5325_v57  ;;  %v1964_v6 = vpop.f32.mrf.mxu1  ;;  %v3540_v57 = vor.u32 %v3833_v2, %v3537_v3  ;;  %v3468_v24 = vor.u32 %v3815_v14, %v3465_v16  ;;  %v3441_v1 = vld [vmem:[%s5609_s1 + $0x708] sm:$0xf0]  ;;  %v3896_v14 = vmov 16.0  }
  0xed   : > { %2200 = vmatpush.bf16.msra.mxu2 %v3188_v25  ;;  %v3781_v25 = vld [vmem:[%s5609_s1 + $0x624] sm:$0xf]  ;;  %v3444_v9 = vor.u32 %v3809_v47, %v3441_v1  ;;  %3866 = vrcp.f32 %v3896_v14 }
  0xee   : > { %2214 = vmatpush.bf16.msra.mxu3 %v3252_v28  ;;  %2173 = vmatmul.bf16.vlgmr.msra.gmra.mxu0 %v4598_v31  ;;  %v3835_v31 = vld [vmem:[%s5609_s1 + $0x7d4] sm:$0xf]  ;;  %v1965_v12 = vadd.f32 %v1964_v6, %v1951_v4  ;;  %v3532_v28 = vor.u32 %v3831_v17, %v3529_v18  ;;  %v3332_v52 = vor.u32 %v3781_v25, %v3329_v26  ;;  %v3825_v4 = vld [vmem:[%s5609_s1 + $0x784] sm:$0xf] }
  0xef   : > { %2221 = vmatpush.bf16.msrb.mxu0 %v3372_v30  ;;  %2187 = vmatmul.bf16.vlgmr.msra.gmra.mxu1 %v4611_v36  ;;  %v3345_v36 = vld [vmem:[%s5609_s1 + $0x648] sm:$0xf0] }
  0xf0   : > { %2235 = vmatpush.bf16.msrb.mxu1 %v3436_v33  ;;  %2201 = vmatmul.bf16.vlgmr.msra.gmra.mxu2 %v4609_v35  ;;  %v3785_v35 = vld [vmem:[%s5609_s1 + $0x644] sm:$0xf]  ;;  %v3393_v33 = vld [vmem:[%s5609_s1 + $0x6a8] sm:$0xf0] }
  0xf1   : > { %2249 = vmatpush.bf16.msrb.mxu2 %v3500_v34  ;;  %2215 = vmatmul.bf16.vlgmr.msra.gmra.mxu3 %v4619_v40  ;;  %v3548_v40 = vor.u32 %v3835_v31, %v3545_v63  ;;  %v3348_v5 = vor.u32 %v3785_v35, %v3345_v36  ;;  %v3813_v34 = vld [vmem:[%s5609_s1 + $0x724] sm:$0xf]  ;;  %v3827_v31 = vld [vmem:[%s5609_s1 + $0x794] sm:$0xf]  ;;  %v3513_v63 = vld [vmem:[%s5609_s1 + $0x798] sm:$0xf0] }
  0xf2   : > { %2263 = vmatpush.bf16.msrb.mxu3 %v3564_v48  ;;  %v3777_v35 = vld [vmem:[%s5609_s1 + $0x604] sm:$0xf]  ;;  %v3313_v36 = vld [vmem:[%s5609_s1 + $0x608] sm:$0xf0] }
  0xf3   : > { %2222 = vmatpush.bf16.msrb.mxu0 %v3364_v54  ;;  %v1978_v30 = vpop.f32.mrf.mxu2  ;;  %v1952_v45 = vpop.f32.mrf.mxu0  ;;  %v3316_v6 = vor.u32 %v3777_v35, %v3313_v36 }
  0xf4   : > { %2236 = vmatpush.bf16.msrb.mxu1 %v3428_v55  ;;  %v1979_v42 = vadd.f32 %v1978_v30, %v1965_v12  ;;  %v1992_v48 = vpop.f32.mrf.mxu3  ;;  %v1953_v51 = vadd.f32 %v1952_v45, %v5393_v23  ;;  %v1966_v53 = vpop.f32.mrf.mxu1  ;;  %v3396_v55 = vor.u32 %v3797_v27, %v3393_v33  ;;  %v3524_v23 = vor.u32 %v3829_v49, %v3521_v50 }
  0xf5   : > { %2250 = vmatpush.bf16.msrb.mxu2 %v3492_v56  ;;  %v3460_v56 = vor.u32 %v3813_v34, %v3457_v37  ;;  %v3867_v26 = vpop.eup %3866 }
  0xf6   : > { %2264 = vmatpush.bf16.msrb.mxu3 %v3556_v61  ;;  %v1993_v54 = vadd.f32 %v1992_v48, %v1979_v42  ;;  %v1967_v61 = vadd.f32 %v1966_v53, %v1953_v51  ;;  %v2292_v27 = vmul.f32 16.0, %v3867_v26  ;;  %vm2296_vm0 = vweird.f32 %v3867_v26 }
  0xf7   : > { %2223 = vmatpush.bf16.msrb.mxu0 %v3356_v20  ;;  %v3324_v20 = vor.u32 %v3779_v58, %v3321_v59 }
  0xf8   : > { %2237 = vmatpush.bf16.msrb.mxu1 %v3420_v21  ;;  %v3388_v21 = vor.u32 %v3795_v60, %v3385_v15  ;;  %v2293_v30 = vsub.f32 1.0, %v2292_v27 }
  0xf9   : > { %2251 = vmatpush.bf16.msrb.mxu2 %v3484_v29  ;;  %v3452_v29 = vor.u32 %v3811_v39, %v3449_v62 }
  0xfa   : > { %2265 = vmatpush.bf16.msrb.mxu3 %v3548_v40  ;;  %v3516_v40 = vor.u32 %v3827_v31, %v3513_v63  ;;  %v2294_v37 = vmul.f32 %v3867_v26, %v2293_v30 }
  0xfb   : > { %2224 = vmatpush.bf16.msrb.mxu0 %v3348_v5  ;;  %v1980_v44 = vpop.f32.mrf.mxu2  ;;  %v3505_v5 = vld [vmem:[%s5609_s1 + $0x788] sm:$0xf0] }
  0xfc   : > { %2238 = vmatpush.bf16.msrb.mxu1 %v3412_v7  ;;  %v1981_v2 = vadd.f32 %v1980_v44, %v1967_v61  ;;  %v1994_v3 = vpop.f32.mrf.mxu3  ;;  %v3508_v10 = vor.u32 %v3825_v4, %v3505_v5  ;;  %v2295_v48 = vadd.f32 %v3867_v26, %v2294_v37 }
  0xfd   : > { %2252 = vmatpush.bf16.msrb.mxu2 %v3476_v8  ;;  %v3380_v8 = vor.u32 %v3793_v43, %v3377_v0 }
  0xfe   : > { %2266 = vmatpush.bf16.msrb.mxu3 %v3540_v57  ;;  %v1995_v7 = vadd.f32 %v1994_v3, %v1981_v2  ;;  %v5579_v51 = vsel %vm2296_vm0, %v3867_v26, %v2295_v48 }
  0xff   : > { %2225 = vmatpush.bf16.msrb.mxu0 %v3340_v19 }
 0x100   : > { %2239 = vmatpush.bf16.msrb.mxu1 %v3404_v22 }
 0x101   : > { %2253 = vmatpush.bf16.msrb.mxu2 %v3468_v24 }
 0x102   : > { %2267 = vmatpush.bf16.msrb.mxu3 %v3532_v28 }
 0x103   : > { %2226 = vmatpush.bf16.msrb.mxu0 %v3332_v52 }
 0x104   : > { %2240 = vmatpush.bf16.msrb.mxu1 %v3396_v55 }
 0x105   : > { %2254 = vmatpush.bf16.msrb.mxu2 %v3460_v56 }
 0x106   : > { %2268 = vmatpush.bf16.msrb.mxu3 %v3524_v23 }
 0x107   : > { %2227 = vmatpush.bf16.msrb.mxu0 %v3324_v20 }
 0x108   : > { %2241 = vmatpush.bf16.msrb.mxu1 %v3388_v21 }
 0x109   : > { %2255 = vmatpush.bf16.msrb.mxu2 %v3452_v29 }
 0x10a   : > { %2269 = vmatpush.bf16.msrb.mxu3 %v3516_v40 }
 0x10b   : > { %2228 = vmatpush.bf16.msrb.mxu0 %v3316_v6  ;;  %v2006_v11 = vpop.f32.mrf.mxu0 }
 0x10c   : > { %2242 = vmatpush.bf16.msrb.mxu1 %v3380_v8  ;;  %v2007_v57 = vadd.f32 %v2006_v11, %v1993_v54  ;;  %v2020_v12 = vpop.f32.mrf.mxu1 }
 0x10d   : > { %2256 = vmatpush.bf16.msrb.mxu2 %v3444_v9 }
 0x10e   : > { %2270 = vmatpush.bf16.msrb.mxu3 %v3508_v10  ;;  %2229 = vmatmul.bf16.vlgmr.msrb.gmra.mxu0 %v4810_v32  ;;  %v2021_v13 = vadd.f32 %v2020_v12, %v2007_v57 }
 0x10f   : > { %2243 = vmatmul.bf16.vlgmr.msrb.gmra.mxu1 %v4823_v41 }
 0x110   : > { %2257 = vmatmul.bf16.vlgmr.msrb.gmra.mxu2 %v4821_v38 }
 0x111   : > { %2271 = vmatmul.bf16.vlgmr.msrb.gmra.mxu3 %v4831_v46 }
 0x113   : > { %v2034_v16 = vpop.f32.mrf.mxu2  ;;  %v2008_v18 = vpop.f32.mrf.mxu0 }
 0x114   : > { %v2035_v17 = vadd.f32 %v2034_v16, %v2021_v13  ;;  %v2048_v19 = vpop.f32.mrf.mxu3  ;;  %v2009_v22 = vadd.f32 %v2008_v18, %v1995_v7  ;;  %v2022_v24 = vpop.f32.mrf.mxu1 }
 0x116   : > { %v2049_v25 = vadd.f32 %v2048_v19, %v2035_v17  ;;  %v2023_v32 = vadd.f32 %v2022_v24, %v2009_v22 }
 0x11b   : > { %v2036_v41 = vpop.f32.mrf.mxu2 }
 0x11c   : > { %v2037_v38 = vadd.f32 %v2036_v41, %v2023_v32  ;;  %v2050_v28 = vpop.f32.mrf.mxu3 }
 0x11e   : > { %v2051_v46 = vadd.f32 %v2050_v28, %v2037_v38 }
 0x120   : > { %v2277_v33 = vadd.f32 %v2051_v46, %v2049_v25 }
 0x122   : > { %v2278_v34 = vrot.slane %v2277_v33, 4 }
 0x124   : > { %v2279_v42 = vadd.f32 %v2278_v34, %v2277_v33 }
 0x126   : > { %v2280_v45 = vrot.slane %v2279_v42, 2 }
 0x128   : > { %v2281_v49 = vadd.f32 %v2280_v45, %v2279_v42 }
 0x12a   : > { %v2282_v50 = vrot.slane %v2281_v49, 1 }
 0x12b   : > { %v2062_v20 = vpop.f32.mrf.mxu0 }
 0x12c   : > { %v2283_v52 = vadd.f32 %v2282_v50, %v2281_v49  ;;  %v2076_v35 = vpop.f32.mrf.mxu1 }
 0x12d   : > { %v2077_v10 = vadd.f32 %v2076_v35, %v2062_v20 }
 0x12e   : > { %v2298_v53 = vmul.f32 %v5579_v51, %v2283_v52 }
 0x130   : > { %v2300_v54 = vsub.f32 %v2049_v25, %v2298_v53  ;;  %v2302_v55 = vsub.f32 %v2051_v46, %v2298_v53 }
 0x132   : > { %v2304_v56 = vmul.f32 %v2300_v54, %v2300_v54  ;;  %v2306_v58 = vmul.f32 %v2302_v55, %v2302_v55 }
 0x133   : > { %v2090_v40 = vpop.f32.mrf.mxu2  ;;  %v2064_v1 = vpop.f32.mrf.mxu0 }
 0x134   : > { %v2308_v59 = vadd.f32 %v2306_v58, %v2304_v56  ;;  %v2104_v0 = vpop.f32.mrf.mxu3  ;;  %v2078_v5 = vpop.f32.mrf.mxu1  ;;  %v2091_v12 = vadd.f32 %v2090_v40, %v2077_v10 }
 0x135   : > { %v2079_v14 = vadd.f32 %v2078_v5, %v2064_v1 }
 0x136   : > { %v2309_v60 = vrot.slane %v2308_v59, 4  ;;  %v2105_v17 = vadd.f32 %v2104_v0, %v2091_v12 }
 0x138   : > { %v2310_v23 = vadd.f32 %v2309_v60, %v2308_v59 }
 0x13a   : > { %v2311_v61 = vrot.slane %v2310_v23, 2 }
 0x13b   : > { %v2092_v6 = vpop.f32.mrf.mxu2 }
 0x13c   : > { %v2312_v15 = vadd.f32 %v2311_v61, %v2310_v23  ;;  %v2106_v7 = vpop.f32.mrf.mxu3  ;;  %v2093_v18 = vadd.f32 %v2092_v6, %v2079_v14 }
 0x13e   : > { %v2313_v39 = vrot.slane %v2312_v15, 1  ;;  %v2107_v32 = vadd.f32 %v2106_v7, %v2093_v18 }
 0x140   : > { %v2314_v62 = vadd.f32 %v2313_v39, %v2312_v15 }
 0x142   : > { %v2322_v31 = vmul.f32 %v2314_v62, %v5579_v51 }
 0x144   : > { %v2324_v63 = vadd.f32 1e-05, %v2322_v31 }
 0x146   : > { %3868 = vrsqrt.f32 %v2324_v63  ;;  %vm2332_vm2 = vweird.f32 %v2324_v63 }
 0x14b   : > { %v2118_v8 = vpop.f32.mrf.mxu0 }
 0x14c   : > { %v3869_v21 = vpop.eup %3868  ;;  %v2132_v9 = vpop.f32.mrf.mxu1  ;;  %v2119_v22 = vadd.f32 %v2118_v8, %v2105_v17 }
 0x14d   : > { %v2327_v29 = vmul.f32 %v3869_v21, %v2324_v63  ;;  %vm2333_vm1 = vweird.f32 %v3869_v21 }
 0x14e   : > { %vm2334_vm3 = vmor %vm2332_vm2, %vm2333_vm1  ;;  %v2133_v41 = vadd.f32 %v2132_v9, %v2119_v22 }
 0x14f   : > { %v2328_v36 = vmul.f32 %v3869_v21, %v2327_v29 }
 0x151   : > { %v2329_v43 = vmul.f32 0.5, %v2328_v36 }
 0x153   : > { %v2330_v44 = vsub.f32 1.5, %v2329_v43  ;;  %v2146_v11 = vpop.f32.mrf.mxu2  ;;  %v2120_v13 = vpop.f32.mrf.mxu0 }
 0x154   : > { %v2160_v57 = vpop.f32.mrf.mxu3  ;;  %v2134_v16 = vpop.f32.mrf.mxu1  ;;  %v2121_v27 = vadd.f32 %v2120_v13, %v2107_v32  ;;  %v2147_v28 = vadd.f32 %v2146_v11, %v2133_v41 }
 0x155   : > { %v2331_v47 = vmul.f32 %v3869_v21, %v2330_v44 }
 0x156   : > { %v2135_v46 = vadd.f32 %v2134_v16, %v2121_v27  ;;  %v2161_v37 = vadd.f32 %v2160_v57, %v2147_v28 }
 0x157   : > { %v2335_v2 = vsel %vm2334_vm3, %v3869_v21, %v2331_v47 }
 0x158   : > { %v5583_v3 = vmul.f32 %v2335_v2, %v2300_v54  ;;  %v5585_v4 = vmul.f32 %v2335_v2, %v2302_v55 }
 0x15a   : > { %vm2350_vm7 = vcmp.ge.f32.partialorder %v5583_v3, 0.0  ;;  %vm2352_vm8 = vcmp.ge.f32.partialorder %v5585_v4, 0.0 }
 0x15b   : > { %v2148_v19 = vpop.f32.mrf.mxu2 }
 0x15c   : > { %v2162_v24 = vpop.f32.mrf.mxu3  ;;  %v2149_v33 = vadd.f32 %v2148_v19, %v2135_v46  ;;  %v2354_v46 = vmul.f32 0.2, %v5583_v3 }
 0x15e   : > { %v2163_v45 = vadd.f32 %v2162_v24, %v2149_v33 }
 0x16b   : > { %v2174_v25 = vpop.f32.mrf.mxu0 }
 0x16c   : > { %v2188_v26 = vpop.f32.mrf.mxu1  ;;  %v2175_v48 = vadd.f32 %v2174_v25, %v2161_v37 }
 0x16e   : > { %v2189_v52 = vadd.f32 %v2188_v26, %v2175_v48 }
 0x173   : > { %v2202_v38 = vpop.f32.mrf.mxu2  ;;  %v2176_v34 = vpop.f32.mrf.mxu0 }
 0x174   : > { %v2216_v30 = vpop.f32.mrf.mxu3  ;;  %v2190_v42 = vpop.f32.mrf.mxu1  ;;  %v2177_v49 = vadd.f32 %v2176_v34, %v2163_v45  ;;  %v2203_v55 = vadd.f32 %v2202_v38, %v2189_v52 }
 0x176   : > { %v2191_v56 = vadd.f32 %v2190_v42, %v2177_v49  ;;  %v2217_v60 = vadd.f32 %v2216_v30, %v2203_v55  ;;  %v2356_v30 = vmul.f32 0.2, %v5585_v4  ;;  %v2358_v42 = vsel %vm2350_vm7, %v5583_v3, %v2354_v46 }
 0x178   : > { %v2360_v45 = vsel %vm2352_vm8, %v5585_v4, %v2356_v30 }
 0x17b   : > { %v2204_v50 = vpop.f32.mrf.mxu2 }
 0x17c   : > { %v2218_v53 = vpop.f32.mrf.mxu3  ;;  %v2205_v59 = vadd.f32 %v2204_v50, %v2191_v56 }
 0x17e   : > { %v2219_v61 = vadd.f32 %v2218_v53, %v2205_v59 }
 0x18b   : > { %v2230_v54 = vpop.f32.mrf.mxu0 }
 0x18c   : > { %v2244_v58 = vpop.f32.mrf.mxu1  ;;  %v2231_v15 = vadd.f32 %v2230_v54, %v2217_v60 }
 0x18e   : > { %v2245_v63 = vadd.f32 %v2244_v58, %v2231_v15 }
 0x193   : > { %v2258_v23 = vpop.f32.mrf.mxu2  ;;  %v2232_v62 = vpop.f32.mrf.mxu0 }
 0x194   : > { %v2272_v39 = vpop.f32.mrf.mxu3  ;;  %v2233_v31 = vadd.f32 %v2232_v62, %v2219_v61  ;;  %v2246_v20 = vpop.f32.mrf.mxu1  ;;  %v2259_v21 = vadd.f32 %v2258_v23, %v2245_v63 }
 0x196   : > { %v2247_v29 = vadd.f32 %v2246_v20, %v2233_v31  ;;  %v2273_v40 = vadd.f32 %v2272_v39, %v2259_v21 }
 0x19b   : > { %v2260_v35 = vpop.f32.mrf.mxu2 }
 0x19c   : > { %v2261_v36 = vadd.f32 %v2260_v35, %v2247_v29  ;;  %v2274_v43 = vpop.f32.mrf.mxu3 }
 0x19e   : > { %v2275_v44 = vadd.f32 %v2274_v43, %v2261_v36 }
 0x1a0   : > { %v2284_v0 = vadd.f32 %v2275_v44, %v2273_v40 }
 0x1a2   : > { %v2285_v47 = vrot.slane %v2284_v0, 4 }
 0x1a4   : > { %v2286_v1 = vadd.f32 %v2285_v47, %v2284_v0 }
 0x1a6   : > { %v2287_v2 = vrot.slane %v2286_v1, 2 }
 0x1a8   : > { %v2288_v5 = vadd.f32 %v2287_v2, %v2286_v1 }
 0x1aa   : > { %v2289_v6 = vrot.slane %v2288_v5, 1 }
 0x1ac   : > { %v2290_v7 = vadd.f32 %v2289_v6, %v2288_v5 }
 0x1ae   : > { %v2299_v8 = vmul.f32 %v5579_v51, %v2290_v7 }
 0x1b0   : > { %v2301_v9 = vsub.f32 %v2273_v40, %v2299_v8  ;;  %v2303_v10 = vsub.f32 %v2275_v44, %v2299_v8 }
 0x1b2   : > { %v2305_v11 = vmul.f32 %v2301_v9, %v2301_v9  ;;  %v2307_v57 = vmul.f32 %v2303_v10, %v2303_v10 }
 0x1b4   : > { %v2315_v12 = vadd.f32 %v2307_v57, %v2305_v11 }
 0x1b6   : > { %v2316_v13 = vrot.slane %v2315_v12, 4 }
 0x1b8   : > { %v2317_v14 = vadd.f32 %v2316_v13, %v2315_v12 }
 0x1ba   : > { %v2318_v16 = vrot.slane %v2317_v14, 2 }
 0x1bc   : > { %v2319_v17 = vadd.f32 %v2318_v16, %v2317_v14 }
 0x1be   : > { %v2320_v18 = vrot.slane %v2319_v17, 1 }
 0x1c0   : > { %v2321_v19 = vadd.f32 %v2320_v18, %v2319_v17 }
 0x1c2   : > { %v2323_v22 = vmul.f32 %v2321_v19, %v5579_v51 }
 0x1c4   : > { %v2325_v24 = vadd.f32 1e-05, %v2323_v22 }
 0x1c6   : > { %3870 = vrsqrt.f32 %v2325_v24  ;;  %vm2342_vm5 = vweird.f32 %v2325_v24 }
 0x1cc   : > { %v3871_v25 = vpop.eup %3870 }
 0x1cd   : > { %v2337_v32 = vmul.f32 %v3871_v25, %v2325_v24  ;;  %vm2343_vm4 = vweird.f32 %v3871_v25 }
 0x1ce   : > { %vm2344_vm6 = vmor %vm2342_vm5, %vm2343_vm4 }
 0x1cf   : > { %v2338_v26 = vmul.f32 %v3871_v25, %v2337_v32 }
 0x1d1   : > { %v2339_v41 = vmul.f32 0.5, %v2338_v26 }
 0x1d3   : > { %v2340_v27 = vsub.f32 1.5, %v2339_v41 }
 0x1d5   : > { %v2341_v38 = vmul.f32 %v3871_v25, %v2340_v27 }
 0x1d7   : > { %v2345_v28 = vsel %vm2344_vm6, %v3871_v25, %v2341_v38 }
 0x1d8   : > { %v2347_v33 = vmul.f32 %v2345_v28, %v2301_v9  ;;  %v2349_v34 = vmul.f32 %v2345_v28, %v2303_v10 }
 0x1da   : > { %vm2351_vm9 = vcmp.ge.f32.partialorder %v2347_v33, 0.0  ;;  %vm2353_vm10 = vcmp.ge.f32.partialorder %v2349_v34, 0.0  ;;  %v2355_v51 = vmul.f32 0.2, %v2347_v33  ;;  %v2357_v37 = vmul.f32 0.2, %v2349_v34 }
 0x1dc   : > { %v2359_v48 = vsel %vm2351_vm9, %v2347_v33, %v2355_v51  ;;  %v2361_v49 = vsel %vm2353_vm10, %v2349_v34, %v2357_v37 }
 0x1dd   : > { %v2362_v50 = vpack.c.bf16 %v2359_v48, %v2358_v42  ;;  %v2363_v52 = vpack.c.bf16 %v2361_v49, %v2360_v45 }
 0x1df   : > { %2364 = vst [vmem:[%s194_s26] sm:$0xff] %v2362_v50 }
 0x1e0   : > { %2365 = vst [vmem:[%s194_s26 + $0x8] sm:$0xff] %v2363_v52 }
 0x1e1 PF: > { %s12_s11 = sadd.s32 1, %s3894_s11   ;;  %s5611_s9 = smov %s3890_s10 }
 0x1e2   : > { %p9_p5 = scmp.ge.s32.totalorder %s12_s11, 4   ;;  %s5612_s10 = smov %s5614_s12 }
 0x1e4   :  { %11 = sbr.rel (!%p9_p5) target bundleno = 2 (0x2), region = 61 }

// kernel: _lambda_.8
= control target key start
LH: loop header
LB: loop body
LE: loop exit
PB: predicated region body
PF: predicated region fallthrough
CT: control target
= control target key end

     0   :  { %s11368_s9 = smov 0   ;;  %s11370_s10 = smov 0   ;;  %s13718_s0 = inlined_call_operand.vmem [shape: bf16[8,4096], index: 0, kind: input, shape index: {}]   ;;  %s13719_s1 = inlined_call_operand.vmem [shape: bf16[4096,512], index: 1, kind: input, shape index: {}]   ;;  %s13720_s2 = inlined_call_operand.vmem [shape: bf16[8,512], index: 2, kind: output, shape index: {}]  }
   0x1   :  { %s11372_s11 = smov 0   ;;  %s11374_s12 = smov 0  }
   0x2   :  { %s11376_s13 = smov 0  }
   0x3 LB: > { %s24_s14 = sadd.s32 1, %s11346_s12  ;;  %p64_p1 = scmp.ne.s32.totalorder %s11338_s10, %s11334_s9  ;;  %s11350_s13 = sphi %s11376_s13, %s12_s13   ;;  %s11346_s12 = sphi %s11374_s12, %s13724_s12   ;;  %s11342_s11 = sphi %s11372_s11, %s13723_s11   ;;  %s11338_s10 = sphi %s11370_s10, %s13722_s10   ;;  %s11334_s9 = sphi %s11368_s9, %s13721_s9  }
   0x4   : > { %p26_p0 = scmp.ge.s32.totalorder %s24_s14, 2  ;;  %p65_p2 = scmp.eq.s32.totalorder %s11350_s13, 0 }
   0x5   : > { %s57_s16 = sadd.s32 1, %s11338_s10  ;;  %p8690_p5 = scmp.ge.s32.totalorder %s11350_s13, 2 }
   0x6   : > { %s13726_s14 = smov (%p26_p0, %s24_s14), 0  ;;  %p66_p3 = por %p65_p2, %p64_p1 }
   0x7   : > { %s54_s15 = ssub.s32 %s11346_s12, %s13726_s14  ;;  %126 = sbr.rel (%p8690_p5) target bundleno = 528 (0x210), region = 20 }
   0x8   : > { %p55_p4 = scmp.eq.s32.totalorder %s54_s15, 0 }
   0xa   : > { %s11403_s17 = scalar_select %p55_p4, %s11338_s10, %s57_s16  }
   0xc   : > { %129 = sbr.rel (!%p66_p3) target bundleno = 528 (0x210), region = 24  ;;  %s131_s18 = sand.u32 (%p66_p3), 1, %s11338_s10  }
   0xd   : > { %s10748_s19 = sshll.u32 (%p66_p3), %s11346_s12, 3  ;;  %s8691_s20 = sshll.u32 (%p66_p3), %s131_s18, 12 }
   0xe   : > { %s11411_s23 = scalar_lea.vmem (%p66_p3), %s13719_s1, %s10748_s19  ;;  %s11416_s24 = scalar_lea.vmem (%p66_p3), [#allocation2], %s8691_s20 }
   0xf   : > { %v1188_v0 = vld [vmem:[%s11411_s23] sm:$0xff] (%p66_p3)  ;;  %v1190_v1 = vld [vmem:[%s11411_s23 + $0x10] sm:$0xff] (%p66_p3) }
  0x10   : > { %v1192_v2 = vld [vmem:[%s11411_s23 + $0x20] sm:$0xff] (%p66_p3)  ;;  %1189 = vst [vmem:[%s11416_s24] sm:$0xff] (%p66_p3), %v1188_v0  ;;  %v1194_v3 = vld [vmem:[%s11411_s23 + $0x30] sm:$0xff] (%p66_p3) }
  0x11   : > { %1191 = vst [vmem:[%s11416_s24 + $0x8] sm:$0xff] %v1190_v1  ;;  %v1196_v4 = vld [vmem:[%s11411_s23 + $0x40] sm:$0xff]  ;;  %v1198_v5 = vld [vmem:[%s11411_s23 + $0x50] sm:$0xff] }
  0x12   : > { %1193 = vst [vmem:[%s11416_s24 + $0x10] sm:$0xff] %v1192_v2  ;;  %v1200_v6 = vld [vmem:[%s11411_s23 + $0x60] sm:$0xff]  ;;  %v1202_v7 = vld [vmem:[%s11411_s23 + $0x70] sm:$0xff] }
  0x13   : > { %1195 = vst [vmem:[%s11416_s24 + $0x18] sm:$0xff] %v1194_v3  ;;  %v1204_v8 = vld [vmem:[%s11411_s23 + $0x80] sm:$0xff]  ;;  %v1206_v9 = vld [vmem:[%s11411_s23 + $0x90] sm:$0xff] }
  0x14   : > { %1197 = vst [vmem:[%s11416_s24 + $0x20] sm:$0xff] %v1196_v4  ;;  %v1208_v10 = vld [vmem:[%s11411_s23 + $0xa0] sm:$0xff]  ;;  %v1210_v11 = vld [vmem:[%s11411_s23 + $0xb0] sm:$0xff] }
  0x15   : > { %1199 = vst [vmem:[%s11416_s24 + $0x28] sm:$0xff] %v1198_v5  ;;  %v1212_v12 = vld [vmem:[%s11411_s23 + $0xc0] sm:$0xff]  ;;  %v1214_v13 = vld [vmem:[%s11411_s23 + $0xd0] sm:$0xff] }
  0x16   : > { %1201 = vst [vmem:[%s11416_s24 + $0x30] sm:$0xff] %v1200_v6  ;;  %v1216_v14 = vld [vmem:[%s11411_s23 + $0xe0] sm:$0xff]  ;;  %v1218_v15 = vld [vmem:[%s11411_s23 + $0xf0] sm:$0xff] }
  0x17   : > { %1203 = vst [vmem:[%s11416_s24 + $0x38] sm:$0xff] %v1202_v7  ;;  %v1220_v16 = vld [vmem:[%s11411_s23 + $0x100] sm:$0xff]  ;;  %v1222_v17 = vld [vmem:[%s11411_s23 + $0x110] sm:$0xff] }
  0x18   : > { %1205 = vst [vmem:[%s11416_s24 + $0x40] sm:$0xff] %v1204_v8  ;;  %v1224_v18 = vld [vmem:[%s11411_s23 + $0x120] sm:$0xff]  ;;  %v1226_v19 = vld [vmem:[%s11411_s23 + $0x130] sm:$0xff] }
  0x19   : > { %1207 = vst [vmem:[%s11416_s24 + $0x48] sm:$0xff] %v1206_v9  ;;  %v1228_v20 = vld [vmem:[%s11411_s23 + $0x140] sm:$0xff]  ;;  %v1230_v21 = vld [vmem:[%s11411_s23 + $0x150] sm:$0xff] }
  0x1a   : > { %1209 = vst [vmem:[%s11416_s24 + $0x50] sm:$0xff] %v1208_v10  ;;  %v1232_v22 = vld [vmem:[%s11411_s23 + $0x160] sm:$0xff]  ;;  %v1234_v23 = vld [vmem:[%s11411_s23 + $0x170] sm:$0xff] }
  0x1b   : > { %1211 = vst [vmem:[%s11416_s24 + $0x58] sm:$0xff] %v1210_v11  ;;  %v1236_v24 = vld [vmem:[%s11411_s23 + $0x180] sm:$0xff]  ;;  %v1238_v25 = vld [vmem:[%s11411_s23 + $0x190] sm:$0xff] }
  0x1c   : > { %1213 = vst [vmem:[%s11416_s24 + $0x60] sm:$0xff] %v1212_v12  ;;  %v1240_v26 = vld [vmem:[%s11411_s23 + $0x1a0] sm:$0xff]  ;;  %v1242_v27 = vld [vmem:[%s11411_s23 + $0x1b0] sm:$0xff] }
  0x1d   : > { %1215 = vst [vmem:[%s11416_s24 + $0x68] sm:$0xff] %v1214_v13  ;;  %v1244_v28 = vld [vmem:[%s11411_s23 + $0x1c0] sm:$0xff]  ;;  %v1246_v29 = vld [vmem:[%s11411_s23 + $0x1d0] sm:$0xff] }
  0x1e   : > { %1217 = vst [vmem:[%s11416_s24 + $0x70] sm:$0xff] %v1216_v14  ;;  %v1248_v30 = vld [vmem:[%s11411_s23 + $0x1e0] sm:$0xff]  ;;  %v1250_v31 = vld [vmem:[%s11411_s23 + $0x1f0] sm:$0xff] }
  0x1f   : > { %1219 = vst [vmem:[%s11416_s24 + $0x78] sm:$0xff] %v1218_v15  ;;  %v1252_v32 = vld [vmem:[%s11411_s23 + $0x200] sm:$0xff]  ;;  %v1254_v33 = vld [vmem:[%s11411_s23 + $0x210] sm:$0xff] }
  0x20   : > { %1221 = vst [vmem:[%s11416_s24 + $0x80] sm:$0xff] %v1220_v16  ;;  %v1256_v34 = vld [vmem:[%s11411_s23 + $0x220] sm:$0xff]  ;;  %v1258_v35 = vld [vmem:[%s11411_s23 + $0x230] sm:$0xff] }
  0x21   : > { %1223 = vst [vmem:[%s11416_s24 + $0x88] sm:$0xff] %v1222_v17  ;;  %v1260_v36 = vld [vmem:[%s11411_s23 + $0x240] sm:$0xff]  ;;  %v1262_v37 = vld [vmem:[%s11411_s23 + $0x250] sm:$0xff] }
  0x22   : > { %1225 = vst [vmem:[%s11416_s24 + $0x90] sm:$0xff] %v1224_v18  ;;  %v1264_v38 = vld [vmem:[%s11411_s23 + $0x260] sm:$0xff]  ;;  %v1266_v39 = vld [vmem:[%s11411_s23 + $0x270] sm:$0xff] }
  0x23   : > { %1227 = vst [vmem:[%s11416_s24 + $0x98] sm:$0xff] %v1226_v19  ;;  %v1268_v40 = vld [vmem:[%s11411_s23 + $0x280] sm:$0xff]  ;;  %v1270_v41 = vld [vmem:[%s11411_s23 + $0x290] sm:$0xff] }
  0x24   : > { %1229 = vst [vmem:[%s11416_s24 + $0xa0] sm:$0xff] %v1228_v20  ;;  %v1272_v42 = vld [vmem:[%s11411_s23 + $0x2a0] sm:$0xff]  ;;  %v1274_v43 = vld [vmem:[%s11411_s23 + $0x2b0] sm:$0xff] }
  0x25   : > { %1231 = vst [vmem:[%s11416_s24 + $0xa8] sm:$0xff] %v1230_v21  ;;  %v1276_v44 = vld [vmem:[%s11411_s23 + $0x2c0] sm:$0xff]  ;;  %v1278_v45 = vld [vmem:[%s11411_s23 + $0x2d0] sm:$0xff] }
  0x26   : > { %1233 = vst [vmem:[%s11416_s24 + $0xb0] sm:$0xff] %v1232_v22  ;;  %v1280_v46 = vld [vmem:[%s11411_s23 + $0x2e0] sm:$0xff]  ;;  %v1282_v47 = vld [vmem:[%s11411_s23 + $0x2f0] sm:$0xff] }
  0x27   : > { %1235 = vst [vmem:[%s11416_s24 + $0xb8] sm:$0xff] %v1234_v23  ;;  %v1284_v48 = vld [vmem:[%s11411_s23 + $0x300] sm:$0xff]  ;;  %v1286_v49 = vld [vmem:[%s11411_s23 + $0x310] sm:$0xff] }
  0x28   : > { %1237 = vst [vmem:[%s11416_s24 + $0xc0] sm:$0xff] %v1236_v24  ;;  %v1288_v50 = vld [vmem:[%s11411_s23 + $0x320] sm:$0xff]  ;;  %v1290_v51 = vld [vmem:[%s11411_s23 + $0x330] sm:$0xff] }
  0x29   : > { %1239 = vst [vmem:[%s11416_s24 + $0xc8] sm:$0xff] %v1238_v25  ;;  %v1292_v52 = vld [vmem:[%s11411_s23 + $0x340] sm:$0xff]  ;;  %v1294_v53 = vld [vmem:[%s11411_s23 + $0x350] sm:$0xff] }
  0x2a   : > { %1241 = vst [vmem:[%s11416_s24 + $0xd0] sm:$0xff] %v1240_v26  ;;  %v1296_v54 = vld [vmem:[%s11411_s23 + $0x360] sm:$0xff]  ;;  %v1298_v55 = vld [vmem:[%s11411_s23 + $0x370] sm:$0xff] }
  0x2b   : > { %1243 = vst [vmem:[%s11416_s24 + $0xd8] sm:$0xff] %v1242_v27  ;;  %v1300_v56 = vld [vmem:[%s11411_s23 + $0x380] sm:$0xff]  ;;  %v1302_v57 = vld [vmem:[%s11411_s23 + $0x390] sm:$0xff] }
  0x2c   : > { %1245 = vst [vmem:[%s11416_s24 + $0xe0] sm:$0xff] %v1244_v28  ;;  %v1304_v58 = vld [vmem:[%s11411_s23 + $0x3a0] sm:$0xff]  ;;  %v1306_v59 = vld [vmem:[%s11411_s23 + $0x3b0] sm:$0xff] }
  0x2d   : > { %1247 = vst [vmem:[%s11416_s24 + $0xe8] sm:$0xff] %v1246_v29  ;;  %v1308_v60 = vld [vmem:[%s11411_s23 + $0x3c0] sm:$0xff]  ;;  %v1310_v61 = vld [vmem:[%s11411_s23 + $0x3d0] sm:$0xff] }
  0x2e   : > { %1249 = vst [vmem:[%s11416_s24 + $0xf0] sm:$0xff] %v1248_v30  ;;  %v1312_v62 = vld [vmem:[%s11411_s23 + $0x3e0] sm:$0xff]  ;;  %v1314_v63 = vld [vmem:[%s11411_s23 + $0x3f0] sm:$0xff] }
  0x2f   : > { %1251 = vst [vmem:[%s11416_s24 + $0xf8] sm:$0xff] %v1250_v31  ;;  %v1316_v0 = vld [vmem:[%s11411_s23 + $0x400] sm:$0xff]  ;;  %v1318_v1 = vld [vmem:[%s11411_s23 + $0x410] sm:$0xff] }
  0x30   : > { %1253 = vst [vmem:[%s11416_s24 + $0x100] sm:$0xff] %v1252_v32  ;;  %v1320_v2 = vld [vmem:[%s11411_s23 + $0x420] sm:$0xff]  ;;  %v1322_v3 = vld [vmem:[%s11411_s23 + $0x430] sm:$0xff] }
  0x31   : > { %1255 = vst [vmem:[%s11416_s24 + $0x108] sm:$0xff] %v1254_v33  ;;  %v1324_v4 = vld [vmem:[%s11411_s23 + $0x440] sm:$0xff]  ;;  %v1326_v5 = vld [vmem:[%s11411_s23 + $0x450] sm:$0xff] }
  0x32   : > { %1257 = vst [vmem:[%s11416_s24 + $0x110] sm:$0xff] %v1256_v34  ;;  %v1328_v6 = vld [vmem:[%s11411_s23 + $0x460] sm:$0xff]  ;;  %v1330_v7 = vld [vmem:[%s11411_s23 + $0x470] sm:$0xff] }
  0x33   : > { %1259 = vst [vmem:[%s11416_s24 + $0x118] sm:$0xff] %v1258_v35  ;;  %v1332_v8 = vld [vmem:[%s11411_s23 + $0x480] sm:$0xff]  ;;  %v1334_v9 = vld [vmem:[%s11411_s23 + $0x490] sm:$0xff] }
  0x34   : > { %1261 = vst [vmem:[%s11416_s24 + $0x120] sm:$0xff] %v1260_v36  ;;  %v1336_v10 = vld [vmem:[%s11411_s23 + $0x4a0] sm:$0xff]  ;;  %v1338_v11 = vld [vmem:[%s11411_s23 + $0x4b0] sm:$0xff] }
  0x35   : > { %1263 = vst [vmem:[%s11416_s24 + $0x128] sm:$0xff] %v1262_v37  ;;  %v1340_v12 = vld [vmem:[%s11411_s23 + $0x4c0] sm:$0xff]  ;;  %v1342_v13 = vld [vmem:[%s11411_s23 + $0x4d0] sm:$0xff] }
  0x36   : > { %1265 = vst [vmem:[%s11416_s24 + $0x130] sm:$0xff] %v1264_v38  ;;  %v1344_v14 = vld [vmem:[%s11411_s23 + $0x4e0] sm:$0xff]  ;;  %v1346_v15 = vld [vmem:[%s11411_s23 + $0x4f0] sm:$0xff] }
  0x37   : > { %1267 = vst [vmem:[%s11416_s24 + $0x138] sm:$0xff] %v1266_v39  ;;  %v1348_v16 = vld [vmem:[%s11411_s23 + $0x500] sm:$0xff]  ;;  %v1350_v17 = vld [vmem:[%s11411_s23 + $0x510] sm:$0xff] }
  0x38   : > { %1269 = vst [vmem:[%s11416_s24 + $0x140] sm:$0xff] %v1268_v40  ;;  %v1352_v18 = vld [vmem:[%s11411_s23 + $0x520] sm:$0xff]  ;;  %v1354_v19 = vld [vmem:[%s11411_s23 + $0x530] sm:$0xff] }
  0x39   : > { %1271 = vst [vmem:[%s11416_s24 + $0x148] sm:$0xff] %v1270_v41  ;;  %v1356_v20 = vld [vmem:[%s11411_s23 + $0x540] sm:$0xff]  ;;  %v1358_v21 = vld [vmem:[%s11411_s23 + $0x550] sm:$0xff] }
  0x3a   : > { %1273 = vst [vmem:[%s11416_s24 + $0x150] sm:$0xff] %v1272_v42  ;;  %v1360_v22 = vld [vmem:[%s11411_s23 + $0x560] sm:$0xff]  ;;  %v1362_v23 = vld [vmem:[%s11411_s23 + $0x570] sm:$0xff] }
  0x3b   : > { %1275 = vst [vmem:[%s11416_s24 + $0x158] sm:$0xff] %v1274_v43  ;;  %v1364_v24 = vld [vmem:[%s11411_s23 + $0x580] sm:$0xff]  ;;  %v1366_v25 = vld [vmem:[%s11411_s23 + $0x590] sm:$0xff] }
  0x3c   : > { %1277 = vst [vmem:[%s11416_s24 + $0x160] sm:$0xff] %v1276_v44  ;;  %v1368_v26 = vld [vmem:[%s11411_s23 + $0x5a0] sm:$0xff]  ;;  %v1370_v27 = vld [vmem:[%s11411_s23 + $0x5b0] sm:$0xff] }
  0x3d   : > { %1279 = vst [vmem:[%s11416_s24 + $0x168] sm:$0xff] %v1278_v45  ;;  %v1372_v28 = vld [vmem:[%s11411_s23 + $0x5c0] sm:$0xff]  ;;  %v1374_v29 = vld [vmem:[%s11411_s23 + $0x5d0] sm:$0xff] }
  0x3e   : > { %1281 = vst [vmem:[%s11416_s24 + $0x170] sm:$0xff] %v1280_v46  ;;  %v1376_v30 = vld [vmem:[%s11411_s23 + $0x5e0] sm:$0xff]  ;;  %v1378_v31 = vld [vmem:[%s11411_s23 + $0x5f0] sm:$0xff] }
  0x3f   : > { %1283 = vst [vmem:[%s11416_s24 + $0x178] sm:$0xff] %v1282_v47  ;;  %v1380_v32 = vld [vmem:[%s11411_s23 + $0x600] sm:$0xff]  ;;  %v1382_v33 = vld [vmem:[%s11411_s23 + $0x610] sm:$0xff] }
  0x40   : > { %1285 = vst [vmem:[%s11416_s24 + $0x180] sm:$0xff] %v1284_v48  ;;  %v1384_v34 = vld [vmem:[%s11411_s23 + $0x620] sm:$0xff]  ;;  %v1386_v35 = vld [vmem:[%s11411_s23 + $0x630] sm:$0xff] }
  0x41   : > { %1287 = vst [vmem:[%s11416_s24 + $0x188] sm:$0xff] %v1286_v49  ;;  %v1388_v36 = vld [vmem:[%s11411_s23 + $0x640] sm:$0xff]  ;;  %v1390_v37 = vld [vmem:[%s11411_s23 + $0x650] sm:$0xff] }
  0x42   : > { %1289 = vst [vmem:[%s11416_s24 + $0x190] sm:$0xff] %v1288_v50  ;;  %v1392_v38 = vld [vmem:[%s11411_s23 + $0x660] sm:$0xff]  ;;  %v1394_v39 = vld [vmem:[%s11411_s23 + $0x670] sm:$0xff] }
  0x43   : > { %1291 = vst [vmem:[%s11416_s24 + $0x198] sm:$0xff] %v1290_v51  ;;  %v1396_v40 = vld [vmem:[%s11411_s23 + $0x680] sm:$0xff]  ;;  %v1398_v41 = vld [vmem:[%s11411_s23 + $0x690] sm:$0xff] }
  0x44   : > { %1293 = vst [vmem:[%s11416_s24 + $0x1a0] sm:$0xff] %v1292_v52  ;;  %v1400_v42 = vld [vmem:[%s11411_s23 + $0x6a0] sm:$0xff]  ;;  %v1402_v43 = vld [vmem:[%s11411_s23 + $0x6b0] sm:$0xff] }
  0x45   : > { %1295 = vst [vmem:[%s11416_s24 + $0x1a8] sm:$0xff] %v1294_v53  ;;  %v1404_v44 = vld [vmem:[%s11411_s23 + $0x6c0] sm:$0xff]  ;;  %v1406_v45 = vld [vmem:[%s11411_s23 + $0x6d0] sm:$0xff] }
  0x46   : > { %1297 = vst [vmem:[%s11416_s24 + $0x1b0] sm:$0xff] %v1296_v54  ;;  %v1408_v46 = vld [vmem:[%s11411_s23 + $0x6e0] sm:$0xff]  ;;  %v1410_v47 = vld [vmem:[%s11411_s23 + $0x6f0] sm:$0xff] }
  0x47   : > { %1299 = vst [vmem:[%s11416_s24 + $0x1b8] sm:$0xff] %v1298_v55  ;;  %v1412_v48 = vld [vmem:[%s11411_s23 + $0x700] sm:$0xff]  ;;  %v1414_v49 = vld [vmem:[%s11411_s23 + $0x710] sm:$0xff] }
  0x48   : > { %1301 = vst [vmem:[%s11416_s24 + $0x1c0] sm:$0xff] %v1300_v56  ;;  %v1416_v50 = vld [vmem:[%s11411_s23 + $0x720] sm:$0xff]  ;;  %v1418_v51 = vld [vmem:[%s11411_s23 + $0x730] sm:$0xff] }
  0x49   : > { %1303 = vst [vmem:[%s11416_s24 + $0x1c8] sm:$0xff] %v1302_v57  ;;  %v1420_v52 = vld [vmem:[%s11411_s23 + $0x740] sm:$0xff]  ;;  %v1422_v53 = vld [vmem:[%s11411_s23 + $0x750] sm:$0xff] }
  0x4a   : > { %1305 = vst [vmem:[%s11416_s24 + $0x1d0] sm:$0xff] %v1304_v58  ;;  %v1424_v54 = vld [vmem:[%s11411_s23 + $0x760] sm:$0xff]  ;;  %v1426_v55 = vld [vmem:[%s11411_s23 + $0x770] sm:$0xff] }
  0x4b   : > { %1307 = vst [vmem:[%s11416_s24 + $0x1d8] sm:$0xff] %v1306_v59  ;;  %v1428_v56 = vld [vmem:[%s11411_s23 + $0x780] sm:$0xff]  ;;  %v1430_v57 = vld [vmem:[%s11411_s23 + $0x790] sm:$0xff] }
  0x4c   : > { %1309 = vst [vmem:[%s11416_s24 + $0x1e0] sm:$0xff] %v1308_v60  ;;  %v1432_v58 = vld [vmem:[%s11411_s23 + $0x7a0] sm:$0xff]  ;;  %v1434_v59 = vld [vmem:[%s11411_s23 + $0x7b0] sm:$0xff] }
  0x4d   : > { %1311 = vst [vmem:[%s11416_s24 + $0x1e8] sm:$0xff] %v1310_v61  ;;  %v1436_v60 = vld [vmem:[%s11411_s23 + $0x7c0] sm:$0xff]  ;;  %v1438_v61 = vld [vmem:[%s11411_s23 + $0x7d0] sm:$0xff] }
  0x4e   : > { %1313 = vst [vmem:[%s11416_s24 + $0x1f0] sm:$0xff] %v1312_v62  ;;  %v1440_v62 = vld [vmem:[%s11411_s23 + $0x7e0] sm:$0xff] }
  0x4f   : > { %1315 = vst [vmem:[%s11416_s24 + $0x1f8] sm:$0xff] %v1314_v63  ;;  %v1442_v63 = vld [vmem:[%s11411_s23 + $0x7f0] sm:$0xff] }
  0x50   : > { %1317 = vst [vmem:[%s11416_s24 + $0x200] sm:$0xff] %v1316_v0  ;;  %v1444_v0 = vld [vmem:[%s11411_s23 + $0x800] sm:$0xff] }
  0x51   : > { %1319 = vst [vmem:[%s11416_s24 + $0x208] sm:$0xff] %v1318_v1  ;;  %v1446_v1 = vld [vmem:[%s11411_s23 + $0x810] sm:$0xff] }
  0x52   : > { %1321 = vst [vmem:[%s11416_s24 + $0x210] sm:$0xff] %v1320_v2  ;;  %v1448_v2 = vld [vmem:[%s11411_s23 + $0x820] sm:$0xff] }
  0x53   : > { %1323 = vst [vmem:[%s11416_s24 + $0x218] sm:$0xff] %v1322_v3  ;;  %v1450_v3 = vld [vmem:[%s11411_s23 + $0x830] sm:$0xff] }
  0x54   : > { %1325 = vst [vmem:[%s11416_s24 + $0x220] sm:$0xff] %v1324_v4  ;;  %v1452_v4 = vld [vmem:[%s11411_s23 + $0x840] sm:$0xff] }
  0x55   : > { %1327 = vst [vmem:[%s11416_s24 + $0x228] sm:$0xff] %v1326_v5  ;;  %v1454_v5 = vld [vmem:[%s11411_s23 + $0x850] sm:$0xff] }
  0x56   : > { %1329 = vst [vmem:[%s11416_s24 + $0x230] sm:$0xff] %v1328_v6  ;;  %v1456_v6 = vld [vmem:[%s11411_s23 + $0x860] sm:$0xff] }
  0x57   : > { %1331 = vst [vmem:[%s11416_s24 + $0x238] sm:$0xff] %v1330_v7  ;;  %v1458_v7 = vld [vmem:[%s11411_s23 + $0x870] sm:$0xff] }
  0x58   : > { %1333 = vst [vmem:[%s11416_s24 + $0x240] sm:$0xff] %v1332_v8  ;;  %v1460_v8 = vld [vmem:[%s11411_s23 + $0x880] sm:$0xff] }
  0x59   : > { %1335 = vst [vmem:[%s11416_s24 + $0x248] sm:$0xff] %v1334_v9  ;;  %v1462_v9 = vld [vmem:[%s11411_s23 + $0x890] sm:$0xff] }
  0x5a   : > { %1337 = vst [vmem:[%s11416_s24 + $0x250] sm:$0xff] %v1336_v10  ;;  %v1464_v10 = vld [vmem:[%s11411_s23 + $0x8a0] sm:$0xff] }
  0x5b   : > { %1339 = vst [vmem:[%s11416_s24 + $0x258] sm:$0xff] %v1338_v11  ;;  %v1466_v11 = vld [vmem:[%s11411_s23 + $0x8b0] sm:$0xff] }
  0x5c   : > { %1341 = vst [vmem:[%s11416_s24 + $0x260] sm:$0xff] %v1340_v12  ;;  %v1468_v12 = vld [vmem:[%s11411_s23 + $0x8c0] sm:$0xff] }
  0x5d   : > { %1343 = vst [vmem:[%s11416_s24 + $0x268] sm:$0xff] %v1342_v13  ;;  %v1470_v13 = vld [vmem:[%s11411_s23 + $0x8d0] sm:$0xff] }
  0x5e   : > { %1345 = vst [vmem:[%s11416_s24 + $0x270] sm:$0xff] %v1344_v14  ;;  %v1472_v14 = vld [vmem:[%s11411_s23 + $0x8e0] sm:$0xff] }
  0x5f   : > { %1347 = vst [vmem:[%s11416_s24 + $0x278] sm:$0xff] %v1346_v15  ;;  %v1474_v15 = vld [vmem:[%s11411_s23 + $0x8f0] sm:$0xff] }
  0x60   : > { %1349 = vst [vmem:[%s11416_s24 + $0x280] sm:$0xff] %v1348_v16  ;;  %v1476_v16 = vld [vmem:[%s11411_s23 + $0x900] sm:$0xff] }
  0x61   : > { %1351 = vst [vmem:[%s11416_s24 + $0x288] sm:$0xff] %v1350_v17  ;;  %v1478_v17 = vld [vmem:[%s11411_s23 + $0x910] sm:$0xff] }
  0x62   : > { %1353 = vst [vmem:[%s11416_s24 + $0x290] sm:$0xff] %v1352_v18  ;;  %v1480_v18 = vld [vmem:[%s11411_s23 + $0x920] sm:$0xff] }
  0x63   : > { %1355 = vst [vmem:[%s11416_s24 + $0x298] sm:$0xff] %v1354_v19  ;;  %v1482_v19 = vld [vmem:[%s11411_s23 + $0x930] sm:$0xff] }
  0x64   : > { %1357 = vst [vmem:[%s11416_s24 + $0x2a0] sm:$0xff] %v1356_v20  ;;  %v1484_v20 = vld [vmem:[%s11411_s23 + $0x940] sm:$0xff] }
  0x65   : > { %1359 = vst [vmem:[%s11416_s24 + $0x2a8] sm:$0xff] %v1358_v21  ;;  %v1486_v21 = vld [vmem:[%s11411_s23 + $0x950] sm:$0xff] }
  0x66   : > { %1361 = vst [vmem:[%s11416_s24 + $0x2b0] sm:$0xff] %v1360_v22  ;;  %v1488_v22 = vld [vmem:[%s11411_s23 + $0x960] sm:$0xff] }
  0x67   : > { %1363 = vst [vmem:[%s11416_s24 + $0x2b8] sm:$0xff] %v1362_v23  ;;  %v1490_v23 = vld [vmem:[%s11411_s23 + $0x970] sm:$0xff] }
  0x68   : > { %1365 = vst [vmem:[%s11416_s24 + $0x2c0] sm:$0xff] %v1364_v24  ;;  %v1492_v24 = vld [vmem:[%s11411_s23 + $0x980] sm:$0xff] }
  0x69   : > { %1367 = vst [vmem:[%s11416_s24 + $0x2c8] sm:$0xff] %v1366_v25  ;;  %v1494_v25 = vld [vmem:[%s11411_s23 + $0x990] sm:$0xff] }
  0x6a   : > { %1369 = vst [vmem:[%s11416_s24 + $0x2d0] sm:$0xff] %v1368_v26  ;;  %v1496_v26 = vld [vmem:[%s11411_s23 + $0x9a0] sm:$0xff] }
  0x6b   : > { %1371 = vst [vmem:[%s11416_s24 + $0x2d8] sm:$0xff] %v1370_v27  ;;  %v1498_v27 = vld [vmem:[%s11411_s23 + $0x9b0] sm:$0xff] }
  0x6c   : > { %1373 = vst [vmem:[%s11416_s24 + $0x2e0] sm:$0xff] %v1372_v28  ;;  %v1500_v28 = vld [vmem:[%s11411_s23 + $0x9c0] sm:$0xff] }
  0x6d   : > { %1375 = vst [vmem:[%s11416_s24 + $0x2e8] sm:$0xff] %v1374_v29  ;;  %v1502_v29 = vld [vmem:[%s11411_s23 + $0x9d0] sm:$0xff] }
  0x6e   : > { %1377 = vst [vmem:[%s11416_s24 + $0x2f0] sm:$0xff] %v1376_v30  ;;  %v1504_v30 = vld [vmem:[%s11411_s23 + $0x9e0] sm:$0xff] }
  0x6f   : > { %1379 = vst [vmem:[%s11416_s24 + $0x2f8] sm:$0xff] %v1378_v31  ;;  %v1506_v31 = vld [vmem:[%s11411_s23 + $0x9f0] sm:$0xff] }
  0x70   : > { %1381 = vst [vmem:[%s11416_s24 + $0x300] sm:$0xff] %v1380_v32  ;;  %v1508_v32 = vld [vmem:[%s11411_s23 + $0xa00] sm:$0xff] }
  0x71   : > { %1383 = vst [vmem:[%s11416_s24 + $0x308] sm:$0xff] %v1382_v33  ;;  %v1510_v33 = vld [vmem:[%s11411_s23 + $0xa10] sm:$0xff] }
  0x72   : > { %1385 = vst [vmem:[%s11416_s24 + $0x310] sm:$0xff] %v1384_v34  ;;  %v1512_v34 = vld [vmem:[%s11411_s23 + $0xa20] sm:$0xff] }
  0x73   : > { %1387 = vst [vmem:[%s11416_s24 + $0x318] sm:$0xff] %v1386_v35  ;;  %v1514_v35 = vld [vmem:[%s11411_s23 + $0xa30] sm:$0xff] }
  0x74   : > { %1389 = vst [vmem:[%s11416_s24 + $0x320] sm:$0xff] %v1388_v36  ;;  %v1516_v36 = vld [vmem:[%s11411_s23 + $0xa40] sm:$0xff] }
  0x75   : > { %1391 = vst [vmem:[%s11416_s24 + $0x328] sm:$0xff] %v1390_v37  ;;  %v1518_v37 = vld [vmem:[%s11411_s23 + $0xa50] sm:$0xff] }
  0x76   : > { %1393 = vst [vmem:[%s11416_s24 + $0x330] sm:$0xff] %v1392_v38  ;;  %v1520_v38 = vld [vmem:[%s11411_s23 + $0xa60] sm:$0xff] }
  0x77   : > { %1395 = vst [vmem:[%s11416_s24 + $0x338] sm:$0xff] %v1394_v39  ;;  %v1522_v39 = vld [vmem:[%s11411_s23 + $0xa70] sm:$0xff] }
  0x78   : > { %1397 = vst [vmem:[%s11416_s24 + $0x340] sm:$0xff] %v1396_v40  ;;  %v1524_v40 = vld [vmem:[%s11411_s23 + $0xa80] sm:$0xff] }
  0x79   : > { %1399 = vst [vmem:[%s11416_s24 + $0x348] sm:$0xff] %v1398_v41  ;;  %v1526_v41 = vld [vmem:[%s11411_s23 + $0xa90] sm:$0xff] }
  0x7a   : > { %1401 = vst [vmem:[%s11416_s24 + $0x350] sm:$0xff] %v1400_v42  ;;  %v1528_v42 = vld [vmem:[%s11411_s23 + $0xaa0] sm:$0xff] }
  0x7b   : > { %1403 = vst [vmem:[%s11416_s24 + $0x358] sm:$0xff] %v1402_v43  ;;  %v1530_v43 = vld [vmem:[%s11411_s23 + $0xab0] sm:$0xff] }
  0x7c   : > { %1405 = vst [vmem:[%s11416_s24 + $0x360] sm:$0xff] %v1404_v44  ;;  %v1532_v44 = vld [vmem:[%s11411_s23 + $0xac0] sm:$0xff] }
  0x7d   : > { %1407 = vst [vmem:[%s11416_s24 + $0x368] sm:$0xff] %v1406_v45  ;;  %v1534_v45 = vld [vmem:[%s11411_s23 + $0xad0] sm:$0xff] }
  0x7e   : > { %1409 = vst [vmem:[%s11416_s24 + $0x370] sm:$0xff] %v1408_v46  ;;  %v1536_v46 = vld [vmem:[%s11411_s23 + $0xae0] sm:$0xff] }
  0x7f   : > { %1411 = vst [vmem:[%s11416_s24 + $0x378] sm:$0xff] %v1410_v47  ;;  %v1538_v47 = vld [vmem:[%s11411_s23 + $0xaf0] sm:$0xff] }
  0x80   : > { %1413 = vst [vmem:[%s11416_s24 + $0x380] sm:$0xff] %v1412_v48  ;;  %v1540_v48 = vld [vmem:[%s11411_s23 + $0xb00] sm:$0xff] }
  0x81   : > { %1415 = vst [vmem:[%s11416_s24 + $0x388] sm:$0xff] %v1414_v49  ;;  %v1542_v49 = vld [vmem:[%s11411_s23 + $0xb10] sm:$0xff] }
  0x82   : > { %1417 = vst [vmem:[%s11416_s24 + $0x390] sm:$0xff] %v1416_v50  ;;  %v1544_v50 = vld [vmem:[%s11411_s23 + $0xb20] sm:$0xff] }
  0x83   : > { %1419 = vst [vmem:[%s11416_s24 + $0x398] sm:$0xff] %v1418_v51  ;;  %v1546_v51 = vld [vmem:[%s11411_s23 + $0xb30] sm:$0xff] }
  0x84   : > { %1421 = vst [vmem:[%s11416_s24 + $0x3a0] sm:$0xff] %v1420_v52  ;;  %v1548_v52 = vld [vmem:[%s11411_s23 + $0xb40] sm:$0xff] }
  0x85   : > { %1423 = vst [vmem:[%s11416_s24 + $0x3a8] sm:$0xff] %v1422_v53  ;;  %v1550_v53 = vld [vmem:[%s11411_s23 + $0xb50] sm:$0xff] }
  0x86   : > { %1425 = vst [vmem:[%s11416_s24 + $0x3b0] sm:$0xff] %v1424_v54  ;;  %v1552_v54 = vld [vmem:[%s11411_s23 + $0xb60] sm:$0xff] }
  0x87   : > { %1427 = vst [vmem:[%s11416_s24 + $0x3b8] sm:$0xff] %v1426_v55  ;;  %v1554_v55 = vld [vmem:[%s11411_s23 + $0xb70] sm:$0xff] }
  0x88   : > { %1429 = vst [vmem:[%s11416_s24 + $0x3c0] sm:$0xff] %v1428_v56  ;;  %v1556_v56 = vld [vmem:[%s11411_s23 + $0xb80] sm:$0xff] }
  0x89   : > { %1431 = vst [vmem:[%s11416_s24 + $0x3c8] sm:$0xff] %v1430_v57  ;;  %v1558_v57 = vld [vmem:[%s11411_s23 + $0xb90] sm:$0xff] }
  0x8a   : > { %1433 = vst [vmem:[%s11416_s24 + $0x3d0] sm:$0xff] %v1432_v58  ;;  %v1560_v58 = vld [vmem:[%s11411_s23 + $0xba0] sm:$0xff] }
  0x8b   : > { %1435 = vst [vmem:[%s11416_s24 + $0x3d8] sm:$0xff] %v1434_v59  ;;  %v1562_v59 = vld [vmem:[%s11411_s23 + $0xbb0] sm:$0xff] }
  0x8c   : > { %1437 = vst [vmem:[%s11416_s24 + $0x3e0] sm:$0xff] %v1436_v60  ;;  %v1564_v60 = vld [vmem:[%s11411_s23 + $0xbc0] sm:$0xff] }
  0x8d   : > { %1439 = vst [vmem:[%s11416_s24 + $0x3e8] sm:$0xff] %v1438_v61  ;;  %v1566_v61 = vld [vmem:[%s11411_s23 + $0xbd0] sm:$0xff] }
  0x8e   : > { %1441 = vst [vmem:[%s11416_s24 + $0x3f0] sm:$0xff] %v1440_v62  ;;  %v1568_v62 = vld [vmem:[%s11411_s23 + $0xbe0] sm:$0xff] }
  0x8f   : > { %1443 = vst [vmem:[%s11416_s24 + $0x3f8] sm:$0xff] %v1442_v63  ;;  %v1570_v63 = vld [vmem:[%s11411_s23 + $0xbf0] sm:$0xff] }
  0x90   : > { %1445 = vst [vmem:[%s11416_s24 + $0x400] sm:$0xff] %v1444_v0  ;;  %v1572_v0 = vld [vmem:[%s11411_s23 + $0xc00] sm:$0xff] }
  0x91   : > { %1447 = vst [vmem:[%s11416_s24 + $0x408] sm:$0xff] %v1446_v1  ;;  %v1574_v1 = vld [vmem:[%s11411_s23 + $0xc10] sm:$0xff] }
  0x92   : > { %1449 = vst [vmem:[%s11416_s24 + $0x410] sm:$0xff] %v1448_v2  ;;  %v1576_v2 = vld [vmem:[%s11411_s23 + $0xc20] sm:$0xff] }
  0x93   : > { %1451 = vst [vmem:[%s11416_s24 + $0x418] sm:$0xff] %v1450_v3  ;;  %v1578_v3 = vld [vmem:[%s11411_s23 + $0xc30] sm:$0xff] }
  0x94   : > { %1453 = vst [vmem:[%s11416_s24 + $0x420] sm:$0xff] %v1452_v4  ;;  %v1580_v4 = vld [vmem:[%s11411_s23 + $0xc40] sm:$0xff] }
  0x95   : > { %1455 = vst [vmem:[%s11416_s24 + $0x428] sm:$0xff] %v1454_v5  ;;  %v1582_v5 = vld [vmem:[%s11411_s23 + $0xc50] sm:$0xff] }
  0x96   : > { %1457 = vst [vmem:[%s11416_s24 + $0x430] sm:$0xff] %v1456_v6  ;;  %v1584_v6 = vld [vmem:[%s11411_s23 + $0xc60] sm:$0xff] }
  0x97   : > { %1459 = vst [vmem:[%s11416_s24 + $0x438] sm:$0xff] %v1458_v7  ;;  %v1586_v7 = vld [vmem:[%s11411_s23 + $0xc70] sm:$0xff] }
  0x98   : > { %1461 = vst [vmem:[%s11416_s24 + $0x440] sm:$0xff] %v1460_v8  ;;  %v1588_v8 = vld [vmem:[%s11411_s23 + $0xc80] sm:$0xff] }
  0x99   : > { %1463 = vst [vmem:[%s11416_s24 + $0x448] sm:$0xff] %v1462_v9  ;;  %v1590_v9 = vld [vmem:[%s11411_s23 + $0xc90] sm:$0xff] }
  0x9a   : > { %1465 = vst [vmem:[%s11416_s24 + $0x450] sm:$0xff] %v1464_v10  ;;  %v1592_v10 = vld [vmem:[%s11411_s23 + $0xca0] sm:$0xff] }
  0x9b   : > { %1467 = vst [vmem:[%s11416_s24 + $0x458] sm:$0xff] %v1466_v11  ;;  %v1594_v11 = vld [vmem:[%s11411_s23 + $0xcb0] sm:$0xff] }
  0x9c   : > { %1469 = vst [vmem:[%s11416_s24 + $0x460] sm:$0xff] %v1468_v12  ;;  %v1596_v12 = vld [vmem:[%s11411_s23 + $0xcc0] sm:$0xff] }
  0x9d   : > { %1471 = vst [vmem:[%s11416_s24 + $0x468] sm:$0xff] %v1470_v13  ;;  %v1598_v13 = vld [vmem:[%s11411_s23 + $0xcd0] sm:$0xff] }
  0x9e   : > { %1473 = vst [vmem:[%s11416_s24 + $0x470] sm:$0xff] %v1472_v14  ;;  %v1600_v14 = vld [vmem:[%s11411_s23 + $0xce0] sm:$0xff] }
  0x9f   : > { %1475 = vst [vmem:[%s11416_s24 + $0x478] sm:$0xff] %v1474_v15  ;;  %v1602_v15 = vld [vmem:[%s11411_s23 + $0xcf0] sm:$0xff] }
  0xa0   : > { %1477 = vst [vmem:[%s11416_s24 + $0x480] sm:$0xff] %v1476_v16  ;;  %v1604_v16 = vld [vmem:[%s11411_s23 + $0xd00] sm:$0xff] }
  0xa1   : > { %1479 = vst [vmem:[%s11416_s24 + $0x488] sm:$0xff] %v1478_v17  ;;  %v1606_v17 = vld [vmem:[%s11411_s23 + $0xd10] sm:$0xff] }
  0xa2   : > { %1481 = vst [vmem:[%s11416_s24 + $0x490] sm:$0xff] %v1480_v18  ;;  %v1608_v18 = vld [vmem:[%s11411_s23 + $0xd20] sm:$0xff] }
  0xa3   : > { %1483 = vst [vmem:[%s11416_s24 + $0x498] sm:$0xff] %v1482_v19  ;;  %v1610_v19 = vld [vmem:[%s11411_s23 + $0xd30] sm:$0xff] }
  0xa4   : > { %1485 = vst [vmem:[%s11416_s24 + $0x4a0] sm:$0xff] %v1484_v20  ;;  %v1612_v20 = vld [vmem:[%s11411_s23 + $0xd40] sm:$0xff] }
  0xa5   : > { %1487 = vst [vmem:[%s11416_s24 + $0x4a8] sm:$0xff] %v1486_v21  ;;  %v1614_v21 = vld [vmem:[%s11411_s23 + $0xd50] sm:$0xff] }
  0xa6   : > { %1489 = vst [vmem:[%s11416_s24 + $0x4b0] sm:$0xff] %v1488_v22  ;;  %v1616_v22 = vld [vmem:[%s11411_s23 + $0xd60] sm:$0xff] }
  0xa7   : > { %1491 = vst [vmem:[%s11416_s24 + $0x4b8] sm:$0xff] %v1490_v23  ;;  %v1618_v23 = vld [vmem:[%s11411_s23 + $0xd70] sm:$0xff] }
  0xa8   : > { %1493 = vst [vmem:[%s11416_s24 + $0x4c0] sm:$0xff] %v1492_v24  ;;  %v1620_v24 = vld [vmem:[%s11411_s23 + $0xd80] sm:$0xff] }
  0xa9   : > { %1495 = vst [vmem:[%s11416_s24 + $0x4c8] sm:$0xff] %v1494_v25  ;;  %v1622_v25 = vld [vmem:[%s11411_s23 + $0xd90] sm:$0xff] }
  0xaa   : > { %1497 = vst [vmem:[%s11416_s24 + $0x4d0] sm:$0xff] %v1496_v26  ;;  %v1624_v26 = vld [vmem:[%s11411_s23 + $0xda0] sm:$0xff] }
  0xab   : > { %1499 = vst [vmem:[%s11416_s24 + $0x4d8] sm:$0xff] %v1498_v27  ;;  %v1626_v27 = vld [vmem:[%s11411_s23 + $0xdb0] sm:$0xff] }
  0xac   : > { %1501 = vst [vmem:[%s11416_s24 + $0x4e0] sm:$0xff] %v1500_v28  ;;  %v1628_v28 = vld [vmem:[%s11411_s23 + $0xdc0] sm:$0xff] }
  0xad   : > { %1503 = vst [vmem:[%s11416_s24 + $0x4e8] sm:$0xff] %v1502_v29  ;;  %v1630_v29 = vld [vmem:[%s11411_s23 + $0xdd0] sm:$0xff] }
  0xae   : > { %1505 = vst [vmem:[%s11416_s24 + $0x4f0] sm:$0xff] %v1504_v30  ;;  %v1632_v30 = vld [vmem:[%s11411_s23 + $0xde0] sm:$0xff] }
  0xaf   : > { %1507 = vst [vmem:[%s11416_s24 + $0x4f8] sm:$0xff] %v1506_v31  ;;  %v1634_v31 = vld [vmem:[%s11411_s23 + $0xdf0] sm:$0xff] }
  0xb0   : > { %1509 = vst [vmem:[%s11416_s24 + $0x500] sm:$0xff] %v1508_v32  ;;  %v1636_v32 = vld [vmem:[%s11411_s23 + $0xe00] sm:$0xff] }
  0xb1   : > { %1511 = vst [vmem:[%s11416_s24 + $0x508] sm:$0xff] %v1510_v33  ;;  %v1638_v33 = vld [vmem:[%s11411_s23 + $0xe10] sm:$0xff] }
  0xb2   : > { %1513 = vst [vmem:[%s11416_s24 + $0x510] sm:$0xff] %v1512_v34  ;;  %v1640_v34 = vld [vmem:[%s11411_s23 + $0xe20] sm:$0xff] }
  0xb3   : > { %1515 = vst [vmem:[%s11416_s24 + $0x518] sm:$0xff] %v1514_v35  ;;  %v1642_v35 = vld [vmem:[%s11411_s23 + $0xe30] sm:$0xff] }
  0xb4   : > { %1517 = vst [vmem:[%s11416_s24 + $0x520] sm:$0xff] %v1516_v36  ;;  %v1644_v36 = vld [vmem:[%s11411_s23 + $0xe40] sm:$0xff] }
  0xb5   : > { %1519 = vst [vmem:[%s11416_s24 + $0x528] sm:$0xff] %v1518_v37  ;;  %v1646_v37 = vld [vmem:[%s11411_s23 + $0xe50] sm:$0xff] }
  0xb6   : > { %1521 = vst [vmem:[%s11416_s24 + $0x530] sm:$0xff] %v1520_v38  ;;  %v1648_v38 = vld [vmem:[%s11411_s23 + $0xe60] sm:$0xff] }
  0xb7   : > { %1523 = vst [vmem:[%s11416_s24 + $0x538] sm:$0xff] %v1522_v39  ;;  %v1650_v39 = vld [vmem:[%s11411_s23 + $0xe70] sm:$0xff] }
  0xb8   : > { %1525 = vst [vmem:[%s11416_s24 + $0x540] sm:$0xff] %v1524_v40  ;;  %v1652_v40 = vld [vmem:[%s11411_s23 + $0xe80] sm:$0xff] }
  0xb9   : > { %1527 = vst [vmem:[%s11416_s24 + $0x548] sm:$0xff] %v1526_v41  ;;  %v1654_v41 = vld [vmem:[%s11411_s23 + $0xe90] sm:$0xff] }
  0xba   : > { %1529 = vst [vmem:[%s11416_s24 + $0x550] sm:$0xff] %v1528_v42  ;;  %v1656_v42 = vld [vmem:[%s11411_s23 + $0xea0] sm:$0xff] }
  0xbb   : > { %1531 = vst [vmem:[%s11416_s24 + $0x558] sm:$0xff] %v1530_v43  ;;  %v1658_v43 = vld [vmem:[%s11411_s23 + $0xeb0] sm:$0xff] }
  0xbc   : > { %1533 = vst [vmem:[%s11416_s24 + $0x560] sm:$0xff] %v1532_v44  ;;  %v1660_v44 = vld [vmem:[%s11411_s23 + $0xec0] sm:$0xff] }
  0xbd   : > { %1535 = vst [vmem:[%s11416_s24 + $0x568] sm:$0xff] %v1534_v45  ;;  %v1662_v45 = vld [vmem:[%s11411_s23 + $0xed0] sm:$0xff] }
  0xbe   : > { %1537 = vst [vmem:[%s11416_s24 + $0x570] sm:$0xff] %v1536_v46  ;;  %v1664_v46 = vld [vmem:[%s11411_s23 + $0xee0] sm:$0xff] }
  0xbf   : > { %1539 = vst [vmem:[%s11416_s24 + $0x578] sm:$0xff] %v1538_v47  ;;  %v1666_v47 = vld [vmem:[%s11411_s23 + $0xef0] sm:$0xff] }
  0xc0   : > { %1541 = vst [vmem:[%s11416_s24 + $0x580] sm:$0xff] %v1540_v48  ;;  %v1668_v48 = vld [vmem:[%s11411_s23 + $0xf00] sm:$0xff] }
  0xc1   : > { %1543 = vst [vmem:[%s11416_s24 + $0x588] sm:$0xff] %v1542_v49  ;;  %v1670_v49 = vld [vmem:[%s11411_s23 + $0xf10] sm:$0xff] }
  0xc2   : > { %1545 = vst [vmem:[%s11416_s24 + $0x590] sm:$0xff] %v1544_v50  ;;  %v1672_v50 = vld [vmem:[%s11411_s23 + $0xf20] sm:$0xff] }
  0xc3   : > { %1547 = vst [vmem:[%s11416_s24 + $0x598] sm:$0xff] %v1546_v51  ;;  %v1674_v51 = vld [vmem:[%s11411_s23 + $0xf30] sm:$0xff] }
  0xc4   : > { %1549 = vst [vmem:[%s11416_s24 + $0x5a0] sm:$0xff] %v1548_v52  ;;  %v1676_v52 = vld [vmem:[%s11411_s23 + $0xf40] sm:$0xff] }
  0xc5   : > { %1551 = vst [vmem:[%s11416_s24 + $0x5a8] sm:$0xff] %v1550_v53  ;;  %v1678_v53 = vld [vmem:[%s11411_s23 + $0xf50] sm:$0xff] }
  0xc6   : > { %1553 = vst [vmem:[%s11416_s24 + $0x5b0] sm:$0xff] %v1552_v54  ;;  %v1680_v54 = vld [vmem:[%s11411_s23 + $0xf60] sm:$0xff] }
  0xc7   : > { %1555 = vst [vmem:[%s11416_s24 + $0x5b8] sm:$0xff] %v1554_v55  ;;  %v1682_v55 = vld [vmem:[%s11411_s23 + $0xf70] sm:$0xff] }
  0xc8   : > { %1557 = vst [vmem:[%s11416_s24 + $0x5c0] sm:$0xff] %v1556_v56  ;;  %v1684_v56 = vld [vmem:[%s11411_s23 + $0xf80] sm:$0xff] }
  0xc9   : > { %1559 = vst [vmem:[%s11416_s24 + $0x5c8] sm:$0xff] %v1558_v57  ;;  %v1686_v57 = vld [vmem:[%s11411_s23 + $0xf90] sm:$0xff] }
  0xca   : > { %1561 = vst [vmem:[%s11416_s24 + $0x5d0] sm:$0xff] %v1560_v58  ;;  %v1688_v58 = vld [vmem:[%s11411_s23 + $0xfa0] sm:$0xff] }
  0xcb   : > { %1563 = vst [vmem:[%s11416_s24 + $0x5d8] sm:$0xff] %v1562_v59  ;;  %v1690_v59 = vld [vmem:[%s11411_s23 + $0xfb0] sm:$0xff] }
  0xcc   : > { %1565 = vst [vmem:[%s11416_s24 + $0x5e0] sm:$0xff] %v1564_v60  ;;  %v1692_v60 = vld [vmem:[%s11411_s23 + $0xfc0] sm:$0xff] }
  0xcd   : > { %1567 = vst [vmem:[%s11416_s24 + $0x5e8] sm:$0xff] %v1566_v61  ;;  %v1694_v61 = vld [vmem:[%s11411_s23 + $0xfd0] sm:$0xff] }
  0xce   : > { %1569 = vst [vmem:[%s11416_s24 + $0x5f0] sm:$0xff] %v1568_v62  ;;  %v1696_v62 = vld [vmem:[%s11411_s23 + $0xfe0] sm:$0xff] }
  0xcf   : > { %1571 = vst [vmem:[%s11416_s24 + $0x5f8] sm:$0xff] %v1570_v63  ;;  %v1698_v63 = vld [vmem:[%s11411_s23 + $0xff0] sm:$0xff] }
  0xd0   : > { %1573 = vst [vmem:[%s11416_s24 + $0x600] sm:$0xff] %v1572_v0  ;;  %v1700_v0 = vld [vmem:[%s11411_s23 + $0x1000] sm:$0xff] }
  0xd1   : > { %1575 = vst [vmem:[%s11416_s24 + $0x608] sm:$0xff] %v1574_v1  ;;  %v1702_v1 = vld [vmem:[%s11411_s23 + $0x1010] sm:$0xff] }
  0xd2   : > { %1577 = vst [vmem:[%s11416_s24 + $0x610] sm:$0xff] %v1576_v2  ;;  %v1704_v2 = vld [vmem:[%s11411_s23 + $0x1020] sm:$0xff] }
  0xd3   : > { %1579 = vst [vmem:[%s11416_s24 + $0x618] sm:$0xff] %v1578_v3  ;;  %v1706_v3 = vld [vmem:[%s11411_s23 + $0x1030] sm:$0xff] }
  0xd4   : > { %1581 = vst [vmem:[%s11416_s24 + $0x620] sm:$0xff] %v1580_v4  ;;  %v1708_v4 = vld [vmem:[%s11411_s23 + $0x1040] sm:$0xff] }
  0xd5   : > { %1583 = vst [vmem:[%s11416_s24 + $0x628] sm:$0xff] %v1582_v5  ;;  %v1710_v5 = vld [vmem:[%s11411_s23 + $0x1050] sm:$0xff] }
  0xd6   : > { %1585 = vst [vmem:[%s11416_s24 + $0x630] sm:$0xff] %v1584_v6  ;;  %v1712_v6 = vld [vmem:[%s11411_s23 + $0x1060] sm:$0xff] }
  0xd7   : > { %1587 = vst [vmem:[%s11416_s24 + $0x638] sm:$0xff] %v1586_v7  ;;  %v1714_v7 = vld [vmem:[%s11411_s23 + $0x1070] sm:$0xff] }
  0xd8   : > { %1589 = vst [vmem:[%s11416_s24 + $0x640] sm:$0xff] %v1588_v8  ;;  %v1716_v8 = vld [vmem:[%s11411_s23 + $0x1080] sm:$0xff] }
  0xd9   : > { %1591 = vst [vmem:[%s11416_s24 + $0x648] sm:$0xff] %v1590_v9  ;;  %v1718_v9 = vld [vmem:[%s11411_s23 + $0x1090] sm:$0xff] }
  0xda   : > { %1593 = vst [vmem:[%s11416_s24 + $0x650] sm:$0xff] %v1592_v10  ;;  %v1720_v10 = vld [vmem:[%s11411_s23 + $0x10a0] sm:$0xff] }
  0xdb   : > { %1595 = vst [vmem:[%s11416_s24 + $0x658] sm:$0xff] %v1594_v11  ;;  %v1722_v11 = vld [vmem:[%s11411_s23 + $0x10b0] sm:$0xff] }
  0xdc   : > { %1597 = vst [vmem:[%s11416_s24 + $0x660] sm:$0xff] %v1596_v12  ;;  %v1724_v12 = vld [vmem:[%s11411_s23 + $0x10c0] sm:$0xff] }
  0xdd   : > { %1599 = vst [vmem:[%s11416_s24 + $0x668] sm:$0xff] %v1598_v13  ;;  %v1726_v13 = vld [vmem:[%s11411_s23 + $0x10d0] sm:$0xff] }
  0xde   : > { %1601 = vst [vmem:[%s11416_s24 + $0x670] sm:$0xff] %v1600_v14  ;;  %v1728_v14 = vld [vmem:[%s11411_s23 + $0x10e0] sm:$0xff] }
  0xdf   : > { %1603 = vst [vmem:[%s11416_s24 + $0x678] sm:$0xff] %v1602_v15  ;;  %v1730_v15 = vld [vmem:[%s11411_s23 + $0x10f0] sm:$0xff] }
  0xe0   : > { %1605 = vst [vmem:[%s11416_s24 + $0x680] sm:$0xff] %v1604_v16  ;;  %v1732_v16 = vld [vmem:[%s11411_s23 + $0x1100] sm:$0xff] }
  0xe1   : > { %1607 = vst [vmem:[%s11416_s24 + $0x688] sm:$0xff] %v1606_v17  ;;  %v1734_v17 = vld [vmem:[%s11411_s23 + $0x1110] sm:$0xff] }
  0xe2   : > { %1609 = vst [vmem:[%s11416_s24 + $0x690] sm:$0xff] %v1608_v18  ;;  %v1736_v18 = vld [vmem:[%s11411_s23 + $0x1120] sm:$0xff] }
  0xe3   : > { %1611 = vst [vmem:[%s11416_s24 + $0x698] sm:$0xff] %v1610_v19  ;;  %v1738_v19 = vld [vmem:[%s11411_s23 + $0x1130] sm:$0xff] }
  0xe4   : > { %1613 = vst [vmem:[%s11416_s24 + $0x6a0] sm:$0xff] %v1612_v20  ;;  %v1740_v20 = vld [vmem:[%s11411_s23 + $0x1140] sm:$0xff] }
  0xe5   : > { %1615 = vst [vmem:[%s11416_s24 + $0x6a8] sm:$0xff] %v1614_v21  ;;  %v1742_v21 = vld [vmem:[%s11411_s23 + $0x1150] sm:$0xff] }
  0xe6   : > { %1617 = vst [vmem:[%s11416_s24 + $0x6b0] sm:$0xff] %v1616_v22  ;;  %v1744_v22 = vld [vmem:[%s11411_s23 + $0x1160] sm:$0xff] }
  0xe7   : > { %1619 = vst [vmem:[%s11416_s24 + $0x6b8] sm:$0xff] %v1618_v23  ;;  %v1746_v23 = vld [vmem:[%s11411_s23 + $0x1170] sm:$0xff] }
  0xe8   : > { %1621 = vst [vmem:[%s11416_s24 + $0x6c0] sm:$0xff] %v1620_v24  ;;  %v1748_v24 = vld [vmem:[%s11411_s23 + $0x1180] sm:$0xff] }
  0xe9   : > { %1623 = vst [vmem:[%s11416_s24 + $0x6c8] sm:$0xff] %v1622_v25  ;;  %v1750_v25 = vld [vmem:[%s11411_s23 + $0x1190] sm:$0xff] }
  0xea   : > { %1625 = vst [vmem:[%s11416_s24 + $0x6d0] sm:$0xff] %v1624_v26  ;;  %v1752_v26 = vld [vmem:[%s11411_s23 + $0x11a0] sm:$0xff] }
  0xeb   : > { %1627 = vst [vmem:[%s11416_s24 + $0x6d8] sm:$0xff] %v1626_v27  ;;  %v1754_v27 = vld [vmem:[%s11411_s23 + $0x11b0] sm:$0xff] }
  0xec   : > { %1629 = vst [vmem:[%s11416_s24 + $0x6e0] sm:$0xff] %v1628_v28  ;;  %v1756_v28 = vld [vmem:[%s11411_s23 + $0x11c0] sm:$0xff] }
  0xed   : > { %1631 = vst [vmem:[%s11416_s24 + $0x6e8] sm:$0xff] %v1630_v29  ;;  %v1758_v29 = vld [vmem:[%s11411_s23 + $0x11d0] sm:$0xff] }
  0xee   : > { %1633 = vst [vmem:[%s11416_s24 + $0x6f0] sm:$0xff] %v1632_v30  ;;  %v1760_v30 = vld [vmem:[%s11411_s23 + $0x11e0] sm:$0xff] }
  0xef   : > { %1635 = vst [vmem:[%s11416_s24 + $0x6f8] sm:$0xff] %v1634_v31  ;;  %v1762_v31 = vld [vmem:[%s11411_s23 + $0x11f0] sm:$0xff] }
  0xf0   : > { %1637 = vst [vmem:[%s11416_s24 + $0x700] sm:$0xff] %v1636_v32  ;;  %v1764_v32 = vld [vmem:[%s11411_s23 + $0x1200] sm:$0xff] }
  0xf1   : > { %1639 = vst [vmem:[%s11416_s24 + $0x708] sm:$0xff] %v1638_v33  ;;  %v1766_v33 = vld [vmem:[%s11411_s23 + $0x1210] sm:$0xff] }
  0xf2   : > { %1641 = vst [vmem:[%s11416_s24 + $0x710] sm:$0xff] %v1640_v34  ;;  %v1768_v34 = vld [vmem:[%s11411_s23 + $0x1220] sm:$0xff] }
  0xf3   : > { %1643 = vst [vmem:[%s11416_s24 + $0x718] sm:$0xff] %v1642_v35  ;;  %v1770_v35 = vld [vmem:[%s11411_s23 + $0x1230] sm:$0xff] }
  0xf4   : > { %1645 = vst [vmem:[%s11416_s24 + $0x720] sm:$0xff] %v1644_v36  ;;  %v1772_v36 = vld [vmem:[%s11411_s23 + $0x1240] sm:$0xff] }
  0xf5   : > { %1647 = vst [vmem:[%s11416_s24 + $0x728] sm:$0xff] %v1646_v37  ;;  %v1774_v37 = vld [vmem:[%s11411_s23 + $0x1250] sm:$0xff] }
  0xf6   : > { %1649 = vst [vmem:[%s11416_s24 + $0x730] sm:$0xff] %v1648_v38  ;;  %v1776_v38 = vld [vmem:[%s11411_s23 + $0x1260] sm:$0xff] }
  0xf7   : > { %1651 = vst [vmem:[%s11416_s24 + $0x738] sm:$0xff] %v1650_v39  ;;  %v1778_v39 = vld [vmem:[%s11411_s23 + $0x1270] sm:$0xff] }
  0xf8   : > { %1653 = vst [vmem:[%s11416_s24 + $0x740] sm:$0xff] %v1652_v40  ;;  %v1780_v40 = vld [vmem:[%s11411_s23 + $0x1280] sm:$0xff] }
  0xf9   : > { %1655 = vst [vmem:[%s11416_s24 + $0x748] sm:$0xff] %v1654_v41  ;;  %v1782_v41 = vld [vmem:[%s11411_s23 + $0x1290] sm:$0xff] }
  0xfa   : > { %1657 = vst [vmem:[%s11416_s24 + $0x750] sm:$0xff] %v1656_v42  ;;  %v1784_v42 = vld [vmem:[%s11411_s23 + $0x12a0] sm:$0xff] }
  0xfb   : > { %1659 = vst [vmem:[%s11416_s24 + $0x758] sm:$0xff] %v1658_v43  ;;  %v1786_v43 = vld [vmem:[%s11411_s23 + $0x12b0] sm:$0xff] }
  0xfc   : > { %1661 = vst [vmem:[%s11416_s24 + $0x760] sm:$0xff] %v1660_v44  ;;  %v1788_v44 = vld [vmem:[%s11411_s23 + $0x12c0] sm:$0xff] }
  0xfd   : > { %1663 = vst [vmem:[%s11416_s24 + $0x768] sm:$0xff] %v1662_v45  ;;  %v1790_v45 = vld [vmem:[%s11411_s23 + $0x12d0] sm:$0xff] }
  0xfe   : > { %1665 = vst [vmem:[%s11416_s24 + $0x770] sm:$0xff] %v1664_v46  ;;  %v1792_v46 = vld [vmem:[%s11411_s23 + $0x12e0] sm:$0xff] }
  0xff   : > { %1667 = vst [vmem:[%s11416_s24 + $0x778] sm:$0xff] %v1666_v47  ;;  %v1794_v47 = vld [vmem:[%s11411_s23 + $0x12f0] sm:$0xff] }
 0x100   : > { %1669 = vst [vmem:[%s11416_s24 + $0x780] sm:$0xff] %v1668_v48  ;;  %v1796_v48 = vld [vmem:[%s11411_s23 + $0x1300] sm:$0xff] }
 0x101   : > { %1671 = vst [vmem:[%s11416_s24 + $0x788] sm:$0xff] %v1670_v49  ;;  %v1798_v49 = vld [vmem:[%s11411_s23 + $0x1310] sm:$0xff] }
 0x102   : > { %1673 = vst [vmem:[%s11416_s24 + $0x790] sm:$0xff] %v1672_v50  ;;  %v1800_v50 = vld [vmem:[%s11411_s23 + $0x1320] sm:$0xff] }
 0x103   : > { %1675 = vst [vmem:[%s11416_s24 + $0x798] sm:$0xff] %v1674_v51  ;;  %v1802_v51 = vld [vmem:[%s11411_s23 + $0x1330] sm:$0xff] }
 0x104   : > { %1677 = vst [vmem:[%s11416_s24 + $0x7a0] sm:$0xff] %v1676_v52  ;;  %v1804_v52 = vld [vmem:[%s11411_s23 + $0x1340] sm:$0xff] }
 0x105   : > { %1679 = vst [vmem:[%s11416_s24 + $0x7a8] sm:$0xff] %v1678_v53  ;;  %v1806_v53 = vld [vmem:[%s11411_s23 + $0x1350] sm:$0xff] }
 0x106   : > { %1681 = vst [vmem:[%s11416_s24 + $0x7b0] sm:$0xff] %v1680_v54  ;;  %v1808_v54 = vld [vmem:[%s11411_s23 + $0x1360] sm:$0xff] }
 0x107   : > { %1683 = vst [vmem:[%s11416_s24 + $0x7b8] sm:$0xff] %v1682_v55  ;;  %v1810_v55 = vld [vmem:[%s11411_s23 + $0x1370] sm:$0xff] }
 0x108   : > { %1685 = vst [vmem:[%s11416_s24 + $0x7c0] sm:$0xff] %v1684_v56  ;;  %v1812_v56 = vld [vmem:[%s11411_s23 + $0x1380] sm:$0xff] }
 0x109   : > { %1687 = vst [vmem:[%s11416_s24 + $0x7c8] sm:$0xff] %v1686_v57  ;;  %v1814_v57 = vld [vmem:[%s11411_s23 + $0x1390] sm:$0xff] }
 0x10a   : > { %1689 = vst [vmem:[%s11416_s24 + $0x7d0] sm:$0xff] %v1688_v58  ;;  %v1816_v58 = vld [vmem:[%s11411_s23 + $0x13a0] sm:$0xff] }
 0x10b   : > { %1691 = vst [vmem:[%s11416_s24 + $0x7d8] sm:$0xff] %v1690_v59  ;;  %v1818_v59 = vld [vmem:[%s11411_s23 + $0x13b0] sm:$0xff] }
 0x10c   : > { %1693 = vst [vmem:[%s11416_s24 + $0x7e0] sm:$0xff] %v1692_v60  ;;  %v1820_v60 = vld [vmem:[%s11411_s23 + $0x13c0] sm:$0xff] }
 0x10d   : > { %1695 = vst [vmem:[%s11416_s24 + $0x7e8] sm:$0xff] %v1694_v61  ;;  %v1822_v61 = vld [vmem:[%s11411_s23 + $0x13d0] sm:$0xff] }
 0x10e   : > { %1697 = vst [vmem:[%s11416_s24 + $0x7f0] sm:$0xff] %v1696_v62  ;;  %v1824_v62 = vld [vmem:[%s11411_s23 + $0x13e0] sm:$0xff] }
 0x10f   : > { %1699 = vst [vmem:[%s11416_s24 + $0x7f8] sm:$0xff] %v1698_v63  ;;  %v1826_v63 = vld [vmem:[%s11411_s23 + $0x13f0] sm:$0xff] }
 0x110   : > { %1701 = vst [vmem:[%s11416_s24 + $0x800] sm:$0xff] %v1700_v0  ;;  %v1828_v0 = vld [vmem:[%s11411_s23 + $0x1400] sm:$0xff] }
 0x111   : > { %1703 = vst [vmem:[%s11416_s24 + $0x808] sm:$0xff] %v1702_v1  ;;  %v1830_v1 = vld [vmem:[%s11411_s23 + $0x1410] sm:$0xff] }
 0x112   : > { %1705 = vst [vmem:[%s11416_s24 + $0x810] sm:$0xff] %v1704_v2  ;;  %v1832_v2 = vld [vmem:[%s11411_s23 + $0x1420] sm:$0xff] }
 0x113   : > { %1707 = vst [vmem:[%s11416_s24 + $0x818] sm:$0xff] %v1706_v3  ;;  %v1834_v3 = vld [vmem:[%s11411_s23 + $0x1430] sm:$0xff] }
 0x114   : > { %1709 = vst [vmem:[%s11416_s24 + $0x820] sm:$0xff] %v1708_v4  ;;  %v1836_v4 = vld [vmem:[%s11411_s23 + $0x1440] sm:$0xff] }
 0x115   : > { %1711 = vst [vmem:[%s11416_s24 + $0x828] sm:$0xff] %v1710_v5  ;;  %v1838_v5 = vld [vmem:[%s11411_s23 + $0x1450] sm:$0xff] }
 0x116   : > { %1713 = vst [vmem:[%s11416_s24 + $0x830] sm:$0xff] %v1712_v6  ;;  %v1840_v6 = vld [vmem:[%s11411_s23 + $0x1460] sm:$0xff] }
 0x117   : > { %1715 = vst [vmem:[%s11416_s24 + $0x838] sm:$0xff] %v1714_v7  ;;  %v1842_v7 = vld [vmem:[%s11411_s23 + $0x1470] sm:$0xff] }
 0x118   : > { %1717 = vst [vmem:[%s11416_s24 + $0x840] sm:$0xff] %v1716_v8  ;;  %v1844_v8 = vld [vmem:[%s11411_s23 + $0x1480] sm:$0xff] }
 0x119   : > { %1719 = vst [vmem:[%s11416_s24 + $0x848] sm:$0xff] %v1718_v9  ;;  %v1846_v9 = vld [vmem:[%s11411_s23 + $0x1490] sm:$0xff] }
 0x11a   : > { %1721 = vst [vmem:[%s11416_s24 + $0x850] sm:$0xff] %v1720_v10  ;;  %v1848_v10 = vld [vmem:[%s11411_s23 + $0x14a0] sm:$0xff] }
 0x11b   : > { %1723 = vst [vmem:[%s11416_s24 + $0x858] sm:$0xff] %v1722_v11  ;;  %v1850_v11 = vld [vmem:[%s11411_s23 + $0x14b0] sm:$0xff] }
 0x11c   : > { %1725 = vst [vmem:[%s11416_s24 + $0x860] sm:$0xff] %v1724_v12  ;;  %v1852_v12 = vld [vmem:[%s11411_s23 + $0x14c0] sm:$0xff] }
 0x11d   : > { %1727 = vst [vmem:[%s11416_s24 + $0x868] sm:$0xff] %v1726_v13  ;;  %v1854_v13 = vld [vmem:[%s11411_s23 + $0x14d0] sm:$0xff] }
 0x11e   : > { %1729 = vst [vmem:[%s11416_s24 + $0x870] sm:$0xff] %v1728_v14  ;;  %v1856_v14 = vld [vmem:[%s11411_s23 + $0x14e0] sm:$0xff] }
 0x11f   : > { %1731 = vst [vmem:[%s11416_s24 + $0x878] sm:$0xff] %v1730_v15  ;;  %v1858_v15 = vld [vmem:[%s11411_s23 + $0x14f0] sm:$0xff] }
 0x120   : > { %1733 = vst [vmem:[%s11416_s24 + $0x880] sm:$0xff] %v1732_v16  ;;  %v1860_v16 = vld [vmem:[%s11411_s23 + $0x1500] sm:$0xff] }
 0x121   : > { %1735 = vst [vmem:[%s11416_s24 + $0x888] sm:$0xff] %v1734_v17  ;;  %v1862_v17 = vld [vmem:[%s11411_s23 + $0x1510] sm:$0xff] }
 0x122   : > { %1737 = vst [vmem:[%s11416_s24 + $0x890] sm:$0xff] %v1736_v18  ;;  %v1864_v18 = vld [vmem:[%s11411_s23 + $0x1520] sm:$0xff] }
 0x123   : > { %1739 = vst [vmem:[%s11416_s24 + $0x898] sm:$0xff] %v1738_v19  ;;  %v1866_v19 = vld [vmem:[%s11411_s23 + $0x1530] sm:$0xff] }
 0x124   : > { %1741 = vst [vmem:[%s11416_s24 + $0x8a0] sm:$0xff] %v1740_v20  ;;  %v1868_v20 = vld [vmem:[%s11411_s23 + $0x1540] sm:$0xff] }
 0x125   : > { %1743 = vst [vmem:[%s11416_s24 + $0x8a8] sm:$0xff] %v1742_v21  ;;  %v1870_v21 = vld [vmem:[%s11411_s23 + $0x1550] sm:$0xff] }
 0x126   : > { %1745 = vst [vmem:[%s11416_s24 + $0x8b0] sm:$0xff] %v1744_v22  ;;  %v1872_v22 = vld [vmem:[%s11411_s23 + $0x1560] sm:$0xff] }
 0x127   : > { %1747 = vst [vmem:[%s11416_s24 + $0x8b8] sm:$0xff] %v1746_v23  ;;  %v1874_v23 = vld [vmem:[%s11411_s23 + $0x1570] sm:$0xff] }
 0x128   : > { %1749 = vst [vmem:[%s11416_s24 + $0x8c0] sm:$0xff] %v1748_v24  ;;  %v1876_v24 = vld [vmem:[%s11411_s23 + $0x1580] sm:$0xff] }
 0x129   : > { %1751 = vst [vmem:[%s11416_s24 + $0x8c8] sm:$0xff] %v1750_v25  ;;  %v1878_v25 = vld [vmem:[%s11411_s23 + $0x1590] sm:$0xff] }
 0x12a   : > { %1753 = vst [vmem:[%s11416_s24 + $0x8d0] sm:$0xff] %v1752_v26  ;;  %v1880_v26 = vld [vmem:[%s11411_s23 + $0x15a0] sm:$0xff] }
 0x12b   : > { %1755 = vst [vmem:[%s11416_s24 + $0x8d8] sm:$0xff] %v1754_v27  ;;  %v1882_v27 = vld [vmem:[%s11411_s23 + $0x15b0] sm:$0xff] }
 0x12c   : > { %1757 = vst [vmem:[%s11416_s24 + $0x8e0] sm:$0xff] %v1756_v28  ;;  %v1884_v28 = vld [vmem:[%s11411_s23 + $0x15c0] sm:$0xff] }
 0x12d   : > { %1759 = vst [vmem:[%s11416_s24 + $0x8e8] sm:$0xff] %v1758_v29  ;;  %v1886_v29 = vld [vmem:[%s11411_s23 + $0x15d0] sm:$0xff] }
 0x12e   : > { %1761 = vst [vmem:[%s11416_s24 + $0x8f0] sm:$0xff] %v1760_v30  ;;  %v1888_v30 = vld [vmem:[%s11411_s23 + $0x15e0] sm:$0xff] }
 0x12f   : > { %1763 = vst [vmem:[%s11416_s24 + $0x8f8] sm:$0xff] %v1762_v31  ;;  %v1890_v31 = vld [vmem:[%s11411_s23 + $0x15f0] sm:$0xff] }
 0x130   : > { %1765 = vst [vmem:[%s11416_s24 + $0x900] sm:$0xff] %v1764_v32  ;;  %v1892_v32 = vld [vmem:[%s11411_s23 + $0x1600] sm:$0xff] }
 0x131   : > { %1767 = vst [vmem:[%s11416_s24 + $0x908] sm:$0xff] %v1766_v33  ;;  %v1894_v33 = vld [vmem:[%s11411_s23 + $0x1610] sm:$0xff] }
 0x132   : > { %1769 = vst [vmem:[%s11416_s24 + $0x910] sm:$0xff] %v1768_v34  ;;  %v1896_v34 = vld [vmem:[%s11411_s23 + $0x1620] sm:$0xff] }
 0x133   : > { %1771 = vst [vmem:[%s11416_s24 + $0x918] sm:$0xff] %v1770_v35  ;;  %v1898_v35 = vld [vmem:[%s11411_s23 + $0x1630] sm:$0xff] }
 0x134   : > { %1773 = vst [vmem:[%s11416_s24 + $0x920] sm:$0xff] %v1772_v36  ;;  %v1900_v36 = vld [vmem:[%s11411_s23 + $0x1640] sm:$0xff] }
 0x135   : > { %1775 = vst [vmem:[%s11416_s24 + $0x928] sm:$0xff] %v1774_v37  ;;  %v1902_v37 = vld [vmem:[%s11411_s23 + $0x1650] sm:$0xff] }
 0x136   : > { %1777 = vst [vmem:[%s11416_s24 + $0x930] sm:$0xff] %v1776_v38  ;;  %v1904_v38 = vld [vmem:[%s11411_s23 + $0x1660] sm:$0xff] }
 0x137   : > { %1779 = vst [vmem:[%s11416_s24 + $0x938] sm:$0xff] %v1778_v39  ;;  %v1906_v39 = vld [vmem:[%s11411_s23 + $0x1670] sm:$0xff] }
 0x138   : > { %1781 = vst [vmem:[%s11416_s24 + $0x940] sm:$0xff] %v1780_v40  ;;  %v1908_v40 = vld [vmem:[%s11411_s23 + $0x1680] sm:$0xff] }
 0x139   : > { %1783 = vst [vmem:[%s11416_s24 + $0x948] sm:$0xff] %v1782_v41  ;;  %v1910_v41 = vld [vmem:[%s11411_s23 + $0x1690] sm:$0xff] }
 0x13a   : > { %1785 = vst [vmem:[%s11416_s24 + $0x950] sm:$0xff] %v1784_v42  ;;  %v1912_v42 = vld [vmem:[%s11411_s23 + $0x16a0] sm:$0xff] }
 0x13b   : > { %1787 = vst [vmem:[%s11416_s24 + $0x958] sm:$0xff] %v1786_v43  ;;  %v1914_v43 = vld [vmem:[%s11411_s23 + $0x16b0] sm:$0xff] }
 0x13c   : > { %1789 = vst [vmem:[%s11416_s24 + $0x960] sm:$0xff] %v1788_v44  ;;  %v1916_v44 = vld [vmem:[%s11411_s23 + $0x16c0] sm:$0xff] }
 0x13d   : > { %1791 = vst [vmem:[%s11416_s24 + $0x968] sm:$0xff] %v1790_v45  ;;  %v1918_v45 = vld [vmem:[%s11411_s23 + $0x16d0] sm:$0xff] }
 0x13e   : > { %1793 = vst [vmem:[%s11416_s24 + $0x970] sm:$0xff] %v1792_v46  ;;  %v1920_v46 = vld [vmem:[%s11411_s23 + $0x16e0] sm:$0xff] }
 0x13f   : > { %1795 = vst [vmem:[%s11416_s24 + $0x978] sm:$0xff] %v1794_v47  ;;  %v1922_v47 = vld [vmem:[%s11411_s23 + $0x16f0] sm:$0xff] }
 0x140   : > { %1797 = vst [vmem:[%s11416_s24 + $0x980] sm:$0xff] %v1796_v48  ;;  %v1924_v48 = vld [vmem:[%s11411_s23 + $0x1700] sm:$0xff] }
 0x141   : > { %1799 = vst [vmem:[%s11416_s24 + $0x988] sm:$0xff] %v1798_v49  ;;  %v1926_v49 = vld [vmem:[%s11411_s23 + $0x1710] sm:$0xff] }
 0x142   : > { %1801 = vst [vmem:[%s11416_s24 + $0x990] sm:$0xff] %v1800_v50  ;;  %v1928_v50 = vld [vmem:[%s11411_s23 + $0x1720] sm:$0xff] }
 0x143   : > { %1803 = vst [vmem:[%s11416_s24 + $0x998] sm:$0xff] %v1802_v51  ;;  %v1930_v51 = vld [vmem:[%s11411_s23 + $0x1730] sm:$0xff] }
 0x144   : > { %1805 = vst [vmem:[%s11416_s24 + $0x9a0] sm:$0xff] %v1804_v52  ;;  %v1932_v52 = vld [vmem:[%s11411_s23 + $0x1740] sm:$0xff] }
 0x145   : > { %1807 = vst [vmem:[%s11416_s24 + $0x9a8] sm:$0xff] %v1806_v53  ;;  %v1934_v53 = vld [vmem:[%s11411_s23 + $0x1750] sm:$0xff] }
 0x146   : > { %1809 = vst [vmem:[%s11416_s24 + $0x9b0] sm:$0xff] %v1808_v54  ;;  %v1936_v54 = vld [vmem:[%s11411_s23 + $0x1760] sm:$0xff] }
 0x147   : > { %1811 = vst [vmem:[%s11416_s24 + $0x9b8] sm:$0xff] %v1810_v55  ;;  %v1938_v55 = vld [vmem:[%s11411_s23 + $0x1770] sm:$0xff] }
 0x148   : > { %1813 = vst [vmem:[%s11416_s24 + $0x9c0] sm:$0xff] %v1812_v56  ;;  %v1940_v56 = vld [vmem:[%s11411_s23 + $0x1780] sm:$0xff] }
 0x149   : > { %1815 = vst [vmem:[%s11416_s24 + $0x9c8] sm:$0xff] %v1814_v57  ;;  %v1942_v57 = vld [vmem:[%s11411_s23 + $0x1790] sm:$0xff] }
 0x14a   : > { %1817 = vst [vmem:[%s11416_s24 + $0x9d0] sm:$0xff] %v1816_v58  ;;  %v1944_v58 = vld [vmem:[%s11411_s23 + $0x17a0] sm:$0xff] }
 0x14b   : > { %1819 = vst [vmem:[%s11416_s24 + $0x9d8] sm:$0xff] %v1818_v59  ;;  %v1946_v59 = vld [vmem:[%s11411_s23 + $0x17b0] sm:$0xff] }
 0x14c   : > { %1821 = vst [vmem:[%s11416_s24 + $0x9e0] sm:$0xff] %v1820_v60  ;;  %v1948_v60 = vld [vmem:[%s11411_s23 + $0x17c0] sm:$0xff] }
 0x14d   : > { %1823 = vst [vmem:[%s11416_s24 + $0x9e8] sm:$0xff] %v1822_v61  ;;  %v1950_v61 = vld [vmem:[%s11411_s23 + $0x17d0] sm:$0xff] }
 0x14e   : > { %1825 = vst [vmem:[%s11416_s24 + $0x9f0] sm:$0xff] %v1824_v62  ;;  %v1952_v62 = vld [vmem:[%s11411_s23 + $0x17e0] sm:$0xff] }
 0x14f   : > { %1827 = vst [vmem:[%s11416_s24 + $0x9f8] sm:$0xff] %v1826_v63  ;;  %v1954_v63 = vld [vmem:[%s11411_s23 + $0x17f0] sm:$0xff] }
 0x150   : > { %1829 = vst [vmem:[%s11416_s24 + $0xa00] sm:$0xff] %v1828_v0  ;;  %v1956_v0 = vld [vmem:[%s11411_s23 + $0x1800] sm:$0xff] }
 0x151   : > { %1831 = vst [vmem:[%s11416_s24 + $0xa08] sm:$0xff] %v1830_v1  ;;  %v1958_v1 = vld [vmem:[%s11411_s23 + $0x1810] sm:$0xff] }
 0x152   : > { %1833 = vst [vmem:[%s11416_s24 + $0xa10] sm:$0xff] %v1832_v2  ;;  %v1960_v2 = vld [vmem:[%s11411_s23 + $0x1820] sm:$0xff] }
 0x153   : > { %1835 = vst [vmem:[%s11416_s24 + $0xa18] sm:$0xff] %v1834_v3  ;;  %v1962_v3 = vld [vmem:[%s11411_s23 + $0x1830] sm:$0xff] }
 0x154   : > { %1837 = vst [vmem:[%s11416_s24 + $0xa20] sm:$0xff] %v1836_v4  ;;  %v1964_v4 = vld [vmem:[%s11411_s23 + $0x1840] sm:$0xff] }
 0x155   : > { %1839 = vst [vmem:[%s11416_s24 + $0xa28] sm:$0xff] %v1838_v5  ;;  %v1966_v5 = vld [vmem:[%s11411_s23 + $0x1850] sm:$0xff] }
 0x156   : > { %1841 = vst [vmem:[%s11416_s24 + $0xa30] sm:$0xff] %v1840_v6  ;;  %v1968_v6 = vld [vmem:[%s11411_s23 + $0x1860] sm:$0xff] }
 0x157   : > { %1843 = vst [vmem:[%s11416_s24 + $0xa38] sm:$0xff] %v1842_v7  ;;  %v1970_v7 = vld [vmem:[%s11411_s23 + $0x1870] sm:$0xff] }
 0x158   : > { %1845 = vst [vmem:[%s11416_s24 + $0xa40] sm:$0xff] %v1844_v8  ;;  %v1972_v8 = vld [vmem:[%s11411_s23 + $0x1880] sm:$0xff] }
 0x159   : > { %1847 = vst [vmem:[%s11416_s24 + $0xa48] sm:$0xff] %v1846_v9  ;;  %v1974_v9 = vld [vmem:[%s11411_s23 + $0x1890] sm:$0xff] }
 0x15a   : > { %1849 = vst [vmem:[%s11416_s24 + $0xa50] sm:$0xff] %v1848_v10  ;;  %v1976_v10 = vld [vmem:[%s11411_s23 + $0x18a0] sm:$0xff] }
 0x15b   : > { %1851 = vst [vmem:[%s11416_s24 + $0xa58] sm:$0xff] %v1850_v11  ;;  %v1978_v11 = vld [vmem:[%s11411_s23 + $0x18b0] sm:$0xff] }
 0x15c   : > { %1853 = vst [vmem:[%s11416_s24 + $0xa60] sm:$0xff] %v1852_v12  ;;  %v1980_v12 = vld [vmem:[%s11411_s23 + $0x18c0] sm:$0xff] }
 0x15d   : > { %1855 = vst [vmem:[%s11416_s24 + $0xa68] sm:$0xff] %v1854_v13  ;;  %v1982_v13 = vld [vmem:[%s11411_s23 + $0x18d0] sm:$0xff] }
 0x15e   : > { %1857 = vst [vmem:[%s11416_s24 + $0xa70] sm:$0xff] %v1856_v14  ;;  %v1984_v14 = vld [vmem:[%s11411_s23 + $0x18e0] sm:$0xff] }
 0x15f   : > { %1859 = vst [vmem:[%s11416_s24 + $0xa78] sm:$0xff] %v1858_v15  ;;  %v1986_v15 = vld [vmem:[%s11411_s23 + $0x18f0] sm:$0xff] }
 0x160   : > { %1861 = vst [vmem:[%s11416_s24 + $0xa80] sm:$0xff] %v1860_v16  ;;  %v1988_v16 = vld [vmem:[%s11411_s23 + $0x1900] sm:$0xff] }
 0x161   : > { %1863 = vst [vmem:[%s11416_s24 + $0xa88] sm:$0xff] %v1862_v17  ;;  %v1990_v17 = vld [vmem:[%s11411_s23 + $0x1910] sm:$0xff] }
 0x162   : > { %1865 = vst [vmem:[%s11416_s24 + $0xa90] sm:$0xff] %v1864_v18  ;;  %v1992_v18 = vld [vmem:[%s11411_s23 + $0x1920] sm:$0xff] }
 0x163   : > { %1867 = vst [vmem:[%s11416_s24 + $0xa98] sm:$0xff] %v1866_v19  ;;  %v1994_v19 = vld [vmem:[%s11411_s23 + $0x1930] sm:$0xff] }
 0x164   : > { %1869 = vst [vmem:[%s11416_s24 + $0xaa0] sm:$0xff] %v1868_v20  ;;  %v1996_v20 = vld [vmem:[%s11411_s23 + $0x1940] sm:$0xff] }
 0x165   : > { %1871 = vst [vmem:[%s11416_s24 + $0xaa8] sm:$0xff] %v1870_v21  ;;  %v1998_v21 = vld [vmem:[%s11411_s23 + $0x1950] sm:$0xff] }
 0x166   : > { %1873 = vst [vmem:[%s11416_s24 + $0xab0] sm:$0xff] %v1872_v22  ;;  %v2000_v22 = vld [vmem:[%s11411_s23 + $0x1960] sm:$0xff] }
 0x167   : > { %1875 = vst [vmem:[%s11416_s24 + $0xab8] sm:$0xff] %v1874_v23  ;;  %v2002_v23 = vld [vmem:[%s11411_s23 + $0x1970] sm:$0xff] }
 0x168   : > { %1877 = vst [vmem:[%s11416_s24 + $0xac0] sm:$0xff] %v1876_v24  ;;  %v2004_v24 = vld [vmem:[%s11411_s23 + $0x1980] sm:$0xff] }
 0x169   : > { %1879 = vst [vmem:[%s11416_s24 + $0xac8] sm:$0xff] %v1878_v25  ;;  %v2006_v25 = vld [vmem:[%s11411_s23 + $0x1990] sm:$0xff] }
 0x16a   : > { %1881 = vst [vmem:[%s11416_s24 + $0xad0] sm:$0xff] %v1880_v26  ;;  %v2008_v26 = vld [vmem:[%s11411_s23 + $0x19a0] sm:$0xff] }
 0x16b   : > { %1883 = vst [vmem:[%s11416_s24 + $0xad8] sm:$0xff] %v1882_v27  ;;  %v2010_v27 = vld [vmem:[%s11411_s23 + $0x19b0] sm:$0xff] }
 0x16c   : > { %1885 = vst [vmem:[%s11416_s24 + $0xae0] sm:$0xff] %v1884_v28  ;;  %v2012_v28 = vld [vmem:[%s11411_s23 + $0x19c0] sm:$0xff] }
 0x16d   : > { %1887 = vst [vmem:[%s11416_s24 + $0xae8] sm:$0xff] %v1886_v29  ;;  %v2014_v29 = vld [vmem:[%s11411_s23 + $0x19d0] sm:$0xff] }
 0x16e   : > { %1889 = vst [vmem:[%s11416_s24 + $0xaf0] sm:$0xff] %v1888_v30  ;;  %v2016_v30 = vld [vmem:[%s11411_s23 + $0x19e0] sm:$0xff] }
 0x16f   : > { %1891 = vst [vmem:[%s11416_s24 + $0xaf8] sm:$0xff] %v1890_v31  ;;  %v2018_v31 = vld [vmem:[%s11411_s23 + $0x19f0] sm:$0xff] }
 0x170   : > { %1893 = vst [vmem:[%s11416_s24 + $0xb00] sm:$0xff] %v1892_v32  ;;  %v2020_v32 = vld [vmem:[%s11411_s23 + $0x1a00] sm:$0xff] }
 0x171   : > { %1895 = vst [vmem:[%s11416_s24 + $0xb08] sm:$0xff] %v1894_v33  ;;  %v2022_v33 = vld [vmem:[%s11411_s23 + $0x1a10] sm:$0xff] }
 0x172   : > { %1897 = vst [vmem:[%s11416_s24 + $0xb10] sm:$0xff] %v1896_v34  ;;  %v2024_v34 = vld [vmem:[%s11411_s23 + $0x1a20] sm:$0xff] }
 0x173   : > { %1899 = vst [vmem:[%s11416_s24 + $0xb18] sm:$0xff] %v1898_v35  ;;  %v2026_v35 = vld [vmem:[%s11411_s23 + $0x1a30] sm:$0xff] }
 0x174   : > { %1901 = vst [vmem:[%s11416_s24 + $0xb20] sm:$0xff] %v1900_v36  ;;  %v2028_v36 = vld [vmem:[%s11411_s23 + $0x1a40] sm:$0xff] }
 0x175   : > { %1903 = vst [vmem:[%s11416_s24 + $0xb28] sm:$0xff] %v1902_v37  ;;  %v2030_v37 = vld [vmem:[%s11411_s23 + $0x1a50] sm:$0xff] }
 0x176   : > { %1905 = vst [vmem:[%s11416_s24 + $0xb30] sm:$0xff] %v1904_v38  ;;  %v2032_v38 = vld [vmem:[%s11411_s23 + $0x1a60] sm:$0xff] }
 0x177   : > { %1907 = vst [vmem:[%s11416_s24 + $0xb38] sm:$0xff] %v1906_v39  ;;  %v2034_v39 = vld [vmem:[%s11411_s23 + $0x1a70] sm:$0xff] }
 0x178   : > { %1909 = vst [vmem:[%s11416_s24 + $0xb40] sm:$0xff] %v1908_v40  ;;  %v2036_v40 = vld [vmem:[%s11411_s23 + $0x1a80] sm:$0xff] }
 0x179   : > { %1911 = vst [vmem:[%s11416_s24 + $0xb48] sm:$0xff] %v1910_v41  ;;  %v2038_v41 = vld [vmem:[%s11411_s23 + $0x1a90] sm:$0xff] }
 0x17a   : > { %1913 = vst [vmem:[%s11416_s24 + $0xb50] sm:$0xff] %v1912_v42  ;;  %v2040_v42 = vld [vmem:[%s11411_s23 + $0x1aa0] sm:$0xff] }
 0x17b   : > { %1915 = vst [vmem:[%s11416_s24 + $0xb58] sm:$0xff] %v1914_v43  ;;  %v2042_v43 = vld [vmem:[%s11411_s23 + $0x1ab0] sm:$0xff] }
 0x17c   : > { %1917 = vst [vmem:[%s11416_s24 + $0xb60] sm:$0xff] %v1916_v44  ;;  %v2044_v44 = vld [vmem:[%s11411_s23 + $0x1ac0] sm:$0xff] }
 0x17d   : > { %1919 = vst [vmem:[%s11416_s24 + $0xb68] sm:$0xff] %v1918_v45  ;;  %v2046_v45 = vld [vmem:[%s11411_s23 + $0x1ad0] sm:$0xff] }
 0x17e   : > { %1921 = vst [vmem:[%s11416_s24 + $0xb70] sm:$0xff] %v1920_v46  ;;  %v2048_v46 = vld [vmem:[%s11411_s23 + $0x1ae0] sm:$0xff] }
 0x17f   : > { %1923 = vst [vmem:[%s11416_s24 + $0xb78] sm:$0xff] %v1922_v47  ;;  %v2050_v47 = vld [vmem:[%s11411_s23 + $0x1af0] sm:$0xff] }
 0x180   : > { %1925 = vst [vmem:[%s11416_s24 + $0xb80] sm:$0xff] %v1924_v48  ;;  %v2052_v48 = vld [vmem:[%s11411_s23 + $0x1b00] sm:$0xff] }
 0x181   : > { %1927 = vst [vmem:[%s11416_s24 + $0xb88] sm:$0xff] %v1926_v49  ;;  %v2054_v49 = vld [vmem:[%s11411_s23 + $0x1b10] sm:$0xff] }
 0x182   : > { %1929 = vst [vmem:[%s11416_s24 + $0xb90] sm:$0xff] %v1928_v50  ;;  %v2056_v50 = vld [vmem:[%s11411_s23 + $0x1b20] sm:$0xff] }
 0x183   : > { %1931 = vst [vmem:[%s11416_s24 + $0xb98] sm:$0xff] %v1930_v51  ;;  %v2058_v51 = vld [vmem:[%s11411_s23 + $0x1b30] sm:$0xff] }
 0x184   : > { %1933 = vst [vmem:[%s11416_s24 + $0xba0] sm:$0xff] %v1932_v52  ;;  %v2060_v52 = vld [vmem:[%s11411_s23 + $0x1b40] sm:$0xff] }
 0x185   : > { %1935 = vst [vmem:[%s11416_s24 + $0xba8] sm:$0xff] %v1934_v53  ;;  %v2062_v53 = vld [vmem:[%s11411_s23 + $0x1b50] sm:$0xff] }
 0x186   : > { %1937 = vst [vmem:[%s11416_s24 + $0xbb0] sm:$0xff] %v1936_v54  ;;  %v2064_v54 = vld [vmem:[%s11411_s23 + $0x1b60] sm:$0xff] }
 0x187   : > { %1939 = vst [vmem:[%s11416_s24 + $0xbb8] sm:$0xff] %v1938_v55  ;;  %v2066_v55 = vld [vmem:[%s11411_s23 + $0x1b70] sm:$0xff] }
 0x188   : > { %1941 = vst [vmem:[%s11416_s24 + $0xbc0] sm:$0xff] %v1940_v56  ;;  %v2068_v56 = vld [vmem:[%s11411_s23 + $0x1b80] sm:$0xff] }
 0x189   : > { %1943 = vst [vmem:[%s11416_s24 + $0xbc8] sm:$0xff] %v1942_v57  ;;  %v2070_v57 = vld [vmem:[%s11411_s23 + $0x1b90] sm:$0xff] }
 0x18a   : > { %1945 = vst [vmem:[%s11416_s24 + $0xbd0] sm:$0xff] %v1944_v58  ;;  %v2072_v58 = vld [vmem:[%s11411_s23 + $0x1ba0] sm:$0xff] }
 0x18b   : > { %1947 = vst [vmem:[%s11416_s24 + $0xbd8] sm:$0xff] %v1946_v59  ;;  %v2074_v59 = vld [vmem:[%s11411_s23 + $0x1bb0] sm:$0xff] }
 0x18c   : > { %1949 = vst [vmem:[%s11416_s24 + $0xbe0] sm:$0xff] %v1948_v60  ;;  %v2076_v60 = vld [vmem:[%s11411_s23 + $0x1bc0] sm:$0xff] }
 0x18d   : > { %1951 = vst [vmem:[%s11416_s24 + $0xbe8] sm:$0xff] %v1950_v61  ;;  %v2078_v61 = vld [vmem:[%s11411_s23 + $0x1bd0] sm:$0xff] }
 0x18e   : > { %1953 = vst [vmem:[%s11416_s24 + $0xbf0] sm:$0xff] %v1952_v62  ;;  %v2080_v62 = vld [vmem:[%s11411_s23 + $0x1be0] sm:$0xff] }
 0x18f   : > { %1955 = vst [vmem:[%s11416_s24 + $0xbf8] sm:$0xff] %v1954_v63  ;;  %v2082_v63 = vld [vmem:[%s11411_s23 + $0x1bf0] sm:$0xff] }
 0x190   : > { %1957 = vst [vmem:[%s11416_s24 + $0xc00] sm:$0xff] %v1956_v0  ;;  %v2084_v0 = vld [vmem:[%s11411_s23 + $0x1c00] sm:$0xff] }
 0x191   : > { %1959 = vst [vmem:[%s11416_s24 + $0xc08] sm:$0xff] %v1958_v1  ;;  %v2086_v1 = vld [vmem:[%s11411_s23 + $0x1c10] sm:$0xff] }
 0x192   : > { %1961 = vst [vmem:[%s11416_s24 + $0xc10] sm:$0xff] %v1960_v2  ;;  %v2088_v2 = vld [vmem:[%s11411_s23 + $0x1c20] sm:$0xff] }
 0x193   : > { %1963 = vst [vmem:[%s11416_s24 + $0xc18] sm:$0xff] %v1962_v3  ;;  %v2090_v3 = vld [vmem:[%s11411_s23 + $0x1c30] sm:$0xff] }
 0x194   : > { %1965 = vst [vmem:[%s11416_s24 + $0xc20] sm:$0xff] %v1964_v4  ;;  %v2092_v4 = vld [vmem:[%s11411_s23 + $0x1c40] sm:$0xff] }
 0x195   : > { %1967 = vst [vmem:[%s11416_s24 + $0xc28] sm:$0xff] %v1966_v5  ;;  %v2094_v5 = vld [vmem:[%s11411_s23 + $0x1c50] sm:$0xff] }
 0x196   : > { %1969 = vst [vmem:[%s11416_s24 + $0xc30] sm:$0xff] %v1968_v6  ;;  %v2096_v6 = vld [vmem:[%s11411_s23 + $0x1c60] sm:$0xff] }
 0x197   : > { %1971 = vst [vmem:[%s11416_s24 + $0xc38] sm:$0xff] %v1970_v7  ;;  %v2098_v7 = vld [vmem:[%s11411_s23 + $0x1c70] sm:$0xff] }
 0x198   : > { %1973 = vst [vmem:[%s11416_s24 + $0xc40] sm:$0xff] %v1972_v8  ;;  %v2100_v8 = vld [vmem:[%s11411_s23 + $0x1c80] sm:$0xff] }
 0x199   : > { %1975 = vst [vmem:[%s11416_s24 + $0xc48] sm:$0xff] %v1974_v9  ;;  %v2102_v9 = vld [vmem:[%s11411_s23 + $0x1c90] sm:$0xff] }
 0x19a   : > { %1977 = vst [vmem:[%s11416_s24 + $0xc50] sm:$0xff] %v1976_v10  ;;  %v2104_v10 = vld [vmem:[%s11411_s23 + $0x1ca0] sm:$0xff] }
 0x19b   : > { %1979 = vst [vmem:[%s11416_s24 + $0xc58] sm:$0xff] %v1978_v11  ;;  %v2106_v11 = vld [vmem:[%s11411_s23 + $0x1cb0] sm:$0xff] }
 0x19c   : > { %1981 = vst [vmem:[%s11416_s24 + $0xc60] sm:$0xff] %v1980_v12  ;;  %v2108_v12 = vld [vmem:[%s11411_s23 + $0x1cc0] sm:$0xff] }
 0x19d   : > { %1983 = vst [vmem:[%s11416_s24 + $0xc68] sm:$0xff] %v1982_v13  ;;  %v2110_v13 = vld [vmem:[%s11411_s23 + $0x1cd0] sm:$0xff] }
 0x19e   : > { %1985 = vst [vmem:[%s11416_s24 + $0xc70] sm:$0xff] %v1984_v14  ;;  %v2112_v14 = vld [vmem:[%s11411_s23 + $0x1ce0] sm:$0xff] }
 0x19f   : > { %1987 = vst [vmem:[%s11416_s24 + $0xc78] sm:$0xff] %v1986_v15  ;;  %v2114_v15 = vld [vmem:[%s11411_s23 + $0x1cf0] sm:$0xff] }
 0x1a0   : > { %1989 = vst [vmem:[%s11416_s24 + $0xc80] sm:$0xff] %v1988_v16  ;;  %v2116_v16 = vld [vmem:[%s11411_s23 + $0x1d00] sm:$0xff] }
 0x1a1   : > { %1991 = vst [vmem:[%s11416_s24 + $0xc88] sm:$0xff] %v1990_v17  ;;  %v2118_v17 = vld [vmem:[%s11411_s23 + $0x1d10] sm:$0xff] }
 0x1a2   : > { %1993 = vst [vmem:[%s11416_s24 + $0xc90] sm:$0xff] %v1992_v18  ;;  %v2120_v18 = vld [vmem:[%s11411_s23 + $0x1d20] sm:$0xff] }
 0x1a3   : > { %1995 = vst [vmem:[%s11416_s24 + $0xc98] sm:$0xff] %v1994_v19  ;;  %v2122_v19 = vld [vmem:[%s11411_s23 + $0x1d30] sm:$0xff] }
 0x1a4   : > { %1997 = vst [vmem:[%s11416_s24 + $0xca0] sm:$0xff] %v1996_v20  ;;  %v2124_v20 = vld [vmem:[%s11411_s23 + $0x1d40] sm:$0xff] }
 0x1a5   : > { %1999 = vst [vmem:[%s11416_s24 + $0xca8] sm:$0xff] %v1998_v21  ;;  %v2126_v21 = vld [vmem:[%s11411_s23 + $0x1d50] sm:$0xff] }
 0x1a6   : > { %2001 = vst [vmem:[%s11416_s24 + $0xcb0] sm:$0xff] %v2000_v22  ;;  %v2128_v22 = vld [vmem:[%s11411_s23 + $0x1d60] sm:$0xff] }
 0x1a7   : > { %2003 = vst [vmem:[%s11416_s24 + $0xcb8] sm:$0xff] %v2002_v23  ;;  %v2130_v23 = vld [vmem:[%s11411_s23 + $0x1d70] sm:$0xff] }
 0x1a8   : > { %2005 = vst [vmem:[%s11416_s24 + $0xcc0] sm:$0xff] %v2004_v24  ;;  %v2132_v24 = vld [vmem:[%s11411_s23 + $0x1d80] sm:$0xff] }
 0x1a9   : > { %2007 = vst [vmem:[%s11416_s24 + $0xcc8] sm:$0xff] %v2006_v25  ;;  %v2134_v25 = vld [vmem:[%s11411_s23 + $0x1d90] sm:$0xff] }
 0x1aa   : > { %2009 = vst [vmem:[%s11416_s24 + $0xcd0] sm:$0xff] %v2008_v26  ;;  %v2136_v26 = vld [vmem:[%s11411_s23 + $0x1da0] sm:$0xff] }
 0x1ab   : > { %2011 = vst [vmem:[%s11416_s24 + $0xcd8] sm:$0xff] %v2010_v27  ;;  %v2138_v27 = vld [vmem:[%s11411_s23 + $0x1db0] sm:$0xff] }
 0x1ac   : > { %2013 = vst [vmem:[%s11416_s24 + $0xce0] sm:$0xff] %v2012_v28  ;;  %v2140_v28 = vld [vmem:[%s11411_s23 + $0x1dc0] sm:$0xff] }
 0x1ad   : > { %2015 = vst [vmem:[%s11416_s24 + $0xce8] sm:$0xff] %v2014_v29  ;;  %v2142_v29 = vld [vmem:[%s11411_s23 + $0x1dd0] sm:$0xff] }
 0x1ae   : > { %2017 = vst [vmem:[%s11416_s24 + $0xcf0] sm:$0xff] %v2016_v30  ;;  %v2144_v30 = vld [vmem:[%s11411_s23 + $0x1de0] sm:$0xff] }
 0x1af   : > { %2019 = vst [vmem:[%s11416_s24 + $0xcf8] sm:$0xff] %v2018_v31  ;;  %v2146_v31 = vld [vmem:[%s11411_s23 + $0x1df0] sm:$0xff] }
 0x1b0   : > { %2021 = vst [vmem:[%s11416_s24 + $0xd00] sm:$0xff] %v2020_v32  ;;  %v2148_v32 = vld [vmem:[%s11411_s23 + $0x1e00] sm:$0xff] }
 0x1b1   : > { %2023 = vst [vmem:[%s11416_s24 + $0xd08] sm:$0xff] %v2022_v33  ;;  %v2150_v33 = vld [vmem:[%s11411_s23 + $0x1e10] sm:$0xff] }
 0x1b2   : > { %2025 = vst [vmem:[%s11416_s24 + $0xd10] sm:$0xff] %v2024_v34  ;;  %v2152_v34 = vld [vmem:[%s11411_s23 + $0x1e20] sm:$0xff] }
 0x1b3   : > { %2027 = vst [vmem:[%s11416_s24 + $0xd18] sm:$0xff] %v2026_v35  ;;  %v2154_v35 = vld [vmem:[%s11411_s23 + $0x1e30] sm:$0xff] }
 0x1b4   : > { %2029 = vst [vmem:[%s11416_s24 + $0xd20] sm:$0xff] %v2028_v36  ;;  %v2156_v36 = vld [vmem:[%s11411_s23 + $0x1e40] sm:$0xff] }
 0x1b5   : > { %2031 = vst [vmem:[%s11416_s24 + $0xd28] sm:$0xff] %v2030_v37  ;;  %v2158_v37 = vld [vmem:[%s11411_s23 + $0x1e50] sm:$0xff] }
 0x1b6   : > { %2033 = vst [vmem:[%s11416_s24 + $0xd30] sm:$0xff] %v2032_v38  ;;  %v2160_v38 = vld [vmem:[%s11411_s23 + $0x1e60] sm:$0xff] }
 0x1b7   : > { %2035 = vst [vmem:[%s11416_s24 + $0xd38] sm:$0xff] %v2034_v39  ;;  %v2162_v39 = vld [vmem:[%s11411_s23 + $0x1e70] sm:$0xff] }
 0x1b8   : > { %2037 = vst [vmem:[%s11416_s24 + $0xd40] sm:$0xff] %v2036_v40  ;;  %v2164_v40 = vld [vmem:[%s11411_s23 + $0x1e80] sm:$0xff] }
 0x1b9   : > { %2039 = vst [vmem:[%s11416_s24 + $0xd48] sm:$0xff] %v2038_v41  ;;  %v2166_v41 = vld [vmem:[%s11411_s23 + $0x1e90] sm:$0xff] }
 0x1ba   : > { %2041 = vst [vmem:[%s11416_s24 + $0xd50] sm:$0xff] %v2040_v42  ;;  %v2168_v42 = vld [vmem:[%s11411_s23 + $0x1ea0] sm:$0xff] }
 0x1bb   : > { %2043 = vst [vmem:[%s11416_s24 + $0xd58] sm:$0xff] %v2042_v43  ;;  %v2170_v43 = vld [vmem:[%s11411_s23 + $0x1eb0] sm:$0xff] }
 0x1bc   : > { %2045 = vst [vmem:[%s11416_s24 + $0xd60] sm:$0xff] %v2044_v44  ;;  %v2172_v44 = vld [vmem:[%s11411_s23 + $0x1ec0] sm:$0xff] }
 0x1bd   : > { %2047 = vst [vmem:[%s11416_s24 + $0xd68] sm:$0xff] %v2046_v45  ;;  %v2174_v45 = vld [vmem:[%s11411_s23 + $0x1ed0] sm:$0xff] }
 0x1be   : > { %2049 = vst [vmem:[%s11416_s24 + $0xd70] sm:$0xff] %v2048_v46  ;;  %v2176_v46 = vld [vmem:[%s11411_s23 + $0x1ee0] sm:$0xff] }
 0x1bf   : > { %2051 = vst [vmem:[%s11416_s24 + $0xd78] sm:$0xff] %v2050_v47  ;;  %v2178_v47 = vld [vmem:[%s11411_s23 + $0x1ef0] sm:$0xff] }
 0x1c0   : > { %2053 = vst [vmem:[%s11416_s24 + $0xd80] sm:$0xff] %v2052_v48  ;;  %v2180_v48 = vld [vmem:[%s11411_s23 + $0x1f00] sm:$0xff] }
 0x1c1   : > { %2055 = vst [vmem:[%s11416_s24 + $0xd88] sm:$0xff] %v2054_v49  ;;  %v2182_v49 = vld [vmem:[%s11411_s23 + $0x1f10] sm:$0xff] }
 0x1c2   : > { %2057 = vst [vmem:[%s11416_s24 + $0xd90] sm:$0xff] %v2056_v50  ;;  %v2184_v50 = vld [vmem:[%s11411_s23 + $0x1f20] sm:$0xff] }
 0x1c3   : > { %2059 = vst [vmem:[%s11416_s24 + $0xd98] sm:$0xff] %v2058_v51  ;;  %v2186_v51 = vld [vmem:[%s11411_s23 + $0x1f30] sm:$0xff] }
 0x1c4   : > { %2061 = vst [vmem:[%s11416_s24 + $0xda0] sm:$0xff] %v2060_v52  ;;  %v2188_v52 = vld [vmem:[%s11411_s23 + $0x1f40] sm:$0xff] }
 0x1c5   : > { %2063 = vst [vmem:[%s11416_s24 + $0xda8] sm:$0xff] %v2062_v53  ;;  %v2190_v53 = vld [vmem:[%s11411_s23 + $0x1f50] sm:$0xff] }
 0x1c6   : > { %2065 = vst [vmem:[%s11416_s24 + $0xdb0] sm:$0xff] %v2064_v54  ;;  %v2192_v54 = vld [vmem:[%s11411_s23 + $0x1f60] sm:$0xff] }
 0x1c7   : > { %2067 = vst [vmem:[%s11416_s24 + $0xdb8] sm:$0xff] %v2066_v55  ;;  %v2194_v55 = vld [vmem:[%s11411_s23 + $0x1f70] sm:$0xff] }
 0x1c8   : > { %2069 = vst [vmem:[%s11416_s24 + $0xdc0] sm:$0xff] %v2068_v56  ;;  %v2196_v56 = vld [vmem:[%s11411_s23 + $0x1f80] sm:$0xff] }
 0x1c9   : > { %2071 = vst [vmem:[%s11416_s24 + $0xdc8] sm:$0xff] %v2070_v57  ;;  %v2198_v57 = vld [vmem:[%s11411_s23 + $0x1f90] sm:$0xff] }
 0x1ca   : > { %2073 = vst [vmem:[%s11416_s24 + $0xdd0] sm:$0xff] %v2072_v58  ;;  %v2200_v58 = vld [vmem:[%s11411_s23 + $0x1fa0] sm:$0xff] }
 0x1cb   : > { %2075 = vst [vmem:[%s11416_s24 + $0xdd8] sm:$0xff] %v2074_v59  ;;  %v2202_v59 = vld [vmem:[%s11411_s23 + $0x1fb0] sm:$0xff] }
 0x1cc   : > { %2077 = vst [vmem:[%s11416_s24 + $0xde0] sm:$0xff] %v2076_v60  ;;  %v2204_v60 = vld [vmem:[%s11411_s23 + $0x1fc0] sm:$0xff] }
 0x1cd   : > { %2079 = vst [vmem:[%s11416_s24 + $0xde8] sm:$0xff] %v2078_v61  ;;  %v2206_v61 = vld [vmem:[%s11411_s23 + $0x1fd0] sm:$0xff] }
 0x1ce   : > { %2081 = vst [vmem:[%s11416_s24 + $0xdf0] sm:$0xff] %v2080_v62  ;;  %v2208_v62 = vld [vmem:[%s11411_s23 + $0x1fe0] sm:$0xff] }
 0x1cf   : > { %2083 = vst [vmem:[%s11416_s24 + $0xdf8] sm:$0xff] %v2082_v63  ;;  %v2210_v63 = vld [vmem:[%s11411_s23 + $0x1ff0] sm:$0xff] }
 0x1d0   : > { %2085 = vst [vmem:[%s11416_s24 + $0xe00] sm:$0xff] %v2084_v0 }
 0x1d1   : > { %2087 = vst [vmem:[%s11416_s24 + $0xe08] sm:$0xff] %v2086_v1 }
 0x1d2   : > { %2089 = vst [vmem:[%s11416_s24 + $0xe10] sm:$0xff] %v2088_v2 }
 0x1d3   : > { %2091 = vst [vmem:[%s11416_s24 + $0xe18] sm:$0xff] %v2090_v3 }
 0x1d4   : > { %2093 = vst [vmem:[%s11416_s24 + $0xe20] sm:$0xff] %v2092_v4 }
 0x1d5   : > { %2095 = vst [vmem:[%s11416_s24 + $0xe28] sm:$0xff] %v2094_v5 }
 0x1d6   : > { %2097 = vst [vmem:[%s11416_s24 + $0xe30] sm:$0xff] %v2096_v6 }
 0x1d7   : > { %2099 = vst [vmem:[%s11416_s24 + $0xe38] sm:$0xff] %v2098_v7 }
 0x1d8   : > { %2101 = vst [vmem:[%s11416_s24 + $0xe40] sm:$0xff] %v2100_v8 }
 0x1d9   : > { %2103 = vst [vmem:[%s11416_s24 + $0xe48] sm:$0xff] %v2102_v9 }
 0x1da   : > { %2105 = vst [vmem:[%s11416_s24 + $0xe50] sm:$0xff] %v2104_v10 }
 0x1db   : > { %2107 = vst [vmem:[%s11416_s24 + $0xe58] sm:$0xff] %v2106_v11 }
 0x1dc   : > { %2109 = vst [vmem:[%s11416_s24 + $0xe60] sm:$0xff] %v2108_v12 }
 0x1dd   : > { %2111 = vst [vmem:[%s11416_s24 + $0xe68] sm:$0xff] %v2110_v13 }
 0x1de   : > { %2113 = vst [vmem:[%s11416_s24 + $0xe70] sm:$0xff] %v2112_v14 }
 0x1df   : > { %2115 = vst [vmem:[%s11416_s24 + $0xe78] sm:$0xff] %v2114_v15 }
 0x1e0   : > { %2117 = vst [vmem:[%s11416_s24 + $0xe80] sm:$0xff] %v2116_v16 }
 0x1e1   : > { %2119 = vst [vmem:[%s11416_s24 + $0xe88] sm:$0xff] %v2118_v17 }
 0x1e2   : > { %2121 = vst [vmem:[%s11416_s24 + $0xe90] sm:$0xff] %v2120_v18 }
 0x1e3   : > { %2123 = vst [vmem:[%s11416_s24 + $0xe98] sm:$0xff] %v2122_v19 }
 0x1e4   : > { %2125 = vst [vmem:[%s11416_s24 + $0xea0] sm:$0xff] %v2124_v20 }
 0x1e5   : > { %2127 = vst [vmem:[%s11416_s24 + $0xea8] sm:$0xff] %v2126_v21 }
 0x1e6   : > { %2129 = vst [vmem:[%s11416_s24 + $0xeb0] sm:$0xff] %v2128_v22 }
 0x1e7   : > { %2131 = vst [vmem:[%s11416_s24 + $0xeb8] sm:$0xff] %v2130_v23 }
 0x1e8   : > { %2133 = vst [vmem:[%s11416_s24 + $0xec0] sm:$0xff] %v2132_v24 }
 0x1e9   : > { %2135 = vst [vmem:[%s11416_s24 + $0xec8] sm:$0xff] %v2134_v25 }
 0x1ea   : > { %2137 = vst [vmem:[%s11416_s24 + $0xed0] sm:$0xff] %v2136_v26 }
 0x1eb   : > { %2139 = vst [vmem:[%s11416_s24 + $0xed8] sm:$0xff] %v2138_v27 }
 0x1ec   : > { %2141 = vst [vmem:[%s11416_s24 + $0xee0] sm:$0xff] %v2140_v28 }
 0x1ed   : > { %2143 = vst [vmem:[%s11416_s24 + $0xee8] sm:$0xff] %v2142_v29 }
 0x1ee   : > { %2145 = vst [vmem:[%s11416_s24 + $0xef0] sm:$0xff] %v2144_v30 }
 0x1ef   : > { %2147 = vst [vmem:[%s11416_s24 + $0xef8] sm:$0xff] %v2146_v31 }
 0x1f0   : > { %2149 = vst [vmem:[%s11416_s24 + $0xf00] sm:$0xff] %v2148_v32 }
 0x1f1   : > { %2151 = vst [vmem:[%s11416_s24 + $0xf08] sm:$0xff] %v2150_v33 }
 0x1f2   : > { %2153 = vst [vmem:[%s11416_s24 + $0xf10] sm:$0xff] %v2152_v34 }
 0x1f3   : > { %2155 = vst [vmem:[%s11416_s24 + $0xf18] sm:$0xff] %v2154_v35 }
 0x1f4   : > { %2157 = vst [vmem:[%s11416_s24 + $0xf20] sm:$0xff] %v2156_v36 }
 0x1f5   : > { %2159 = vst [vmem:[%s11416_s24 + $0xf28] sm:$0xff] %v2158_v37 }
 0x1f6   : > { %2161 = vst [vmem:[%s11416_s24 + $0xf30] sm:$0xff] %v2160_v38 }
 0x1f7   : > { %2163 = vst [vmem:[%s11416_s24 + $0xf38] sm:$0xff] %v2162_v39 }
 0x1f8   : > { %2165 = vst [vmem:[%s11416_s24 + $0xf40] sm:$0xff] %v2164_v40 }
 0x1f9   : > { %2167 = vst [vmem:[%s11416_s24 + $0xf48] sm:$0xff] %v2166_v41 }
 0x1fa   : > { %2169 = vst [vmem:[%s11416_s24 + $0xf50] sm:$0xff] %v2168_v42 }
 0x1fb   : > { %2171 = vst [vmem:[%s11416_s24 + $0xf58] sm:$0xff] %v2170_v43 }
 0x1fc   : > { %2173 = vst [vmem:[%s11416_s24 + $0xf60] sm:$0xff] %v2172_v44 }
 0x1fd   : > { %2175 = vst [vmem:[%s11416_s24 + $0xf68] sm:$0xff] %v2174_v45 }
 0x1fe   : > { %2177 = vst [vmem:[%s11416_s24 + $0xf70] sm:$0xff] %v2176_v46 }
 0x1ff   : > { %2179 = vst [vmem:[%s11416_s24 + $0xf78] sm:$0xff] %v2178_v47 }
 0x200   : > { %2181 = vst [vmem:[%s11416_s24 + $0xf80] sm:$0xff] %v2180_v48 }
 0x201   : > { %2183 = vst [vmem:[%s11416_s24 + $0xf88] sm:$0xff] %v2182_v49 }
 0x202   : > { %2185 = vst [vmem:[%s11416_s24 + $0xf90] sm:$0xff] %v2184_v50 }
 0x203   : > { %2187 = vst [vmem:[%s11416_s24 + $0xf98] sm:$0xff] %v2186_v51 }
 0x204   : > { %2189 = vst [vmem:[%s11416_s24 + $0xfa0] sm:$0xff] %v2188_v52 }
 0x205   : > { %2191 = vst [vmem:[%s11416_s24 + $0xfa8] sm:$0xff] %v2190_v53 }
 0x206   : > { %2193 = vst [vmem:[%s11416_s24 + $0xfb0] sm:$0xff] %v2192_v54 }
 0x207   : > { %2195 = vst [vmem:[%s11416_s24 + $0xfb8] sm:$0xff] %v2194_v55 }
 0x208   : > { %2197 = vst [vmem:[%s11416_s24 + $0xfc0] sm:$0xff] %v2196_v56 }
 0x209   : > { %2199 = vst [vmem:[%s11416_s24 + $0xfc8] sm:$0xff] %v2198_v57 }
 0x20a   : > { %2201 = vst [vmem:[%s11416_s24 + $0xfd0] sm:$0xff] %v2200_v58 }
 0x20b   : > { %2203 = vst [vmem:[%s11416_s24 + $0xfd8] sm:$0xff] %v2202_v59 }
 0x20c   : > { %2205 = vst [vmem:[%s11416_s24 + $0xfe0] sm:$0xff] %v2204_v60 }
 0x20d   : > { %2207 = vst [vmem:[%s11416_s24 + $0xfe8] sm:$0xff] %v2206_v61 }
 0x20e   : > { %2209 = vst [vmem:[%s11416_s24 + $0xff0] sm:$0xff] %v2208_v62 }
 0x20f   : > { %2211 = vst [vmem:[%s11416_s24 + $0xff8] sm:$0xff] %v2210_v63 }
 0x210 PF: > { %p8694_p6 = scmp.ge.s32.totalorder %s11350_s13, 1  ;;  %p4299_p7 = scmp.lt.s32.totalorder %s11350_s13, 3 }
 0x212   : > { %p4300_p8 = pnand %p8694_p6, %p4299_p7 }
 0x213   : > { %s4306_s25 = sand.u32 (!%p4300_p8), 1, %s11334_s9  }
 0x214   : > { %4303 = sbr.rel (%p4300_p8) target bundleno = 1289 (0x509), region = 76  ;;  %s8695_s26 = sshll.u32 (!%p4300_p8), %s4306_s25, 12 }
 0x215   : > { %s12442_s27 = scalar_lea.vmem (!%p4300_p8), [#allocation2], %s8695_s26 }
 0x219   : > { %v8756_v0 = vld [vmem:[%s12442_s27 + $0x70] sm:$0xf]  ;;  %v10764_v1 = vld [vmem:[%s12442_s27 + $0x74] sm:$0xf0]  ;;  %v8748_v11 = vld [vmem:[%s12442_s27 + $0x60] sm:$0xf] }
 0x21a   : > { %v8820_v2 = vld [vmem:[%s12442_s27 + $0xf0] sm:$0xf]  ;;  %v8757_v3 = vor.u32 %v10764_v1, %v8756_v0  ;;  %v10780_v4 = vld [vmem:[%s12442_s27 + $0xf4] sm:$0xf0]  ;;  %v10762_v13 = vld [vmem:[%s12442_s27 + $0x64] sm:$0xf0] }
 0x21b   : > { %v8884_v5 = vld [vmem:[%s12442_s27 + $0x170] sm:$0xf]  ;;  %v10796_v6 = vld [vmem:[%s12442_s27 + $0x174] sm:$0xf0]  ;;  %v8821_v7 = vor.u32 %v10780_v4, %v8820_v2  ;;  %v8812_v14 = vld [vmem:[%s12442_s27 + $0xe0] sm:$0xf]  ;;  %v8749_v16 = vor.u32 %v10762_v13, %v8748_v11 }
 0x21c   : > { %v8885_v8 = vor.u32 %v10796_v6, %v8884_v5  ;;  %v8948_v9 = vld [vmem:[%s12442_s27 + $0x1f0] sm:$0xf]  ;;  %v10812_v10 = vld [vmem:[%s12442_s27 + $0x1f4] sm:$0xf0]  ;;  %7552 = vmatpush.bf16.msra.mxu0 %v8757_v3  ;;  %v10778_v15 = vld [vmem:[%s12442_s27 + $0xe4] sm:$0xf0] }
 0x21d   : > { %v8949_v12 = vor.u32 %v10812_v10, %v8948_v9  ;;  %7565 = vmatpush.bf16.msra.mxu1 %v8821_v7  ;;  %v8813_v17 = vor.u32 %v10778_v15, %v8812_v14  ;;  %v8876_v18 = vld [vmem:[%s12442_s27 + $0x160] sm:$0xf]  ;;  %v10794_v19 = vld [vmem:[%s12442_s27 + $0x164] sm:$0xf0]  ;;  %v8740_v23 = vld [vmem:[%s12442_s27 + $0x50] sm:$0xf] }
 0x21e   : > { %7578 = vmatpush.bf16.msra.mxu2 %v8885_v8  ;;  %v8940_v20 = vld [vmem:[%s12442_s27 + $0x1e0] sm:$0xf]  ;;  %v8877_v21 = vor.u32 %v10794_v19, %v8876_v18  ;;  %v10810_v22 = vld [vmem:[%s12442_s27 + $0x1e4] sm:$0xf0]  ;;  %v10760_v24 = vld [vmem:[%s12442_s27 + $0x54] sm:$0xf0] }
 0x21f   : > { %7591 = vmatpush.bf16.msra.mxu3 %v8949_v12  ;;  %v8941_v25 = vor.u32 %v10810_v22, %v8940_v20  ;;  %v8804_v26 = vld [vmem:[%s12442_s27 + $0xd0] sm:$0xf]  ;;  %v10776_v27 = vld [vmem:[%s12442_s27 + $0xd4] sm:$0xf0]  ;;  %v8741_v29 = vor.u32 %v10760_v24, %v8740_v23  ;;  %v8732_v35 = vld [vmem:[%s12442_s27 + $0x40] sm:$0xf] }
 0x220   : > { %v8868_v28 = vld [vmem:[%s12442_s27 + $0x150] sm:$0xf]  ;;  %7553 = vmatpush.bf16.msra.mxu0 %v8749_v16  ;;  %v10792_v30 = vld [vmem:[%s12442_s27 + $0x154] sm:$0xf0]  ;;  %v8805_v33 = vor.u32 %v10776_v27, %v8804_v26  ;;  %v10758_v36 = vld [vmem:[%s12442_s27 + $0x44] sm:$0xf0] }
 0x221   : > { %v8932_v31 = vld [vmem:[%s12442_s27 + $0x1d0] sm:$0xf]  ;;  %v10808_v32 = vld [vmem:[%s12442_s27 + $0x1d4] sm:$0xf0]  ;;  %7566 = vmatpush.bf16.msra.mxu1 %v8813_v17  ;;  %v8869_v34 = vor.u32 %v10792_v30, %v8868_v28  ;;  %v8796_v37 = vld [vmem:[%s12442_s27 + $0xc0] sm:$0xf]  ;;  %v8733_v44 = vor.u32 %v10758_v36, %v8732_v35 }
 0x222   : > { %7579 = vmatpush.bf16.msra.mxu2 %v8877_v21  ;;  %v8933_v38 = vor.u32 %v10808_v32, %v8932_v31  ;;  %v10774_v39 = vld [vmem:[%s12442_s27 + $0xc4] sm:$0xf0]  ;;  %v8860_v40 = vld [vmem:[%s12442_s27 + $0x140] sm:$0xf]  ;;  %v8724_v47 = vld [vmem:[%s12442_s27 + $0x30] sm:$0xf] }
 0x223   : > { %7592 = vmatpush.bf16.msra.mxu3 %v8941_v25  ;;  %v10790_v41 = vld [vmem:[%s12442_s27 + $0x144] sm:$0xf0]  ;;  %v8924_v42 = vld [vmem:[%s12442_s27 + $0x1c0] sm:$0xf]  ;;  %v8797_v45 = vor.u32 %v10774_v39, %v8796_v37  ;;  %v10756_v48 = vld [vmem:[%s12442_s27 + $0x34] sm:$0xf0] }
 0x224   : > { %v10806_v43 = vld [vmem:[%s12442_s27 + $0x1c4] sm:$0xf0]  ;;  %7554 = vmatpush.bf16.msra.mxu0 %v8741_v29  ;;  %v8861_v46 = vor.u32 %v10790_v41, %v8860_v40  ;;  %v8788_v49 = vld [vmem:[%s12442_s27 + $0xb0] sm:$0xf]  ;;  %v10772_v51 = vld [vmem:[%s12442_s27 + $0xb4] sm:$0xf0]  ;;  %v8725_v56 = vor.u32 %v10756_v48, %v8724_v47 }
 0x225   : > { %7567 = vmatpush.bf16.msra.mxu1 %v8805_v33  ;;  %v8925_v50 = vor.u32 %v10806_v43, %v8924_v42  ;;  %v8852_v52 = vld [vmem:[%s12442_s27 + $0x130] sm:$0xf]  ;;  %v10788_v53 = vld [vmem:[%s12442_s27 + $0x134] sm:$0xf0]  ;;  %v8789_v57 = vor.u32 %v10772_v51, %v8788_v49  ;;  %v8716_v59 = vld [vmem:[%s12442_s27 + $0x20] sm:$0xf] }
 0x226   : > { %7580 = vmatpush.bf16.msra.mxu2 %v8869_v34  ;;  %v8916_v54 = vld [vmem:[%s12442_s27 + $0x1b0] sm:$0xf]  ;;  %v10804_v55 = vld [vmem:[%s12442_s27 + $0x1b4] sm:$0xf0]  ;;  %v8853_v58 = vor.u32 %v10788_v53, %v8852_v52  ;;  %v10754_v60 = vld [vmem:[%s12442_s27 + $0x24] sm:$0xf0] }
 0x227   : > { %7593 = vmatpush.bf16.msra.mxu3 %v8933_v38  ;;  %v8780_v61 = vld [vmem:[%s12442_s27 + $0xa0] sm:$0xf]  ;;  %v8917_v62 = vor.u32 %v10804_v55, %v8916_v54  ;;  %v10770_v63 = vld [vmem:[%s12442_s27 + $0xa4] sm:$0xf0]  ;;  %v8717_v4 = vor.u32 %v10754_v60, %v8716_v59  ;;  %v8708_v7 = vld [vmem:[%s12442_s27 + $0x10] sm:$0xf] }
 0x228   : > { %7555 = vmatpush.bf16.msra.mxu0 %v8733_v44  ;;  %v8844_v0 = vld [vmem:[%s12442_s27 + $0x120] sm:$0xf]  ;;  %v10786_v1 = vld [vmem:[%s12442_s27 + $0x124] sm:$0xf0]  ;;  %v8781_v5 = vor.u32 %v10770_v63, %v8780_v61  ;;  %v10752_v8 = vld [vmem:[%s12442_s27 + $0x14] sm:$0xf0] }
 0x229   : > { %7568 = vmatpush.bf16.msra.mxu1 %v8797_v45  ;;  %v8908_v2 = vld [vmem:[%s12442_s27 + $0x1a0] sm:$0xf]  ;;  %v10802_v3 = vld [vmem:[%s12442_s27 + $0x1a4] sm:$0xf0]  ;;  %v8845_v6 = vor.u32 %v10786_v1, %v8844_v0  ;;  %v8772_v9 = vld [vmem:[%s12442_s27 + $0x90] sm:$0xf]  ;;  %v8709_v16 = vor.u32 %v10752_v8, %v8708_v7 }
 0x22a   : > { %7581 = vmatpush.bf16.msra.mxu2 %v8861_v46  ;;  %v8909_v10 = vor.u32 %v10802_v3, %v8908_v2  ;;  %v10768_v11 = vld [vmem:[%s12442_s27 + $0x94] sm:$0xf0]  ;;  %v8836_v12 = vld [vmem:[%s12442_s27 + $0x110] sm:$0xf]  ;;  %v8700_v17 = vld [vmem:[%s12442_s27] sm:$0xf] }
 0x22b   : > { %7594 = vmatpush.bf16.msra.mxu3 %v8925_v50  ;;  %v10784_v13 = vld [vmem:[%s12442_s27 + $0x114] sm:$0xf0]  ;;  %v8900_v14 = vld [vmem:[%s12442_s27 + $0x190] sm:$0xf]  ;;  %v10750_v18 = vld [vmem:[%s12442_s27 + $0x4] sm:$0xf0]  ;;  %v8773_v19 = vor.u32 %v10768_v11, %v8772_v9 }
 0x22c   : > { %7556 = vmatpush.bf16.msra.mxu0 %v8725_v56  ;;  %v10800_v15 = vld [vmem:[%s12442_s27 + $0x194] sm:$0xf0]  ;;  %v8837_v20 = vor.u32 %v10784_v13, %v8836_v12  ;;  %v8764_v21 = vld [vmem:[%s12442_s27 + $0x80] sm:$0xf]  ;;  %v10766_v22 = vld [vmem:[%s12442_s27 + $0x84] sm:$0xf0]  ;;  %v8701_v31 = vor.u32 %v10750_v18, %v8700_v17 }
 0x22d   : > { %7569 = vmatpush.bf16.msra.mxu1 %v8789_v57  ;;  %v8828_v23 = vld [vmem:[%s12442_s27 + $0x100] sm:$0xf]  ;;  %v8901_v24 = vor.u32 %v10800_v15, %v8900_v14  ;;  %v10782_v25 = vld [vmem:[%s12442_s27 + $0x104] sm:$0xf0]  ;;  %v9012_v28 = vld [vmem:[%s12442_s27 + $0x270] sm:$0xf]  ;;  %v8765_v35 = vor.u32 %v10766_v22, %v8764_v21 }
 0x22e   : > { %7582 = vmatpush.bf16.msra.mxu2 %v8853_v58  ;;  %v8892_v26 = vld [vmem:[%s12442_s27 + $0x180] sm:$0xf]  ;;  %v10798_v27 = vld [vmem:[%s12442_s27 + $0x184] sm:$0xf0]  ;;  %v10828_v29 = vld [vmem:[%s12442_s27 + $0x274] sm:$0xf0]  ;;  %v8829_v36 = vor.u32 %v10782_v25, %v8828_v23 }
 0x22f   : > { %7595 = vmatpush.bf16.msra.mxu3 %v8917_v62  ;;  %v9076_v30 = vld [vmem:[%s12442_s27 + $0x2f0] sm:$0xf]  ;;  %v10844_v32 = vld [vmem:[%s12442_s27 + $0x2f4] sm:$0xf0]  ;;  %v8893_v39 = vor.u32 %v10798_v27, %v8892_v26  ;;  %v9013_v40 = vor.u32 %v10828_v29, %v9012_v28  ;;  %v9004_v43 = vld [vmem:[%s12442_s27 + $0x260] sm:$0xf] }
 0x230   : > { %7557 = vmatpush.bf16.msra.mxu0 %v8717_v4  ;;  %v9140_v33 = vld [vmem:[%s12442_s27 + $0x370] sm:$0xf]  ;;  %v10860_v34 = vld [vmem:[%s12442_s27 + $0x374] sm:$0xf0]  ;;  %v9077_v41 = vor.u32 %v10844_v32, %v9076_v30  ;;  %v10826_v44 = vld [vmem:[%s12442_s27 + $0x264] sm:$0xf0] }
 0x231   : > { %7570 = vmatpush.bf16.msra.mxu1 %v8781_v5  ;;  %v9204_v37 = vld [vmem:[%s12442_s27 + $0x3f0] sm:$0xf]  ;;  %v10876_v38 = vld [vmem:[%s12442_s27 + $0x3f4] sm:$0xf0]  ;;  %v9141_v42 = vor.u32 %v10860_v34, %v9140_v33  ;;  %v9068_v45 = vld [vmem:[%s12442_s27 + $0x2e0] sm:$0xf]  ;;  %v9005_v52 = vor.u32 %v10826_v44, %v9004_v43 }
 0x232   : > { %7583 = vmatpush.bf16.msra.mxu2 %v8845_v6  ;;  %v9205_v46 = vor.u32 %v10876_v38, %v9204_v37  ;;  %v10842_v47 = vld [vmem:[%s12442_s27 + $0x2e4] sm:$0xf0]  ;;  %v9132_v48 = vld [vmem:[%s12442_s27 + $0x360] sm:$0xf]  ;;  %v8996_v53 = vld [vmem:[%s12442_s27 + $0x250] sm:$0xf] }
 0x233   : > { %7596 = vmatpush.bf16.msra.mxu3 %v8909_v10  ;;  %v10858_v49 = vld [vmem:[%s12442_s27 + $0x364] sm:$0xf0]  ;;  %v9196_v50 = vld [vmem:[%s12442_s27 + $0x3e0] sm:$0xf]  ;;  %v9069_v54 = vor.u32 %v10842_v47, %v9068_v45  ;;  %v10824_v56 = vld [vmem:[%s12442_s27 + $0x254] sm:$0xf0] }
 0x234   : > { %7558 = vmatpush.bf16.msra.mxu0 %v8709_v16  ;;  %v10874_v51 = vld [vmem:[%s12442_s27 + $0x3e4] sm:$0xf0]  ;;  %v9133_v55 = vor.u32 %v10858_v49, %v9132_v48  ;;  %v9060_v57 = vld [vmem:[%s12442_s27 + $0x2d0] sm:$0xf]  ;;  %v4353_v58 = vld [vmem:[%s13718_s0 + $0x8] sm:$0xff]  ;;  %v8997_v3 = vor.u32 %v10824_v56, %v8996_v53  ;;  %vm8387_vm0 = vcmask 1043456  }
 0x235   : > { %7571 = vmatpush.bf16.msra.mxu1 %v8773_v19  ;;  %v9197_v59 = vor.u32 %v10874_v51, %v9196_v50  ;;  %v10840_v60 = vld [vmem:[%s12442_s27 + $0x2d4] sm:$0xf0]  ;;  %v9124_v61 = vld [vmem:[%s12442_s27 + $0x350] sm:$0xf]  ;;  %v4898_v63 = vunpack.c.l.b16 %v4353_v58  ;;  %v4899_v0 = vunpack.c.h.b16 %v4353_v58  ;;  %v8988_v9 = vld [vmem:[%s12442_s27 + $0x240] sm:$0xf] }
 0x236   : > { %7584 = vmatpush.bf16.msra.mxu2 %v8837_v20  ;;  %v10856_v62 = vld [vmem:[%s12442_s27 + $0x354] sm:$0xf0]  ;;  %v9188_v1 = vld [vmem:[%s12442_s27 + $0x3d0] sm:$0xf]  ;;  %v9061_v7 = vor.u32 %v10840_v60, %v9060_v57  ;;  %v10822_v10 = vld [vmem:[%s12442_s27 + $0x244] sm:$0xf0] }
 0x237   : > { %7597 = vmatpush.bf16.msra.mxu3 %v8901_v24  ;;  %v10872_v2 = vld [vmem:[%s12442_s27 + $0x3d4] sm:$0xf0]  ;;  %v12535_v4 = vpack.c.b16 %v4898_v63, %v4898_v63  ;;  %v12540_v6 = vpack.c.b16 %v4899_v0, %v4899_v0  ;;  %v9125_v8 = vor.u32 %v10856_v62, %v9124_v61  ;;  %v9052_v11 = vld [vmem:[%s12442_s27 + $0x2c0] sm:$0xf]  ;;  %v10838_v15 = vld [vmem:[%s12442_s27 + $0x2c4] sm:$0xf0]  ;;  %v8989_v22 = vor.u32 %v10822_v10, %v8988_v9 }
 0x238   : > { %7559 = vmatpush.bf16.msra.mxu0 %v8701_v31  ;;  %v4352_v5 = vld [vmem:[%s13718_s0] sm:$0xff]  ;;  %v9189_v14 = vor.u32 %v10872_v2, %v9188_v1  ;;  %v9116_v16 = vld [vmem:[%s12442_s27 + $0x340] sm:$0xf]  ;;  %v10854_v17 = vld [vmem:[%s12442_s27 + $0x344] sm:$0xf0]  ;;  %v9053_v23 = vor.u32 %v10838_v15, %v9052_v11 }
 0x239   : > { %7572 = vmatpush.bf16.msra.mxu1 %v8765_v35  ;;  %v4896_v12 = vunpack.c.l.b16 %v4352_v5  ;;  %v4897_v13 = vunpack.c.h.b16 %v4352_v5  ;;  %v9180_v18 = vld [vmem:[%s12442_s27 + $0x3c0] sm:$0xf]  ;;  %v10870_v19 = vld [vmem:[%s12442_s27 + $0x3c4] sm:$0xf0]  ;;  %v9117_v24 = vor.u32 %v10854_v17, %v9116_v16  ;;  %v8980_v25 = vld [vmem:[%s12442_s27 + $0x230] sm:$0xf] }
 0x23a   : > { %7585 = vmatpush.bf16.msra.mxu2 %v8829_v36  ;;  %v10820_v26 = vld [vmem:[%s12442_s27 + $0x234] sm:$0xf0]  ;;  %v9044_v27 = vld [vmem:[%s12442_s27 + $0x2b0] sm:$0xf]  ;;  %v9181_v28 = vor.u32 %v10870_v19, %v9180_v18  ;;  %v8972_v37 = vld [vmem:[%s12442_s27 + $0x220] sm:$0xf] }
 0x23b   : > { %7598 = vmatpush.bf16.msra.mxu3 %v8893_v39  ;;  %v12551_v20 = vpack.c.b16 %v4896_v12, %v4896_v12  ;;  %v12554_v21 = vpack.c.b16 %v4897_v13, %v4897_v13  ;;  %v10836_v29 = vld [vmem:[%s12442_s27 + $0x2b4] sm:$0xf0]  ;;  %v9108_v30 = vld [vmem:[%s12442_s27 + $0x330] sm:$0xf]  ;;  %v8981_v34 = vor.u32 %v10820_v26, %v8980_v25  ;;  %v10818_v38 = vld [vmem:[%s12442_s27 + $0x224] sm:$0xf0] }
 0x23c   : > { %7604 = vmatpush.bf16.msrb.mxu0 %v9013_v40  ;;  %v10852_v31 = vld [vmem:[%s12442_s27 + $0x334] sm:$0xf0]  ;;  %v9172_v32 = vld [vmem:[%s12442_s27 + $0x3b0] sm:$0xf]  ;;  %v9045_v35 = vor.u32 %v10836_v29, %v9044_v27  ;;  %v9036_v39 = vld [vmem:[%s12442_s27 + $0x2a0] sm:$0xf] }
 0x23d   : > { %7617 = vmatpush.bf16.msrb.mxu1 %v9077_v41  ;;  %7586 = vmatmul.bf16.vlgmr.msra.gmra.mxu2 %v12535_v4  ;;  %v10868_v33 = vld [vmem:[%s12442_s27 + $0x3b4] sm:$0xf0]  ;;  %v9109_v36 = vor.u32 %v10852_v31, %v9108_v30  ;;  %v10834_v41 = vld [vmem:[%s12442_s27 + $0x2a4] sm:$0xf0]  ;;  %v9164_v44 = vld [vmem:[%s12442_s27 + $0x3a0] sm:$0xf] }
 0x23e   : > { %7630 = vmatpush.bf16.msrb.mxu2 %v9141_v42  ;;  %7599 = vmatmul.bf16.vlgmr.msra.gmra.mxu3 %v12540_v6  ;;  %v9173_v40 = vor.u32 %v10868_v33, %v9172_v32  ;;  %v9100_v42 = vld [vmem:[%s12442_s27 + $0x320] sm:$0xf]  ;;  %v10850_v43 = vld [vmem:[%s12442_s27 + $0x324] sm:$0xf0]  ;;  %v9037_v47 = vor.u32 %v10834_v41, %v9036_v39  ;;  %v8964_v49 = vld [vmem:[%s12442_s27 + $0x210] sm:$0xf] }
 0x23f   : > { %7643 = vmatpush.bf16.msrb.mxu3 %v9205_v46  ;;  %7560 = vmatmul.bf16.vlgmr.msra.gmra.mxu0 %v12551_v20  ;;  %v10866_v45 = vld [vmem:[%s12442_s27 + $0x3a4] sm:$0xf0]  ;;  %v8973_v46 = vor.u32 %v10818_v38, %v8972_v37  ;;  %v9101_v48 = vor.u32 %v10850_v43, %v9100_v42  ;;  %v10816_v50 = vld [vmem:[%s12442_s27 + $0x214] sm:$0xf0]  ;;  %v9028_v51 = vld [vmem:[%s12442_s27 + $0x290] sm:$0xf] }
 0x240   : > { %7605 = vmatpush.bf16.msrb.mxu0 %v9005_v52  ;;  %7573 = vmatmul.bf16.vlgmr.msra.gmra.mxu1 %v12554_v21  ;;  %v9165_v52 = vor.u32 %v10866_v45, %v9164_v44  ;;  %v10832_v53 = vld [vmem:[%s12442_s27 + $0x294] sm:$0xf0]  ;;  %v9156_v56 = vld [vmem:[%s12442_s27 + $0x390] sm:$0xf]  ;;  %v8956_v58 = vld [vmem:[%s12442_s27 + $0x200] sm:$0xf] }
 0x241   : > { %7618 = vmatpush.bf16.msrb.mxu1 %v9069_v54  ;;  %v9092_v54 = vld [vmem:[%s12442_s27 + $0x310] sm:$0xf]  ;;  %v10864_v57 = vld [vmem:[%s12442_s27 + $0x394] sm:$0xf0]  ;;  %v10814_v60 = vld [vmem:[%s12442_s27 + $0x204] sm:$0xf0]  ;;  %v9029_v63 = vor.u32 %v10832_v53, %v9028_v51 }
 0x242   : > { %7631 = vmatpush.bf16.msrb.mxu2 %v9133_v55  ;;  %v10848_v55 = vld [vmem:[%s12442_s27 + $0x314] sm:$0xf0]  ;;  %v9020_v61 = vld [vmem:[%s12442_s27 + $0x280] sm:$0xf]  ;;  %v10830_v62 = vld [vmem:[%s12442_s27 + $0x284] sm:$0xf0]  ;;  %v9157_v5 = vor.u32 %v10864_v57, %v9156_v56  ;;  %v8957_v13 = vor.u32 %v10814_v60, %v8956_v58 }
 0x243   : > { %7644 = vmatpush.bf16.msrb.mxu3 %v9197_v59  ;;  %v8965_v59 = vor.u32 %v10816_v50, %v8964_v49  ;;  %v9093_v0 = vor.u32 %v10848_v55, %v9092_v54  ;;  %v9084_v1 = vld [vmem:[%s12442_s27 + $0x300] sm:$0xf]  ;;  %v10846_v2 = vld [vmem:[%s12442_s27 + $0x304] sm:$0xf0]  ;;  %v9268_v10 = vld [vmem:[%s12442_s27 + $0x470] sm:$0xf]  ;;  %v9021_v18 = vor.u32 %v10830_v62, %v9020_v61 }
 0x244   : > { %7606 = vmatpush.bf16.msrb.mxu0 %v8997_v3  ;;  %v4355_v3 = vld [vmem:[%s13718_s0 + $0x18] sm:$0xff]  ;;  %v4354_v9 = vld [vmem:[%s13718_s0 + $0x10] sm:$0xff]  ;;  %v10892_v11 = vld [vmem:[%s12442_s27 + $0x474] sm:$0xf0]  ;;  %v9085_v19 = vor.u32 %v10846_v2, %v9084_v1 }
 0x245   : > { %7619 = vmatpush.bf16.msrb.mxu1 %v9061_v7  ;;  %v9148_v7 = vld [vmem:[%s12442_s27 + $0x380] sm:$0xf]  ;;  %v9332_v12 = vld [vmem:[%s12442_s27 + $0x4f0] sm:$0xf]  ;;  %v10924_v16 = vld [vmem:[%s12442_s27 + $0x574] sm:$0xf0]  ;;  %v4902_v17 = vunpack.c.l.b16 %v4355_v3  ;;  %v4903_v25 = vunpack.c.h.b16 %v4355_v3  ;;  %v9269_v27 = vor.u32 %v10892_v11, %v9268_v10 }
 0x246   : > { %7632 = vmatpush.bf16.msrb.mxu2 %v9125_v8  ;;  %v10862_v8 = vld [vmem:[%s12442_s27 + $0x384] sm:$0xf0]  ;;  %v9396_v15 = vld [vmem:[%s12442_s27 + $0x570] sm:$0xf]  ;;  %v9260_v31 = vld [vmem:[%s12442_s27 + $0x460] sm:$0xf] }
 0x247   : > { %7645 = vmatpush.bf16.msrb.mxu3 %v9189_v14  ;;  %v10908_v14 = vld [vmem:[%s12442_s27 + $0x4f4] sm:$0xf0]  ;;  %v9149_v26 = vor.u32 %v10862_v8, %v9148_v7  ;;  %v9397_v30 = vor.u32 %v10924_v16, %v9396_v15  ;;  %v10890_v32 = vld [vmem:[%s12442_s27 + $0x464] sm:$0xf0]  ;;  %v9324_v33 = vld [vmem:[%s12442_s27 + $0x4e0] sm:$0xf]  ;;  %v12610_v38 = vpack.c.b16 %v4902_v17, %v4902_v17  ;;  %v12616_v42 = vpack.c.b16 %v4903_v25, %v4903_v25 }
 0x248   : > { %7607 = vmatpush.bf16.msrb.mxu0 %v8989_v22  ;;  %v9460_v22 = vld [vmem:[%s12442_s27 + $0x5f0] sm:$0xf]  ;;  %v9333_v29 = vor.u32 %v10908_v14, %v9332_v12  ;;  %v10922_v37 = vld [vmem:[%s12442_s27 + $0x564] sm:$0xf0]  ;;  %v9452_v39 = vld [vmem:[%s12442_s27 + $0x5e0] sm:$0xf]  ;;  %v9261_v43 = vor.u32 %v10890_v32, %v9260_v31 }
 0x249   : > { %7620 = vmatpush.bf16.msrb.mxu1 %v9053_v23  ;;  %v10940_v23 = vld [vmem:[%s12442_s27 + $0x5f4] sm:$0xf0]  ;;  %v9316_v49 = vld [vmem:[%s12442_s27 + $0x4d0] sm:$0xf]  ;;  %v10886_v60 = vld [vmem:[%s12442_s27 + $0x444] sm:$0xf0] }
 0x24a   : > { %7633 = vmatpush.bf16.msrb.mxu2 %v9117_v24  ;;  %v4900_v24 = vunpack.c.l.b16 %v4354_v9  ;;  %v10904_v51 = vld [vmem:[%s12442_s27 + $0x4d4] sm:$0xf0]  ;;  %v9444_v54 = vld [vmem:[%s12442_s27 + $0x5d0] sm:$0xf]  ;;  %v9308_v61 = vld [vmem:[%s12442_s27 + $0x4c0] sm:$0xf] }
 0x24b   : > { %7646 = vmatpush.bf16.msrb.mxu3 %v9181_v28  ;;  %v4901_v28 = vunpack.c.h.b16 %v4354_v9  ;;  %v10920_v53 = vld [vmem:[%s12442_s27 + $0x554] sm:$0xf0]  ;;  %v9317_v57 = vor.u32 %v10904_v51, %v9316_v49  ;;  %v10918_v1 = vld [vmem:[%s12442_s27 + $0x544] sm:$0xf0]  ;;  %v9436_v2 = vld [vmem:[%s12442_s27 + $0x5c0] sm:$0xf] }
 0x24c   : > { %7608 = vmatpush.bf16.msrb.mxu0 %v8981_v34  ;;  %v9461_v34 = vor.u32 %v10940_v23, %v9460_v22  ;;  %v12614_v41 = vpack.c.b16 %v4900_v24, %v4900_v24  ;;  %v10936_v55 = vld [vmem:[%s12442_s27 + $0x5d4] sm:$0xf0]  ;;  %v10934_v3 = vld [vmem:[%s12442_s27 + $0x5c4] sm:$0xf0]  ;;  %v9236_v9 = vld [vmem:[%s12442_s27 + $0x430] sm:$0xf] }
 0x24d   : > { %7621 = vmatpush.bf16.msrb.mxu1 %v9045_v35  ;;  %v10906_v35 = vld [vmem:[%s12442_s27 + $0x4e4] sm:$0xf0]  ;;  %v12618_v44 = vpack.c.b16 %v4901_v28, %v4901_v28  ;;  %v9445_v62 = vor.u32 %v10936_v55, %v9444_v54  ;;  %v10884_v10 = vld [vmem:[%s12442_s27 + $0x434] sm:$0xf0]  ;;  %v9300_v11 = vld [vmem:[%s12442_s27 + $0x4b0] sm:$0xf]  ;;  %v9437_v12 = vor.u32 %v10934_v3, %v9436_v2 }
 0x24e   : > { %7634 = vmatpush.bf16.msrb.mxu2 %v9109_v36  ;;  %v9388_v36 = vld [vmem:[%s12442_s27 + $0x560] sm:$0xf]  ;;  %v9325_v45 = vor.u32 %v10906_v35, %v9324_v33  ;;  %v9364_v14 = vld [vmem:[%s12442_s27 + $0x530] sm:$0xf]  ;;  %v10916_v15 = vld [vmem:[%s12442_s27 + $0x534] sm:$0xf0] }
 0x24f   : > { %7647 = vmatpush.bf16.msrb.mxu3 %v9173_v40  ;;  %v10938_v40 = vld [vmem:[%s12442_s27 + $0x5e4] sm:$0xf0]  ;;  %v9428_v16 = vld [vmem:[%s12442_s27 + $0x5b0] sm:$0xf]  ;;  %v10932_v17 = vld [vmem:[%s12442_s27 + $0x5b4] sm:$0xf0]  ;;  %v9365_v22 = vor.u32 %v10916_v15, %v9364_v14 }
 0x250   : > { %7609 = vmatpush.bf16.msrb.mxu0 %v8973_v46  ;;  %v9389_v46 = vor.u32 %v10922_v37, %v9388_v36  ;;  %v9453_v50 = vor.u32 %v10938_v40, %v9452_v39  ;;  %v9228_v23 = vld [vmem:[%s12442_s27 + $0x420] sm:$0xf]  ;;  %v10882_v24 = vld [vmem:[%s12442_s27 + $0x424] sm:$0xf0]  ;;  %v9220_v35 = vld [vmem:[%s12442_s27 + $0x410] sm:$0xf] }
 0x251   : > { %7622 = vmatpush.bf16.msrb.mxu1 %v9037_v47  ;;  %v9252_v47 = vld [vmem:[%s12442_s27 + $0x450] sm:$0xf]  ;;  %v9292_v25 = vld [vmem:[%s12442_s27 + $0x4a0] sm:$0xf]  ;;  %v10930_v31 = vld [vmem:[%s12442_s27 + $0x5a4] sm:$0xf0]  ;;  %v9229_v32 = vor.u32 %v10882_v24, %v9228_v23 }
 0x252   : > { %7635 = vmatpush.bf16.msrb.mxu2 %v9101_v48  ;;  %v10888_v48 = vld [vmem:[%s12442_s27 + $0x454] sm:$0xf0]  ;;  %v9356_v28 = vld [vmem:[%s12442_s27 + $0x520] sm:$0xf]  ;;  %v9284_v37 = vld [vmem:[%s12442_s27 + $0x490] sm:$0xf] }
 0x253   : > { %7648 = vmatpush.bf16.msrb.mxu3 %v9165_v52  ;;  %v9380_v52 = vld [vmem:[%s12442_s27 + $0x550] sm:$0xf]  ;;  %v9253_v56 = vor.u32 %v10888_v48, %v9252_v47  ;;  %v10880_v36 = vld [vmem:[%s12442_s27 + $0x414] sm:$0xf0]  ;;  %v9212_v48 = vld [vmem:[%s12442_s27 + $0x400] sm:$0xf] }
 0x254   : > { %7610 = vmatpush.bf16.msrb.mxu0 %v8965_v59  ;;  %v9381_v58 = vor.u32 %v10920_v53, %v9380_v52  ;;  %v9244_v59 = vld [vmem:[%s12442_s27 + $0x440] sm:$0xf]  ;;  %v10896_v40 = vld [vmem:[%s12442_s27 + $0x494] sm:$0xf0]  ;;  %v9221_v49 = vor.u32 %v10880_v36, %v9220_v35  ;;  %v10894_v52 = vld [vmem:[%s12442_s27 + $0x484] sm:$0xf0] }
 0x255   : > { %7623 = vmatpush.bf16.msrb.mxu1 %v9029_v63  ;;  %v10902_v63 = vld [vmem:[%s12442_s27 + $0x4c4] sm:$0xf0]  ;;  %v10928_v47 = vld [vmem:[%s12442_s27 + $0x594] sm:$0xf0]  ;;  %v9276_v51 = vld [vmem:[%s12442_s27 + $0x480] sm:$0xf]  ;;  %v9285_v53 = vor.u32 %v10896_v40, %v9284_v37 }
 0x256   : > { %7636 = vmatpush.bf16.msrb.mxu2 %v9093_v0  ;;  %v9372_v0 = vld [vmem:[%s12442_s27 + $0x540] sm:$0xf]  ;;  %v9309_v7 = vor.u32 %v10902_v63, %v9308_v61  ;;  %v10956_v63 = vld [vmem:[%s12442_s27 + $0x674] sm:$0xf0]  ;;  %v9652_v3 = vld [vmem:[%s12442_s27 + $0x770] sm:$0xf] }
 0x257   : > { %7649 = vmatpush.bf16.msrb.mxu3 %v9157_v5  ;;  %v9245_v5 = vor.u32 %v10886_v60, %v9244_v59  ;;  %v9373_v8 = vor.u32 %v10918_v1, %v9372_v0  ;;  %v9340_v55 = vld [vmem:[%s12442_s27 + $0x500] sm:$0xf]  ;;  %v10926_v60 = vld [vmem:[%s12442_s27 + $0x584] sm:$0xf0]  ;;  %v9588_v0 = vld [vmem:[%s12442_s27 + $0x6f0] sm:$0xf] }
 0x258   : > { %7611 = vmatpush.bf16.msrb.mxu0 %v8957_v13  ;;  %v10900_v13 = vld [vmem:[%s12442_s27 + $0x4b4] sm:$0xf0]  ;;  %v9404_v59 = vld [vmem:[%s12442_s27 + $0x580] sm:$0xf]  ;;  %v9508_v37 = vld [vmem:[%s12442_s27 + $0x650] sm:$0xf] }
 0x259   : > { %7624 = vmatpush.bf16.msrb.mxu1 %v9021_v18  ;;  %v9237_v18 = vor.u32 %v10884_v10, %v9236_v9  ;;  %v4357_v61 = vld [vmem:[%s13718_s0 + $0x28] sm:$0xff]  ;;  %v10972_v2 = vld [vmem:[%s12442_s27 + $0x6f4] sm:$0xf0]  ;;  %v9716_v10 = vld [vmem:[%s12442_s27 + $0x7f0] sm:$0xf]  ;;  %v9405_v14 = vor.u32 %v10926_v60, %v9404_v59 }
 0x25a   : > { %7637 = vmatpush.bf16.msrb.mxu2 %v9085_v19  ;;  %v9301_v19 = vor.u32 %v10900_v13, %v9300_v11  ;;  %v11004_v11 = vld [vmem:[%s12442_s27 + $0x7f4] sm:$0xf0]  ;;  %v9580_v23 = vld [vmem:[%s12442_s27 + $0x6e0] sm:$0xf]  ;;  %v9572_v40 = vld [vmem:[%s12442_s27 + $0x6d0] sm:$0xf] }
 0x25b   : > { %7650 = vmatpush.bf16.msrb.mxu3 %v9149_v26  ;;  %7612 = vmatmul.bf16.vlgmr.msrb.gmra.mxu0 %v12614_v41  ;;  %v9429_v26 = vor.u32 %v10932_v17, %v9428_v16  ;;  %v4907_v16 = vunpack.c.h.b16 %v4357_v61  ;;  %v9589_v17 = vor.u32 %v10972_v2, %v9588_v0  ;;  %v9717_v24 = vor.u32 %v11004_v11, %v9716_v10  ;;  %v10982_v59 = vld [vmem:[%s12442_s27 + $0x744] sm:$0xf0]  ;;  %v9692_v60 = vld [vmem:[%s12442_s27 + $0x7c0] sm:$0xf]  ;;  %v10948_v2 = vld [vmem:[%s12442_s27 + $0x634] sm:$0xf0] }
 0x25c   : > { %7656 = vmatpush.bf16.msra.mxu0 %v9269_v27  ;;  %7625 = vmatmul.bf16.vlgmr.msrb.gmra.mxu1 %v12618_v44  ;;  %v10898_v27 = vld [vmem:[%s12442_s27 + $0x4a4] sm:$0xf0]  ;;  %v9684_v10 = vld [vmem:[%s12442_s27 + $0x7b0] sm:$0xf]  ;;  %v10996_v11 = vld [vmem:[%s12442_s27 + $0x7b4] sm:$0xf0] }
 0x25d   : > { %7669 = vmatpush.bf16.msra.mxu1 %v9333_v29  ;;  %7638 = vmatmul.bf16.vlgmr.msrb.gmra.mxu2 %v12610_v38  ;;  %v10914_v29 = vld [vmem:[%s12442_s27 + $0x524] sm:$0xf0]  ;;  %v9293_v33 = vor.u32 %v10898_v27, %v9292_v25  ;;  %v9644_v27 = vld [vmem:[%s12442_s27 + $0x760] sm:$0xf] }
 0x25e   : > { %7682 = vmatpush.bf16.msra.mxu2 %v9397_v30  ;;  %7651 = vmatmul.bf16.vlgmr.msrb.gmra.mxu3 %v12616_v42  ;;  %v9420_v30 = vld [vmem:[%s12442_s27 + $0x5a0] sm:$0xf] }
 0x25f   : > { %7695 = vmatpush.bf16.msra.mxu3 %v9461_v34  ;;  %v9357_v34 = vor.u32 %v10914_v29, %v9356_v28  ;;  %v9421_v39 = vor.u32 %v10930_v31, %v9420_v30  ;;  %v10986_v28 = vld [vmem:[%s12442_s27 + $0x764] sm:$0xf0]  ;;  %v9708_v31 = vld [vmem:[%s12442_s27 + $0x7e0] sm:$0xf] }
 0x260   : > { %7657 = vmatpush.bf16.msra.mxu0 %v9261_v43  ;;  %v9348_v43 = vld [vmem:[%s12442_s27 + $0x510] sm:$0xf]  ;;  %v9645_v36 = vor.u32 %v10986_v28, %v9644_v27 }
 0x261   : > { %7670 = vmatpush.bf16.msra.mxu1 %v9325_v45  ;;  %v10912_v45 = vld [vmem:[%s12442_s27 + $0x514] sm:$0xf0] }
 0x262   : > { %7683 = vmatpush.bf16.msra.mxu2 %v9389_v46  ;;  %v9412_v46 = vld [vmem:[%s12442_s27 + $0x590] sm:$0xf]  ;;  %v9349_v54 = vor.u32 %v10912_v45, %v9348_v43  ;;  %v10968_v45 = vld [vmem:[%s12442_s27 + $0x6d4] sm:$0xf0] }
 0x263   : > { %7696 = vmatpush.bf16.msra.mxu3 %v9453_v50  ;;  %v10878_v50 = vld [vmem:[%s12442_s27 + $0x404] sm:$0xf0] }
 0x264   : > { %7658 = vmatpush.bf16.msra.mxu0 %v9253_v56  ;;  %v10910_v56 = vld [vmem:[%s12442_s27 + $0x504] sm:$0xf0]  ;;  %v9213_v1 = vor.u32 %v10878_v50, %v9212_v48  ;;  %v9700_v48 = vld [vmem:[%s12442_s27 + $0x7d0] sm:$0xf] }
 0x265   : > { %7671 = vmatpush.bf16.msra.mxu1 %v9317_v57  ;;  %v4356_v57 = vld [vmem:[%s13718_s0 + $0x20] sm:$0xff]  ;;  %v9341_v9 = vor.u32 %v10910_v56, %v9340_v55  ;;  %v9564_v55 = vld [vmem:[%s12442_s27 + $0x6c0] sm:$0xf] }
 0x266   : > { %7684 = vmatpush.bf16.msra.mxu2 %v9381_v58  ;;  %v9413_v58 = vor.u32 %v10928_v47, %v9412_v46  ;;  %v4905_v13 = vunpack.c.h.b16 %v4356_v57  ;;  %v9636_v46 = vld [vmem:[%s12442_s27 + $0x750] sm:$0xf]  ;;  %v10984_v47 = vld [vmem:[%s12442_s27 + $0x754] sm:$0xf0] }
 0x267   : > { %7697 = vmatpush.bf16.msra.mxu3 %v9445_v62  ;;  %v9524_v62 = vld [vmem:[%s12442_s27 + $0x670] sm:$0xf] }
 0x268   : > { %7659 = vmatpush.bf16.msra.mxu0 %v9245_v5  ;;  %v10988_v5 = vld [vmem:[%s12442_s27 + $0x774] sm:$0xf0]  ;;  %v9525_v15 = vor.u32 %v10956_v63, %v9524_v62  ;;  %v12696_v30 = vpack.c.b16 %v4905_v13, %v4905_v13 }
 0x269   : > { %7672 = vmatpush.bf16.msra.mxu1 %v9309_v7  ;;  %v4904_v7 = vunpack.c.l.b16 %v4356_v57  ;;  %v10966_v57 = vld [vmem:[%s12442_s27 + $0x6c4] sm:$0xf0] }
 0x26a   : > { %7685 = vmatpush.bf16.msra.mxu2 %v9373_v8  ;;  %v9277_v8 = vor.u32 %v10894_v52, %v9276_v51  ;;  %v9573_v51 = vor.u32 %v10968_v45, %v9572_v40  ;;  %v9637_v52 = vor.u32 %v10984_v47, %v9636_v46  ;;  %v9565_v63 = vor.u32 %v10966_v57, %v9564_v55  ;;  %v10976_v40 = vld [vmem:[%s12442_s27 + $0x714] sm:$0xf0]  ;;  %v9468_v46 = vld [vmem:[%s12442_s27 + $0x600] sm:$0xf]  ;;  %v4358_v55 = vld [vmem:[%s13718_s0 + $0x30] sm:$0xff] }
 0x26b   : > { %7698 = vmatpush.bf16.msra.mxu3 %v9437_v12  ;;  %v4906_v12 = vunpack.c.l.b16 %v4357_v61  ;;  %v12689_v25 = vpack.c.b16 %v4904_v7, %v4904_v7  ;;  %v10998_v61 = vld [vmem:[%s12442_s27 + $0x7c4] sm:$0xf0]  ;;  %v10964_v7 = vld [vmem:[%s12442_s27 + $0x6b4] sm:$0xf0]  ;;  %v9660_v57 = vld [vmem:[%s12442_s27 + $0x780] sm:$0xf] }
 0x26c   : > { %7660 = vmatpush.bf16.msra.mxu0 %v9237_v18  ;;  %v9653_v18 = vor.u32 %v10988_v5, %v9652_v3  ;;  %v9556_v3 = vld [vmem:[%s12442_s27 + $0x6b0] sm:$0xf]  ;;  %v9693_v5 = vor.u32 %v10998_v61, %v9692_v60  ;;  %v10992_v45 = vld [vmem:[%s12442_s27 + $0x794] sm:$0xf0] }
 0x26d   : > { %7673 = vmatpush.bf16.msra.mxu1 %v9301_v19  ;;  %v9516_v19 = vld [vmem:[%s12442_s27 + $0x660] sm:$0xf]  ;;  %v12694_v29 = vpack.c.b16 %v4906_v12, %v4906_v12  ;;  %v9557_v13 = vor.u32 %v10964_v7, %v9556_v3  ;;  %v9780_v60 = vld [vmem:[%s12442_s27 + $0x870] sm:$0xf]  ;;  %v11020_v61 = vld [vmem:[%s12442_s27 + $0x874] sm:$0xf0]  ;;  %v4908_v3 = vunpack.c.l.b16 %v4358_v55 }
 0x26e   : > { %7686 = vmatpush.bf16.msra.mxu2 %v9365_v22  ;;  %v10954_v22 = vld [vmem:[%s12442_s27 + $0x664] sm:$0xf0] }
 0x26f   : > { %7699 = vmatpush.bf16.msra.mxu3 %v9429_v26  ;;  %v10970_v26 = vld [vmem:[%s12442_s27 + $0x6e4] sm:$0xf0] }
 0x270   : > { %7661 = vmatpush.bf16.msra.mxu0 %v9229_v32  ;;  %v11002_v32 = vld [vmem:[%s12442_s27 + $0x7e4] sm:$0xf0]  ;;  %v9581_v35 = vor.u32 %v10970_v26, %v9580_v23 }
 0x271   : > { %7674 = vmatpush.bf16.msra.mxu1 %v9293_v33  ;;  %v12700_v33 = vpack.c.b16 %v4907_v16, %v4907_v16  ;;  %v9709_v43 = vor.u32 %v11002_v32, %v9708_v31  ;;  %v10946_v16 = vld [vmem:[%s12442_s27 + $0x624] sm:$0xf0]  ;;  %v9476_v32 = vld [vmem:[%s12442_s27 + $0x610] sm:$0xf] }
 0x272   : > { %7687 = vmatpush.bf16.msra.mxu2 %v9357_v34  ;;  %v9517_v34 = vor.u32 %v10954_v22, %v9516_v19  ;;  %v10962_v19 = vld [vmem:[%s12442_s27 + $0x6a4] sm:$0xf0]  ;;  %v9612_v22 = vld [vmem:[%s12442_s27 + $0x720] sm:$0xf] }
 0x273   : > { %7700 = vmatpush.bf16.msra.mxu3 %v9421_v39  ;;  %v10952_v39 = vld [vmem:[%s12442_s27 + $0x654] sm:$0xf0]  ;;  %v10978_v23 = vld [vmem:[%s12442_s27 + $0x724] sm:$0xf0] }
 0x274   : > { %7662 = vmatpush.bf16.msra.mxu0 %v9221_v49  ;;  %v11000_v49 = vld [vmem:[%s12442_s27 + $0x7d4] sm:$0xf0]  ;;  %v9509_v50 = vor.u32 %v10952_v39, %v9508_v37  ;;  %v10994_v26 = vld [vmem:[%s12442_s27 + $0x7a4] sm:$0xf0]  ;;  %v9613_v31 = vor.u32 %v10978_v23, %v9612_v22  ;;  %v9604_v39 = vld [vmem:[%s12442_s27 + $0x710] sm:$0xf]  ;;  %v12771_v23 = vpack.c.b16 %v4908_v3, %v4908_v3 }
 0x275   : > { %7675 = vmatpush.bf16.msra.mxu1 %v9285_v53  ;;  %v9500_v53 = vld [vmem:[%s12442_s27 + $0x640] sm:$0xf]  ;;  %v9701_v56 = vor.u32 %v11000_v49, %v9700_v48  ;;  %v10960_v37 = vld [vmem:[%s12442_s27 + $0x694] sm:$0xf0]  ;;  %v10942_v48 = vld [vmem:[%s12442_s27 + $0x604] sm:$0xf0] }
 0x276   : > { %7688 = vmatpush.bf16.msra.mxu2 %v9349_v54  ;;  %v10950_v54 = vld [vmem:[%s12442_s27 + $0x644] sm:$0xf0]  ;;  %v9532_v49 = vld [vmem:[%s12442_s27 + $0x680] sm:$0xf]  ;;  %v9748_v3 = vld [vmem:[%s12442_s27 + $0x830] sm:$0xf] }
 0x277   : > { %7701 = vmatpush.bf16.msra.mxu3 %v9413_v58  ;;  %v9628_v58 = vld [vmem:[%s12442_s27 + $0x740] sm:$0xf]  ;;  %v9501_v62 = vor.u32 %v10950_v54, %v9500_v53  ;;  %v10974_v54 = vld [vmem:[%s12442_s27 + $0x704] sm:$0xf0] }
 0x278   : > { %7663 = vmatpush.bf16.msra.mxu0 %v9213_v1  ;;  %v9629_v0 = vor.u32 %v10982_v59, %v9628_v58  ;;  %v9492_v1 = vld [vmem:[%s12442_s27 + $0x630] sm:$0xf]  ;;  %v9596_v53 = vld [vmem:[%s12442_s27 + $0x700] sm:$0xf]  ;;  %v10990_v58 = vld [vmem:[%s12442_s27 + $0x784] sm:$0xf0] }
 0x279   : > { %7676 = vmatpush.bf16.msra.mxu1 %v9277_v8  ;;  %v9620_v8 = vld [vmem:[%s12442_s27 + $0x730] sm:$0xf]  ;;  %v9493_v12 = vor.u32 %v10948_v2, %v9492_v1  ;;  %v11052_v2 = vld [vmem:[%s12442_s27 + $0x974] sm:$0xf0]  ;;  %v9597_v7 = vor.u32 %v10974_v54, %v9596_v53 }
 0x27a   : > { %7689 = vmatpush.bf16.msra.mxu2 %v9341_v9  ;;  %v10980_v9 = vld [vmem:[%s12442_s27 + $0x734] sm:$0xf0]  ;;  %v4359_v59 = vld [vmem:[%s13718_s0 + $0x38] sm:$0xff] }
 0x27b   : > { %7702 = vmatpush.bf16.msra.mxu3 %v9405_v14  ;;  %7664 = vmatmul.bf16.vlgmr.msra.gmra.mxu0 %v12689_v25  ;;  %v9621_v14 = vor.u32 %v10980_v9, %v9620_v8  ;;  %v9908_v1 = vld [vmem:[%s12442_s27 + $0x970] sm:$0xf]  ;;  %v11068_v9 = vld [vmem:[%s12442_s27 + $0x9f4] sm:$0xf0] }
 0x27c   : > { %7708 = vmatpush.bf16.msrb.mxu0 %v9525_v15  ;;  %7677 = vmatmul.bf16.vlgmr.msra.gmra.mxu1 %v12696_v30  ;;  %v9484_v15 = vld [vmem:[%s12442_s27 + $0x620] sm:$0xf]  ;;  %v9972_v8 = vld [vmem:[%s12442_s27 + $0x9f0] sm:$0xf] }
 0x27d   : > { %7721 = vmatpush.bf16.msrb.mxu1 %v9589_v17  ;;  %7690 = vmatmul.bf16.vlgmr.msra.gmra.mxu2 %v12694_v29  ;;  %v9548_v17 = vld [vmem:[%s12442_s27 + $0x6a0] sm:$0xf]  ;;  %v9485_v27 = vor.u32 %v10946_v16, %v9484_v15  ;;  %v9909_v16 = vor.u32 %v11052_v2, %v9908_v1  ;;  %v9973_v22 = vor.u32 %v11068_v9, %v9972_v8  ;;  %v11028_v9 = vld [vmem:[%s12442_s27 + $0x8b4] sm:$0xf0] }
 0x27e   : > { %7734 = vmatpush.bf16.msrb.mxu2 %v9653_v18  ;;  %7703 = vmatmul.bf16.vlgmr.msra.gmra.mxu3 %v12700_v33  ;;  %v9685_v18 = vor.u32 %v10996_v11, %v9684_v10  ;;  %v9549_v28 = vor.u32 %v10962_v19, %v9548_v17  ;;  %v4910_v10 = vunpack.c.l.b16 %v4359_v59  ;;  %v4909_v11 = vunpack.c.h.b16 %v4358_v55  ;;  %v9772_v17 = vld [vmem:[%s12442_s27 + $0x860] sm:$0xf] }
 0x27f   : > { %7747 = vmatpush.bf16.msrb.mxu3 %v9717_v24  ;;  %v9676_v24 = vld [vmem:[%s12442_s27 + $0x7a0] sm:$0xf] }
 0x280   : > { %7709 = vmatpush.bf16.msrb.mxu0 %v9517_v34  ;;  %v10944_v34 = vld [vmem:[%s12442_s27 + $0x614] sm:$0xf0]  ;;  %v9836_v19 = vld [vmem:[%s12442_s27 + $0x8e0] sm:$0xf] }
 0x281   : > { %7722 = vmatpush.bf16.msrb.mxu1 %v9581_v35  ;;  %v9540_v35 = vld [vmem:[%s12442_s27 + $0x690] sm:$0xf]  ;;  %v9477_v47 = vor.u32 %v10944_v34, %v9476_v32  ;;  %v9964_v32 = vld [vmem:[%s12442_s27 + $0x9e0] sm:$0xf]  ;;  %v11066_v34 = vld [vmem:[%s12442_s27 + $0x9e4] sm:$0xf0] }
 0x282   : > { %7735 = vmatpush.bf16.msrb.mxu2 %v9645_v36  ;;  %v9677_v36 = vor.u32 %v10994_v26, %v9676_v24  ;;  %v11034_v24 = vld [vmem:[%s12442_s27 + $0x8e4] sm:$0xf0]  ;;  %v9900_v26 = vld [vmem:[%s12442_s27 + $0x960] sm:$0xf] }
 0x283   : > { %7748 = vmatpush.bf16.msrb.mxu3 %v9709_v43  ;;  %v9668_v43 = vld [vmem:[%s12442_s27 + $0x790] sm:$0xf]  ;;  %v9756_v55 = vld [vmem:[%s12442_s27 + $0x840] sm:$0xf] }
 0x284   : > { %7710 = vmatpush.bf16.msrb.mxu0 %v9509_v50  ;;  %v10958_v50 = vld [vmem:[%s12442_s27 + $0x684] sm:$0xf0] }
 0x285   : > { %7723 = vmatpush.bf16.msrb.mxu1 %v9573_v51  ;;  %v9541_v51 = vor.u32 %v10960_v37, %v9540_v35  ;;  %v9837_v37 = vor.u32 %v11034_v24, %v9836_v19  ;;  %v9804_v19 = vld [vmem:[%s12442_s27 + $0x8a0] sm:$0xf]  ;;  %v11026_v24 = vld [vmem:[%s12442_s27 + $0x8a4] sm:$0xf0] }
 0x286   : > { %7736 = vmatpush.bf16.msrb.mxu2 %v9637_v52  ;;  %v9605_v52 = vor.u32 %v10976_v40, %v9604_v39  ;;  %v9764_v40 = vld [vmem:[%s12442_s27 + $0x850] sm:$0xf] }
 0x287   : > { %7749 = vmatpush.bf16.msrb.mxu3 %v9701_v56  ;;  %v9669_v56 = vor.u32 %v10992_v45, %v9668_v43  ;;  %v11016_v43 = vld [vmem:[%s12442_s27 + $0x854] sm:$0xf0]  ;;  %v9828_v45 = vld [vmem:[%s12442_s27 + $0x8d0] sm:$0xf] }
 0x288   : > { %7711 = vmatpush.bf16.msrb.mxu0 %v9501_v62  ;;  %v9844_v62 = vld [vmem:[%s12442_s27 + $0x8f0] sm:$0xf] }
 0x289   : > { %7724 = vmatpush.bf16.msrb.mxu1 %v9565_v63  ;;  %v9469_v63 = vor.u32 %v10942_v48, %v9468_v46  ;;  %v9965_v46 = vor.u32 %v11066_v34, %v9964_v32  ;;  %v9892_v48 = vld [vmem:[%s12442_s27 + $0x950] sm:$0xf]  ;;  %v9932_v32 = vld [vmem:[%s12442_s27 + $0x9a0] sm:$0xf]  ;;  %v11058_v34 = vld [vmem:[%s12442_s27 + $0x9a4] sm:$0xf0] }
 0x28a   : > { %7737 = vmatpush.bf16.msrb.mxu2 %v9629_v0  ;;  %v11036_v0 = vld [vmem:[%s12442_s27 + $0x8f4] sm:$0xf0] }
 0x28b   : > { %7750 = vmatpush.bf16.msrb.mxu3 %v9693_v5  ;;  %v9533_v5 = vor.u32 %v10958_v50, %v9532_v49  ;;  %v9845_v15 = vor.u32 %v11036_v0, %v9844_v62  ;;  %v11048_v49 = vld [vmem:[%s12442_s27 + $0x954] sm:$0xf0]  ;;  %v9956_v50 = vld [vmem:[%s12442_s27 + $0x9d0] sm:$0xf]  ;;  %v9948_v62 = vld [vmem:[%s12442_s27 + $0x9c0] sm:$0xf] }
 0x28c   : > { %7712 = vmatpush.bf16.msrb.mxu0 %v9493_v12  ;;  %v9661_v12 = vor.u32 %v10990_v58, %v9660_v57  ;;  %v9893_v54 = vor.u32 %v11048_v49, %v9892_v48  ;;  %v9820_v57 = vld [vmem:[%s12442_s27 + $0x8c0] sm:$0xf]  ;;  %v9860_v48 = vld [vmem:[%s12442_s27 + $0x910] sm:$0xf]  ;;  %v11040_v49 = vld [vmem:[%s12442_s27 + $0x914] sm:$0xf0] }
 0x28d   : > { %7725 = vmatpush.bf16.msrb.mxu1 %v9557_v13  ;;  %v9781_v13 = vor.u32 %v11020_v61, %v9780_v60  ;;  %v9884_v60 = vld [vmem:[%s12442_s27 + $0x940] sm:$0xf]  ;;  %v11046_v61 = vld [vmem:[%s12442_s27 + $0x944] sm:$0xf0] }
 0x28e   : > { %7738 = vmatpush.bf16.msrb.mxu2 %v9621_v14  ;;  %v4911_v14 = vunpack.c.h.b16 %v4359_v59  ;;  %v11030_v59 = vld [vmem:[%s12442_s27 + $0x8c4] sm:$0xf0]  ;;  %v9885_v2 = vor.u32 %v11046_v61, %v9884_v60  ;;  %v4360_v61 = vld [vmem:[%s13718_s0 + $0x40] sm:$0xff] }
 0x28f   : > { %7751 = vmatpush.bf16.msrb.mxu3 %v9685_v18  ;;  %v11018_v18 = vld [vmem:[%s12442_s27 + $0x864] sm:$0xf0]  ;;  %v9821_v1 = vor.u32 %v11030_v59, %v9820_v57  ;;  %v9852_v59 = vld [vmem:[%s12442_s27 + $0x900] sm:$0xf] }
 0x290   : > { %7713 = vmatpush.bf16.msrb.mxu0 %v9485_v27  ;;  %v11050_v27 = vld [vmem:[%s12442_s27 + $0x964] sm:$0xf0]  ;;  %v12782_v35 = vpack.c.b16 %v4911_v14, %v4911_v14 }
 0x291   : > { %7726 = vmatpush.bf16.msrb.mxu1 %v9549_v28  ;;  %v12776_v28 = vpack.c.b16 %v4910_v10, %v4910_v10  ;;  %v9901_v39 = vor.u32 %v11050_v27, %v9900_v26  ;;  %v9876_v10 = vld [vmem:[%s12442_s27 + $0x930] sm:$0xf]  ;;  %v9868_v26 = vld [vmem:[%s12442_s27 + $0x920] sm:$0xf]  ;;  %v11042_v27 = vld [vmem:[%s12442_s27 + $0x924] sm:$0xf0] }
 0x292   : > { %7739 = vmatpush.bf16.msrb.mxu2 %v9613_v31  ;;  %v12778_v31 = vpack.c.b16 %v4909_v11, %v4909_v11  ;;  %v11044_v11 = vld [vmem:[%s12442_s27 + $0x934] sm:$0xf0]  ;;  %v11038_v60 = vld [vmem:[%s12442_s27 + $0x904] sm:$0xf0] }
 0x293   : > { %7752 = vmatpush.bf16.msrb.mxu3 %v9677_v36  ;;  %v9773_v36 = vor.u32 %v11018_v18, %v9772_v17  ;;  %v9740_v17 = vld [vmem:[%s12442_s27 + $0x820] sm:$0xf]  ;;  %v11010_v18 = vld [vmem:[%s12442_s27 + $0x824] sm:$0xf0] }
 0x294   : > { %7714 = vmatpush.bf16.msrb.mxu0 %v9477_v47  ;;  %v11032_v47 = vld [vmem:[%s12442_s27 + $0x8d4] sm:$0xf0] }
 0x295   : > { %7727 = vmatpush.bf16.msrb.mxu1 %v9541_v51  ;;  %v11064_v51 = vld [vmem:[%s12442_s27 + $0x9d4] sm:$0xf0]  ;;  %v9829_v53 = vor.u32 %v11032_v47, %v9828_v45  ;;  %v9796_v45 = vld [vmem:[%s12442_s27 + $0x890] sm:$0xf] }
 0x296   : > { %7740 = vmatpush.bf16.msrb.mxu2 %v9605_v52  ;;  %v9765_v52 = vor.u32 %v11016_v43, %v9764_v40  ;;  %v9957_v58 = vor.u32 %v11064_v51, %v9956_v50  ;;  %v9732_v40 = vld [vmem:[%s12442_s27 + $0x810] sm:$0xf]  ;;  %v11008_v43 = vld [vmem:[%s12442_s27 + $0x814] sm:$0xf0] }
 0x297   : > { %7753 = vmatpush.bf16.msrb.mxu3 %v9669_v56  ;;  %v11014_v56 = vld [vmem:[%s12442_s27 + $0x844] sm:$0xf0]  ;;  %v11024_v47 = vld [vmem:[%s12442_s27 + $0x894] sm:$0xf0]  ;;  %v9924_v50 = vld [vmem:[%s12442_s27 + $0x990] sm:$0xf] }
 0x298   : > { %7715 = vmatpush.bf16.msrb.mxu0 %v9469_v63  ;;  %v11062_v63 = vld [vmem:[%s12442_s27 + $0x9c4] sm:$0xf0]  ;;  %v9757_v0 = vor.u32 %v11014_v56, %v9756_v55  ;;  %v11056_v51 = vld [vmem:[%s12442_s27 + $0x994] sm:$0xf0]  ;;  %v9788_v55 = vld [vmem:[%s12442_s27 + $0x880] sm:$0xf]  ;;  %v9797_v57 = vor.u32 %v11024_v47, %v9796_v45 }
 0x299   : > { %7728 = vmatpush.bf16.msrb.mxu1 %v9533_v5  ;;  %v11012_v5 = vld [vmem:[%s12442_s27 + $0x834] sm:$0xf0]  ;;  %v9949_v8 = vor.u32 %v11062_v63, %v9948_v62  ;;  %v11022_v56 = vld [vmem:[%s12442_s27 + $0x884] sm:$0xf0]  ;;  %v9925_v62 = vor.u32 %v11056_v51, %v9924_v50  ;;  %v9916_v63 = vld [vmem:[%s12442_s27 + $0x980] sm:$0xf] }
 0x29a   : > { %7741 = vmatpush.bf16.msrb.mxu2 %v9597_v7  ;;  %v9812_v7 = vld [vmem:[%s12442_s27 + $0x8b0] sm:$0xf]  ;;  %v9749_v14 = vor.u32 %v11012_v5, %v9748_v3  ;;  %v11084_v3 = vld [vmem:[%s12442_s27 + $0xa74] sm:$0xf0]  ;;  %v10220_v47 = vld [vmem:[%s12442_s27 + $0xbe0] sm:$0xf] }
 0x29b   : > { %7754 = vmatpush.bf16.msrb.mxu3 %v9661_v12  ;;  %7716 = vmatmul.bf16.vlgmr.msrb.gmra.mxu0 %v12771_v23  ;;  %v9940_v12 = vld [vmem:[%s12442_s27 + $0x9b0] sm:$0xf] }
 0x29c   : > { %7760 = vmatpush.bf16.msra.mxu0 %v9781_v13  ;;  %7729 = vmatmul.bf16.vlgmr.msrb.gmra.mxu1 %v12778_v31  ;;  %v11060_v13 = vld [vmem:[%s12442_s27 + $0x9b4] sm:$0xf0]  ;;  %v10100_v5 = vld [vmem:[%s12442_s27 + $0xaf0] sm:$0xf] }
 0x29d   : > { %7773 = vmatpush.bf16.msra.mxu1 %v9845_v15  ;;  %7742 = vmatmul.bf16.vlgmr.msrb.gmra.mxu2 %v12776_v28  ;;  %v9813_v15 = vor.u32 %v11028_v9, %v9812_v7  ;;  %v10164_v9 = vld [vmem:[%s12442_s27 + $0xb70] sm:$0xf] }
 0x29e   : > { %7786 = vmatpush.bf16.msra.mxu2 %v9909_v16  ;;  %7755 = vmatmul.bf16.vlgmr.msrb.gmra.mxu3 %v12782_v35  ;;  %v9877_v16 = vor.u32 %v11044_v11, %v9876_v10  ;;  %v11116_v10 = vld [vmem:[%s12442_s27 + $0xb74] sm:$0xf0]  ;;  %v4912_v11 = vunpack.c.l.b16 %v4360_v61 }
 0x29f   : > { %7799 = vmatpush.bf16.msra.mxu3 %v9973_v22  ;;  %v9941_v22 = vor.u32 %v11060_v13, %v9940_v12  ;;  %v9789_v12 = vor.u32 %v11022_v56, %v9788_v55  ;;  %v9853_v13 = vor.u32 %v11038_v60, %v9852_v59  ;;  %v10084_v55 = vld [vmem:[%s12442_s27 + $0xad0] sm:$0xf]  ;;  %v11112_v59 = vld [vmem:[%s12442_s27 + $0xb54] sm:$0xf0] }
 0x2a0   : > { %7761 = vmatpush.bf16.msra.mxu0 %v9773_v36  ;;  %v9741_v36 = vor.u32 %v11010_v18, %v9740_v17  ;;  %v4913_v17 = vunpack.c.h.b16 %v4360_v61  ;;  %v10212_v60 = vld [vmem:[%s12442_s27 + $0xbd0] sm:$0xf]  ;;  %v11128_v61 = vld [vmem:[%s12442_s27 + $0xbd4] sm:$0xf0] }
 0x2a1   : > { %7774 = vmatpush.bf16.msra.mxu1 %v9837_v37  ;;  %v9805_v37 = vor.u32 %v11026_v24, %v9804_v19 }
 0x2a2   : > { %7787 = vmatpush.bf16.msra.mxu2 %v9901_v39  ;;  %v9869_v39 = vor.u32 %v11042_v27, %v9868_v26  ;;  %v10165_v26 = vor.u32 %v11116_v10, %v10164_v9  ;;  %v10028_v27 = vld [vmem:[%s12442_s27 + $0xa60] sm:$0xf]  ;;  %v11110_v9 = vld [vmem:[%s12442_s27 + $0xb44] sm:$0xf0] }
 0x2a3   : > { %7800 = vmatpush.bf16.msra.mxu3 %v9965_v46  ;;  %v9933_v46 = vor.u32 %v11058_v34, %v9932_v32  ;;  %v11082_v32 = vld [vmem:[%s12442_s27 + $0xa64] sm:$0xf0]  ;;  %v10092_v34 = vld [vmem:[%s12442_s27 + $0xae0] sm:$0xf] }
 0x2a4   : > { %7762 = vmatpush.bf16.msra.mxu0 %v9765_v52  ;;  %v9724_v52 = vld [vmem:[%s12442_s27 + $0x800] sm:$0xf]  ;;  %v10029_v50 = vor.u32 %v11082_v32, %v10028_v27  ;;  %v11124_v27 = vld [vmem:[%s12442_s27 + $0xbb4] sm:$0xf0] }
 0x2a5   : > { %7775 = vmatpush.bf16.msra.mxu1 %v9829_v53  ;;  %v9733_v53 = vor.u32 %v11008_v43, %v9732_v40  ;;  %v10156_v40 = vld [vmem:[%s12442_s27 + $0xb60] sm:$0xf]  ;;  %v11114_v43 = vld [vmem:[%s12442_s27 + $0xb64] sm:$0xf0] }
 0x2a6   : > { %7788 = vmatpush.bf16.msra.mxu2 %v9893_v54  ;;  %v11006_v54 = vld [vmem:[%s12442_s27 + $0x804] sm:$0xf0]  ;;  %v10204_v10 = vld [vmem:[%s12442_s27 + $0xbc0] sm:$0xf] }
 0x2a7   : > { %7801 = vmatpush.bf16.msra.mxu3 %v9957_v58  ;;  %v9861_v58 = vor.u32 %v11040_v49, %v9860_v48  ;;  %v9725_v7 = vor.u32 %v11006_v54, %v9724_v52  ;;  %v11130_v48 = vld [vmem:[%s12442_s27 + $0xbe4] sm:$0xf0]  ;;  %v10157_v52 = vor.u32 %v11114_v43, %v10156_v40  ;;  %v11080_v54 = vld [vmem:[%s12442_s27 + $0xa54] sm:$0xf0]  ;;  %v10060_v43 = vld [vmem:[%s12442_s27 + $0xaa0] sm:$0xf] }
 0x2a8   : > { %7763 = vmatpush.bf16.msra.mxu0 %v9757_v0  ;;  %v11054_v0 = vld [vmem:[%s12442_s27 + $0x984] sm:$0xf0]  ;;  %v10221_v56 = vor.u32 %v11130_v48, %v10220_v47 }
 0x2a9   : > { %7776 = vmatpush.bf16.msra.mxu1 %v9821_v1  ;;  %v4361_v1 = vld [vmem:[%s13718_s0 + $0x48] sm:$0xff]  ;;  %v9917_v18 = vor.u32 %v11054_v0, %v9916_v63  ;;  %v11074_v40 = vld [vmem:[%s12442_s27 + $0xa24] sm:$0xf0] }
 0x2aa   : > { %7789 = vmatpush.bf16.msra.mxu2 %v9885_v2  ;;  %v10036_v2 = vld [vmem:[%s12442_s27 + $0xa70] sm:$0xf]  ;;  %v11090_v48 = vld [vmem:[%s12442_s27 + $0xaa4] sm:$0xf0] }
 0x2ab   : > { %7802 = vmatpush.bf16.msra.mxu3 %v9949_v8  ;;  %v11100_v8 = vld [vmem:[%s12442_s27 + $0xaf4] sm:$0xf0]  ;;  %v10037_v19 = vor.u32 %v11084_v3, %v10036_v2  ;;  %v11078_v2 = vld [vmem:[%s12442_s27 + $0xa44] sm:$0xf0]  ;;  %v10076_v3 = vld [vmem:[%s12442_s27 + $0xac0] sm:$0xf] }
 0x2ac   : > { %7764 = vmatpush.bf16.msra.mxu0 %v9749_v14  ;;  %v10228_v14 = vld [vmem:[%s12442_s27 + $0xbf0] sm:$0xf]  ;;  %v10101_v24 = vor.u32 %v11100_v8, %v10100_v5  ;;  %v10213_v5 = vor.u32 %v11128_v61, %v10212_v60  ;;  %v10140_v8 = vld [vmem:[%s12442_s27 + $0xb40] sm:$0xf]  ;;  %v11072_v60 = vld [vmem:[%s12442_s27 + $0xa14] sm:$0xf0] }
 0x2ad   : > { %7777 = vmatpush.bf16.msra.mxu1 %v9813_v15  ;;  %v11132_v15 = vld [vmem:[%s12442_s27 + $0xbf4] sm:$0xf0]  ;;  %v10052_v61 = vld [vmem:[%s12442_s27 + $0xa90] sm:$0xf] }
 0x2ae   : > { %7790 = vmatpush.bf16.msra.mxu2 %v9877_v16  ;;  %v4914_v16 = vunpack.c.l.b16 %v4361_v1 }
 0x2af   : > { %7803 = vmatpush.bf16.msra.mxu3 %v9941_v22  ;;  %v4915_v22 = vunpack.c.h.b16 %v4361_v1  ;;  %v10012_v1 = vld [vmem:[%s12442_s27 + $0xa40] sm:$0xf] }
 0x2b0   : > { %7765 = vmatpush.bf16.msra.mxu0 %v9741_v36  ;;  %v10229_v36 = vor.u32 %v11132_v15, %v10228_v14  ;;  %v12858_v45 = vpack.c.b16 %v4914_v16, %v4914_v16  ;;  %v10141_v14 = vor.u32 %v11110_v9, %v10140_v8  ;;  %v10004_v15 = vld [vmem:[%s12442_s27 + $0xa30] sm:$0xf]  ;;  %v11076_v16 = vld [vmem:[%s12442_s27 + $0xa34] sm:$0xf0]  ;;  %v9980_v9 = vld [vmem:[%s12442_s27 + $0xa00] sm:$0xf] }
 0x2b1   : > { %7778 = vmatpush.bf16.msra.mxu1 %v9805_v37  ;;  %v12853_v37 = vpack.c.b16 %v4912_v11, %v4912_v11  ;;  %v12864_v49 = vpack.c.b16 %v4915_v22, %v4915_v22  ;;  %v11126_v11 = vld [vmem:[%s12442_s27 + $0xbc4] sm:$0xf0]  ;;  %v10132_v22 = vld [vmem:[%s12442_s27 + $0xb30] sm:$0xf]  ;;  %v10005_v32 = vor.u32 %v11076_v16, %v10004_v15  ;;  %v11120_v8 = vld [vmem:[%s12442_s27 + $0xb94] sm:$0xf0] }
 0x2b2   : > { %7791 = vmatpush.bf16.msra.mxu2 %v9869_v39  ;;  %v11098_v39 = vld [vmem:[%s12442_s27 + $0xae4] sm:$0xf0] }
 0x2b3   : > { %7804 = vmatpush.bf16.msra.mxu3 %v9933_v46  ;;  %v12860_v46 = vpack.c.b16 %v4913_v17, %v4913_v17  ;;  %v10093_v51 = vor.u32 %v11098_v39, %v10092_v34  ;;  %v10068_v17 = vld [vmem:[%s12442_s27 + $0xab0] sm:$0xf]  ;;  %v9996_v39 = vld [vmem:[%s12442_s27 + $0xa20] sm:$0xf] }
 0x2b4   : > { %7766 = vmatpush.bf16.msra.mxu0 %v9733_v53  ;;  %v10020_v53 = vld [vmem:[%s12442_s27 + $0xa50] sm:$0xf] }
 0x2b5   : > { %7779 = vmatpush.bf16.msra.mxu1 %v9797_v57  ;;  %v11096_v57 = vld [vmem:[%s12442_s27 + $0xad4] sm:$0xf0] }
 0x2b6   : > { %7792 = vmatpush.bf16.msra.mxu2 %v9861_v58  ;;  %v10148_v58 = vld [vmem:[%s12442_s27 + $0xb50] sm:$0xf]  ;;  %v10085_v63 = vor.u32 %v11096_v57, %v10084_v55  ;;  %v9997_v55 = vor.u32 %v11074_v40, %v9996_v39  ;;  %v10061_v57 = vor.u32 %v11090_v48, %v10060_v43 }
 0x2b7   : > { %7805 = vmatpush.bf16.msra.mxu3 %v9925_v62  ;;  %v10021_v62 = vor.u32 %v11080_v54, %v10020_v53  ;;  %v10149_v0 = vor.u32 %v11112_v59, %v10148_v58  ;;  %v11122_v53 = vld [vmem:[%s12442_s27 + $0xba4] sm:$0xf0]  ;;  %v9988_v59 = vld [vmem:[%s12442_s27 + $0xa10] sm:$0xf] }
 0x2b8   : > { %7767 = vmatpush.bf16.msra.mxu0 %v9725_v7  ;;  %v11094_v7 = vld [vmem:[%s12442_s27 + $0xac4] sm:$0xf0]  ;;  %v10356_v39 = vld [vmem:[%s12442_s27 + $0xcf0] sm:$0xf] }
 0x2b9   : > { %7780 = vmatpush.bf16.msra.mxu1 %v9789_v12  ;;  %v10013_v12 = vor.u32 %v11078_v2, %v10012_v1  ;;  %v11088_v1 = vld [vmem:[%s12442_s27 + $0xa94] sm:$0xf0]  ;;  %v10116_v2 = vld [vmem:[%s12442_s27 + $0xb10] sm:$0xf] }
 0x2ba   : > { %7793 = vmatpush.bf16.msra.mxu2 %v9853_v13  ;;  %v10077_v13 = vor.u32 %v11094_v7, %v10076_v3  ;;  %v11104_v3 = vld [vmem:[%s12442_s27 + $0xb14] sm:$0xf0]  ;;  %v10180_v7 = vld [vmem:[%s12442_s27 + $0xb90] sm:$0xf]  ;;  %v10053_v15 = vor.u32 %v11088_v1, %v10052_v61 }
 0x2bb   : > { %7806 = vmatpush.bf16.msra.mxu3 %v9917_v18  ;;  %7768 = vmatmul.bf16.vlgmr.msra.gmra.mxu0 %v12853_v37  ;;  %v10205_v18 = vor.u32 %v11126_v11, %v10204_v10  ;;  %v9989_v11 = vor.u32 %v11072_v60, %v9988_v59  ;;  %v10117_v16 = vor.u32 %v11104_v3, %v10116_v2  ;;  %v10420_v48 = vld [vmem:[%s12442_s27 + $0xd70] sm:$0xf]  ;;  %v10284_v2 = vld [vmem:[%s12442_s27 + $0xc60] sm:$0xf]  ;;  %v11146_v3 = vld [vmem:[%s12442_s27 + $0xc64] sm:$0xf0] }
 0x2bc   : > { %7812 = vmatpush.bf16.msrb.mxu0 %v10037_v19  ;;  %7781 = vmatmul.bf16.vlgmr.msra.gmra.mxu1 %v12860_v46  ;;  %v11092_v19 = vld [vmem:[%s12442_s27 + $0xab4] sm:$0xf0]  ;;  %v7561_v54 = vpop.f32.mrf.mxu0 }
 0x2bd   : > { %7825 = vmatpush.bf16.msrb.mxu1 %v10101_v24  ;;  %7794 = vmatmul.bf16.vlgmr.msra.gmra.mxu2 %v12858_v45  ;;  %v11108_v24 = vld [vmem:[%s12442_s27 + $0xb34] sm:$0xf0]  ;;  %v10069_v34 = vor.u32 %v11092_v19, %v10068_v17  ;;  %v10108_v17 = vld [vmem:[%s12442_s27 + $0xb00] sm:$0xf]  ;;  %v4362_v19 = vld [vmem:[%s13718_s0 + $0x50] sm:$0xff] }
 0x2be   : > { %7838 = vmatpush.bf16.msrb.mxu2 %v10165_v26  ;;  %7807 = vmatmul.bf16.vlgmr.msra.gmra.mxu3 %v12864_v49  ;;  %v10196_v26 = vld [vmem:[%s12442_s27 + $0xbb0] sm:$0xf] }
 0x2bf   : > { %7851 = vmatpush.bf16.msrb.mxu3 %v10229_v36  ;;  %v10133_v36 = vor.u32 %v11108_v24, %v10132_v22  ;;  %v10197_v47 = vor.u32 %v11124_v27, %v10196_v26  ;;  %v10181_v24 = vor.u32 %v11120_v8, %v10180_v7  ;;  %v10172_v26 = vld [vmem:[%s12442_s27 + $0xb80] sm:$0xf]  ;;  %v11118_v27 = vld [vmem:[%s12442_s27 + $0xb84] sm:$0xf0] }
 0x2c0   : > { %7813 = vmatpush.bf16.msrb.mxu0 %v10029_v50  ;;  %v10124_v50 = vld [vmem:[%s12442_s27 + $0xb20] sm:$0xf]  ;;  %v10173_v60 = vor.u32 %v11118_v27, %v10172_v26  ;;  %v11144_v26 = vld [vmem:[%s12442_s27 + $0xc54] sm:$0xf0]  ;;  %v10340_v27 = vld [vmem:[%s12442_s27 + $0xcd0] sm:$0xf] }
 0x2c1   : > { %7826 = vmatpush.bf16.msrb.mxu1 %v10093_v51  ;;  %v11106_v51 = vld [vmem:[%s12442_s27 + $0xb24] sm:$0xf0] }
 0x2c2   : > { %7839 = vmatpush.bf16.msrb.mxu2 %v10157_v52  ;;  %v10188_v52 = vld [vmem:[%s12442_s27 + $0xba0] sm:$0xf]  ;;  %v10125_v58 = vor.u32 %v11106_v51, %v10124_v50  ;;  %v11180_v50 = vld [vmem:[%s12442_s27 + $0xd74] sm:$0xf0]  ;;  %v4916_v51 = vunpack.c.l.b16 %v4362_v19 }
 0x2c3   : > { %7852 = vmatpush.bf16.msrb.mxu3 %v10221_v56  ;;  %v7574_v56 = vpop.f32.mrf.mxu1  ;;  %v10421_v1 = vor.u32 %v11180_v50, %v10420_v48 }
 0x2c4   : > { %7814 = vmatpush.bf16.msrb.mxu0 %v10021_v62  ;;  %v7575_v62 = vadd.f32 %v7574_v56, %v7561_v54  ;;  %v7563_v40 = vpop.f32.mrf.mxu0  ;;  %v11196_v56 = vld [vmem:[%s12442_s27 + $0xdf4] sm:$0xf0]  ;;  %v12937_v8 = vpack.c.b16 %v4916_v51, %v4916_v51  ;;  %v10268_v51 = vld [vmem:[%s12442_s27 + $0xc40] sm:$0xf] }
 0x2c5   : > { %7827 = vmatpush.bf16.msrb.mxu1 %v10085_v63  ;;  %v7587_v63 = vpop.f32.mrf.mxu2  ;;  %v10468_v40 = vld [vmem:[%s12442_s27 + $0xdd0] sm:$0xf] }
 0x2c6   : > { %7840 = vmatpush.bf16.msrb.mxu2 %v10149_v0  ;;  %v10189_v0 = vor.u32 %v11122_v53, %v10188_v52  ;;  %v7588_v10 = vadd.f32 %v7587_v63, %v7575_v62 }
 0x2c7   : > { %7853 = vmatpush.bf16.msrb.mxu3 %v10213_v5  ;;  %v7600_v5 = vpop.f32.mrf.mxu3 }
 0x2c8   : > { %7815 = vmatpush.bf16.msrb.mxu0 %v10013_v12  ;;  %v11070_v12 = vld [vmem:[%s12442_s27 + $0xa04] sm:$0xf0]  ;;  %v12919_v22 = vadd.f32 %v7600_v5, %v7588_v10  ;;  %v10348_v5 = vld [vmem:[%s12442_s27 + $0xce0] sm:$0xf] }
 0x2c9   : > { %7828 = vmatpush.bf16.msrb.mxu1 %v10077_v13  ;;  %v10044_v13 = vld [vmem:[%s12442_s27 + $0xa80] sm:$0xf]  ;;  %v9981_v43 = vor.u32 %v11070_v12, %v9980_v9  ;;  %v11162_v9 = vld [vmem:[%s12442_s27 + $0xce4] sm:$0xf0] }
 0x2ca   : > { %7841 = vmatpush.bf16.msrb.mxu2 %v10141_v14  ;;  %v11086_v14 = vld [vmem:[%s12442_s27 + $0xa84] sm:$0xf0]  ;;  %v10412_v10 = vld [vmem:[%s12442_s27 + $0xd60] sm:$0xf] }
 0x2cb   : > { %7854 = vmatpush.bf16.msrb.mxu3 %v10205_v18  ;;  %v11102_v18 = vld [vmem:[%s12442_s27 + $0xb04] sm:$0xf0]  ;;  %v7576_v52 = vpop.f32.mrf.mxu1  ;;  %v10045_v53 = vor.u32 %v11086_v14, %v10044_v13  ;;  %v10476_v14 = vld [vmem:[%s12442_s27 + $0xde0] sm:$0xf] }
 0x2cc   : > { %7816 = vmatpush.bf16.msrb.mxu0 %v10005_v32  ;;  %v4363_v32 = vld [vmem:[%s13718_s0 + $0x58] sm:$0xff]  ;;  %v10109_v54 = vor.u32 %v11102_v18, %v10108_v17  ;;  %v10285_v17 = vor.u32 %v11146_v3, %v10284_v2  ;;  %v10349_v18 = vor.u32 %v11162_v9, %v10348_v5  ;;  %v11142_v52 = vld [vmem:[%s12442_s27 + $0xc44] sm:$0xf0]  ;;  %v11156_v9 = vld [vmem:[%s12442_s27 + $0xcb4] sm:$0xf0] }
 0x2cd   : > { %7829 = vmatpush.bf16.msrb.mxu1 %v10069_v34  ;;  %v10292_v34 = vld [vmem:[%s12442_s27 + $0xc70] sm:$0xf]  ;;  %v7589_v59 = vpop.f32.mrf.mxu2  ;;  %v4919_v62 = vunpack.c.h.b16 %v4363_v32 }
 0x2ce   : > { %7842 = vmatpush.bf16.msrb.mxu2 %v10133_v36  ;;  %v11148_v36 = vld [vmem:[%s12442_s27 + $0xc74] sm:$0xf0]  ;;  %v11190_v59 = vld [vmem:[%s12442_s27 + $0xdc4] sm:$0xf0]  ;;  %v10324_v2 = vld [vmem:[%s12442_s27 + $0xcb0] sm:$0xf] }
 0x2cf   : > { %7855 = vmatpush.bf16.msrb.mxu3 %v10197_v47  ;;  %v11164_v47 = vld [vmem:[%s12442_s27 + $0xcf4] sm:$0xf0]  ;;  %v10293_v61 = vor.u32 %v11148_v36, %v10292_v34  ;;  %v7602_v63 = vpop.f32.mrf.mxu3  ;;  %v10404_v36 = vld [vmem:[%s12442_s27 + $0xd50] sm:$0xf] }
 0x2d0   : > { %7817 = vmatpush.bf16.msrb.mxu0 %v9997_v55  ;;  %v10484_v55 = vld [vmem:[%s12442_s27 + $0xdf0] sm:$0xf]  ;;  %v11160_v34 = vld [vmem:[%s12442_s27 + $0xcd4] sm:$0xf0] }
 0x2d1   : > { %7830 = vmatpush.bf16.msrb.mxu1 %v10061_v57  ;;  %v4918_v57 = vunpack.c.l.b16 %v4363_v32  ;;  %v10485_v7 = vor.u32 %v11196_v56, %v10484_v55  ;;  %v10341_v48 = vor.u32 %v11160_v34, %v10340_v27  ;;  %v11158_v55 = vld [vmem:[%s12442_s27 + $0xcc4] sm:$0xf0]  ;;  %v10396_v56 = vld [vmem:[%s12442_s27 + $0xd40] sm:$0xf] }
 0x2d2   : > { %7843 = vmatpush.bf16.msrb.mxu2 %v10125_v58  ;;  %v4917_v58 = vunpack.c.h.b16 %v4362_v19  ;;  %v10316_v27 = vld [vmem:[%s12442_s27 + $0xca0] sm:$0xf] }
 0x2d3   : > { %7856 = vmatpush.bf16.msrb.mxu3 %v10189_v0  ;;  %v10357_v0 = vor.u32 %v11164_v47, %v10356_v39  ;;  %v12942_v12 = vpack.c.b16 %v4918_v57, %v4918_v57  ;;  %v11176_v39 = vld [vmem:[%s12442_s27 + $0xd54] sm:$0xf0]  ;;  %v11174_v57 = vld [vmem:[%s12442_s27 + $0xd44] sm:$0xf0] }
 0x2d4   : > { %7818 = vmatpush.bf16.msrb.mxu0 %v9989_v11  ;;  %v11178_v11 = vld [vmem:[%s12442_s27 + $0xd64] sm:$0xf0]  ;;  %v12944_v13 = vpack.c.b16 %v4917_v58, %v4917_v58  ;;  %v10405_v50 = vor.u32 %v11176_v39, %v10404_v36  ;;  %v10460_v58 = vld [vmem:[%s12442_s27 + $0xdc0] sm:$0xf]  ;;  %v10397_v63 = vor.u32 %v11174_v57, %v10396_v56  ;;  %v10244_v56 = vld [vmem:[%s12442_s27 + $0xc10] sm:$0xf] }
 0x2d5   : > { %7831 = vmatpush.bf16.msrb.mxu1 %v10053_v15  ;;  %v11194_v15 = vld [vmem:[%s12442_s27 + $0xde4] sm:$0xf0]  ;;  %v10413_v19 = vor.u32 %v11178_v11, %v10412_v10  ;;  %v10388_v10 = vld [vmem:[%s12442_s27 + $0xd30] sm:$0xf]  ;;  %v11172_v11 = vld [vmem:[%s12442_s27 + $0xd34] sm:$0xf0] }
 0x2d6   : > { %7844 = vmatpush.bf16.msrb.mxu2 %v10117_v16  ;;  %v12948_v16 = vpack.c.b16 %v4919_v62, %v4919_v62  ;;  %v10477_v32 = vor.u32 %v11194_v15, %v10476_v14  ;;  %v10452_v14 = vld [vmem:[%s12442_s27 + $0xdb0] sm:$0xf]  ;;  %v11188_v15 = vld [vmem:[%s12442_s27 + $0xdb4] sm:$0xf0]  ;;  %v11154_v36 = vld [vmem:[%s12442_s27 + $0xca4] sm:$0xf0] }
 0x2d7   : > { %7857 = vmatpush.bf16.msrb.mxu3 %v10181_v24  ;;  %v10276_v24 = vld [vmem:[%s12442_s27 + $0xc50] sm:$0xf]  ;;  %v10453_v34 = vor.u32 %v11188_v15, %v10452_v14  ;;  %v10380_v39 = vld [vmem:[%s12442_s27 + $0xd20] sm:$0xf]  ;;  %v11136_v57 = vld [vmem:[%s12442_s27 + $0xc14] sm:$0xf0] }
 0x2d8   : > { %7819 = vmatpush.bf16.msrb.mxu0 %v9981_v43  ;;  %v11192_v43 = vld [vmem:[%s12442_s27 + $0xdd4] sm:$0xf0]  ;;  %v10277_v47 = vor.u32 %v11144_v26, %v10276_v24  ;;  %v10252_v24 = vld [vmem:[%s12442_s27 + $0xc20] sm:$0xf]  ;;  %v11138_v26 = vld [vmem:[%s12442_s27 + $0xc24] sm:$0xf0] }
 0x2d9   : > { %7832 = vmatpush.bf16.msrb.mxu1 %v10045_v53  ;;  %v10332_v53 = vld [vmem:[%s12442_s27 + $0xcc0] sm:$0xf]  ;;  %v7626_v5 = vpop.f32.mrf.mxu1  ;;  %v11166_v15 = vld [vmem:[%s12442_s27 + $0xd04] sm:$0xf0] }
 0x2da   : > { %7845 = vmatpush.bf16.msrb.mxu2 %v10109_v54  ;;  %v10469_v54 = vor.u32 %v11192_v43, %v10468_v40  ;;  %v10333_v62 = vor.u32 %v11158_v55, %v10332_v53  ;;  %v11170_v40 = vld [vmem:[%s12442_s27 + $0xd24] sm:$0xf0]  ;;  %v10364_v14 = vld [vmem:[%s12442_s27 + $0xd00] sm:$0xf] }
 0x2db   : > { %7858 = vmatpush.bf16.msrb.mxu3 %v10173_v60  ;;  %7820 = vmatmul.bf16.vlgmr.msrb.gmra.mxu0 %v12937_v8  ;;  %v10269_v60 = vor.u32 %v11142_v52, %v10268_v51  ;;  %v10253_v51 = vor.u32 %v11138_v26, %v10252_v24  ;;  %v10381_v55 = vor.u32 %v11170_v40, %v10380_v39  ;;  %v11182_v24 = vld [vmem:[%s12442_s27 + $0xd84] sm:$0xf0]  ;;  %v4365_v26 = vld [vmem:[%s13718_s0 + $0x68] sm:$0xff]  ;;  %v11228_v40 = vld [vmem:[%s12442_s27 + $0xef4] sm:$0xf0] }
 0x2dc   : > { %7864 = vmatpush.bf16.msra.mxu0 %v10293_v61  ;;  %7833 = vmatmul.bf16.vlgmr.msrb.gmra.mxu1 %v12944_v13  ;;  %v7613_v61 = vpop.f32.mrf.mxu0 }
 0x2dd   : > { %7877 = vmatpush.bf16.msra.mxu1 %v10357_v0  ;;  %7846 = vmatmul.bf16.vlgmr.msrb.gmra.mxu2 %v12942_v12  ;;  %v10260_v0 = vld [vmem:[%s12442_s27 + $0xc30] sm:$0xf]  ;;  %v7614_v3 = vadd.f32 %v7613_v61, %v12919_v22  ;;  %v10325_v22 = vor.u32 %v11156_v9, %v10324_v2  ;;  %v11152_v61 = vld [vmem:[%s12442_s27 + $0xc94] sm:$0xf0]  ;;  %v10236_v2 = vld [vmem:[%s12442_s27 + $0xc00] sm:$0xf] }
 0x2de   : > { %7890 = vmatpush.bf16.msra.mxu2 %v10421_v1  ;;  %7859 = vmatmul.bf16.vlgmr.msrb.gmra.mxu3 %v12948_v16  ;;  %v11140_v1 = vld [vmem:[%s12442_s27 + $0xc34] sm:$0xf0]  ;;  %v11150_v9 = vld [vmem:[%s12442_s27 + $0xc84] sm:$0xf0] }
 0x2df   : > { %7903 = vmatpush.bf16.msra.mxu3 %v10485_v7  ;;  %v10461_v7 = vor.u32 %v11190_v59, %v10460_v58  ;;  %v10308_v58 = vld [vmem:[%s12442_s27 + $0xc90] sm:$0xf] }
 0x2e0   : > { %7865 = vmatpush.bf16.msra.mxu0 %v10285_v17  ;;  %v7627_v17 = vadd.f32 %v7626_v5, %v7614_v3  ;;  %v10245_v3 = vor.u32 %v11136_v57, %v10244_v56  ;;  %v11134_v5 = vld [vmem:[%s12442_s27 + $0xc04] sm:$0xf0] }
 0x2e1   : > { %7878 = vmatpush.bf16.msra.mxu1 %v10349_v18  ;;  %v10261_v18 = vor.u32 %v11140_v1, %v10260_v0  ;;  %v7628_v59 = vpop.f32.mrf.mxu1  ;;  %v10436_v0 = vld [vmem:[%s12442_s27 + $0xd90] sm:$0xf]  ;;  %v11184_v1 = vld [vmem:[%s12442_s27 + $0xd94] sm:$0xf0]  ;;  %v10237_v39 = vor.u32 %v11134_v5, %v10236_v2  ;;  %v10668_v5 = vld [vmem:[%s12442_s27 + $0xf60] sm:$0xf] }
 0x2e2   : > { %7891 = vmatpush.bf16.msra.mxu2 %v10413_v19  ;;  %v10389_v19 = vor.u32 %v11172_v11, %v10388_v10  ;;  %v10309_v10 = vor.u32 %v11152_v61, %v10308_v58  ;;  %v4923_v59 = vunpack.c.h.b16 %v4365_v26 }
 0x2e3   : > { %7904 = vmatpush.bf16.msra.mxu3 %v10477_v32  ;;  %v7639_v32 = vpop.f32.mrf.mxu2 }
 0x2e4   : > { %7866 = vmatpush.bf16.msra.mxu0 %v10277_v47  ;;  %v7640_v43 = vadd.f32 %v7639_v32, %v7627_v17  ;;  %v7652_v47 = vpop.f32.mrf.mxu3  ;;  %v7615_v53 = vpop.f32.mrf.mxu0  ;;  %v4364_v17 = vld [vmem:[%s13718_s0 + $0x60] sm:$0xff]  ;;  %v10548_v32 = vld [vmem:[%s12442_s27 + $0xe70] sm:$0xf] }
 0x2e5   : > { %7879 = vmatpush.bf16.msra.mxu1 %v10341_v48  ;;  %v10444_v48 = vld [vmem:[%s12442_s27 + $0xda0] sm:$0xf]  ;;  %v10740_v53 = vld [vmem:[%s12442_s27 + $0xff0] sm:$0xf]  ;;  %v4921_v56 = vunpack.c.h.b16 %v4364_v17 }
 0x2e6   : > { %7892 = vmatpush.bf16.msra.mxu2 %v10405_v50  ;;  %v11186_v50 = vld [vmem:[%s12442_s27 + $0xda4] sm:$0xf0]  ;;  %v12987_v52 = vadd.f32 %v7652_v47, %v7640_v43  ;;  %v10676_v43 = vld [vmem:[%s12442_s27 + $0xf70] sm:$0xf]  ;;  %v11244_v47 = vld [vmem:[%s12442_s27 + $0xf74] sm:$0xf0] }
 0x2e7   : > { %7905 = vmatpush.bf16.msra.mxu3 %v10469_v54  ;;  %v10317_v54 = vor.u32 %v11154_v36, %v10316_v27  ;;  %v10612_v36 = vld [vmem:[%s12442_s27 + $0xef0] sm:$0xf]  ;;  %v10677_v61 = vor.u32 %v11244_v47, %v10676_v43 }
 0x2e8   : > { %7867 = vmatpush.bf16.msra.mxu0 %v10269_v60  ;;  %v10445_v60 = vor.u32 %v11186_v50, %v10444_v48  ;;  %v4920_v48 = vunpack.c.l.b16 %v4364_v17 }
 0x2e9   : > { %7880 = vmatpush.bf16.msra.mxu1 %v10333_v62  ;;  %v10372_v62 = vld [vmem:[%s12442_s27 + $0xd10] sm:$0xf] }
 0x2ea   : > { %7893 = vmatpush.bf16.msra.mxu2 %v10397_v63  ;;  %v11168_v63 = vld [vmem:[%s12442_s27 + $0xd14] sm:$0xf0]  ;;  %v13022_v2 = vpack.c.b16 %v4920_v48, %v4920_v48 }
 0x2eb   : > { %7906 = vmatpush.bf16.msra.mxu3 %v10461_v7  ;;  %v10300_v7 = vld [vmem:[%s12442_s27 + $0xc80] sm:$0xf]  ;;  %v10373_v11 = vor.u32 %v11168_v63, %v10372_v62  ;;  %v11210_v63 = vld [vmem:[%s12442_s27 + $0xe64] sm:$0xf0] }
 0x2ec   : > { %7868 = vmatpush.bf16.msra.mxu0 %v10261_v18  ;;  %v7641_v18 = vpop.f32.mrf.mxu2  ;;  %v7654_v27 = vpop.f32.mrf.mxu3  ;;  %v10301_v50 = vor.u32 %v11150_v9, %v10300_v7  ;;  %v10540_v62 = vld [vmem:[%s12442_s27 + $0xe60] sm:$0xf]  ;;  %v11242_v7 = vld [vmem:[%s12442_s27 + $0xf64] sm:$0xf0] }
 0x2ed   : > { %7881 = vmatpush.bf16.msra.mxu1 %v10325_v22  ;;  %v10437_v22 = vor.u32 %v11184_v1, %v10436_v0  ;;  %v10604_v0 = vld [vmem:[%s12442_s27 + $0xee0] sm:$0xf]  ;;  %v10541_v17 = vor.u32 %v11210_v63, %v10540_v62 }
 0x2ee   : > { %7894 = vmatpush.bf16.msra.mxu2 %v10389_v19  ;;  %v10428_v19 = vld [vmem:[%s12442_s27 + $0xd80] sm:$0xf] }
 0x2ef   : > { %7907 = vmatpush.bf16.msra.mxu3 %v10453_v34  ;;  %v11212_v34 = vld [vmem:[%s12442_s27 + $0xe74] sm:$0xf0]  ;;  %v10429_v57 = vor.u32 %v11182_v24, %v10428_v19  ;;  %v10532_v19 = vld [vmem:[%s12442_s27 + $0xe50] sm:$0xf] }
 0x2f0   : > { %7869 = vmatpush.bf16.msra.mxu0 %v10253_v51  ;;  %v10365_v51 = vor.u32 %v11166_v15, %v10364_v14  ;;  %v10549_v58 = vor.u32 %v11212_v34, %v10548_v32  ;;  %v11258_v14 = vld [vmem:[%s12442_s27 + $0xfe4] sm:$0xf0]  ;;  %v13033_v15 = vpack.c.b16 %v4923_v59, %v4923_v59  ;;  %v11208_v24 = vld [vmem:[%s12442_s27 + $0xe54] sm:$0xf0]  ;;  %v10660_v34 = vld [vmem:[%s12442_s27 + $0xf50] sm:$0xf] }
 0x2f1   : > { %7882 = vmatpush.bf16.msra.mxu1 %v10317_v54  ;;  %v11260_v54 = vld [vmem:[%s12442_s27 + $0xff4] sm:$0xf0]  ;;  %v10533_v43 = vor.u32 %v11208_v24, %v10532_v19  ;;  %v10716_v59 = vld [vmem:[%s12442_s27 + $0xfc0] sm:$0xf] }
 0x2f2   : > { %7895 = vmatpush.bf16.msra.mxu2 %v10381_v55  ;;  %v4922_v55 = vunpack.c.l.b16 %v4365_v26  ;;  %v10741_v1 = vor.u32 %v11260_v54, %v10740_v53  ;;  %v10596_v26 = vld [vmem:[%s12442_s27 + $0xed0] sm:$0xf]  ;;  %v11224_v32 = vld [vmem:[%s12442_s27 + $0xed4] sm:$0xf0]  ;;  %v10588_v53 = vld [vmem:[%s12442_s27 + $0xec0] sm:$0xf] }
 0x2f3   : > { %7908 = vmatpush.bf16.msra.mxu3 %v10445_v60  ;;  %v10613_v60 = vor.u32 %v11228_v40, %v10612_v36  ;;  %v11240_v36 = vld [vmem:[%s12442_s27 + $0xf54] sm:$0xf0]  ;;  %v10597_v47 = vor.u32 %v11224_v32, %v10596_v26  ;;  %v10508_v32 = vld [vmem:[%s12442_s27 + $0xe20] sm:$0xf] }
 0x2f4   : > { %7870 = vmatpush.bf16.msra.mxu0 %v10245_v3  ;;  %v11226_v3 = vld [vmem:[%s12442_s27 + $0xee4] sm:$0xf0]  ;;  %v13027_v9 = vpack.c.b16 %v4922_v55, %v4922_v55  ;;  %v11256_v40 = vld [vmem:[%s12442_s27 + $0xfd4] sm:$0xf0]  ;;  %v10661_v48 = vor.u32 %v11240_v36, %v10660_v34  ;;  %v10572_v36 = vld [vmem:[%s12442_s27 + $0xea0] sm:$0xf] }
 0x2f5   : > { %7883 = vmatpush.bf16.msra.mxu1 %v10309_v10  ;;  %v13029_v10 = vpack.c.b16 %v4921_v56, %v4921_v56  ;;  %v10605_v18 = vor.u32 %v11226_v3, %v10604_v0  ;;  %v11222_v55 = vld [vmem:[%s12442_s27 + $0xec4] sm:$0xf0]  ;;  %v10652_v56 = vld [vmem:[%s12442_s27 + $0xf40] sm:$0xf]  ;;  %v10516_v3 = vld [vmem:[%s12442_s27 + $0xe30] sm:$0xf] }
 0x2f6   : > { %7896 = vmatpush.bf16.msra.mxu2 %v10373_v11  ;;  %v10732_v11 = vld [vmem:[%s12442_s27 + $0xfe0] sm:$0xf]  ;;  %v10589_v0 = vor.u32 %v11222_v55, %v10588_v53  ;;  %v11252_v19 = vld [vmem:[%s12442_s27 + $0xfb4] sm:$0xf0]  ;;  %v11202_v34 = vld [vmem:[%s12442_s27 + $0xe24] sm:$0xf0] }
 0x2f7   : > { %7909 = vmatpush.bf16.msra.mxu3 %v10437_v22  ;;  %v10669_v22 = vor.u32 %v11242_v7, %v10668_v5  ;;  %v10733_v27 = vor.u32 %v11258_v14, %v10732_v11  ;;  %v11204_v5 = vld [vmem:[%s12442_s27 + $0xe34] sm:$0xf0]  ;;  %v10580_v7 = vld [vmem:[%s12442_s27 + $0xeb0] sm:$0xf]  ;;  %v10700_v53 = vld [vmem:[%s12442_s27 + $0xfa0] sm:$0xf] }
 0x2f8   : > { %7871 = vmatpush.bf16.msra.mxu0 %v10237_v39  ;;  %v10724_v39 = vld [vmem:[%s12442_s27 + $0xfd0] sm:$0xf]  ;;  %v10517_v24 = vor.u32 %v11204_v5, %v10516_v3  ;;  %v11232_v5 = vld [vmem:[%s12442_s27 + $0xf14] sm:$0xf0] }
 0x2f9   : > { %7884 = vmatpush.bf16.msra.mxu1 %v10301_v50  ;;  %v10524_v50 = vld [vmem:[%s12442_s27 + $0xe40] sm:$0xf]  ;;  %v10725_v54 = vor.u32 %v11256_v40, %v10724_v39  ;;  %v7678_v63 = vpop.f32.mrf.mxu1  ;;  %v10628_v3 = vld [vmem:[%s12442_s27 + $0xf10] sm:$0xf] }
 0x2fa   : > { %7897 = vmatpush.bf16.msra.mxu2 %v10365_v51  ;;  %v11206_v51 = vld [vmem:[%s12442_s27 + $0xe44] sm:$0xf0] }
 0x2fb   : > { %7910 = vmatpush.bf16.msra.mxu3 %v10429_v57  ;;  %7872 = vmatmul.bf16.vlgmr.msra.gmra.mxu0 %v13022_v2  ;;  %v11238_v57 = vld [vmem:[%s12442_s27 + $0xf44] sm:$0xf0]  ;;  %v10525_v62 = vor.u32 %v11206_v51, %v10524_v50 }
 0x2fc   : > { %7916 = vmatpush.bf16.msrb.mxu0 %v10549_v58  ;;  %7885 = vmatmul.bf16.vlgmr.msra.gmra.mxu1 %v13029_v10  ;;  %v7665_v58 = vpop.f32.mrf.mxu0 }
 0x2fd   : > { %7929 = vmatpush.bf16.msrb.mxu1 %v10613_v60  ;;  %7898 = vmatmul.bf16.vlgmr.msra.gmra.mxu2 %v13027_v9  ;;  %v11254_v60 = vld [vmem:[%s12442_s27 + $0xfc4] sm:$0xf0] }
 0x2fe   : > { %7942 = vmatpush.bf16.msrb.mxu2 %v10677_v61  ;;  %7911 = vmatmul.bf16.vlgmr.msra.gmra.mxu3 %v13033_v15  ;;  %v7666_v61 = vadd.f32 %v7665_v58, %v12987_v52  ;;  %v10717_v11 = vor.u32 %v11254_v60, %v10716_v59  ;;  %v11236_v52 = vld [vmem:[%s12442_s27 + $0xf34] sm:$0xf0] }
 0x2ff   : > { %7955 = vmatpush.bf16.msrb.mxu3 %v10741_v1  ;;  %v10653_v1 = vor.u32 %v11238_v57, %v10652_v56  ;;  %v10509_v56 = vor.u32 %v11202_v34, %v10508_v32  ;;  %v4366_v32 = vld [vmem:[%s13718_s0 + $0x70] sm:$0xff] }
 0x300   : > { %7917 = vmatpush.bf16.msrb.mxu0 %v10541_v17  ;;  %v7679_v14 = vadd.f32 %v7678_v63, %v7666_v61  ;;  %v11220_v17 = vld [vmem:[%s12442_s27 + $0xeb4] sm:$0xf0]  ;;  %v7691_v40 = vpop.f32.mrf.mxu2  ;;  %v10500_v61 = vld [vmem:[%s12442_s27 + $0xe10] sm:$0xf] }
 0x301   : > { %7930 = vmatpush.bf16.msrb.mxu1 %v10605_v18  ;;  %v10644_v18 = vld [vmem:[%s12442_s27 + $0xf30] sm:$0xf]  ;;  %v10581_v26 = vor.u32 %v11220_v17, %v10580_v7  ;;  %v7704_v51 = vpop.f32.mrf.mxu3  ;;  %v7680_v57 = vpop.f32.mrf.mxu1 }
 0x302   : > { %7943 = vmatpush.bf16.msrb.mxu2 %v10669_v22  ;;  %v10708_v22 = vld [vmem:[%s12442_s27 + $0xfb0] sm:$0xf]  ;;  %v7692_v50 = vadd.f32 %v7691_v40, %v7679_v14  ;;  %v10492_v14 = vld [vmem:[%s12442_s27 + $0xe00] sm:$0xf]  ;;  %v4924_v57 = vunpack.c.l.b16 %v4366_v32 }
 0x303   : > { %7956 = vmatpush.bf16.msrb.mxu3 %v10733_v27  ;;  %v10645_v27 = vor.u32 %v11236_v52, %v10644_v18  ;;  %v10709_v39 = vor.u32 %v11252_v19, %v10708_v22  ;;  %v10564_v63 = vld [vmem:[%s12442_s27 + $0xe90] sm:$0xf]  ;;  %v11198_v18 = vld [vmem:[%s12442_s27 + $0xe04] sm:$0xf0]  ;;  %v10556_v52 = vld [vmem:[%s12442_s27 + $0xe80] sm:$0xf] }
 0x304   : > { %7918 = vmatpush.bf16.msrb.mxu0 %v10533_v43  ;;  %v11218_v43 = vld [vmem:[%s12442_s27 + $0xea4] sm:$0xf0]  ;;  %v7667_v55 = vpop.f32.mrf.mxu0  ;;  %v13072_v58 = vadd.f32 %v7704_v51, %v7692_v50  ;;  %v10692_v7 = vld [vmem:[%s12442_s27 + $0xf90] sm:$0xf]  ;;  %v10779_v50 = vld [vmem:[%s12442_s27 + $0xf4] sm:$0xf] }
 0x305   : > { %7931 = vmatpush.bf16.msrb.mxu1 %v10597_v47  ;;  %v10636_v47 = vld [vmem:[%s12442_s27 + $0xf20] sm:$0xf]  ;;  %v10573_v59 = vor.u32 %v11218_v43, %v10572_v36  ;;  %v11214_v22 = vld [vmem:[%s12442_s27 + $0xe84] sm:$0xf0]  ;;  %v4367_v40 = vld [vmem:[%s13718_s0 + $0x78] sm:$0xff] }
 0x306   : > { %7944 = vmatpush.bf16.msrb.mxu2 %v10661_v48  ;;  %v11234_v48 = vld [vmem:[%s12442_s27 + $0xf24] sm:$0xf0]  ;;  %v10684_v36 = vld [vmem:[%s12442_s27 + $0xf80] sm:$0xf]  ;;  %v10795_v55 = vld [vmem:[%s12442_s27 + $0x174] sm:$0xf] }
 0x307   : > { %7957 = vmatpush.bf16.msrb.mxu3 %v10725_v54  ;;  %v11250_v54 = vld [vmem:[%s12442_s27 + $0xfa4] sm:$0xf0]  ;;  %v10637_v60 = vor.u32 %v11234_v48, %v10636_v47  ;;  %v10763_v47 = vld [vmem:[%s12442_s27 + $0x74] sm:$0xf]  ;;  %v8758_v48 = vld [vmem:[%s12442_s27 + $0x78] sm:$0xf0] }
 0x308   : > { %7919 = vmatpush.bf16.msrb.mxu0 %v10525_v62  ;;  %v11200_v62 = vld [vmem:[%s12442_s27 + $0xe14] sm:$0xf0]  ;;  %v7693_v43 = vpop.f32.mrf.mxu2 }
 0x309   : > { %7932 = vmatpush.bf16.msrb.mxu1 %v10589_v0  ;;  %v10701_v0 = vor.u32 %v11250_v54, %v10700_v53  ;;  %v10501_v17 = vor.u32 %v11200_v62, %v10500_v61  ;;  %v7706_v51 = vpop.f32.mrf.mxu3  ;;  %v10493_v53 = vor.u32 %v11198_v18, %v10492_v14  ;;  %v8822_v54 = vld [vmem:[%s12442_s27 + $0xf8] sm:$0xf0]  ;;  %v10811_v61 = vld [vmem:[%s12442_s27 + $0x1f4] sm:$0xf]  ;;  %v10761_v14 = vld [vmem:[%s12442_s27 + $0x64] sm:$0xf] }
 0x30a   : > { %7945 = vmatpush.bf16.msrb.mxu2 %v10653_v1  ;;  %v11216_v1 = vld [vmem:[%s12442_s27 + $0xe94] sm:$0xf0]  ;;  %v8950_v62 = vld [vmem:[%s12442_s27 + $0x1f8] sm:$0xf0]  ;;  %v10777_v18 = vld [vmem:[%s12442_s27 + $0xe4] sm:$0xf] }
 0x30b   : > { %7958 = vmatpush.bf16.msrb.mxu3 %v10717_v11  ;;  %v11248_v11 = vld [vmem:[%s12442_s27 + $0xf94] sm:$0xf0]  ;;  %v10565_v19 = vor.u32 %v11216_v1, %v10564_v63  ;;  %v4926_v63 = vunpack.c.l.b16 %v4367_v40  ;;  %v10775_v51 = vld [vmem:[%s12442_s27 + $0xd4] sm:$0xf] }
 0x30c   : > { %7920 = vmatpush.bf16.msrb.mxu0 %v10517_v24  ;;  %v10629_v24 = vor.u32 %v11232_v5, %v10628_v3  ;;  %v10693_v34 = vor.u32 %v11248_v11, %v10692_v7  ;;  %v8761_v3 = vor.u32 %v10763_v47, %v8758_v48  ;;  %v4927_v5 = vunpack.c.h.b16 %v4367_v40  ;;  %v10759_v48 = vld [vmem:[%s12442_s27 + $0x54] sm:$0xf] }
 0x30d   : > { %7933 = vmatpush.bf16.msrb.mxu1 %v10581_v26  ;;  %v10620_v26 = vld [vmem:[%s12442_s27 + $0xf00] sm:$0xf]  ;;  %v8825_v7 = vor.u32 %v10779_v50, %v8822_v54  ;;  %v8742_v50 = vld [vmem:[%s12442_s27 + $0x58] sm:$0xf0] }
 0x30e   : > { %7946 = vmatpush.bf16.msrb.mxu2 %v10645_v27  ;;  %v11230_v27 = vld [vmem:[%s12442_s27 + $0xf04] sm:$0xf0]  ;;  %v8806_v54 = vld [vmem:[%s12442_s27 + $0xd8] sm:$0xf0] }
 0x30f   : > { %7959 = vmatpush.bf16.msrb.mxu3 %v10709_v39  ;;  %v11246_v39 = vld [vmem:[%s12442_s27 + $0xf84] sm:$0xf0] }
 0x310   : > { %7921 = vmatpush.bf16.msrb.mxu0 %v10509_v56  ;;  %v8886_v56 = vld [vmem:[%s12442_s27 + $0x178] sm:$0xf0]  ;;  %v10685_v1 = vor.u32 %v11246_v39, %v10684_v36  ;;  %v8942_v36 = vld [vmem:[%s12442_s27 + $0x1e8] sm:$0xf0]  ;;  %v13118_v39 = vpack.c.b16 %v4927_v5, %v4927_v5 }
 0x311   : > { %7934 = vmatpush.bf16.msrb.mxu1 %v10573_v59  ;;  %v10557_v59 = vor.u32 %v11214_v22, %v10556_v52  ;;  %v8889_v11 = vor.u32 %v10795_v55, %v8886_v56  ;;  %v8953_v52 = vor.u32 %v10811_v61, %v8950_v62  ;;  %v13107_v22 = vpack.c.b16 %v4924_v57, %v4924_v57  ;;  %v10791_v55 = vld [vmem:[%s12442_s27 + $0x154] sm:$0xf]  ;;  %v8870_v56 = vld [vmem:[%s12442_s27 + $0x158] sm:$0xf0]  ;;  %v8798_v5 = vld [vmem:[%s12442_s27 + $0xc8] sm:$0xf0] }
 0x312   : > { %7947 = vmatpush.bf16.msrb.mxu2 %v10637_v60  ;;  %v10621_v60 = vor.u32 %v11230_v27, %v10620_v26  ;;  %v8878_v26 = vld [vmem:[%s12442_s27 + $0x168] sm:$0xf0]  ;;  %v13112_v27 = vpack.c.b16 %v4926_v63, %v4926_v63  ;;  %v10807_v57 = vld [vmem:[%s12442_s27 + $0x1d4] sm:$0xf]  ;;  %v8809_v61 = vor.u32 %v10775_v51, %v8806_v54  ;;  %v8873_v62 = vor.u32 %v10791_v55, %v8870_v56  ;;  %v10757_v63 = vld [vmem:[%s12442_s27 + $0x44] sm:$0xf] }
 0x313   : > { %7960 = vmatpush.bf16.msrb.mxu3 %v10701_v0  ;;  %v4925_v0 = vunpack.c.h.b16 %v4366_v32  ;;  %v10787_v51 = vld [vmem:[%s12442_s27 + $0x134] sm:$0xf]  ;;  %v8918_v54 = vld [vmem:[%s12442_s27 + $0x1b8] sm:$0xf0] }
 0x314   : > { %7922 = vmatpush.bf16.msrb.mxu0 %v10501_v17  ;;  %v8750_v17 = vld [vmem:[%s12442_s27 + $0x68] sm:$0xf0] }
 0x315   : > { %7935 = vmatpush.bf16.msrb.mxu1 %v10565_v19  ;;  %v8814_v19 = vld [vmem:[%s12442_s27 + $0xe8] sm:$0xf0]  ;;  %v13114_v32 = vpack.c.b16 %v4925_v0, %v4925_v0  ;;  %v8753_v40 = vor.u32 %v10761_v14, %v8750_v17  ;;  %v10805_v17 = vld [vmem:[%s12442_s27 + $0x1c4] sm:$0xf] }
 0x316   : > { %7948 = vmatpush.bf16.msrb.mxu2 %v10629_v24  ;;  %v10793_v24 = vld [vmem:[%s12442_s27 + $0x164] sm:$0xf]  ;;  %v8817_v43 = vor.u32 %v10777_v18, %v8814_v19  ;;  %v8734_v0 = vld [vmem:[%s12442_s27 + $0x48] sm:$0xf0] }
 0x317   : > { %7961 = vmatpush.bf16.msrb.mxu3 %v10693_v34  ;;  %v10809_v34 = vld [vmem:[%s12442_s27 + $0x1e4] sm:$0xf]  ;;  %v8881_v47 = vor.u32 %v10793_v24, %v8878_v26  ;;  %v8926_v18 = vld [vmem:[%s12442_s27 + $0x1c8] sm:$0xf0]  ;;  %v8737_v19 = vor.u32 %v10757_v63, %v8734_v0 }
 0x318   : > { %7923 = vmatpush.bf16.msrb.mxu0 %v10493_v53  ;;  %v8945_v53 = vor.u32 %v10809_v34, %v8942_v36  ;;  %v7717_v14 = vpop.f32.mrf.mxu0  ;;  %v10755_v36 = vld [vmem:[%s12442_s27 + $0x34] sm:$0xf]  ;;  %v8782_v0 = vld [vmem:[%s12442_s27 + $0xa8] sm:$0xf0] }
 0x319   : > { %7936 = vmatpush.bf16.msrb.mxu1 %v10557_v59  ;;  %v8934_v59 = vld [vmem:[%s12442_s27 + $0x1d8] sm:$0xf0]  ;;  %v7730_v24 = vpop.f32.mrf.mxu1 }
 0x31a   : > { %7949 = vmatpush.bf16.msrb.mxu2 %v10621_v60  ;;  %v8745_v60 = vor.u32 %v10759_v48, %v8742_v50  ;;  %v8790_v50 = vld [vmem:[%s12442_s27 + $0xb8] sm:$0xf0] }
 0x31b   : > { %7962 = vmatpush.bf16.msrb.mxu3 %v10685_v1  ;;  %7924 = vmatmul.bf16.vlgmr.msrb.gmra.mxu0 %v13107_v22  ;;  %v10773_v1 = vld [vmem:[%s12442_s27 + $0xc4] sm:$0xf] }
 0x31c   : > { %7968 = vmatpush.bf16.msra.mxu0 %v8761_v3  ;;  %7937 = vmatmul.bf16.vlgmr.msrb.gmra.mxu1 %v13114_v32  ;;  %v8937_v3 = vor.u32 %v10807_v57, %v8934_v59  ;;  %v8801_v26 = vor.u32 %v10773_v1, %v8798_v5  ;;  %v10753_v59 = vld [vmem:[%s12442_s27 + $0x24] sm:$0xf] }
 0x31d   : > { %7981 = vmatpush.bf16.msra.mxu1 %v8825_v7  ;;  %7950 = vmatmul.bf16.vlgmr.msrb.gmra.mxu2 %v13112_v27  ;;  %v10789_v7 = vld [vmem:[%s12442_s27 + $0x144] sm:$0xf] }
 0x31e   : > { %7994 = vmatpush.bf16.msra.mxu2 %v8889_v11  ;;  %7963 = vmatmul.bf16.vlgmr.msrb.gmra.mxu3 %v13118_v39  ;;  %v8862_v11 = vld [vmem:[%s12442_s27 + $0x148] sm:$0xf0]  ;;  %v10785_v1 = vld [vmem:[%s12442_s27 + $0x124] sm:$0xf] }
 0x31f   : > { %8007 = vmatpush.bf16.msra.mxu3 %v8953_v52  ;;  %v7718_v52 = vadd.f32 %v7717_v14, %v13072_v58  ;;  %v8865_v34 = vor.u32 %v10789_v7, %v8862_v11  ;;  %v8854_v58 = vld [vmem:[%s12442_s27 + $0x138] sm:$0xf0]  ;;  %v10801_v11 = vld [vmem:[%s12442_s27 + $0x1a4] sm:$0xf]  ;;  %v8910_v14 = vld [vmem:[%s12442_s27 + $0x1a8] sm:$0xf0] }
 0x320   : > { %7969 = vmatpush.bf16.msra.mxu0 %v8753_v40  ;;  %v8726_v40 = vld [vmem:[%s12442_s27 + $0x38] sm:$0xf0]  ;;  %v8857_v57 = vor.u32 %v10787_v51, %v8854_v58  ;;  %v7743_v63 = vpop.f32.mrf.mxu2  ;;  %v10799_v51 = vld [vmem:[%s12442_s27 + $0x194] sm:$0xf] }
 0x321   : > { %7982 = vmatpush.bf16.msra.mxu1 %v8817_v43  ;;  %v10771_v43 = vld [vmem:[%s12442_s27 + $0xb4] sm:$0xf]  ;;  %v7731_v48 = vadd.f32 %v7730_v24, %v7718_v52  ;;  %v8729_v55 = vor.u32 %v10755_v36, %v8726_v40  ;;  %v7756_v7 = vpop.f32.mrf.mxu3  ;;  %v7732_v52 = vpop.f32.mrf.mxu1  ;;  %v8710_v36 = vld [vmem:[%s12442_s27 + $0x18] sm:$0xf0] }
 0x322   : > { %7995 = vmatpush.bf16.msra.mxu2 %v8881_v47  ;;  %v8929_v47 = vor.u32 %v10805_v17, %v8926_v18  ;;  %v8793_v56 = vor.u32 %v10771_v43, %v8790_v50  ;;  %v7719_v17 = vpop.f32.mrf.mxu0  ;;  %v10767_v40 = vld [vmem:[%s12442_s27 + $0x94] sm:$0xf]  ;;  %v8913_v43 = vor.u32 %v10801_v11, %v8910_v14  ;;  %v8838_v50 = vld [vmem:[%s12442_s27 + $0x118] sm:$0xf0] }
 0x323   : > { %8008 = vmatpush.bf16.msra.mxu3 %v8945_v53  ;;  %v10803_v53 = vld [vmem:[%s12442_s27 + $0x1b4] sm:$0xf]  ;;  %v7744_v5 = vadd.f32 %v7743_v63, %v7731_v48  ;;  %v8902_v58 = vld [vmem:[%s12442_s27 + $0x198] sm:$0xf0]  ;;  %v8830_v63 = vld [vmem:[%s12442_s27 + $0x108] sm:$0xf0] }
 0x324   : > { %7970 = vmatpush.bf16.msra.mxu0 %v8745_v60  ;;  %v8718_v60 = vld [vmem:[%s12442_s27 + $0x28] sm:$0xf0]  ;;  %v10783_v48 = vld [vmem:[%s12442_s27 + $0x114] sm:$0xf] }
 0x325   : > { %7983 = vmatpush.bf16.msra.mxu1 %v8809_v61  ;;  %v10769_v61 = vld [vmem:[%s12442_s27 + $0xa4] sm:$0xf]  ;;  %v8721_v18 = vor.u32 %v10753_v59, %v8718_v60  ;;  %v8766_v60 = vld [vmem:[%s12442_s27 + $0x88] sm:$0xf0]  ;;  %v10843_v11 = vld [vmem:[%s12442_s27 + $0x2f4] sm:$0xf] }
 0x326   : > { %7996 = vmatpush.bf16.msra.mxu2 %v8873_v62  ;;  %v8921_v62 = vor.u32 %v10803_v53, %v8918_v54  ;;  %v8785_v24 = vor.u32 %v10769_v61, %v8782_v0  ;;  %v10749_v54 = vld [vmem:[%s12442_s27 + $0x4] sm:$0xf]  ;;  %v10859_v52 = vld [vmem:[%s12442_s27 + $0x374] sm:$0xf] }
 0x327   : > { %8009 = vmatpush.bf16.msra.mxu3 %v8937_v3  ;;  %v8846_v3 = vld [vmem:[%s12442_s27 + $0x128] sm:$0xf0]  ;;  %v10765_v59 = vld [vmem:[%s12442_s27 + $0x84] sm:$0xf] }
 0x328   : > { %7971 = vmatpush.bf16.msra.mxu0 %v8737_v19  ;;  %v13157_v19 = vadd.f32 %v7756_v7, %v7744_v5  ;;  %v10781_v61 = vld [vmem:[%s12442_s27 + $0x104] sm:$0xf]  ;;  %v10827_v5 = vld [vmem:[%s12442_s27 + $0x274] sm:$0xf]  ;;  %v9014_v7 = vld [vmem:[%s12442_s27 + $0x278] sm:$0xf0] }
 0x329   : > { %7984 = vmatpush.bf16.msra.mxu1 %v8801_v26  ;;  %v8849_v26 = vor.u32 %v10785_v1, %v8846_v3  ;;  %v10797_v0 = vld [vmem:[%s12442_s27 + $0x184] sm:$0xf]  ;;  %v8894_v1 = vld [vmem:[%s12442_s27 + $0x188] sm:$0xf0]  ;;  %v7745_v3 = vpop.f32.mrf.mxu2  ;;  %v7758_v14 = vpop.f32.mrf.mxu3 }
 0x32a   : > { %7997 = vmatpush.bf16.msra.mxu2 %v8865_v34  ;;  %v10751_v34 = vld [vmem:[%s12442_s27 + $0x14] sm:$0xf]  ;;  %v9126_v14 = vld [vmem:[%s12442_s27 + $0x358] sm:$0xf0] }
 0x32b   : > { %8010 = vmatpush.bf16.msra.mxu3 %v8929_v47  ;;  %v8774_v47 = vld [vmem:[%s12442_s27 + $0x98] sm:$0xf0]  ;;  %v8713_v53 = vor.u32 %v10751_v34, %v8710_v36  ;;  %v8833_v34 = vor.u32 %v10781_v61, %v8830_v63  ;;  %v10875_v36 = vld [vmem:[%s12442_s27 + $0x3f4] sm:$0xf] }
 0x32c   : > { %7972 = vmatpush.bf16.msra.mxu0 %v8729_v55  ;;  %v8702_v55 = vld [vmem:[%s12442_s27 + $0x8] sm:$0xf0]  ;;  %v10839_v3 = vld [vmem:[%s12442_s27 + $0x2d4] sm:$0xf] }
 0x32d   : > { %7985 = vmatpush.bf16.msra.mxu1 %v8793_v56  ;;  %v8777_v56 = vor.u32 %v10767_v40, %v8774_v47  ;;  %v8705_v17 = vor.u32 %v10749_v54, %v8702_v55  ;;  %v9206_v40 = vld [vmem:[%s12442_s27 + $0x3f8] sm:$0xf0]  ;;  %v9017_v47 = vor.u32 %v10827_v5, %v9014_v7  ;;  %v9070_v55 = vld [vmem:[%s12442_s27 + $0x2e8] sm:$0xf0] }
 0x32e   : > { %7998 = vmatpush.bf16.msra.mxu2 %v8857_v57  ;;  %v8841_v57 = vor.u32 %v10783_v48, %v8838_v50  ;;  %v9209_v54 = vor.u32 %v10875_v36, %v9206_v40  ;;  %v9062_v7 = vld [vmem:[%s12442_s27 + $0x2d8] sm:$0xf0]  ;;  %v10837_v36 = vld [vmem:[%s12442_s27 + $0x2c4] sm:$0xf] }
 0x32f   : > { %8011 = vmatpush.bf16.msra.mxu3 %v8921_v62  ;;  %v8905_v62 = vor.u32 %v10799_v51, %v8902_v58  ;;  %v10825_v51 = vld [vmem:[%s12442_s27 + $0x264] sm:$0xf]  ;;  %v9006_v58 = vld [vmem:[%s12442_s27 + $0x268] sm:$0xf0] }
 0x330   : > { %7973 = vmatpush.bf16.msra.mxu0 %v8721_v18  ;;  %v9078_v18 = vld [vmem:[%s12442_s27 + $0x2f8] sm:$0xf0]  ;;  %v9009_v61 = vor.u32 %v10825_v51, %v9006_v58 }
 0x331   : > { %7986 = vmatpush.bf16.msra.mxu1 %v8785_v24  ;;  %v9142_v24 = vld [vmem:[%s12442_s27 + $0x378] sm:$0xf0]  ;;  %v9081_v48 = vor.u32 %v10843_v11, %v9078_v18  ;;  %v10855_v11 = vld [vmem:[%s12442_s27 + $0x354] sm:$0xf] }
 0x332   : > { %7999 = vmatpush.bf16.msra.mxu2 %v8849_v26  ;;  %v8769_v26 = vor.u32 %v10765_v59, %v8766_v60  ;;  %v9145_v50 = vor.u32 %v10859_v52, %v9142_v24  ;;  %v10873_v59 = vld [vmem:[%s12442_s27 + $0x3e4] sm:$0xf]  ;;  %v9198_v60 = vld [vmem:[%s12442_s27 + $0x3e8] sm:$0xf0]  ;;  %v9190_v18 = vld [vmem:[%s12442_s27 + $0x3d8] sm:$0xf0]  ;;  %v9065_v24 = vor.u32 %v10839_v3, %v9062_v7 }
 0x333   : > { %8012 = vmatpush.bf16.msra.mxu3 %v8913_v43  ;;  %v8897_v43 = vor.u32 %v10797_v0, %v8894_v1  ;;  %v10823_v0 = vld [vmem:[%s12442_s27 + $0x254] sm:$0xf]  ;;  %v8998_v1 = vld [vmem:[%s12442_s27 + $0x258] sm:$0xf0]  ;;  %v9201_v5 = vor.u32 %v10873_v59, %v9198_v60  ;;  %v10817_v7 = vld [vmem:[%s12442_s27 + $0x224] sm:$0xf] }
 0x334   : > { %7974 = vmatpush.bf16.msra.mxu0 %v8713_v53  ;;  %v10841_v53 = vld [vmem:[%s12442_s27 + $0x2e4] sm:$0xf]  ;;  %v9001_v52 = vor.u32 %v10823_v0, %v8998_v1  ;;  %v9174_v0 = vld [vmem:[%s12442_s27 + $0x3b8] sm:$0xf0] }
 0x335   : > { %7987 = vmatpush.bf16.msra.mxu1 %v8777_v56  ;;  %v10857_v56 = vld [vmem:[%s12442_s27 + $0x364] sm:$0xf] }
 0x336   : > { %8000 = vmatpush.bf16.msra.mxu2 %v8841_v57  ;;  %v9134_v57 = vld [vmem:[%s12442_s27 + $0x368] sm:$0xf0] }
 0x337   : > { %8013 = vmatpush.bf16.msra.mxu3 %v8905_v62  ;;  %v9073_v62 = vor.u32 %v10841_v53, %v9070_v55  ;;  %v9137_v63 = vor.u32 %v10857_v56, %v9134_v57  ;;  %v10819_v55 = vld [vmem:[%s12442_s27 + $0x234] sm:$0xf]  ;;  %v8982_v56 = vld [vmem:[%s12442_s27 + $0x238] sm:$0xf0] }
 0x338   : > { %7975 = vmatpush.bf16.msra.mxu0 %v8705_v17  ;;  %v10871_v17 = vld [vmem:[%s12442_s27 + $0x3d4] sm:$0xf]  ;;  %v8985_v1 = vor.u32 %v10819_v55, %v8982_v56  ;;  %v9094_v56 = vld [vmem:[%s12442_s27 + $0x318] sm:$0xf0] }
 0x339   : > { %7988 = vmatpush.bf16.msra.mxu1 %v8769_v26  ;;  %v9129_v26 = vor.u32 %v10855_v11, %v9126_v14  ;;  %v9193_v40 = vor.u32 %v10871_v17, %v9190_v18  ;;  %v7782_v58 = vpop.f32.mrf.mxu1  ;;  %v10835_v57 = vld [vmem:[%s12442_s27 + $0x2b4] sm:$0xf]  ;;  %v8974_v11 = vld [vmem:[%s12442_s27 + $0x228] sm:$0xf0]  ;;  %v10833_v14 = vld [vmem:[%s12442_s27 + $0x2a4] sm:$0xf] }
 0x33a   : > { %8001 = vmatpush.bf16.msra.mxu2 %v8833_v34  ;;  %v8990_v34 = vld [vmem:[%s12442_s27 + $0x248] sm:$0xf0]  ;;  %v10847_v55 = vld [vmem:[%s12442_s27 + $0x314] sm:$0xf] }
 0x33b   : > { %8014 = vmatpush.bf16.msra.mxu3 %v8897_v43  ;;  %7976 = vmatmul.bf16.vlgmr.msra.gmra.mxu0 %v12551_v20  ;;  %v9054_v20 = vld [vmem:[%s12442_s27 + $0x2c8] sm:$0xf0] }
 0x33c   : > { %8020 = vmatpush.bf16.msrb.mxu0 %v9017_v47  ;;  %7989 = vmatmul.bf16.vlgmr.msra.gmra.mxu1 %v12554_v21  ;;  %v9118_v43 = vld [vmem:[%s12442_s27 + $0x348] sm:$0xf0]  ;;  %v7769_v47 = vpop.f32.mrf.mxu0  ;;  %v9057_v53 = vor.u32 %v10837_v36, %v9054_v20  ;;  %v10865_v36 = vld [vmem:[%s12442_s27 + $0x3a4] sm:$0xf] }
 0x33d   : > { %8033 = vmatpush.bf16.msrb.mxu1 %v9081_v48  ;;  %8002 = vmatmul.bf16.vlgmr.msra.gmra.mxu2 %v12535_v4  ;;  %v10821_v4 = vld [vmem:[%s12442_s27 + $0x244] sm:$0xf]  ;;  %v7770_v21 = vadd.f32 %v7769_v47, %v13157_v19  ;;  %v9110_v19 = vld [vmem:[%s12442_s27 + $0x338] sm:$0xf0] }
 0x33e   : > { %8046 = vmatpush.bf16.msrb.mxu2 %v9145_v50  ;;  %8015 = vmatmul.bf16.vlgmr.msra.gmra.mxu3 %v12540_v6  ;;  %v10853_v6 = vld [vmem:[%s12442_s27 + $0x344] sm:$0xf]  ;;  %v9182_v50 = vld [vmem:[%s12442_s27 + $0x3c8] sm:$0xf0]  ;;  %v8993_v51 = vor.u32 %v10821_v4, %v8990_v34 }
 0x33f   : > { %8059 = vmatpush.bf16.msrb.mxu3 %v9209_v54  ;;  %v10869_v48 = vld [vmem:[%s12442_s27 + $0x3c4] sm:$0xf]  ;;  %v9121_v54 = vor.u32 %v10853_v6, %v9118_v43  ;;  %v7783_v60 = vadd.f32 %v7782_v58, %v7770_v21  ;;  %v8977_v6 = vor.u32 %v10817_v7, %v8974_v11  ;;  %v10815_v21 = vld [vmem:[%s12442_s27 + $0x214] sm:$0xf]  ;;  %v9086_v7 = vld [vmem:[%s12442_s27 + $0x308] sm:$0xf0] }
 0x340   : > { %8021 = vmatpush.bf16.msrb.mxu0 %v9009_v61  ;;  %v9185_v59 = vor.u32 %v10869_v48, %v9182_v50  ;;  %v9046_v61 = vld [vmem:[%s12442_s27 + $0x2b8] sm:$0xf0]  ;;  %v7795_v18 = vpop.f32.mrf.mxu2  ;;  %v10831_v58 = vld [vmem:[%s12442_s27 + $0x294] sm:$0xf]  ;;  %v10861_v11 = vld [vmem:[%s12442_s27 + $0x384] sm:$0xf] }
 0x341   : > { %8034 = vmatpush.bf16.msrb.mxu1 %v9073_v62  ;;  %v10851_v62 = vld [vmem:[%s12442_s27 + $0x334] sm:$0xf]  ;;  %v9049_v3 = vor.u32 %v10835_v57, %v9046_v61  ;;  %v7796_v4 = vadd.f32 %v7795_v18, %v7783_v60  ;;  %v7808_v34 = vpop.f32.mrf.mxu3  ;;  %v7784_v43 = vpop.f32.mrf.mxu1  ;;  %v10813_v61 = vld [vmem:[%s12442_s27 + $0x204] sm:$0xf] }
 0x342   : > { %8047 = vmatpush.bf16.msrb.mxu2 %v9137_v63  ;;  %v10867_v63 = vld [vmem:[%s12442_s27 + $0x3b4] sm:$0xf] }
 0x343   : > { %8060 = vmatpush.bf16.msrb.mxu3 %v9201_v5  ;;  %v9113_v5 = vor.u32 %v10851_v62, %v9110_v19  ;;  %v9177_v17 = vor.u32 %v10867_v63, %v9174_v0  ;;  %v13228_v47 = vadd.f32 %v7808_v34, %v7796_v4  ;;  %v10863_v57 = vld [vmem:[%s12442_s27 + $0x394] sm:$0xf]  ;;  %v8958_v62 = vld [vmem:[%s12442_s27 + $0x208] sm:$0xf0]  ;;  %v9097_v63 = vor.u32 %v10847_v55, %v9094_v56  ;;  %v10829_v0 = vld [vmem:[%s12442_s27 + $0x284] sm:$0xf] }
 0x344   : > { %8022 = vmatpush.bf16.msrb.mxu0 %v9001_v52  ;;  %v9038_v52 = vld [vmem:[%s12442_s27 + $0x2a8] sm:$0xf0]  ;;  %v7771_v20 = vpop.f32.mrf.mxu0  ;;  %v10891_v18 = vld [vmem:[%s12442_s27 + $0x474] sm:$0xf]  ;;  %v8961_v4 = vor.u32 %v10813_v61, %v8958_v62  ;;  %v9334_v34 = vld [vmem:[%s12442_s27 + $0x4f8] sm:$0xf0] }
 0x345   : > { %8035 = vmatpush.bf16.msrb.mxu1 %v9065_v24  ;;  %v10849_v24 = vld [vmem:[%s12442_s27 + $0x324] sm:$0xf]  ;;  %v9041_v48 = vor.u32 %v10833_v14, %v9038_v52  ;;  %v9150_v14 = vld [vmem:[%s12442_s27 + $0x388] sm:$0xf0]  ;;  %v9270_v52 = vld [vmem:[%s12442_s27 + $0x478] sm:$0xf0] }
 0x346   : > { %8048 = vmatpush.bf16.msrb.mxu2 %v9129_v26  ;;  %v9102_v26 = vld [vmem:[%s12442_s27 + $0x328] sm:$0xf0]  ;;  %v10939_v43 = vld [vmem:[%s12442_s27 + $0x5f4] sm:$0xf]  ;;  %v10905_v55 = vld [vmem:[%s12442_s27 + $0x4e4] sm:$0xf] }
 0x347   : > { %8061 = vmatpush.bf16.msrb.mxu3 %v9193_v40  ;;  %v9166_v40 = vld [vmem:[%s12442_s27 + $0x3a8] sm:$0xf0]  ;;  %v9105_v50 = vor.u32 %v10849_v24, %v9102_v26  ;;  %v10907_v24 = vld [vmem:[%s12442_s27 + $0x4f4] sm:$0xf]  ;;  %v10937_v61 = vld [vmem:[%s12442_s27 + $0x5e4] sm:$0xf] }
 0x348   : > { %8023 = vmatpush.bf16.msrb.mxu0 %v8993_v51  ;;  %v8966_v51 = vld [vmem:[%s12442_s27 + $0x218] sm:$0xf0]  ;;  %v9454_v62 = vld [vmem:[%s12442_s27 + $0x5e8] sm:$0xf0] }
 0x349   : > { %8036 = vmatpush.bf16.msrb.mxu1 %v9057_v53  ;;  %v9169_v53 = vor.u32 %v10865_v36, %v9166_v40  ;;  %v8969_v60 = vor.u32 %v10815_v21, %v8966_v51  ;;  %v7810_v26 = vpop.f32.mrf.mxu3  ;;  %v10923_v36 = vld [vmem:[%s12442_s27 + $0x574] sm:$0xf]  ;;  %v9398_v40 = vld [vmem:[%s12442_s27 + $0x578] sm:$0xf0]  ;;  %v9273_v21 = vor.u32 %v10891_v18, %v9270_v52  ;;  %v9337_v51 = vor.u32 %v10907_v24, %v9334_v34  ;;  %v9246_v34 = vld [vmem:[%s12442_s27 + $0x448] sm:$0xf0] }
 0x34a   : > { %8049 = vmatpush.bf16.msrb.mxu2 %v9121_v54  ;;  %v9030_v54 = vld [vmem:[%s12442_s27 + $0x298] sm:$0xf0]  ;;  %v10935_v18 = vld [vmem:[%s12442_s27 + $0x5d4] sm:$0xf] }
 0x34b   : > { %8062 = vmatpush.bf16.msrb.mxu3 %v9185_v59  ;;  %v9158_v59 = vld [vmem:[%s12442_s27 + $0x398] sm:$0xf0]  ;;  %v9033_v19 = vor.u32 %v10831_v58, %v9030_v54  ;;  %v9401_v58 = vor.u32 %v10923_v36, %v9398_v40  ;;  %v9262_v54 = vld [vmem:[%s12442_s27 + $0x468] sm:$0xf0]  ;;  %v10917_v40 = vld [vmem:[%s12442_s27 + $0x544] sm:$0xf] }
 0x34c   : > { %8024 = vmatpush.bf16.msrb.mxu0 %v8985_v1  ;;  %v9022_v1 = vld [vmem:[%s12442_s27 + $0x288] sm:$0xf0]  ;;  %v9446_v52 = vld [vmem:[%s12442_s27 + $0x5d8] sm:$0xf0] }
 0x34d   : > { %8037 = vmatpush.bf16.msrb.mxu1 %v9049_v3  ;;  %v10845_v3 = vld [vmem:[%s12442_s27 + $0x304] sm:$0xf]  ;;  %v9025_v20 = vor.u32 %v10829_v0, %v9022_v1  ;;  %v10887_v1 = vld [vmem:[%s12442_s27 + $0x454] sm:$0xf]  ;;  %v9310_v36 = vld [vmem:[%s12442_s27 + $0x4c8] sm:$0xf0] }
 0x34e   : > { %8050 = vmatpush.bf16.msrb.mxu2 %v9113_v5  ;;  %v9161_v5 = vor.u32 %v10863_v57, %v9158_v59  ;;  %v9326_v57 = vld [vmem:[%s12442_s27 + $0x4e8] sm:$0xf0]  ;;  %v10921_v59 = vld [vmem:[%s12442_s27 + $0x564] sm:$0xf] }
 0x34f   : > { %8063 = vmatpush.bf16.msrb.mxu3 %v9177_v17  ;;  %v7797_v17 = vpop.f32.mrf.mxu2 }
 0x350   : > { %8025 = vmatpush.bf16.msrb.mxu0 %v8977_v6  ;;  %v9089_v6 = vor.u32 %v10845_v3, %v9086_v7  ;;  %v9254_v3 = vld [vmem:[%s12442_s27 + $0x458] sm:$0xf0]  ;;  %v9457_v7 = vor.u32 %v10937_v61, %v9454_v62  ;;  %v10931_v61 = vld [vmem:[%s12442_s27 + $0x5b4] sm:$0xf] }
 0x351   : > { %8038 = vmatpush.bf16.msrb.mxu1 %v9041_v48  ;;  %v9462_v48 = vld [vmem:[%s12442_s27 + $0x5f8] sm:$0xf0]  ;;  %v9257_v24 = vor.u32 %v10887_v1, %v9254_v3  ;;  %v10881_v1 = vld [vmem:[%s12442_s27 + $0x424] sm:$0xf]  ;;  %v9230_v3 = vld [vmem:[%s12442_s27 + $0x428] sm:$0xf0] }
 0x352   : > { %8051 = vmatpush.bf16.msrb.mxu2 %v9105_v50  ;;  %v9153_v50 = vor.u32 %v10861_v11, %v9150_v14  ;;  %v9465_v56 = vor.u32 %v10939_v43, %v9462_v48  ;;  %v9318_v11 = vld [vmem:[%s12442_s27 + $0x4d8] sm:$0xf0]  ;;  %v10919_v14 = vld [vmem:[%s12442_s27 + $0x554] sm:$0xf]  ;;  %v10933_v43 = vld [vmem:[%s12442_s27 + $0x5c4] sm:$0xf] }
 0x353   : > { %8064 = vmatpush.bf16.msrb.mxu3 %v9169_v53  ;;  %v10889_v53 = vld [vmem:[%s12442_s27 + $0x464] sm:$0xf]  ;;  %v9382_v17 = vld [vmem:[%s12442_s27 + $0x558] sm:$0xf0]  ;;  %v9438_v48 = vld [vmem:[%s12442_s27 + $0x5c8] sm:$0xf0] }
 0x354   : > { %8026 = vmatpush.bf16.msrb.mxu0 %v8969_v60  ;;  %v9390_v60 = vld [vmem:[%s12442_s27 + $0x568] sm:$0xf0]  ;;  %v9385_v26 = vor.u32 %v10919_v14, %v9382_v17  ;;  %v9430_v62 = vld [vmem:[%s12442_s27 + $0x5b8] sm:$0xf0]  ;;  %v10913_v17 = vld [vmem:[%s12442_s27 + $0x524] sm:$0xf] }
 0x355   : > { %8039 = vmatpush.bf16.msrb.mxu1 %v9033_v19  ;;  %v9265_v19 = vor.u32 %v10889_v53, %v9262_v54  ;;  %v9393_v0 = vor.u32 %v10921_v59, %v9390_v60  ;;  %v10883_v53 = vld [vmem:[%s12442_s27 + $0x434] sm:$0xf]  ;;  %v9238_v54 = vld [vmem:[%s12442_s27 + $0x438] sm:$0xf0]  ;;  %v9294_v14 = vld [vmem:[%s12442_s27 + $0x4a8] sm:$0xf0] }
 0x356   : > { %8052 = vmatpush.bf16.msrb.mxu2 %v9097_v63  ;;  %v9329_v63 = vor.u32 %v10905_v55, %v9326_v57  ;;  %v10899_v55 = vld [vmem:[%s12442_s27 + $0x4b4] sm:$0xf]  ;;  %v9302_v59 = vld [vmem:[%s12442_s27 + $0x4b8] sm:$0xf0] }
 0x357   : > { %8065 = vmatpush.bf16.msrb.mxu3 %v9161_v5  ;;  %v10903_v5 = vld [vmem:[%s12442_s27 + $0x4d4] sm:$0xf] }
 0x358   : > { %8027 = vmatpush.bf16.msrb.mxu0 %v8961_v4  ;;  %v10885_v4 = vld [vmem:[%s12442_s27 + $0x444] sm:$0xf]  ;;  %v10915_v60 = vld [vmem:[%s12442_s27 + $0x534] sm:$0xf] }
 0x359   : > { %8040 = vmatpush.bf16.msrb.mxu1 %v9025_v20  ;;  %v9374_v20 = vld [vmem:[%s12442_s27 + $0x548] sm:$0xf0] }
 0x35a   : > { %8053 = vmatpush.bf16.msrb.mxu2 %v9089_v6  ;;  %v7821_v6 = vpop.f32.mrf.mxu0 }
 0x35b   : > { %8066 = vmatpush.bf16.msrb.mxu3 %v9153_v50  ;;  %8028 = vmatmul.bf16.vlgmr.msrb.gmra.mxu0 %v12614_v41  ;;  %v10901_v41 = vld [vmem:[%s12442_s27 + $0x4c4] sm:$0xf]  ;;  %v9249_v50 = vor.u32 %v10885_v4, %v9246_v34  ;;  %v9233_v34 = vor.u32 %v10881_v1, %v9230_v3  ;;  %v10955_v1 = vld [vmem:[%s12442_s27 + $0x674] sm:$0xf]  ;;  %v9526_v3 = vld [vmem:[%s12442_s27 + $0x678] sm:$0xf0] }
 0x35c   : > { %8072 = vmatpush.bf16.msra.mxu0 %v9273_v21  ;;  %8041 = vmatmul.bf16.vlgmr.msrb.gmra.mxu1 %v12618_v44  ;;  %v7822_v44 = vadd.f32 %v7821_v6, %v13228_v47  ;;  %v7834_v21 = vpop.f32.mrf.mxu1  ;;  %v9366_v47 = vld [vmem:[%s12442_s27 + $0x538] sm:$0xf0] }
 0x35d   : > { %8085 = vmatpush.bf16.msra.mxu1 %v9337_v51  ;;  %8054 = vmatmul.bf16.vlgmr.msrb.gmra.mxu2 %v12610_v38  ;;  %v9321_v38 = vor.u32 %v10903_v5, %v9318_v11  ;;  %v9313_v51 = vor.u32 %v10901_v41, %v9310_v36  ;;  %v10897_v5 = vld [vmem:[%s12442_s27 + $0x4a4] sm:$0xf]  ;;  %v9222_v6 = vld [vmem:[%s12442_s27 + $0x418] sm:$0xf0] }
 0x35e   : > { %8098 = vmatpush.bf16.msra.mxu2 %v9401_v58  ;;  %8067 = vmatmul.bf16.vlgmr.msrb.gmra.mxu3 %v12616_v42  ;;  %v9449_v42 = vor.u32 %v10935_v18, %v9446_v52  ;;  %v9377_v58 = vor.u32 %v10917_v40, %v9374_v20  ;;  %v7835_v57 = vadd.f32 %v7834_v21, %v7822_v44  ;;  %v9358_v18 = vld [vmem:[%s12442_s27 + $0x528] sm:$0xf0]  ;;  %v10879_v20 = vld [vmem:[%s12442_s27 + $0x414] sm:$0xf]  ;;  %v9286_v44 = vld [vmem:[%s12442_s27 + $0x498] sm:$0xf0] }
 0x35f   : > { %8111 = vmatpush.bf16.msra.mxu3 %v9465_v56  ;;  %v9441_v56 = vor.u32 %v10933_v43, %v9438_v48  ;;  %v9297_v36 = vor.u32 %v10897_v5, %v9294_v14  ;;  %v9361_v40 = vor.u32 %v10913_v17, %v9358_v18  ;;  %v10895_v43 = vld [vmem:[%s12442_s27 + $0x494] sm:$0xf]  ;;  %v9350_v21 = vld [vmem:[%s12442_s27 + $0x518] sm:$0xf0] }
 0x360   : > { %8073 = vmatpush.bf16.msra.mxu0 %v9265_v19  ;;  %v9241_v19 = vor.u32 %v10883_v53, %v9238_v54  ;;  %v7847_v11 = vpop.f32.mrf.mxu2  ;;  %v9225_v53 = vor.u32 %v10879_v20, %v9222_v6  ;;  %v10877_v54 = vld [vmem:[%s12442_s27 + $0x404] sm:$0xf]  ;;  %v10971_v5 = vld [vmem:[%s12442_s27 + $0x6f4] sm:$0xf]  ;;  %v9590_v14 = vld [vmem:[%s12442_s27 + $0x6f8] sm:$0xf0] }
 0x361   : > { %8086 = vmatpush.bf16.msra.mxu1 %v9329_v63  ;;  %v9305_v63 = vor.u32 %v10899_v55, %v9302_v59  ;;  %v7848_v52 = vadd.f32 %v7847_v11, %v7835_v57  ;;  %v9214_v55 = vld [vmem:[%s12442_s27 + $0x408] sm:$0xf0]  ;;  %v10893_v59 = vld [vmem:[%s12442_s27 + $0x484] sm:$0xf]  ;;  %v10987_v17 = vld [vmem:[%s12442_s27 + $0x774] sm:$0xf] }
 0x362   : > { %8099 = vmatpush.bf16.msra.mxu2 %v9393_v0  ;;  %v9369_v0 = vor.u32 %v10915_v60, %v9366_v47  ;;  %v7823_v4 = vpop.f32.mrf.mxu0  ;;  %v9278_v60 = vld [vmem:[%s12442_s27 + $0x488] sm:$0xf0]  ;;  %v10909_v47 = vld [vmem:[%s12442_s27 + $0x504] sm:$0xf]  ;;  %v9217_v11 = vor.u32 %v10877_v54, %v9214_v55  ;;  %v9654_v18 = vld [vmem:[%s12442_s27 + $0x778] sm:$0xf0] }
 0x363   : > { %8112 = vmatpush.bf16.msra.mxu3 %v9457_v7  ;;  %v9433_v7 = vor.u32 %v10931_v61, %v9430_v62  ;;  %v9342_v62 = vld [vmem:[%s12442_s27 + $0x508] sm:$0xf0]  ;;  %v10969_v6 = vld [vmem:[%s12442_s27 + $0x6e4] sm:$0xf]  ;;  %v10951_v55 = vld [vmem:[%s12442_s27 + $0x654] sm:$0xf] }
 0x364   : > { %8074 = vmatpush.bf16.msra.mxu0 %v9257_v24  ;;  %v7860_v24 = vpop.f32.mrf.mxu3  ;;  %v7836_v41 = vpop.f32.mrf.mxu1  ;;  %v9518_v20 = vld [vmem:[%s12442_s27 + $0x668] sm:$0xf0] }
 0x365   : > { %8087 = vmatpush.bf16.msra.mxu1 %v9321_v38  ;;  %v10929_v38 = vld [vmem:[%s12442_s27 + $0x5a4] sm:$0xf]  ;;  %v9593_v41 = vor.u32 %v10971_v5, %v9590_v14  ;;  %v9566_v5 = vld [vmem:[%s12442_s27 + $0x6c8] sm:$0xf0] }
 0x366   : > { %8100 = vmatpush.bf16.msra.mxu2 %v9385_v26  ;;  %v9422_v26 = vld [vmem:[%s12442_s27 + $0x5a8] sm:$0xf0]  ;;  %v10997_v14 = vld [vmem:[%s12442_s27 + $0x7c4] sm:$0xf] }
 0x367   : > { %8113 = vmatpush.bf16.msra.mxu3 %v9449_v42  ;;  %v13299_v42 = vadd.f32 %v7860_v24, %v7848_v52  ;;  %v9425_v48 = vor.u32 %v10929_v38, %v9422_v26  ;;  %v9281_v52 = vor.u32 %v10893_v59, %v9278_v60  ;;  %v9345_v24 = vor.u32 %v10909_v47, %v9342_v62  ;;  %v11003_v38 = vld [vmem:[%s12442_s27 + $0x7f4] sm:$0xf]  ;;  %v9718_v26 = vld [vmem:[%s12442_s27 + $0x7f8] sm:$0xf0] }
 0x368   : > { %8075 = vmatpush.bf16.msra.mxu0 %v9249_v50  ;;  %v10911_v50 = vld [vmem:[%s12442_s27 + $0x514] sm:$0xf]  ;;  %v9574_v60 = vld [vmem:[%s12442_s27 + $0x6d8] sm:$0xf0] }
 0x369   : > { %8088 = vmatpush.bf16.msra.mxu1 %v9313_v51  ;;  %v10927_v51 = vld [vmem:[%s12442_s27 + $0x594] sm:$0xf]  ;;  %v9353_v57 = vor.u32 %v10911_v50, %v9350_v21  ;;  %v9646_v50 = vld [vmem:[%s12442_s27 + $0x768] sm:$0xf0]  ;;  %v11001_v21 = vld [vmem:[%s12442_s27 + $0x7e4] sm:$0xf] }
 0x36a   : > { %8101 = vmatpush.bf16.msra.mxu2 %v9377_v58  ;;  %v9414_v58 = vld [vmem:[%s12442_s27 + $0x598] sm:$0xf0]  ;;  %v10983_v47 = vld [vmem:[%s12442_s27 + $0x754] sm:$0xf] }
 0x36b   : > { %8114 = vmatpush.bf16.msra.mxu3 %v9441_v56  ;;  %v9289_v56 = vor.u32 %v10895_v43, %v9286_v44  ;;  %v9417_v61 = vor.u32 %v10927_v51, %v9414_v58  ;;  %v9721_v43 = vor.u32 %v11003_v38, %v9718_v26  ;;  %v10985_v44 = vld [vmem:[%s12442_s27 + $0x764] sm:$0xf]  ;;  %v9710_v51 = vld [vmem:[%s12442_s27 + $0x7e8] sm:$0xf0]  ;;  %v10999_v62 = vld [vmem:[%s12442_s27 + $0x7d4] sm:$0xf] }
 0x36c   : > { %8076 = vmatpush.bf16.msra.mxu0 %v9241_v19  ;;  %v10925_v19 = vld [vmem:[%s12442_s27 + $0x584] sm:$0xf]  ;;  %v9649_v54 = vor.u32 %v10985_v44, %v9646_v50  ;;  %v9713_v59 = vor.u32 %v11001_v21, %v9710_v51 }
 0x36d   : > { %8089 = vmatpush.bf16.msra.mxu1 %v9305_v63  ;;  %v9406_v63 = vld [vmem:[%s12442_s27 + $0x588] sm:$0xf0]  ;;  %v10945_v51 = vld [vmem:[%s12442_s27 + $0x624] sm:$0xf] }
 0x36e   : > { %8102 = vmatpush.bf16.msra.mxu2 %v9369_v0  ;;  %v7849_v0 = vpop.f32.mrf.mxu2  ;;  %v9409_v4 = vor.u32 %v10925_v19, %v9406_v63  ;;  %v9702_v19 = vld [vmem:[%s12442_s27 + $0x7d8] sm:$0xf0] }
 0x36f   : > { %8115 = vmatpush.bf16.msra.mxu3 %v9433_v7  ;;  %v7862_v7 = vpop.f32.mrf.mxu3 }
 0x370   : > { %8077 = vmatpush.bf16.msra.mxu0 %v9233_v34  ;;  %v9529_v34 = vor.u32 %v10955_v1, %v9526_v3  ;;  %v10949_v1 = vld [vmem:[%s12442_s27 + $0x644] sm:$0xf]  ;;  %v9502_v3 = vld [vmem:[%s12442_s27 + $0x648] sm:$0xf0] }
 0x371   : > { %8090 = vmatpush.bf16.msra.mxu1 %v9297_v36  ;;  %v9657_v36 = vor.u32 %v10987_v17, %v9654_v18  ;;  %v10981_v7 = vld [vmem:[%s12442_s27 + $0x744] sm:$0xf]  ;;  %v9694_v17 = vld [vmem:[%s12442_s27 + $0x7c8] sm:$0xf0] }
 0x372   : > { %8103 = vmatpush.bf16.msra.mxu2 %v9361_v40  ;;  %v10953_v40 = vld [vmem:[%s12442_s27 + $0x664] sm:$0xf] }
 0x373   : > { %8116 = vmatpush.bf16.msra.mxu3 %v9425_v48  ;;  %v9582_v48 = vld [vmem:[%s12442_s27 + $0x6e8] sm:$0xf0]  ;;  %v9521_v58 = vor.u32 %v10953_v40, %v9518_v20  ;;  %v9558_v20 = vld [vmem:[%s12442_s27 + $0x6b8] sm:$0xf0] }
 0x374   : > { %8078 = vmatpush.bf16.msra.mxu0 %v9225_v53  ;;  %v9585_v53 = vor.u32 %v10969_v6, %v9582_v48  ;;  %v10979_v6 = vld [vmem:[%s12442_s27 + $0x734] sm:$0xf]  ;;  %v9686_v48 = vld [vmem:[%s12442_s27 + $0x7b8] sm:$0xf0] }
 0x375   : > { %8091 = vmatpush.bf16.msra.mxu1 %v9289_v56  ;;  %v9510_v56 = vld [vmem:[%s12442_s27 + $0x658] sm:$0xf0] }
 0x376   : > { %8104 = vmatpush.bf16.msra.mxu2 %v9353_v57  ;;  %v10967_v57 = vld [vmem:[%s12442_s27 + $0x6d4] sm:$0xf] }
 0x377   : > { %8117 = vmatpush.bf16.msra.mxu3 %v9417_v61  ;;  %v9638_v61 = vld [vmem:[%s12442_s27 + $0x758] sm:$0xf0]  ;;  %v9577_v63 = vor.u32 %v10967_v57, %v9574_v60  ;;  %v10977_v57 = vld [vmem:[%s12442_s27 + $0x724] sm:$0xf] }
 0x378   : > { %8079 = vmatpush.bf16.msra.mxu0 %v9217_v11  ;;  %v9641_v0 = vor.u32 %v10983_v47, %v9638_v61  ;;  %v9630_v11 = vld [vmem:[%s12442_s27 + $0x748] sm:$0xf0]  ;;  %v10993_v61 = vld [vmem:[%s12442_s27 + $0x7a4] sm:$0xf] }
 0x379   : > { %8092 = vmatpush.bf16.msra.mxu1 %v9281_v52  ;;  %v9505_v52 = vor.u32 %v10949_v1, %v9502_v3  ;;  %v9633_v26 = vor.u32 %v10981_v7, %v9630_v11  ;;  %v9542_v11 = vld [vmem:[%s12442_s27 + $0x698] sm:$0xf0] }
 0x37a   : > { %8105 = vmatpush.bf16.msra.mxu2 %v9345_v24  ;;  %v7886_v24 = vpop.f32.mrf.mxu1 }
 0x37b   : > { %8118 = vmatpush.bf16.msra.mxu3 %v9409_v4  ;;  %8080 = vmatmul.bf16.vlgmr.msra.gmra.mxu0 %v12689_v25  ;;  %v9513_v25 = vor.u32 %v10951_v55, %v9510_v56  ;;  %v10947_v4 = vld [vmem:[%s12442_s27 + $0x634] sm:$0xf]  ;;  %v9550_v56 = vld [vmem:[%s12442_s27 + $0x6a8] sm:$0xf0] }
 0x37c   : > { %8124 = vmatpush.bf16.msrb.mxu0 %v9529_v34  ;;  %8093 = vmatmul.bf16.vlgmr.msra.gmra.mxu1 %v12696_v30  ;;  %v9705_v30 = vor.u32 %v10999_v62, %v9702_v19  ;;  %v9494_v34 = vld [vmem:[%s12442_s27 + $0x638] sm:$0xf0]  ;;  %v9678_v62 = vld [vmem:[%s12442_s27 + $0x7a8] sm:$0xf0] }
 0x37d   : > { %8137 = vmatpush.bf16.msrb.mxu1 %v9593_v41  ;;  %8106 = vmatmul.bf16.vlgmr.msra.gmra.mxu2 %v12694_v29  ;;  %v10965_v29 = vld [vmem:[%s12442_s27 + $0x6c4] sm:$0xf]  ;;  %v10963_v41 = vld [vmem:[%s12442_s27 + $0x6b4] sm:$0xf]  ;;  %v9497_v44 = vor.u32 %v10947_v4, %v9494_v34  ;;  %v9681_v7 = vor.u32 %v10993_v61, %v9678_v62 }
 0x37e   : > { %8150 = vmatpush.bf16.msrb.mxu2 %v9657_v36  ;;  %8119 = vmatmul.bf16.vlgmr.msra.gmra.mxu3 %v12700_v33  ;;  %v7873_v33 = vpop.f32.mrf.mxu0  ;;  %v9569_v38 = vor.u32 %v10965_v29, %v9566_v5  ;;  %v9697_v36 = vor.u32 %v10997_v14, %v9694_v17  ;;  %v9561_v50 = vor.u32 %v10963_v41, %v9558_v20  ;;  %v10943_v29 = vld [vmem:[%s12442_s27 + $0x614] sm:$0xf]  ;;  %v9606_v14 = vld [vmem:[%s12442_s27 + $0x718] sm:$0xf0]  ;;  %v10957_v34 = vld [vmem:[%s12442_s27 + $0x684] sm:$0xf] }
 0x37f   : > { %8163 = vmatpush.bf16.msrb.mxu3 %v9721_v43  ;;  %v7874_v18 = vadd.f32 %v7873_v33, %v13299_v42  ;;  %v9622_v42 = vld [vmem:[%s12442_s27 + $0x738] sm:$0xf0]  ;;  %v10995_v43 = vld [vmem:[%s12442_s27 + $0x7b4] sm:$0xf]  ;;  %v9534_v41 = vld [vmem:[%s12442_s27 + $0x688] sm:$0xf0] }
 0x380   : > { %8125 = vmatpush.bf16.msrb.mxu0 %v9521_v58  ;;  %v9625_v21 = vor.u32 %v10979_v6, %v9622_v42  ;;  %v9486_v58 = vld [vmem:[%s12442_s27 + $0x628] sm:$0xf0]  ;;  %v7899_v55 = vpop.f32.mrf.mxu2  ;;  %v10959_v5 = vld [vmem:[%s12442_s27 + $0x694] sm:$0xf]  ;;  %v10989_v6 = vld [vmem:[%s12442_s27 + $0x784] sm:$0xf] }
 0x381   : > { %8138 = vmatpush.bf16.msrb.mxu1 %v9585_v53  ;;  %v7887_v40 = vadd.f32 %v7886_v24, %v7874_v18  ;;  %v10961_v53 = vld [vmem:[%s12442_s27 + $0x6a4] sm:$0xf]  ;;  %v7912_v47 = vpop.f32.mrf.mxu3  ;;  %v10975_v33 = vld [vmem:[%s12442_s27 + $0x714] sm:$0xf]  ;;  %v9670_v18 = vld [vmem:[%s12442_s27 + $0x798] sm:$0xf0] }
 0x382   : > { %8151 = vmatpush.bf16.msrb.mxu2 %v9649_v54  ;;  %v9689_v54 = vor.u32 %v10995_v43, %v9686_v48  ;;  %v9553_v1 = vor.u32 %v10961_v53, %v9550_v56  ;;  %v10991_v17 = vld [vmem:[%s12442_s27 + $0x794] sm:$0xf]  ;;  %v10941_v24 = vld [vmem:[%s12442_s27 + $0x604] sm:$0xf]  ;;  %v9609_v4 = vor.u32 %v10975_v33, %v9606_v14  ;;  %v9598_v20 = vld [vmem:[%s12442_s27 + $0x708] sm:$0xf0] }
 0x383   : > { %8164 = vmatpush.bf16.msrb.mxu3 %v9713_v59  ;;  %v9614_v59 = vld [vmem:[%s12442_s27 + $0x728] sm:$0xf0]  ;;  %v7900_v60 = vadd.f32 %v7899_v55, %v7887_v40  ;;  %v9673_v40 = vor.u32 %v10991_v17, %v9670_v18  ;;  %v11019_v48 = vld [vmem:[%s12442_s27 + $0x874] sm:$0xf]  ;;  %v9537_v55 = vor.u32 %v10957_v34, %v9534_v41  ;;  %v9766_v18 = vld [vmem:[%s12442_s27 + $0x858] sm:$0xf0] }
 0x384   : > { %8126 = vmatpush.bf16.msrb.mxu0 %v9513_v25  ;;  %v9489_v25 = vor.u32 %v10945_v51, %v9486_v58  ;;  %v9617_v3 = vor.u32 %v10977_v57, %v9614_v59  ;;  %v9662_v42 = vld [vmem:[%s12442_s27 + $0x788] sm:$0xf0]  ;;  %v9846_v58 = vld [vmem:[%s12442_s27 + $0x8f8] sm:$0xf0]  ;;  %v11051_v53 = vld [vmem:[%s12442_s27 + $0x974] sm:$0xf] }
 0x385   : > { %8139 = vmatpush.bf16.msrb.mxu1 %v9577_v63  ;;  %v7888_v63 = vpop.f32.mrf.mxu1  ;;  %v11067_v57 = vld [vmem:[%s12442_s27 + $0x9f4] sm:$0xf]  ;;  %v9974_v59 = vld [vmem:[%s12442_s27 + $0x9f8] sm:$0xf0] }
 0x386   : > { %8152 = vmatpush.bf16.msrb.mxu2 %v9641_v0  ;;  %v7875_v19 = vpop.f32.mrf.mxu0  ;;  %v13370_v0 = vadd.f32 %v7912_v47, %v7900_v60  ;;  %v9665_v60 = vor.u32 %v10989_v6, %v9662_v42  ;;  %v11033_v63 = vld [vmem:[%s12442_s27 + $0x8e4] sm:$0xf]  ;;  %v11015_v17 = vld [vmem:[%s12442_s27 + $0x854] sm:$0xf]  ;;  %v9958_v41 = vld [vmem:[%s12442_s27 + $0x9d8] sm:$0xf0] }
 0x387   : > { %8165 = vmatpush.bf16.msrb.mxu3 %v9705_v30  ;;  %v9478_v30 = vld [vmem:[%s12442_s27 + $0x618] sm:$0xf0]  ;;  %v11017_v19 = vld [vmem:[%s12442_s27 + $0x864] sm:$0xf]  ;;  %v11063_v34 = vld [vmem:[%s12442_s27 + $0x9d4] sm:$0xf] }
 0x388   : > { %8127 = vmatpush.bf16.msrb.mxu0 %v9505_v52  ;;  %v9481_v52 = vor.u32 %v10943_v29, %v9478_v30  ;;  %v7901_v43 = vpop.f32.mrf.mxu2  ;;  %v11049_v29 = vld [vmem:[%s12442_s27 + $0x964] sm:$0xf]  ;;  %v9902_v30 = vld [vmem:[%s12442_s27 + $0x968] sm:$0xf0] }
 0x389   : > { %8140 = vmatpush.bf16.msrb.mxu1 %v9569_v38  ;;  %v9470_v38 = vld [vmem:[%s12442_s27 + $0x608] sm:$0xf0]  ;;  %v9905_v14 = vor.u32 %v11049_v29, %v9902_v30  ;;  %v11045_v43 = vld [vmem:[%s12442_s27 + $0x944] sm:$0xf] }
 0x38a   : > { %8153 = vmatpush.bf16.msrb.mxu2 %v9633_v26  ;;  %v9545_v26 = vor.u32 %v10959_v5, %v9542_v11  ;;  %v9473_v51 = vor.u32 %v10941_v24, %v9470_v38  ;;  %v11065_v5 = vld [vmem:[%s12442_s27 + $0x9e4] sm:$0xf]  ;;  %v9830_v38 = vld [vmem:[%s12442_s27 + $0x8d8] sm:$0xf0]  ;;  %v9758_v6 = vld [vmem:[%s12442_s27 + $0x848] sm:$0xf0] }
 0x38b   : > { %8166 = vmatpush.bf16.msrb.mxu3 %v9697_v36  ;;  %v10973_v36 = vld [vmem:[%s12442_s27 + $0x704] sm:$0xf]  ;;  %v9822_v42 = vld [vmem:[%s12442_s27 + $0x8c8] sm:$0xf0] }
 0x38c   : > { %8128 = vmatpush.bf16.msrb.mxu0 %v9497_v44  ;;  %v9782_v44 = vld [vmem:[%s12442_s27 + $0x878] sm:$0xf0]  ;;  %v9601_v56 = vor.u32 %v10973_v36, %v9598_v20  ;;  %v11013_v20 = vld [vmem:[%s12442_s27 + $0x844] sm:$0xf]  ;;  %v9742_v29 = vld [vmem:[%s12442_s27 + $0x828] sm:$0xf0] }
 0x38d   : > { %8141 = vmatpush.bf16.msrb.mxu1 %v9561_v50  ;;  %v11035_v50 = vld [vmem:[%s12442_s27 + $0x8f4] sm:$0xf]  ;;  %v9785_v47 = vor.u32 %v11019_v48, %v9782_v44  ;;  %v9886_v48 = vld [vmem:[%s12442_s27 + $0x948] sm:$0xf0]  ;;  %v11061_v44 = vld [vmem:[%s12442_s27 + $0x9c4] sm:$0xf] }
 0x38e   : > { %8154 = vmatpush.bf16.msrb.mxu2 %v9625_v21  ;;  %v7914_v21 = vpop.f32.mrf.mxu3  ;;  %v9849_v61 = vor.u32 %v11035_v50, %v9846_v58  ;;  %v9950_v50 = vld [vmem:[%s12442_s27 + $0x9c8] sm:$0xf0]  ;;  %v11025_v30 = vld [vmem:[%s12442_s27 + $0x8a4] sm:$0xf] }
 0x38f   : > { %8167 = vmatpush.bf16.msrb.mxu3 %v9689_v54  ;;  %v9910_v54 = vld [vmem:[%s12442_s27 + $0x978] sm:$0xf0] }
 0x390   : > { %8129 = vmatpush.bf16.msrb.mxu0 %v9489_v25  ;;  %v9913_v62 = vor.u32 %v11051_v53, %v9910_v54  ;;  %v9774_v25 = vld [vmem:[%s12442_s27 + $0x868] sm:$0xf0]  ;;  %v9889_v54 = vor.u32 %v11045_v43, %v9886_v48  ;;  %v11055_v43 = vld [vmem:[%s12442_s27 + $0x994] sm:$0xf]  ;;  %v9926_v48 = vld [vmem:[%s12442_s27 + $0x998] sm:$0xf0] }
 0x391   : > { %8142 = vmatpush.bf16.msrb.mxu1 %v9553_v1  ;;  %v9977_v1 = vor.u32 %v11067_v57, %v9974_v59  ;;  %v9777_v11 = vor.u32 %v11017_v19, %v9774_v25  ;;  %v11027_v57 = vld [vmem:[%s12442_s27 + $0x8b4] sm:$0xf]  ;;  %v9953_v59 = vor.u32 %v11061_v44, %v9950_v50  ;;  %v9942_v19 = vld [vmem:[%s12442_s27 + $0x9b8] sm:$0xf0]  ;;  %v11005_v44 = vld [vmem:[%s12442_s27 + $0x804] sm:$0xf] }
 0x392   : > { %8155 = vmatpush.bf16.msrb.mxu2 %v9617_v3  ;;  %v9838_v3 = vld [vmem:[%s12442_s27 + $0x8e8] sm:$0xf0] }
 0x393   : > { %8168 = vmatpush.bf16.msrb.mxu3 %v9681_v7  ;;  %v9966_v7 = vld [vmem:[%s12442_s27 + $0x9e8] sm:$0xf0]  ;;  %v9841_v33 = vor.u32 %v11033_v63, %v9838_v3  ;;  %v11009_v3 = vld [vmem:[%s12442_s27 + $0x824] sm:$0xf] }
 0x394   : > { %8130 = vmatpush.bf16.msrb.mxu0 %v9481_v52  ;;  %v11031_v52 = vld [vmem:[%s12442_s27 + $0x8d4] sm:$0xf]  ;;  %v9969_v24 = vor.u32 %v11065_v5, %v9966_v7  ;;  %v9726_v50 = vld [vmem:[%s12442_s27 + $0x808] sm:$0xf0] }
 0x395   : > { %8143 = vmatpush.bf16.msrb.mxu1 %v9545_v26  ;;  %v11047_v26 = vld [vmem:[%s12442_s27 + $0x954] sm:$0xf]  ;;  %v9833_v36 = vor.u32 %v11031_v52, %v9830_v38  ;;  %v11057_v52 = vld [vmem:[%s12442_s27 + $0x9a4] sm:$0xf] }
 0x396   : > { %8156 = vmatpush.bf16.msrb.mxu2 %v9609_v4  ;;  %v9894_v4 = vld [vmem:[%s12442_s27 + $0x958] sm:$0xf0] }
 0x397   : > { %8169 = vmatpush.bf16.msrb.mxu3 %v9673_v40  ;;  %v9897_v40 = vor.u32 %v11047_v26, %v9894_v4  ;;  %v9745_v26 = vor.u32 %v11009_v3, %v9742_v29 }
 0x398   : > { %8131 = vmatpush.bf16.msrb.mxu0 %v9473_v51  ;;  %v9761_v51 = vor.u32 %v11013_v20, %v9758_v6  ;;  %v11023_v20 = vld [vmem:[%s12442_s27 + $0x894] sm:$0xf] }
 0x399   : > { %8144 = vmatpush.bf16.msrb.mxu1 %v9537_v55  ;;  %v7938_v58 = vpop.f32.mrf.mxu1  ;;  %v11011_v55 = vld [vmem:[%s12442_s27 + $0x834] sm:$0xf] }
 0x39a   : > { %8157 = vmatpush.bf16.msrb.mxu2 %v9601_v56  ;;  %v9750_v56 = vld [vmem:[%s12442_s27 + $0x838] sm:$0xf0] }
 0x39b   : > { %8170 = vmatpush.bf16.msrb.mxu3 %v9665_v60  ;;  %8132 = vmatmul.bf16.vlgmr.msrb.gmra.mxu0 %v12771_v23  ;;  %v9769_v23 = vor.u32 %v11015_v17, %v9766_v18  ;;  %v9753_v25 = vor.u32 %v11011_v55, %v9750_v56  ;;  %v9929_v55 = vor.u32 %v11055_v43, %v9926_v48  ;;  %v9854_v56 = vld [vmem:[%s12442_s27 + $0x908] sm:$0xf0]  ;;  %v10086_v43 = vld [vmem:[%s12442_s27 + $0xad8] sm:$0xf0]  ;;  %v11111_v48 = vld [vmem:[%s12442_s27 + $0xb54] sm:$0xf] }
 0x39c   : > { %8176 = vmatpush.bf16.msra.mxu0 %v9785_v47  ;;  %8145 = vmatmul.bf16.vlgmr.msrb.gmra.mxu1 %v12778_v31  ;;  %v9961_v31 = vor.u32 %v11063_v34, %v9958_v41  ;;  %v9814_v47 = vld [vmem:[%s12442_s27 + $0x8b8] sm:$0xf0] }
 0x39d   : > { %8189 = vmatpush.bf16.msra.mxu1 %v9849_v61  ;;  %8158 = vmatmul.bf16.vlgmr.msrb.gmra.mxu2 %v12776_v28  ;;  %v11029_v28 = vld [vmem:[%s12442_s27 + $0x8c4] sm:$0xf]  ;;  %v11043_v61 = vld [vmem:[%s12442_s27 + $0x934] sm:$0xf]  ;;  %v9817_v63 = vor.u32 %v11027_v57, %v9814_v47 }
 0x39e   : > { %8202 = vmatpush.bf16.msra.mxu2 %v9913_v62  ;;  %8171 = vmatmul.bf16.vlgmr.msrb.gmra.mxu3 %v12782_v35  ;;  %v7925_v35 = vpop.f32.mrf.mxu0  ;;  %v9825_v53 = vor.u32 %v11029_v28, %v9822_v42  ;;  %v11059_v62 = vld [vmem:[%s12442_s27 + $0x9b4] sm:$0xf]  ;;  %v9798_v28 = vld [vmem:[%s12442_s27 + $0x898] sm:$0xf0]  ;;  %v11053_v57 = vld [vmem:[%s12442_s27 + $0x984] sm:$0xf] }
 0x39f   : > { %8215 = vmatpush.bf16.msra.mxu3 %v9977_v1  ;;  %v7926_v21 = vadd.f32 %v7925_v35, %v13370_v0  ;;  %v9878_v0 = vld [vmem:[%s12442_s27 + $0x938] sm:$0xf0]  ;;  %v9945_v5 = vor.u32 %v11059_v62, %v9942_v19  ;;  %v11083_v47 = vld [vmem:[%s12442_s27 + $0xa74] sm:$0xf]  ;;  %v9729_v19 = vor.u32 %v11005_v44, %v9726_v50 }
 0x3a0   : > { %8177 = vmatpush.bf16.msra.mxu0 %v9777_v11  ;;  %v9881_v1 = vor.u32 %v11043_v61, %v9878_v0  ;;  %v7951_v7 = vpop.f32.mrf.mxu2  ;;  %v9806_v11 = vld [vmem:[%s12442_s27 + $0x8a8] sm:$0xf0]  ;;  %v9862_v42 = vld [vmem:[%s12442_s27 + $0x918] sm:$0xf0]  ;;  %v11099_v0 = vld [vmem:[%s12442_s27 + $0xaf4] sm:$0xf] }
 0x3a1   : > { %8190 = vmatpush.bf16.msra.mxu1 %v9841_v33  ;;  %v7939_v60 = vadd.f32 %v7938_v58, %v7926_v21  ;;  %v11041_v33 = vld [vmem:[%s12442_s27 + $0x924] sm:$0xf]  ;;  %v7964_v18 = vpop.f32.mrf.mxu3  ;;  %v7940_v4 = vpop.f32.mrf.mxu1  ;;  %v9809_v41 = vor.u32 %v11025_v30, %v9806_v11  ;;  %v9801_v21 = vor.u32 %v11023_v20, %v9798_v28  ;;  %v10038_v61 = vld [vmem:[%s12442_s27 + $0xa78] sm:$0xf0]  ;;  %v11131_v30 = vld [vmem:[%s12442_s27 + $0xbf4] sm:$0xf] }
 0x3a2   : > { %8203 = vmatpush.bf16.msra.mxu2 %v9905_v14  ;;  %v9870_v14 = vld [vmem:[%s12442_s27 + $0x928] sm:$0xf0]  ;;  %v11021_v58 = vld [vmem:[%s12442_s27 + $0x884] sm:$0xf]  ;;  %v10041_v11 = vor.u32 %v11083_v47, %v10038_v61  ;;  %v10022_v28 = vld [vmem:[%s12442_s27 + $0xa58] sm:$0xf0] }
 0x3a3   : > { %8216 = vmatpush.bf16.msra.mxu3 %v9969_v24  ;;  %v7952_v17 = vadd.f32 %v7951_v7, %v7939_v60  ;;  %v9934_v24 = vld [vmem:[%s12442_s27 + $0x9a8] sm:$0xf0]  ;;  %v11127_v44 = vld [vmem:[%s12442_s27 + $0xbd4] sm:$0xf]  ;;  %v10214_v50 = vld [vmem:[%s12442_s27 + $0xbd8] sm:$0xf0] }
 0x3a4   : > { %8178 = vmatpush.bf16.msra.mxu0 %v9769_v23  ;;  %v9873_v23 = vor.u32 %v11041_v33, %v9870_v14  ;;  %v9937_v6 = vor.u32 %v11057_v52, %v9934_v24  ;;  %v11097_v52 = vld [vmem:[%s12442_s27 + $0xae4] sm:$0xf]  ;;  %v10158_v4 = vld [vmem:[%s12442_s27 + $0xb68] sm:$0xf0] }
 0x3a5   : > { %8191 = vmatpush.bf16.msra.mxu1 %v9833_v36  ;;  %v13441_v34 = vadd.f32 %v7964_v18, %v7952_v17  ;;  %v11007_v36 = vld [vmem:[%s12442_s27 + $0x814] sm:$0xf]  ;;  %v11081_v17 = vld [vmem:[%s12442_s27 + $0xa64] sm:$0xf]  ;;  %v10030_v18 = vld [vmem:[%s12442_s27 + $0xa68] sm:$0xf0] }
 0x3a6   : > { %8204 = vmatpush.bf16.msra.mxu2 %v9897_v40  ;;  %v7927_v38 = vpop.f32.mrf.mxu0  ;;  %v9734_v40 = vld [vmem:[%s12442_s27 + $0x818] sm:$0xf0] }
 0x3a7   : > { %8217 = vmatpush.bf16.msra.mxu3 %v9961_v31  ;;  %v11039_v31 = vld [vmem:[%s12442_s27 + $0x914] sm:$0xf]  ;;  %v9737_v35 = vor.u32 %v11007_v36, %v9734_v40  ;;  %v10094_v38 = vld [vmem:[%s12442_s27 + $0xae8] sm:$0xf0]  ;;  %v10033_v36 = vor.u32 %v11081_v17, %v10030_v18  ;;  %v11073_v17 = vld [vmem:[%s12442_s27 + $0xa24] sm:$0xf] }
 0x3a8   : > { %8179 = vmatpush.bf16.msra.mxu0 %v9761_v51  ;;  %v9865_v51 = vor.u32 %v11039_v31, %v9862_v42  ;;  %v7953_v60 = vpop.f32.mrf.mxu2  ;;  %v10097_v40 = vor.u32 %v11097_v52, %v10094_v38  ;;  %v11095_v31 = vld [vmem:[%s12442_s27 + $0xad4] sm:$0xf]  ;;  %v9998_v18 = vld [vmem:[%s12442_s27 + $0xa28] sm:$0xf0]  ;;  %v11089_v52 = vld [vmem:[%s12442_s27 + $0xaa4] sm:$0xf] }
 0x3a9   : > { %8192 = vmatpush.bf16.msra.mxu1 %v9825_v53  ;;  %v9790_v53 = vld [vmem:[%s12442_s27 + $0x888] sm:$0xf0]  ;;  %v7966_v62 = vpop.f32.mrf.mxu3 }
 0x3aa   : > { %8205 = vmatpush.bf16.msra.mxu2 %v9889_v54  ;;  %v11037_v54 = vld [vmem:[%s12442_s27 + $0x904] sm:$0xf]  ;;  %v9793_v3 = vor.u32 %v11021_v58, %v9790_v53  ;;  %v10014_v53 = vld [vmem:[%s12442_s27 + $0xa48] sm:$0xf0]  ;;  %v10006_v62 = vld [vmem:[%s12442_s27 + $0xa38] sm:$0xf0] }
 0x3ab   : > { %8218 = vmatpush.bf16.msra.mxu3 %v9953_v59  ;;  %v9918_v59 = vld [vmem:[%s12442_s27 + $0x988] sm:$0xf0]  ;;  %v9857_v29 = vor.u32 %v11037_v54, %v9854_v56  ;;  %v11077_v58 = vld [vmem:[%s12442_s27 + $0xa44] sm:$0xf] }
 0x3ac   : > { %8180 = vmatpush.bf16.msra.mxu0 %v9753_v25  ;;  %v10102_v25 = vld [vmem:[%s12442_s27 + $0xaf8] sm:$0xf0]  ;;  %v9921_v7 = vor.u32 %v11053_v57, %v9918_v59  ;;  %v10078_v54 = vld [vmem:[%s12442_s27 + $0xac8] sm:$0xf0]  ;;  %v10017_v59 = vor.u32 %v11077_v58, %v10014_v53  ;;  %v11119_v53 = vld [vmem:[%s12442_s27 + $0xb94] sm:$0xf] }
 0x3ad   : > { %8193 = vmatpush.bf16.msra.mxu1 %v9817_v63  ;;  %v11115_v63 = vld [vmem:[%s12442_s27 + $0xb74] sm:$0xf]  ;;  %v10105_v33 = vor.u32 %v11099_v0, %v10102_v25  ;;  %v10142_v56 = vld [vmem:[%s12442_s27 + $0xb48] sm:$0xf0]  ;;  %v10118_v58 = vld [vmem:[%s12442_s27 + $0xb18] sm:$0xf0] }
 0x3ae   : > { %8206 = vmatpush.bf16.msra.mxu2 %v9881_v1  ;;  %v10166_v1 = vld [vmem:[%s12442_s27 + $0xb78] sm:$0xf0]  ;;  %v10206_v57 = vld [vmem:[%s12442_s27 + $0xbc8] sm:$0xf0]  ;;  %v11075_v0 = vld [vmem:[%s12442_s27 + $0xa34] sm:$0xf] }
 0x3af   : > { %8219 = vmatpush.bf16.msra.mxu3 %v9945_v5  ;;  %v10230_v5 = vld [vmem:[%s12442_s27 + $0xbf8] sm:$0xf0]  ;;  %v10169_v14 = vor.u32 %v11115_v63, %v10166_v1 }
 0x3b0   : > { %8181 = vmatpush.bf16.msra.mxu0 %v9745_v26  ;;  %v10233_v24 = vor.u32 %v11131_v30, %v10230_v5  ;;  %v11113_v26 = vld [vmem:[%s12442_s27 + $0xb64] sm:$0xf]  ;;  %v10070_v1 = vld [vmem:[%s12442_s27 + $0xab8] sm:$0xf0]  ;;  %v11123_v5 = vld [vmem:[%s12442_s27 + $0xbb4] sm:$0xf] }
 0x3b1   : > { %8194 = vmatpush.bf16.msra.mxu1 %v9809_v41  ;;  %v11129_v41 = vld [vmem:[%s12442_s27 + $0xbe4] sm:$0xf]  ;;  %v10161_v20 = vor.u32 %v11113_v26, %v10158_v4  ;;  %v10062_v26 = vld [vmem:[%s12442_s27 + $0xaa8] sm:$0xf0] }
 0x3b2   : > { %8207 = vmatpush.bf16.msra.mxu2 %v9873_v23  ;;  %v10222_v23 = vld [vmem:[%s12442_s27 + $0xbe8] sm:$0xf0]  ;;  %v11105_v4 = vld [vmem:[%s12442_s27 + $0xb24] sm:$0xf] }
 0x3b3   : > { %8220 = vmatpush.bf16.msra.mxu3 %v9937_v6  ;;  %v11079_v6 = vld [vmem:[%s12442_s27 + $0xa54] sm:$0xf]  ;;  %v10225_v42 = vor.u32 %v11129_v41, %v10222_v23  ;;  %v10126_v41 = vld [vmem:[%s12442_s27 + $0xb28] sm:$0xf0] }
 0x3b4   : > { %8182 = vmatpush.bf16.msra.mxu0 %v9737_v35  ;;  %v10150_v35 = vld [vmem:[%s12442_s27 + $0xb58] sm:$0xf0] }
 0x3b5   : > { %8195 = vmatpush.bf16.msra.mxu1 %v9801_v21  ;;  %v10089_v21 = vor.u32 %v11095_v31, %v10086_v43  ;;  %v10129_v43 = vor.u32 %v11105_v4, %v10126_v41  ;;  %v10286_v4 = vld [vmem:[%s12442_s27 + $0xc68] sm:$0xf0]  ;;  %v11161_v41 = vld [vmem:[%s12442_s27 + $0xce4] sm:$0xf] }
 0x3b6   : > { %8208 = vmatpush.bf16.msra.mxu2 %v9865_v51  ;;  %v10153_v51 = vor.u32 %v11111_v48, %v10150_v35  ;;  %v11071_v48 = vld [vmem:[%s12442_s27 + $0xa14] sm:$0xf]  ;;  %v9990_v35 = vld [vmem:[%s12442_s27 + $0xa18] sm:$0xf0] }
 0x3b7   : > { %8221 = vmatpush.bf16.msra.mxu3 %v9929_v55  ;;  %v11109_v55 = vld [vmem:[%s12442_s27 + $0xb44] sm:$0xf] }
 0x3b8   : > { %8183 = vmatpush.bf16.msra.mxu0 %v9729_v19  ;;  %v7977_v60 = vpop.f32.mrf.mxu0  ;;  %v10145_v61 = vor.u32 %v11109_v55, %v10142_v56  ;;  %v11091_v19 = vld [vmem:[%s12442_s27 + $0xab4] sm:$0xf]  ;;  %v9982_v55 = vld [vmem:[%s12442_s27 + $0xa08] sm:$0xf0] }
 0x3b9   : > { %8196 = vmatpush.bf16.msra.mxu1 %v9793_v3  ;;  %v7990_v25 = vpop.f32.mrf.mxu1  ;;  %v11107_v3 = vld [vmem:[%s12442_s27 + $0xb34] sm:$0xf] }
 0x3ba   : > { %8209 = vmatpush.bf16.msra.mxu2 %v9857_v29  ;;  %v10134_v29 = vld [vmem:[%s12442_s27 + $0xb38] sm:$0xf0]  ;;  %v7991_v30 = vadd.f32 %v7990_v25, %v7977_v60  ;;  %v11101_v60 = vld [vmem:[%s12442_s27 + $0xb04] sm:$0xf] }
 0x3bb   : > { %8222 = vmatpush.bf16.msra.mxu3 %v9921_v7  ;;  %8184 = vmatmul.bf16.vlgmr.msra.gmra.mxu0 %v12853_v37  ;;  %v10025_v37 = vor.u32 %v11079_v6, %v10022_v28  ;;  %v10198_v7 = vld [vmem:[%s12442_s27 + $0xbb8] sm:$0xf0]  ;;  %v10001_v6 = vor.u32 %v11073_v17, %v9998_v18 }
 0x3bc   : > { %8228 = vmatpush.bf16.msrb.mxu0 %v10041_v11  ;;  %8197 = vmatmul.bf16.vlgmr.msra.gmra.mxu1 %v12860_v46  ;;  %v10217_v46 = vor.u32 %v11127_v44, %v10214_v50  ;;  %v10009_v11 = vor.u32 %v11075_v0, %v10006_v62  ;;  %v10201_v38 = vor.u32 %v11123_v5, %v10198_v7  ;;  %v11087_v44 = vld [vmem:[%s12442_s27 + $0xa94] sm:$0xf]  ;;  %v10110_v0 = vld [vmem:[%s12442_s27 + $0xb08] sm:$0xf0]  ;;  %v11117_v62 = vld [vmem:[%s12442_s27 + $0xb84] sm:$0xf] }
 0x3bd   : > { %8241 = vmatpush.bf16.msrb.mxu1 %v10105_v33  ;;  %8210 = vmatmul.bf16.vlgmr.msra.gmra.mxu2 %v12858_v45  ;;  %v11093_v45 = vld [vmem:[%s12442_s27 + $0xac4] sm:$0xf]  ;;  %v10073_v33 = vor.u32 %v11091_v19, %v10070_v1  ;;  %v10174_v19 = vld [vmem:[%s12442_s27 + $0xb88] sm:$0xf0]  ;;  %v10294_v1 = vld [vmem:[%s12442_s27 + $0xc78] sm:$0xf0] }
 0x3be   : > { %8254 = vmatpush.bf16.msrb.mxu2 %v10169_v14  ;;  %8223 = vmatmul.bf16.vlgmr.msra.gmra.mxu3 %v12864_v49  ;;  %v11125_v49 = vld [vmem:[%s12442_s27 + $0xbc4] sm:$0xf]  ;;  %v10081_v47 = vor.u32 %v11093_v45, %v10078_v54  ;;  %v10137_v14 = vor.u32 %v11107_v3, %v10134_v29  ;;  %v10182_v45 = vld [vmem:[%s12442_s27 + $0xb98] sm:$0xf0]  ;;  %v11163_v3 = vld [vmem:[%s12442_s27 + $0xcf4] sm:$0xf]  ;;  %v10177_v18 = vor.u32 %v11117_v62, %v10174_v19 }
 0x3bf   : > { %8267 = vmatpush.bf16.msrb.mxu3 %v10233_v24  ;;  %v10209_v63 = vor.u32 %v11125_v49, %v10206_v57  ;;  %v11069_v54 = vld [vmem:[%s12442_s27 + $0xa04] sm:$0xf]  ;;  %v11179_v5 = vld [vmem:[%s12442_s27 + $0xd74] sm:$0xf]  ;;  %v10422_v7 = vld [vmem:[%s12442_s27 + $0xd78] sm:$0xf0] }
 0x3c0   : > { %8229 = vmatpush.bf16.msrb.mxu0 %v10033_v36  ;;  %v8003_v24 = vpop.f32.mrf.mxu2  ;;  %v7979_v31 = vpop.f32.mrf.mxu0  ;;  %v11085_v57 = vld [vmem:[%s12442_s27 + $0xa84] sm:$0xf]  ;;  %v9985_v29 = vor.u32 %v11069_v54, %v9982_v55  ;;  %v10486_v17 = vld [vmem:[%s12442_s27 + $0xdf8] sm:$0xf0]  ;;  %v11139_v19 = vld [vmem:[%s12442_s27 + $0xc34] sm:$0xf] }
 0x3c1   : > { %8242 = vmatpush.bf16.msrb.mxu1 %v10097_v40  ;;  %v8004_v23 = vadd.f32 %v8003_v24, %v7991_v30  ;;  %v8016_v36 = vpop.f32.mrf.mxu3  ;;  %v11121_v40 = vld [vmem:[%s12442_s27 + $0xba4] sm:$0xf]  ;;  %v7992_v50 = vpop.f32.mrf.mxu1  ;;  %v10358_v30 = vld [vmem:[%s12442_s27 + $0xcf8] sm:$0xf0]  ;;  %v10478_v31 = vld [vmem:[%s12442_s27 + $0xde8] sm:$0xf0] }
 0x3c2   : > { %8255 = vmatpush.bf16.msrb.mxu2 %v10161_v20  ;;  %v10190_v20 = vld [vmem:[%s12442_s27 + $0xba8] sm:$0xf0]  ;;  %v10361_v24 = vor.u32 %v11163_v3, %v10358_v30  ;;  %v11159_v50 = vld [vmem:[%s12442_s27 + $0xcd4] sm:$0xf]  ;;  %v11141_v55 = vld [vmem:[%s12442_s27 + $0xc44] sm:$0xf] }
 0x3c3   : > { %8268 = vmatpush.bf16.msrb.mxu3 %v10225_v42  ;;  %v13511_v28 = vadd.f32 %v8016_v36, %v8004_v23  ;;  %v10065_v42 = vor.u32 %v11089_v52, %v10062_v26  ;;  %v11145_v26 = vld [vmem:[%s12442_s27 + $0xc64] sm:$0xf]  ;;  %v10350_v36 = vld [vmem:[%s12442_s27 + $0xce8] sm:$0xf0]  ;;  %v10326_v30 = vld [vmem:[%s12442_s27 + $0xcb8] sm:$0xf0] }
 0x3c4   : > { %8230 = vmatpush.bf16.msrb.mxu0 %v10025_v37  ;;  %v10193_v37 = vor.u32 %v11121_v40, %v10190_v20  ;;  %v11177_v40 = vld [vmem:[%s12442_s27 + $0xd64] sm:$0xf]  ;;  %v10414_v20 = vld [vmem:[%s12442_s27 + $0xd68] sm:$0xf0] }
 0x3c5   : > { %8243 = vmatpush.bf16.msrb.mxu1 %v10089_v21  ;;  %v10054_v21 = vld [vmem:[%s12442_s27 + $0xa98] sm:$0xf0] }
 0x3c6   : > { %8256 = vmatpush.bf16.msrb.mxu2 %v10153_v51  ;;  %v11103_v51 = vld [vmem:[%s12442_s27 + $0xb14] sm:$0xf]  ;;  %v10057_v56 = vor.u32 %v11087_v44, %v10054_v21  ;;  %v10278_v44 = vld [vmem:[%s12442_s27 + $0xc58] sm:$0xf0] }
 0x3c7   : > { %8269 = vmatpush.bf16.msrb.mxu3 %v10217_v46  ;;  %v9993_v46 = vor.u32 %v11071_v48, %v9990_v35  ;;  %v10121_v49 = vor.u32 %v11103_v51, %v10118_v58  ;;  %v10417_v48 = vor.u32 %v11177_v40, %v10414_v20  ;;  %v11143_v35 = vld [vmem:[%s12442_s27 + $0xc54] sm:$0xf]  ;;  %v10342_v21 = vld [vmem:[%s12442_s27 + $0xcd8] sm:$0xf0] }
 0x3c8   : > { %8231 = vmatpush.bf16.msrb.mxu0 %v10017_v59  ;;  %v10046_v59 = vld [vmem:[%s12442_s27 + $0xa88] sm:$0xf0]  ;;  %v11175_v51 = vld [vmem:[%s12442_s27 + $0xd54] sm:$0xf]  ;;  %v10406_v58 = vld [vmem:[%s12442_s27 + $0xd58] sm:$0xf0] }
 0x3c9   : > { %8244 = vmatpush.bf16.msrb.mxu1 %v10081_v47  ;;  %v8005_v47 = vpop.f32.mrf.mxu2  ;;  %v8018_v25 = vpop.f32.mrf.mxu3  ;;  %v10409_v54 = vor.u32 %v11175_v51, %v10406_v58 }
 0x3ca   : > { %8257 = vmatpush.bf16.msrb.mxu2 %v10145_v61  ;;  %v10185_v61 = vor.u32 %v11119_v53, %v10182_v45  ;;  %v11191_v53 = vld [vmem:[%s12442_s27 + $0xdd4] sm:$0xf]  ;;  %v10470_v45 = vld [vmem:[%s12442_s27 + $0xdd8] sm:$0xf0] }
 0x3cb   : > { %8270 = vmatpush.bf16.msrb.mxu3 %v10209_v63  ;;  %v11147_v63 = vld [vmem:[%s12442_s27 + $0xc74] sm:$0xf]  ;;  %v10262_v25 = vld [vmem:[%s12442_s27 + $0xc38] sm:$0xf0] }
 0x3cc   : > { %8232 = vmatpush.bf16.msrb.mxu0 %v10009_v11  ;;  %v10049_v11 = vor.u32 %v11085_v57, %v10046_v59  ;;  %v10297_v52 = vor.u32 %v11147_v63, %v10294_v1  ;;  %v11173_v57 = vld [vmem:[%s12442_s27 + $0xd44] sm:$0xf]  ;;  %v10398_v59 = vld [vmem:[%s12442_s27 + $0xd48] sm:$0xf0]  ;;  %v11155_v63 = vld [vmem:[%s12442_s27 + $0xcb4] sm:$0xf] }
 0x3cd   : > { %8245 = vmatpush.bf16.msrb.mxu1 %v10073_v33  ;;  %v10113_v33 = vor.u32 %v11101_v60, %v10110_v0  ;;  %v11189_v60 = vld [vmem:[%s12442_s27 + $0xdc4] sm:$0xf]  ;;  %v10401_v62 = vor.u32 %v11173_v57, %v10398_v59  ;;  %v10302_v59 = vld [vmem:[%s12442_s27 + $0xc88] sm:$0xf0] }
 0x3ce   : > { %8258 = vmatpush.bf16.msrb.mxu2 %v10137_v14  ;;  %v11195_v14 = vld [vmem:[%s12442_s27 + $0xdf4] sm:$0xf]  ;;  %v11149_v57 = vld [vmem:[%s12442_s27 + $0xc84] sm:$0xf] }
 0x3cf   : > { %8271 = vmatpush.bf16.msrb.mxu3 %v10201_v38  ;;  %v10425_v38 = vor.u32 %v11179_v5, %v10422_v7  ;;  %v10489_v23 = vor.u32 %v11195_v14, %v10486_v17  ;;  %v11171_v5 = vld [vmem:[%s12442_s27 + $0xd34] sm:$0xf]  ;;  %v10390_v7 = vld [vmem:[%s12442_s27 + $0xd38] sm:$0xf0]  ;;  %v10265_v17 = vor.u32 %v11139_v19, %v10262_v25 }
 0x3d0   : > { %8233 = vmatpush.bf16.msrb.mxu0 %v10001_v6  ;;  %v11193_v6 = vld [vmem:[%s12442_s27 + $0xde4] sm:$0xf]  ;;  %v11211_v25 = vld [vmem:[%s12442_s27 + $0xe74] sm:$0xf] }
 0x3d1   : > { %8246 = vmatpush.bf16.msrb.mxu1 %v10065_v42  ;;  %v10289_v42 = vor.u32 %v11145_v26, %v10286_v4 }
 0x3d2   : > { %8259 = vmatpush.bf16.msrb.mxu2 %v10129_v43  ;;  %v10353_v43 = vor.u32 %v11161_v41, %v10350_v36  ;;  %v10318_v41 = vld [vmem:[%s12442_s27 + $0xca8] sm:$0xf0] }
 0x3d3   : > { %8272 = vmatpush.bf16.msrb.mxu3 %v10193_v37  ;;  %v10481_v37 = vor.u32 %v11193_v6, %v10478_v31  ;;  %v10382_v36 = vld [vmem:[%s12442_s27 + $0xd28] sm:$0xf0]  ;;  %v11185_v6 = vld [vmem:[%s12442_s27 + $0xda4] sm:$0xf] }
 0x3d4   : > { %8234 = vmatpush.bf16.msrb.mxu0 %v9993_v46  ;;  %v10345_v46 = vor.u32 %v11159_v50, %v10342_v21  ;;  %v10446_v31 = vld [vmem:[%s12442_s27 + $0xda8] sm:$0xf0]  ;;  %v11135_v50 = vld [vmem:[%s12442_s27 + $0xc14] sm:$0xf] }
 0x3d5   : > { %8247 = vmatpush.bf16.msrb.mxu1 %v10057_v56  ;;  %v10270_v56 = vld [vmem:[%s12442_s27 + $0xc48] sm:$0xf0]  ;;  %v11151_v21 = vld [vmem:[%s12442_s27 + $0xc94] sm:$0xf]  ;;  %v10449_v58 = vor.u32 %v11185_v6, %v10446_v31 }
 0x3d6   : > { %8260 = vmatpush.bf16.msrb.mxu2 %v10121_v49  ;;  %v10334_v49 = vld [vmem:[%s12442_s27 + $0xcc8] sm:$0xf0]  ;;  %v10273_v47 = vor.u32 %v11141_v55, %v10270_v56  ;;  %v11133_v56 = vld [vmem:[%s12442_s27 + $0xc04] sm:$0xf] }
 0x3d7   : > { %8273 = vmatpush.bf16.msrb.mxu3 %v10185_v61 }
 0x3d8   : > { %8235 = vmatpush.bf16.msrb.mxu0 %v9985_v29  ;;  %v8029_v61 = vpop.f32.mrf.mxu0 }
 0x3d9   : > { %8248 = vmatpush.bf16.msrb.mxu1 %v10049_v11  ;;  %v8030_v1 = vadd.f32 %v8029_v61, %v13511_v28  ;;  %v8042_v3 = vpop.f32.mrf.mxu1  ;;  %v11187_v11 = vld [vmem:[%s12442_s27 + $0xdb4] sm:$0xf]  ;;  %v10329_v28 = vor.u32 %v11155_v63, %v10326_v30  ;;  %v10366_v61 = vld [vmem:[%s12442_s27 + $0xd08] sm:$0xf0]  ;;  %v10550_v63 = vld [vmem:[%s12442_s27 + $0xe78] sm:$0xf0] }
 0x3da   : > { %8261 = vmatpush.bf16.msrb.mxu2 %v10113_v33  ;;  %v10454_v33 = vld [vmem:[%s12442_s27 + $0xdb8] sm:$0xf0]  ;;  %v11243_v30 = vld [vmem:[%s12442_s27 + $0xf74] sm:$0xf] }
 0x3db   : > { %8274 = vmatpush.bf16.msrb.mxu3 %v10177_v18  ;;  %8236 = vmatmul.bf16.vlgmr.msrb.gmra.mxu0 %v12937_v8  ;;  %v10281_v8 = vor.u32 %v11143_v35, %v10278_v44  ;;  %v8043_v14 = vadd.f32 %v8042_v3, %v8030_v1  ;;  %v10393_v18 = vor.u32 %v11171_v5, %v10390_v7  ;;  %v11227_v1 = vld [vmem:[%s12442_s27 + $0xef4] sm:$0xf]  ;;  %v10678_v5 = vld [vmem:[%s12442_s27 + $0xf78] sm:$0xf0] }
 0x3dc   : > { %8280 = vmatpush.bf16.msra.mxu0 %v10297_v52  ;;  %8249 = vmatmul.bf16.vlgmr.msrb.gmra.mxu1 %v12944_v13  ;;  %v10473_v13 = vor.u32 %v11191_v53, %v10470_v45  ;;  %v11137_v52 = vld [vmem:[%s12442_s27 + $0xc24] sm:$0xf]  ;;  %v10457_v4 = vor.u32 %v11187_v11, %v10454_v33  ;;  %v10310_v53 = vld [vmem:[%s12442_s27 + $0xc98] sm:$0xf0]  ;;  %v11167_v45 = vld [vmem:[%s12442_s27 + $0xd14] sm:$0xf]  ;;  %v10305_v7 = vor.u32 %v11149_v57, %v10302_v59 }
 0x3dd   : > { %8293 = vmatpush.bf16.msra.mxu1 %v10361_v24  ;;  %8262 = vmatmul.bf16.vlgmr.msrb.gmra.mxu2 %v12942_v12  ;;  %v11157_v12 = vld [vmem:[%s12442_s27 + $0xcc4] sm:$0xf]  ;;  %v10254_v24 = vld [vmem:[%s12442_s27 + $0xc28] sm:$0xf0]  ;;  %v11259_v33 = vld [vmem:[%s12442_s27 + $0xff4] sm:$0xf] }
 0x3de   : > { %8306 = vmatpush.bf16.msra.mxu2 %v10425_v38  ;;  %8275 = vmatmul.bf16.vlgmr.msrb.gmra.mxu3 %v12948_v16  ;;  %v10462_v16 = vld [vmem:[%s12442_s27 + $0xdc8] sm:$0xf0]  ;;  %v10337_v0 = vor.u32 %v11157_v12, %v10334_v49  ;;  %v11153_v38 = vld [vmem:[%s12442_s27 + $0xca4] sm:$0xf] }
 0x3df   : > { %8319 = vmatpush.bf16.msra.mxu3 %v10489_v23  ;;  %v10465_v29 = vor.u32 %v11189_v60, %v10462_v16  ;;  %v11169_v23 = vld [vmem:[%s12442_s27 + $0xd24] sm:$0xf]  ;;  %v10321_v35 = vor.u32 %v11153_v38, %v10318_v41  ;;  %v10238_v12 = vld [vmem:[%s12442_s27 + $0xc08] sm:$0xf0] }
 0x3e0   : > { %8281 = vmatpush.bf16.msra.mxu0 %v10289_v42  ;;  %v8055_v26 = vpop.f32.mrf.mxu2  ;;  %v10257_v42 = vor.u32 %v11137_v52, %v10254_v24  ;;  %v10385_v44 = vor.u32 %v11169_v23, %v10382_v36  ;;  %v11165_v60 = vld [vmem:[%s12442_s27 + $0xd04] sm:$0xf]  ;;  %v10241_v3 = vor.u32 %v11133_v56, %v10238_v12  ;;  %v10681_v52 = vor.u32 %v11243_v30, %v10678_v5  ;;  %v10542_v38 = vld [vmem:[%s12442_s27 + $0xe68] sm:$0xf0] }
 0x3e1   : > { %8294 = vmatpush.bf16.msra.mxu1 %v10353_v43  ;;  %v8056_v40 = vadd.f32 %v8055_v26, %v8043_v14  ;;  %v8068_v20 = vpop.f32.mrf.mxu3  ;;  %v8044_v51 = vpop.f32.mrf.mxu1  ;;  %v10369_v11 = vor.u32 %v11165_v60, %v10366_v61  ;;  %v10742_v14 = vld [vmem:[%s12442_s27 + $0xff8] sm:$0xf0]  ;;  %v11209_v24 = vld [vmem:[%s12442_s27 + $0xe64] sm:$0xf]  ;;  %v10606_v41 = vld [vmem:[%s12442_s27 + $0xee8] sm:$0xf0] }
 0x3e2   : > { %8307 = vmatpush.bf16.msra.mxu2 %v10417_v48  ;;  %v8031_v48 = vpop.f32.mrf.mxu0  ;;  %v11225_v26 = vld [vmem:[%s12442_s27 + $0xee4] sm:$0xf]  ;;  %v10670_v36 = vld [vmem:[%s12442_s27 + $0xf68] sm:$0xf0]  ;;  %v10545_v6 = vor.u32 %v11209_v24, %v10542_v38  ;;  %v10662_v51 = vld [vmem:[%s12442_s27 + $0xf58] sm:$0xf0] }
 0x3e3   : > { %8320 = vmatpush.bf16.msra.mxu3 %v10481_v37  ;;  %v13582_v43 = vadd.f32 %v8068_v20, %v8056_v40  ;;  %v10246_v37 = vld [vmem:[%s12442_s27 + $0xc18] sm:$0xf0]  ;;  %v11241_v23 = vld [vmem:[%s12442_s27 + $0xf64] sm:$0xf]  ;;  %v10734_v20 = vld [vmem:[%s12442_s27 + $0xfe8] sm:$0xf0]  ;;  %v10609_v31 = vor.u32 %v11225_v26, %v10606_v41 }
 0x3e4   : > { %8282 = vmatpush.bf16.msra.mxu0 %v10281_v8  ;;  %v10374_v8 = vld [vmem:[%s12442_s27 + $0xd18] sm:$0xf0]  ;;  %v10249_v55 = vor.u32 %v11135_v50, %v10246_v37  ;;  %v11257_v40 = vld [vmem:[%s12442_s27 + $0xfe4] sm:$0xf]  ;;  %v11207_v48 = vld [vmem:[%s12442_s27 + $0xe54] sm:$0xf] }
 0x3e5   : > { %8295 = vmatpush.bf16.msra.mxu1 %v10345_v46  ;;  %v11183_v46 = vld [vmem:[%s12442_s27 + $0xd94] sm:$0xf]  ;;  %v10377_v49 = vor.u32 %v11167_v45, %v10374_v8  ;;  %v10737_v50 = vor.u32 %v11257_v40, %v10734_v20  ;;  %v10598_v37 = vld [vmem:[%s12442_s27 + $0xed8] sm:$0xf0]  ;;  %v11237_v56 = vld [vmem:[%s12442_s27 + $0xf44] sm:$0xf] }
 0x3e6   : > { %8308 = vmatpush.bf16.msra.mxu2 %v10409_v54  ;;  %v10438_v54 = vld [vmem:[%s12442_s27 + $0xd98] sm:$0xf0]  ;;  %v10654_v12 = vld [vmem:[%s12442_s27 + $0xf48] sm:$0xf0]  ;;  %v11203_v61 = vld [vmem:[%s12442_s27 + $0xe34] sm:$0xf] }
 0x3e7   : > { %8321 = vmatpush.bf16.msra.mxu3 %v10473_v13  ;;  %v10313_v13 = vor.u32 %v11151_v21, %v10310_v53  ;;  %v11239_v21 = vld [vmem:[%s12442_s27 + $0xf54] sm:$0xf]  ;;  %v10726_v53 = vld [vmem:[%s12442_s27 + $0xfd8] sm:$0xf0]  ;;  %v10638_v24 = vld [vmem:[%s12442_s27 + $0xf28] sm:$0xf0] }
 0x3e8   : > { %8283 = vmatpush.bf16.msra.mxu0 %v10273_v47  ;;  %v8057_v16 = vpop.f32.mrf.mxu2  ;;  %v10441_v47 = vor.u32 %v11183_v46, %v10438_v54  ;;  %v10665_v8 = vor.u32 %v11239_v21, %v10662_v51  ;;  %v11205_v46 = vld [vmem:[%s12442_s27 + $0xe44] sm:$0xf]  ;;  %v10526_v54 = vld [vmem:[%s12442_s27 + $0xe48] sm:$0xf0]  ;;  %v10630_v21 = vld [vmem:[%s12442_s27 + $0xf18] sm:$0xf0] }
 0x3e9   : > { %8296 = vmatpush.bf16.msra.mxu1 %v10337_v0  ;;  %v11181_v0 = vld [vmem:[%s12442_s27 + $0xd84] sm:$0xf]  ;;  %v8070_v19 = vpop.f32.mrf.mxu3  ;;  %v10529_v59 = vor.u32 %v11205_v46, %v10526_v54  ;;  %v10702_v41 = vld [vmem:[%s12442_s27 + $0xfa8] sm:$0xf0]  ;;  %v11247_v51 = vld [vmem:[%s12442_s27 + $0xf94] sm:$0xf] }
 0x3ea   : > { %8309 = vmatpush.bf16.msra.mxu2 %v10401_v62  ;;  %v10430_v62 = vld [vmem:[%s12442_s27 + $0xd88] sm:$0xf0]  ;;  %v11213_v54 = vld [vmem:[%s12442_s27 + $0xe84] sm:$0xf] }
 0x3eb   : > { %8322 = vmatpush.bf16.msra.mxu3 %v10465_v29  ;;  %v10614_v29 = vld [vmem:[%s12442_s27 + $0xef8] sm:$0xf0]  ;;  %v10494_v46 = vld [vmem:[%s12442_s27 + $0xe08] sm:$0xf0] }
 0x3ec   : > { %8284 = vmatpush.bf16.msra.mxu0 %v10265_v17  ;;  %v10433_v17 = vor.u32 %v11181_v0, %v10430_v62  ;;  %v10518_v0 = vld [vmem:[%s12442_s27 + $0xe38] sm:$0xf0]  ;;  %v11219_v62 = vld [vmem:[%s12442_s27 + $0xeb4] sm:$0xf] }
 0x3ed   : > { %8297 = vmatpush.bf16.msra.mxu1 %v10329_v28  ;;  %v10553_v28 = vor.u32 %v11211_v25, %v10550_v63  ;;  %v10582_v63 = vld [vmem:[%s12442_s27 + $0xeb8] sm:$0xf0]  ;;  %v10521_v30 = vor.u32 %v11203_v61, %v10518_v0 }
 0x3ee   : > { %8310 = vmatpush.bf16.msra.mxu2 %v10393_v18  ;;  %v10617_v18 = vor.u32 %v11227_v1, %v10614_v29  ;;  %v11235_v1 = vld [vmem:[%s12442_s27 + $0xf34] sm:$0xf]  ;;  %v10710_v29 = vld [vmem:[%s12442_s27 + $0xfb8] sm:$0xf0]  ;;  %v10585_v5 = vor.u32 %v11219_v62, %v10582_v63 }
 0x3ef   : > { %8323 = vmatpush.bf16.msra.mxu3 %v10457_v4  ;;  %v10745_v4 = vor.u32 %v11259_v33, %v10742_v14  ;;  %v10510_v33 = vld [vmem:[%s12442_s27 + $0xe28] sm:$0xf0]  ;;  %v11217_v14 = vld [vmem:[%s12442_s27 + $0xea4] sm:$0xf] }
 0x3f0   : > { %8285 = vmatpush.bf16.msra.mxu0 %v10257_v42  ;;  %v10673_v42 = vor.u32 %v11241_v23, %v10670_v36 }
 0x3f1   : > { %8298 = vmatpush.bf16.msra.mxu1 %v10321_v35  ;;  %v10534_v35 = vld [vmem:[%s12442_s27 + $0xe58] sm:$0xf0] }
 0x3f2   : > { %8311 = vmatpush.bf16.msra.mxu2 %v10385_v44  ;;  %v11223_v44 = vld [vmem:[%s12442_s27 + $0xed4] sm:$0xf] }
 0x3f3   : > { %8324 = vmatpush.bf16.msra.mxu3 %v10449_v58  ;;  %v11255_v58 = vld [vmem:[%s12442_s27 + $0xfd4] sm:$0xf]  ;;  %v10601_v45 = vor.u32 %v11223_v44, %v10598_v37 }
 0x3f4   : > { %8286 = vmatpush.bf16.msra.mxu0 %v10249_v55  ;;  %v10590_v55 = vld [vmem:[%s12442_s27 + $0xec8] sm:$0xf0]  ;;  %v11231_v37 = vld [vmem:[%s12442_s27 + $0xf14] sm:$0xf] }
 0x3f5   : > { %8299 = vmatpush.bf16.msra.mxu1 %v10313_v13  ;;  %v11253_v13 = vld [vmem:[%s12442_s27 + $0xfc4] sm:$0xf] }
 0x3f6   : > { %8312 = vmatpush.bf16.msra.mxu2 %v10377_v49  ;;  %v10718_v49 = vld [vmem:[%s12442_s27 + $0xfc8] sm:$0xf0] }
 0x3f7   : > { %8325 = vmatpush.bf16.msra.mxu3 %v10441_v47  ;;  %v10657_v47 = vor.u32 %v11237_v56, %v10654_v12  ;;  %v10721_v19 = vor.u32 %v11253_v13, %v10718_v49  ;;  %v10622_v56 = vld [vmem:[%s12442_s27 + $0xf08] sm:$0xf0] }
 0x3f8   : > { %8287 = vmatpush.bf16.msra.mxu0 %v10241_v3  ;;  %v11251_v3 = vld [vmem:[%s12442_s27 + $0xfb4] sm:$0xf]  ;;  %v10686_v13 = vld [vmem:[%s12442_s27 + $0xf88] sm:$0xf0] }
 0x3f9   : > { %8300 = vmatpush.bf16.msra.mxu1 %v10305_v7  ;;  %v8094_v60 = vpop.f32.mrf.mxu1 }
 0x3fa   : > { %8313 = vmatpush.bf16.msra.mxu2 %v10369_v11  ;;  %v11201_v11 = vld [vmem:[%s12442_s27 + $0xe24] sm:$0xf] }
 0x3fb   : > { %8326 = vmatpush.bf16.msra.mxu3 %v10433_v17  ;;  %8288 = vmatmul.bf16.vlgmr.msra.gmra.mxu0 %v13022_v2  ;;  %v10537_v2 = vor.u32 %v11207_v48, %v10534_v35  ;;  %v10713_v17 = vor.u32 %v11251_v3, %v10710_v29  ;;  %v10513_v36 = vor.u32 %v11201_v11, %v10510_v33  ;;  %v10502_v48 = vld [vmem:[%s12442_s27 + $0xe18] sm:$0xf0]  ;;  %v11215_v35 = vld [vmem:[%s12442_s27 + $0xe94] sm:$0xf] }
 0x3fc   : > { %8332 = vmatpush.bf16.msrb.mxu0 %v10553_v28  ;;  %8301 = vmatmul.bf16.vlgmr.msra.gmra.mxu1 %v13029_v10  ;;  %v10729_v10 = vor.u32 %v11255_v58, %v10726_v53  ;;  %v10694_v58 = vld [vmem:[%s12442_s27 + $0xf98] sm:$0xf0] }
 0x3fd   : > { %8345 = vmatpush.bf16.msrb.mxu1 %v10617_v18  ;;  %8314 = vmatmul.bf16.vlgmr.msra.gmra.mxu2 %v13027_v9  ;;  %v11221_v9 = vld [vmem:[%s12442_s27 + $0xec4] sm:$0xf]  ;;  %v10574_v18 = vld [vmem:[%s12442_s27 + $0xea8] sm:$0xf0] }
 0x3fe   : > { %8358 = vmatpush.bf16.msrb.mxu2 %v10681_v52  ;;  %8327 = vmatmul.bf16.vlgmr.msra.gmra.mxu3 %v13033_v15  ;;  %v8081_v15 = vpop.f32.mrf.mxu0  ;;  %v10593_v16 = vor.u32 %v11221_v9, %v10590_v55  ;;  %v11233_v52 = vld [vmem:[%s12442_s27 + $0xf24] sm:$0xf]  ;;  %v10697_v9 = vor.u32 %v11247_v51, %v10694_v58 }
 0x3ff   : > { %8371 = vmatpush.bf16.msrb.mxu3 %v10745_v4  ;;  %v8082_v57 = vadd.f32 %v8081_v15, %v13582_v43  ;;  %v10646_v43 = vld [vmem:[%s12442_s27 + $0xf38] sm:$0xf0]  ;;  %v11249_v4 = vld [vmem:[%s12442_s27 + $0xfa4] sm:$0xf] }
 0x400   : > { %8333 = vmatpush.bf16.msrb.mxu0 %v10545_v6  ;;  %v10649_v7 = vor.u32 %v11235_v1, %v10646_v43  ;;  %v8107_v28 = vpop.f32.mrf.mxu2  ;;  %v10577_v6 = vor.u32 %v11217_v14, %v10574_v18  ;;  %v10705_v44 = vor.u32 %v11249_v4, %v10702_v41  ;;  %v11229_v55 = vld [vmem:[%s12442_s27 + $0xf04] sm:$0xf] }
 0x401   : > { %8346 = vmatpush.bf16.msrb.mxu1 %v10609_v31  ;;  %v8095_v25 = vadd.f32 %v8094_v60, %v8082_v57  ;;  %v8120_v26 = vpop.f32.mrf.mxu3  ;;  %v8096_v40 = vpop.f32.mrf.mxu1  ;;  %v10641_v31 = vor.u32 %v11233_v52, %v10638_v24  ;;  %v11245_v15 = vld [vmem:[%s12442_s27 + $0xf84] sm:$0xf]  ;;  %v10625_v60 = vor.u32 %v11229_v55, %v10622_v56 }
 0x402   : > { %8359 = vmatpush.bf16.msrb.mxu2 %v10673_v42  ;;  %v11199_v42 = vld [vmem:[%s12442_s27 + $0xe14] sm:$0xf] }
 0x403   : > { %8372 = vmatpush.bf16.msrb.mxu3 %v10737_v50  ;;  %v8108_v38 = vadd.f32 %v8107_v28, %v8095_v25  ;;  %v10566_v50 = vld [vmem:[%s12442_s27 + $0xe98] sm:$0xf0]  ;;  %v10505_v53 = vor.u32 %v11199_v42, %v10502_v48 }
 0x404   : > { %8334 = vmatpush.bf16.msrb.mxu0 %v10537_v2  ;;  %v10569_v2 = vor.u32 %v11215_v35, %v10566_v50 }
 0x405   : > { %8347 = vmatpush.bf16.msrb.mxu1 %v10601_v45  ;;  %v8121_v20 = vadd.f32 %v8120_v26, %v8108_v38  ;;  %v10633_v45 = vor.u32 %v11231_v37, %v10630_v21 }
 0x406   : > { %8360 = vmatpush.bf16.msrb.mxu2 %v10665_v8  ;;  %v8083_v23 = vpop.f32.mrf.mxu0  ;;  %v11197_v8 = vld [vmem:[%s12442_s27 + $0xe04] sm:$0xf] }
 0x407   : > { %8373 = vmatpush.bf16.msrb.mxu3 %v10729_v10  ;;  %v10558_v10 = vld [vmem:[%s12442_s27 + $0xe88] sm:$0xf0]  ;;  %v10497_v57 = vor.u32 %v11197_v8, %v10494_v46  ;;  %s8696_s27 = sshll.u32 %s11342_s11, 1 }
 0x408   : > { %8335 = vmatpush.bf16.msrb.mxu0 %v10529_v59  ;;  %v8109_v12 = vpop.f32.mrf.mxu2  ;;  %v10561_v59 = vor.u32 %v11213_v54, %v10558_v10  ;;  %p4345_p9 = scmp.lt.s32.totalorder %s8696_s27, 3 }
 0x409   : > { %8348 = vmatpush.bf16.msrb.mxu1 %v10593_v16  ;;  %v8122_v49 = vpop.f32.mrf.mxu3  ;;  %v10689_v16 = vor.u32 %v11245_v15, %v10686_v13  ;;  %v11352_v12 = vmov 4.0  }
 0x40a   : > { %8361 = vmatpush.bf16.msrb.mxu2 %v10657_v47  ;;  %11302 = vrcp.f32 %v11352_v12  ;;  %s13728_s27 = smov (!%p4345_p9, %s8696_s27), 3 }
 0x40b   : > { %8374 = vmatpush.bf16.msrb.mxu3 %v10721_v19  ;;  %s8697_s16 = sshll.u32 %s13728_s27, 2 }
 0x40c   : > { %8336 = vmatpush.bf16.msrb.mxu0 %v10521_v30  ;;  %s4350_s19 = scalar_lea.vmem %s13720_s2, %s8697_s16 }
 0x40d   : > { %8349 = vmatpush.bf16.msrb.mxu1 %v10585_v5 }
 0x40e   : > { %8362 = vmatpush.bf16.msrb.mxu2 %v10649_v7 }
 0x40f   : > { %8375 = vmatpush.bf16.msrb.mxu3 %v10713_v17 }
 0x410   : > { %8337 = vmatpush.bf16.msrb.mxu0 %v10513_v36 }
 0x411   : > { %8350 = vmatpush.bf16.msrb.mxu1 %v10577_v6 }
 0x412   : > { %8363 = vmatpush.bf16.msrb.mxu2 %v10641_v31 }
 0x413   : > { %8376 = vmatpush.bf16.msrb.mxu3 %v10705_v44 }
 0x414   : > { %8338 = vmatpush.bf16.msrb.mxu0 %v10505_v53 }
 0x415   : > { %8351 = vmatpush.bf16.msrb.mxu1 %v10569_v2 }
 0x416   : > { %8364 = vmatpush.bf16.msrb.mxu2 %v10633_v45 }
 0x417   : > { %8377 = vmatpush.bf16.msrb.mxu3 %v10697_v9 }
 0x418   : > { %8339 = vmatpush.bf16.msrb.mxu0 %v10497_v57  ;;  %v8133_v47 = vpop.f32.mrf.mxu0 }
 0x419   : > { %8352 = vmatpush.bf16.msrb.mxu1 %v10561_v59  ;;  %v8134_v61 = vadd.f32 %v8133_v47, %v8121_v20  ;;  %v8146_v0 = vpop.f32.mrf.mxu1  ;;  %v11303_v59 = vpop.eup %11302 }
 0x41a   : > { %8365 = vmatpush.bf16.msrb.mxu2 %v10625_v60  ;;  %vm8437_vm1 = vweird.f32 %v11303_v59 }
 0x41b   : > { %8378 = vmatpush.bf16.msrb.mxu3 %v10689_v16  ;;  %8340 = vmatmul.bf16.vlgmr.msrb.gmra.mxu0 %v13107_v22  ;;  %v8147_v62 = vadd.f32 %v8146_v0, %v8134_v61 }
 0x41c   : > { %8353 = vmatmul.bf16.vlgmr.msrb.gmra.mxu1 %v13114_v32 }
 0x41d   : > { %8366 = vmatmul.bf16.vlgmr.msrb.gmra.mxu2 %v13112_v27 }
 0x41e   : > { %8379 = vmatmul.bf16.vlgmr.msrb.gmra.mxu3 %v13118_v39 }
 0x420   : > { %v8159_v19 = vpop.f32.mrf.mxu2  ;;  %v8135_v1 = vpop.f32.mrf.mxu0 }
 0x421   : > { %v8160_v25 = vadd.f32 %v8159_v19, %v8147_v62  ;;  %v8172_v63 = vpop.f32.mrf.mxu3  ;;  %v8148_v43 = vpop.f32.mrf.mxu1  ;;  %v8433_v62 = vmul.f32 4.0, %v11303_v59 }
 0x423   : > { %v8173_v3 = vadd.f32 %v8172_v63, %v8160_v25  ;;  %v8434_v19 = vsub.f32 1.0, %v8433_v62 }
 0x428   : > { %v8161_v29 = vpop.f32.mrf.mxu2 }
 0x429   : > { %v8174_v30 = vpop.f32.mrf.mxu3 }
 0x438   : > { %v8185_v5 = vpop.f32.mrf.mxu0 }
 0x439   : > { %v8186_v22 = vadd.f32 %v8185_v5, %v8173_v3  ;;  %v8198_v7 = vpop.f32.mrf.mxu1 }
 0x43b   : > { %v8199_v32 = vadd.f32 %v8198_v7, %v8186_v22 }
 0x440   : > { %v8211_v11 = vpop.f32.mrf.mxu2  ;;  %v8187_v39 = vpop.f32.mrf.mxu0 }
 0x441   : > { %v8212_v27 = vadd.f32 %v8211_v11, %v8199_v32  ;;  %v8224_v33 = vpop.f32.mrf.mxu3  ;;  %v8200_v14 = vpop.f32.mrf.mxu1  ;;  %v8435_v11 = vmul.f32 %v11303_v59, %v8434_v19 }
 0x443   : > { %v8225_v17 = vadd.f32 %v8224_v33, %v8212_v27 }
 0x448   : > { %v8213_v28 = vpop.f32.mrf.mxu2 }
 0x449   : > { %v8226_v18 = vpop.f32.mrf.mxu3 }
 0x458   : > { %v8237_v52 = vpop.f32.mrf.mxu0 }
 0x459   : > { %v8250_v24 = vpop.f32.mrf.mxu1  ;;  %v8238_v6 = vadd.f32 %v8237_v52, %v8225_v17 }
 0x45b   : > { %v8251_v44 = vadd.f32 %v8250_v24, %v8238_v6  ;;  %v8436_v24 = vadd.f32 %v11303_v59, %v8435_v11 }
 0x45d   : > { %v8438_v6 = vsel %vm8437_vm1, %v11303_v59, %v8436_v24 }
 0x460   : > { %v8263_v38 = vpop.f32.mrf.mxu2  ;;  %v8239_v4 = vpop.f32.mrf.mxu0 }
 0x461   : > { %v8276_v26 = vpop.f32.mrf.mxu3  ;;  %v8252_v41 = vpop.f32.mrf.mxu1  ;;  %v8264_v50 = vadd.f32 %v8263_v38, %v8251_v44 }
 0x463   : > { %v8277_v51 = vadd.f32 %v8276_v26, %v8264_v50 }
 0x468   : > { %v8265_v23 = vpop.f32.mrf.mxu2 }
 0x469   : > { %v8278_v36 = vpop.f32.mrf.mxu3 }
 0x478   : > { %v8289_v40 = vpop.f32.mrf.mxu0 }
 0x479   : > { %v8302_v20 = vpop.f32.mrf.mxu1  ;;  %v8290_v58 = vadd.f32 %v8289_v40, %v8277_v51 }
 0x47b   : > { %v8303_v53 = vadd.f32 %v8302_v20, %v8290_v58 }
 0x480   : > { %v8315_v31 = vpop.f32.mrf.mxu2  ;;  %v8291_v48 = vpop.f32.mrf.mxu0 }
 0x481   : > { %v8328_v42 = vpop.f32.mrf.mxu3  ;;  %v8304_v35 = vpop.f32.mrf.mxu1  ;;  %v8316_v2 = vadd.f32 %v8315_v31, %v8303_v53 }
 0x483   : > { %v8329_v45 = vadd.f32 %v8328_v42, %v8316_v2 }
 0x488   : > { %v8317_v37 = vpop.f32.mrf.mxu2 }
 0x489   : > { %v8330_v21 = vpop.f32.mrf.mxu3 }
 0x498   : > { %v8341_v8 = vpop.f32.mrf.mxu0 }
 0x499   : > { %v8354_v46 = vpop.f32.mrf.mxu1  ;;  %v8342_v54 = vadd.f32 %v8341_v8, %v8329_v45 }
 0x49b   : > { %v8355_v9 = vadd.f32 %v8354_v46, %v8342_v54 }
 0x4a0   : > { %v8367_v10 = vpop.f32.mrf.mxu2  ;;  %v8343_v15 = vpop.f32.mrf.mxu0 }
 0x4a1   : > { %v8368_v55 = vadd.f32 %v8367_v10, %v8355_v9  ;;  %v8380_v56 = vpop.f32.mrf.mxu3  ;;  %v8356_v13 = vpop.f32.mrf.mxu1 }
 0x4a3   : > { %v8381_v49 = vadd.f32 %v8380_v56, %v8368_v55 }
 0x4a5   : > { %v8386_v57 = vrot.slane %v8381_v49, 4 }
 0x4a7   : > { %v8388_v60 = vsel %vm8387_vm0, %v13441_v34, %v8386_v57  ;;  %v8389_v16 = vsel %vm8387_vm0, %v8386_v57, %v13441_v34 }
 0x4a8   : > { %v8390_v47 = vrot.slane %v8389_v16, 4  ;;  %8393 = vst [vmem:[#allocation1] ss:$2 sm:$0xff] %v8388_v60  ;;  %v8369_v61 = vpop.f32.mrf.mxu2 }
 0x4a9   : > { %v8382_v0 = vpop.f32.mrf.mxu3 }
 0x4aa   : > { %8397 = vst [vmem:[#allocation1 + $0x10] ss:$2 sm:$0xff] %v8390_v47 }
 0x4af   : > { %v8394_v25 = vld.sshfl [vmem:[#allocation1] sm:$0xff pattern:$0x75316420]  ;;  %v8395_v63 = vld.sshfl [vmem:[#allocation1 + $0x8] sm:$0xff pattern:$0x75316420] }
 0x4b0   : > { %v8404_v1 = vsel %vm8387_vm0, %v8394_v25, 0.0  ;;  %v8411_v43 = vsel %vm8387_vm0, %v8395_v63, 0.0 }
 0x4b1   : > { %v8398_v3 = vld.sshfl [vmem:[#allocation1 + $0x10] sm:$0xff pattern:$0x75316420]  ;;  %v8399_v29 = vld.sshfl [vmem:[#allocation1 + $0x18] sm:$0xff pattern:$0x75316420] }
 0x4b2   : > { %v8405_v30 = vrot.slane %v8404_v1, 4  ;;  %v8412_v5 = vrot.slane %v8411_v43, 4  ;;  %v8418_v22 = vsel %vm8387_vm0, %v8398_v3, 0.0  ;;  %v8425_v34 = vsel %vm8387_vm0, %v8399_v29, 0.0 }
 0x4b3   : > { %v8419_v7 = vrot.slane %v8418_v22, 4  ;;  %v8426_v32 = vrot.slane %v8425_v34, 4 }
 0x4b4   : > { %v8406_v27 = vadd.f32 %v8405_v30, %v8404_v1  ;;  %v8413_v33 = vadd.f32 %v8412_v5, %v8411_v43 }
 0x4b5   : > { %v8420_v39 = vadd.f32 %v8419_v7, %v8418_v22  ;;  %v8427_v14 = vadd.f32 %v8426_v32, %v8425_v34 }
 0x4b6   : > { %v8407_v17 = vrot.slane %v8406_v27, 2  ;;  %v8414_v28 = vrot.slane %v8413_v33, 2 }
 0x4b7   : > { %v8421_v18 = vrot.slane %v8420_v39, 2  ;;  %v8428_v52 = vrot.slane %v8427_v14, 2 }
 0x4b8   : > { %v8408_v38 = vadd.f32 %v8407_v17, %v8406_v27  ;;  %v8415_v26 = vadd.f32 %v8414_v28, %v8413_v33 }
 0x4b9   : > { %v8422_v4 = vadd.f32 %v8421_v18, %v8420_v39  ;;  %v8429_v41 = vadd.f32 %v8428_v52, %v8427_v14 }
 0x4ba   : > { %v8409_v23 = vrot.slane %v8408_v38, 1  ;;  %v8416_v36 = vrot.slane %v8415_v26, 1 }
 0x4bb   : > { %v8423_v40 = vrot.slane %v8422_v4, 1  ;;  %v8430_v20 = vrot.slane %v8429_v41, 1 }
 0x4bc   : > { %v8410_v31 = vadd.f32 %v8409_v23, %v8408_v38  ;;  %v8417_v42 = vadd.f32 %v8416_v36, %v8415_v26 }
 0x4bd   : > { %v8424_v48 = vadd.f32 %v8423_v40, %v8422_v4  ;;  %v8431_v35 = vadd.f32 %v8430_v20, %v8429_v41 }
 0x4be   : > { %v8440_v44 = vmul.f32 %v8438_v6, %v8417_v42  ;;  %v8439_v37 = vmul.f32 %v8438_v6, %v8410_v31 }
 0x4bf   : > { %v8442_v50 = vmul.f32 %v8438_v6, %v8431_v35  ;;  %v8441_v51 = vmul.f32 %v8438_v6, %v8424_v48 }
 0x4c0   : > { %v8447_v21 = vrot.slane %v8440_v44, 4 }
 0x4c1   : > { %v8448_v58 = vrot.slane %v8442_v50, 4 }
 0x4c2   : > { %v8449_v53 = vsel %vm8387_vm0, %v8439_v37, %v8447_v21 }
 0x4c3   : > { %v8450_v2 = vsel %vm8387_vm0, %v8441_v51, %v8448_v58  ;;  %v13683_v45 = vsub.f32 %v8388_v60, %v8449_v53 }
 0x4c4   : > { %v13685_v8 = vsub.f32 %v8390_v47, %v8450_v2 }
 0x4c5   : > { %v8455_v46 = vmul.f32 %v13683_v45, %v13683_v45 }
 0x4c6   : > { %v8456_v54 = vmul.f32 %v13685_v8, %v13685_v8 }
 0x4c7   : > { %8459 = vst [vmem:[#allocation1] ss:$2 sm:$0xff] %v8455_v46 }
 0x4c8   : > { %8463 = vst [vmem:[#allocation1 + $0x10] ss:$2 sm:$0xff] %v8456_v54 }
 0x4ce   : > { %v8460_v9 = vld.sshfl [vmem:[#allocation1] sm:$0xff pattern:$0x75316420]  ;;  %v8461_v10 = vld.sshfl [vmem:[#allocation1 + $0x8] sm:$0xff pattern:$0x75316420] }
 0x4cf   : > { %v8464_v55 = vld.sshfl [vmem:[#allocation1 + $0x10] sm:$0xff pattern:$0x75316420]  ;;  %v8465_v56 = vld.sshfl [vmem:[#allocation1 + $0x18] sm:$0xff pattern:$0x75316420] }
 0x4d0   : > { %v8470_v12 = vsel %vm8387_vm0, %v8460_v9, 0.0  ;;  %v8477_v15 = vsel %vm8387_vm0, %v8461_v10, 0.0  ;;  %v8484_v13 = vsel %vm8387_vm0, %v8464_v55, 0.0  ;;  %v8491_v49 = vsel %vm8387_vm0, %v8465_v56, 0.0 }
 0x4d1   : > { %v8471_v57 = vrot.slane %v8470_v12, 4  ;;  %v8478_v59 = vrot.slane %v8477_v15, 4  ;;  %v8485_v60 = vrot.slane %v8484_v13, 4  ;;  %v8492_v16 = vrot.slane %v8491_v49, 4 }
 0x4d3   : > { %v8472_v47 = vadd.f32 %v8471_v57, %v8470_v12  ;;  %v8479_v61 = vadd.f32 %v8478_v59, %v8477_v15  ;;  %v8486_v0 = vadd.f32 %v8485_v60, %v8484_v13  ;;  %v8493_v62 = vadd.f32 %v8492_v16, %v8491_v49 }
 0x4d5   : > { %v8473_v19 = vrot.slane %v8472_v47, 2  ;;  %v8480_v25 = vrot.slane %v8479_v61, 2  ;;  %v8487_v63 = vrot.slane %v8486_v0, 2  ;;  %v8494_v1 = vrot.slane %v8493_v62, 2 }
 0x4d7   : > { %v8474_v43 = vadd.f32 %v8473_v19, %v8472_v47  ;;  %v8481_v3 = vadd.f32 %v8480_v25, %v8479_v61  ;;  %v8488_v29 = vadd.f32 %v8487_v63, %v8486_v0  ;;  %v8495_v30 = vadd.f32 %v8494_v1, %v8493_v62 }
 0x4d9   : > { %v8475_v5 = vrot.slane %v8474_v43, 1  ;;  %v8482_v22 = vrot.slane %v8481_v3, 1  ;;  %v8489_v34 = vrot.slane %v8488_v29, 1  ;;  %v8496_v7 = vrot.slane %v8495_v30, 1 }
 0x4db   : > { %v8476_v32 = vadd.f32 %v8475_v5, %v8474_v43  ;;  %v8483_v11 = vadd.f32 %v8482_v22, %v8481_v3  ;;  %v8490_v27 = vadd.f32 %v8489_v34, %v8488_v29  ;;  %v8497_v33 = vadd.f32 %v8496_v7, %v8495_v30 }
 0x4dd   : > { %v8498_v39 = vmul.f32 %v8476_v32, %v8438_v6  ;;  %v8499_v14 = vmul.f32 %v8483_v11, %v8438_v6  ;;  %v8500_v17 = vmul.f32 %v8490_v27, %v8438_v6  ;;  %v8501_v28 = vmul.f32 %v8497_v33, %v8438_v6 }
 0x4df   : > { %v8502_v18 = vadd.f32 1e-05, %v8498_v39  ;;  %v8503_v52 = vadd.f32 1e-05, %v8499_v14  ;;  %v8504_v24 = vadd.f32 1e-05, %v8500_v17 }
 0x4e0   : > { %v8505_v38 = vadd.f32 1e-05, %v8501_v28 }
 0x4e1   : > { %11304 = vrsqrt.f32 %v8502_v18  ;;  %vm8522_vm4 = vweird.f32 %v8503_v52  ;;  %vm8512_vm6 = vweird.f32 %v8502_v18  ;;  %vm8532_vm12 = vweird.f32 %v8504_v24 }
 0x4e2   : > { %11306 = vrsqrt.f32 %v8503_v52  ;;  %vm8542_vm8 = vweird.f32 %v8505_v38 }
 0x4e3   : > { %11308 = vrsqrt.f32 %v8504_v24 }
 0x4e4   : > { %11310 = vrsqrt.f32 %v8505_v38 }
 0x4e7   : > { %v11305_v26 = vpop.eup %11304 }
 0x4e8   : > { %v11307_v4 = vpop.eup %11306  ;;  %v8507_v41 = vmul.f32 %v11305_v26, %v8502_v18  ;;  %vm8513_vm3 = vweird.f32 %v11305_v26 }
 0x4e9   : > { %v11309_v23 = vpop.eup %11308  ;;  %v8517_v36 = vmul.f32 %v11307_v4, %v8503_v52  ;;  %vm8523_vm2 = vweird.f32 %v11307_v4  ;;  %vm8514_vm9 = vmor %vm8512_vm6, %vm8513_vm3 }
 0x4ea   : > { %v11311_v40 = vpop.eup %11310  ;;  %v8508_v20 = vmul.f32 %v11305_v26, %v8507_v41  ;;  %v8527_v31 = vmul.f32 %v11309_v23, %v8504_v24  ;;  %vm8524_vm7 = vmor %vm8522_vm4, %vm8523_vm2  ;;  %vm8533_vm10 = vweird.f32 %v11309_v23 }
 0x4eb   : > { %v8518_v42 = vmul.f32 %v11307_v4, %v8517_v36  ;;  %v8537_v48 = vmul.f32 %v11311_v40, %v8505_v38  ;;  %vm8543_vm5 = vweird.f32 %v11311_v40  ;;  %vm8534_vm13 = vmor %vm8532_vm12, %vm8533_vm10 }
 0x4ec   : > { %v8509_v35 = vmul.f32 0.5, %v8508_v20  ;;  %v8528_v6 = vmul.f32 %v11309_v23, %v8527_v31  ;;  %vm8544_vm11 = vmor %vm8542_vm8, %vm8543_vm5 }
 0x4ed   : > { %v8519_v44 = vmul.f32 0.5, %v8518_v42  ;;  %v8538_v50 = vmul.f32 %v11311_v40, %v8537_v48 }
 0x4ee   : > { %v8510_v37 = vsub.f32 1.5, %v8509_v35  ;;  %v8529_v21 = vmul.f32 0.5, %v8528_v6 }
 0x4ef   : > { %v8520_v51 = vsub.f32 1.5, %v8519_v44  ;;  %v8539_v58 = vmul.f32 0.5, %v8538_v50 }
 0x4f0   : > { %v8530_v53 = vsub.f32 1.5, %v8529_v21  ;;  %v8511_v2 = vmul.f32 %v11305_v26, %v8510_v37 }
 0x4f1   : > { %v8521_v46 = vmul.f32 %v11307_v4, %v8520_v51  ;;  %v8540_v54 = vsub.f32 1.5, %v8539_v58 }
 0x4f2   : > { %v8531_v10 = vmul.f32 %v11309_v23, %v8530_v53  ;;  %v8515_v12 = vsel %vm8514_vm9, %v11305_v26, %v8511_v2 }
 0x4f3   : > { %v8525_v9 = vsel %vm8524_vm7, %v11307_v4, %v8521_v46  ;;  %v8541_v55 = vmul.f32 %v11311_v40, %v8540_v54 }
 0x4f4   : > { %v8550_v56 = vrot.slane %v8525_v9, 4  ;;  %v8535_v57 = vsel %vm8534_vm13, %v11309_v23, %v8531_v10 }
 0x4f5   : > { %v8545_v15 = vsel %vm8544_vm11, %v11311_v40, %v8541_v55 }
 0x4f6   : > { %v8551_v13 = vrot.slane %v8545_v15, 4  ;;  %v8552_v49 = vsel %vm8387_vm0, %v8515_v12, %v8550_v56 }
 0x4f7   : > { %v8556_v59 = vmul.f32 %v8552_v49, %v13683_v45 }
 0x4f8   : > { %v8553_v60 = vsel %vm8387_vm0, %v8535_v57, %v8551_v13 }
 0x4f9   : > { %v8557_v16 = vmul.f32 %v8553_v60, %v13685_v8  ;;  %vm8558_vm14 = vcmp.ge.f32.partialorder %v8556_v59, 0.0  ;;  %v8560_v47 = vmul.f32 0.2, %v8556_v59 }
 0x4fb   : > { %vm8559_vm15 = vcmp.ge.f32.partialorder %v8557_v16, 0.0  ;;  %v8561_v61 = vmul.f32 0.2, %v8557_v16  ;;  %v8562_v0 = vsel %vm8558_vm14, %v8556_v59, %v8560_v47 }
 0x4fc   : > { %8566 = vst [vmem:[#allocation1] ss:$2 sm:$0xff] %v8562_v0 }
 0x4fd   : > { %v8563_v62 = vsel %vm8559_vm15, %v8557_v16, %v8561_v61 }
 0x4fe   : > { %8568 = vst [vmem:[#allocation1 + $0x1] ss:$2 sm:$0xff] %v8563_v62 }
 0x505   : > { %v8569_v45 = vld.sshfl [vmem:[#allocation1] sm:$0xff pattern:$0x75316420]  ;;  %v8570_v19 = vld.sshfl [vmem:[#allocation1 + $0x8] sm:$0xff pattern:$0x75316420] }
 0x506   : > { %v8573_v25 = vpack.c.bf16 %v8570_v19, %v8569_v45 }
 0x508   : > { %8574 = vst [vmem:[%s4350_s19] sm:$0xff] %v8573_v25 }
 0x509 PF: > { %s12_s13 = sadd.s32 1, %s11350_s13   ;;  %s13721_s9 = smov %s11338_s10 }
 0x50a   : > { %p9_p10 = scmp.ge.s32.totalorder %s12_s13, 4   ;;  %s13722_s10 = smov %s11403_s17 }
 0x50b   : > { %s13723_s11 = smov %s11346_s12  ;;  %s13724_s12 = smov %s13726_s14 }
 0x50c   :  { %11 = sbr.rel (!%p9_p10) target bundleno = 3 (0x3), region = 127 }

// kernel: _lambda_.9
= control target key start
LH: loop header
LB: loop body
LE: loop exit
PB: predicated region body
PF: predicated region fallthrough
CT: control target
= control target key end

     0   :  { %s9343_s1 = inlined_call_operand.vmem [shape: bf16[8192,128], index: 1, kind: input, shape index: {}]   ;;  %s9344_s0 = inlined_call_operand.vmem [shape: bf16[2,8192], index: 0, kind: input, shape index: {}]   ;;  %s9345_s2 = inlined_call_operand.vmem [shape: f32[1,128], index: 2, kind: input, shape index: {}]   ;;  %s9346_s3 = inlined_call_operand.vmem [shape: f32[2,128], index: 3, kind: output, shape index: {}]  }
   0x1   :  { %v7163_v0 = vld [vmem:[%s9343_s1 + $0x38] sm:$0xff]  ;;  %v7162_v4 = vld [vmem:[%s9343_s1 + $0x30] sm:$0xff]  ;;  %v7161_v8 = vld [vmem:[%s9343_s1 + $0x28] sm:$0xff] }
   0x2   :  { %v7171_v1 = vld [vmem:[%s9343_s1 + $0x78] sm:$0xff]  ;;  %4266 = vmatpush.bf16.msra.mxu0 %v7163_v0  ;;  %v7170_v5 = vld [vmem:[%s9343_s1 + $0x70] sm:$0xff]  ;;  %v7169_v9 = vld [vmem:[%s9343_s1 + $0x68] sm:$0xff] }
   0x3   :  { %v7179_v2 = vld [vmem:[%s9343_s1 + $0xb8] sm:$0xff]  ;;  %4279 = vmatpush.bf16.msra.mxu1 %v7171_v1  ;;  %v7178_v6 = vld [vmem:[%s9343_s1 + $0xb0] sm:$0xff]  ;;  %v7177_v10 = vld [vmem:[%s9343_s1 + $0xa8] sm:$0xff] }
   0x4   :  { %v7187_v3 = vld [vmem:[%s9343_s1 + $0xf8] sm:$0xff]  ;;  %4292 = vmatpush.bf16.msra.mxu2 %v7179_v2  ;;  %v7186_v7 = vld [vmem:[%s9343_s1 + $0xf0] sm:$0xff]  ;;  %v7185_v11 = vld [vmem:[%s9343_s1 + $0xe8] sm:$0xff] }
   0x5   :  { %4305 = vmatpush.bf16.msra.mxu3 %v7187_v3  ;;  %v7160_v12 = vld [vmem:[%s9343_s1 + $0x20] sm:$0xff]  ;;  %v7159_v16 = vld [vmem:[%s9343_s1 + $0x18] sm:$0xff]  ;;  %v7158_v21 = vld [vmem:[%s9343_s1 + $0x10] sm:$0xff] }
   0x6   :  { %4267 = vmatpush.bf16.msra.mxu0 %v7162_v4  ;;  %v7168_v13 = vld [vmem:[%s9343_s1 + $0x60] sm:$0xff]  ;;  %v7167_v17 = vld [vmem:[%s9343_s1 + $0x58] sm:$0xff]  ;;  %v7166_v22 = vld [vmem:[%s9343_s1 + $0x50] sm:$0xff] }
   0x7   :  { %4280 = vmatpush.bf16.msra.mxu1 %v7170_v5  ;;  %v7176_v14 = vld [vmem:[%s9343_s1 + $0xa0] sm:$0xff]  ;;  %v7175_v18 = vld [vmem:[%s9343_s1 + $0x98] sm:$0xff]  ;;  %v7174_v23 = vld [vmem:[%s9343_s1 + $0x90] sm:$0xff] }
   0x8   :  { %4293 = vmatpush.bf16.msra.mxu2 %v7178_v6  ;;  %v7184_v15 = vld [vmem:[%s9343_s1 + $0xe0] sm:$0xff]  ;;  %v7183_v19 = vld [vmem:[%s9343_s1 + $0xd8] sm:$0xff]  ;;  %v7182_v24 = vld [vmem:[%s9343_s1 + $0xd0] sm:$0xff] }
   0x9   :  { %4306 = vmatpush.bf16.msra.mxu3 %v7186_v7  ;;  %v14_v20 = vld [vmem:[%s9344_s0] sm:$0xff]  ;;  %v7157_v25 = vld [vmem:[%s9343_s1 + $0x8] sm:$0xff]  ;;  %v7195_v33 = vld [vmem:[%s9343_s1 + $0x138] sm:$0xff] }
   0xa   :  { %4268 = vmatpush.bf16.msra.mxu0 %v7161_v8  ;;  %1051 = vst [vmem:[#allocation1] ss:$9 sm:$0xff] %v14_v20  ;;  %v7165_v26 = vld [vmem:[%s9343_s1 + $0x48] sm:$0xff]  ;;  %v7156_v29 = vld [vmem:[%s9343_s1] sm:$0xff]  ;;  %v7203_v34 = vld [vmem:[%s9343_s1 + $0x178] sm:$0xff] }
   0xb   :  { %4281 = vmatpush.bf16.msra.mxu1 %v7169_v9  ;;  %v7173_v27 = vld [vmem:[%s9343_s1 + $0x88] sm:$0xff]  ;;  %v7164_v30 = vld [vmem:[%s9343_s1 + $0x40] sm:$0xff]  ;;  %v7211_v35 = vld [vmem:[%s9343_s1 + $0x1b8] sm:$0xff] }
   0xc   :  { %4294 = vmatpush.bf16.msra.mxu2 %v7177_v10  ;;  %v7181_v28 = vld [vmem:[%s9343_s1 + $0xc8] sm:$0xff]  ;;  %v7172_v31 = vld [vmem:[%s9343_s1 + $0x80] sm:$0xff]  ;;  %v7219_v36 = vld [vmem:[%s9343_s1 + $0x1f8] sm:$0xff] }
   0xd   :  { %4307 = vmatpush.bf16.msra.mxu3 %v7185_v11  ;;  %v7180_v32 = vld [vmem:[%s9343_s1 + $0xc0] sm:$0xff]  ;;  %v7194_v37 = vld [vmem:[%s9343_s1 + $0x130] sm:$0xff]  ;;  %v7193_v45 = vld [vmem:[%s9343_s1 + $0x128] sm:$0xff] }
   0xe   :  { %4269 = vmatpush.bf16.msra.mxu0 %v7160_v12  ;;  %v7202_v40 = vld [vmem:[%s9343_s1 + $0x170] sm:$0xff]  ;;  %v7201_v46 = vld [vmem:[%s9343_s1 + $0x168] sm:$0xff]  ;;  %v7192_v49 = vld [vmem:[%s9343_s1 + $0x120] sm:$0xff] }
   0xf   :  { %4282 = vmatpush.bf16.msra.mxu1 %v7168_v13  ;;  %v7210_v43 = vld [vmem:[%s9343_s1 + $0x1b0] sm:$0xff]  ;;  %v7209_v47 = vld [vmem:[%s9343_s1 + $0x1a8] sm:$0xff]  ;;  %v7200_v50 = vld [vmem:[%s9343_s1 + $0x160] sm:$0xff] }
  0x10   :  { %4295 = vmatpush.bf16.msra.mxu2 %v7176_v14  ;;  %v7218_v44 = vld [vmem:[%s9343_s1 + $0x1f0] sm:$0xff]  ;;  %v7217_v48 = vld [vmem:[%s9343_s1 + $0x1e8] sm:$0xff]  ;;  %v7208_v56 = vld [vmem:[%s9343_s1 + $0x1a0] sm:$0xff] }
  0x11   :  { %4308 = vmatpush.bf16.msra.mxu3 %v7184_v15  ;;  %v1054_v38 = vld [vmem:[#allocation1 + $0x12] sm:$0xff]  ;;  %v1052_v39 = vld [vmem:[#allocation1] sm:$0xff]  ;;  %v1053_v42 = vld [vmem:[#allocation1 + $0x9] sm:$0xff] }
  0x12   :  { %4270 = vmatpush.bf16.msra.mxu0 %v7159_v16  ;;  %v1055_v41 = vld [vmem:[#allocation1 + $0x1b] sm:$0xff]  ;;  %v15_v52 = vld [vmem:[%s9344_s0 + $0x8] sm:$0xff]  ;;  %v7190_v62 = vld [vmem:[%s9343_s1 + $0x110] sm:$0xff] }
  0x13   :  { %4283 = vmatpush.bf16.msra.mxu1 %v7167_v17  ;;  %v1058_v51 = vld [vmem:[#allocation1 + $0x36] sm:$0xff]  ;;  %v1056_v53 = vld [vmem:[#allocation1 + $0x24] sm:$0xff]  ;;  %v1057_v55 = vld [vmem:[#allocation1 + $0x2d] sm:$0xff] }
  0x14   :  { %4296 = vmatpush.bf16.msra.mxu2 %v7175_v18  ;;  %v1059_v54 = vld [vmem:[#allocation1 + $0x3f] sm:$0xff]  ;;  %v7198_v63 = vld [vmem:[%s9343_s1 + $0x150] sm:$0xff]  ;;  %v7189_v2 = vld [vmem:[%s9343_s1 + $0x108] sm:$0xff] }
  0x15   :  { %4309 = vmatpush.bf16.msra.mxu3 %v7183_v19  ;;  %v7216_v57 = vld [vmem:[%s9343_s1 + $0x1e0] sm:$0xff]  ;;  %1061 = vst [vmem:[#allocation1] ss:$9 sm:$0xff] %v15_v52  ;;  %v7191_v58 = vld [vmem:[%s9343_s1 + $0x118] sm:$0xff]  ;;  %v7206_v0 = vld [vmem:[%s9343_s1 + $0x190] sm:$0xff] }
  0x16   :  { %4271 = vmatpush.bf16.msra.mxu0 %v7158_v21  ;;  %v7199_v59 = vld [vmem:[%s9343_s1 + $0x158] sm:$0xff]  ;;  %v7214_v1 = vld [vmem:[%s9343_s1 + $0x1d0] sm:$0xff]  ;;  %v7197_v3 = vld [vmem:[%s9343_s1 + $0x148] sm:$0xff] }
  0x17   :  { %4284 = vmatpush.bf16.msra.mxu1 %v7166_v22  ;;  %v7207_v60 = vld [vmem:[%s9343_s1 + $0x198] sm:$0xff]  ;;  %v7205_v4 = vld [vmem:[%s9343_s1 + $0x188] sm:$0xff]  ;;  %v7188_v6 = vld [vmem:[%s9343_s1 + $0x100] sm:$0xff] }
  0x18   :  { %4297 = vmatpush.bf16.msra.mxu2 %v7174_v23  ;;  %v7215_v61 = vld [vmem:[%s9343_s1 + $0x1d8] sm:$0xff]  ;;  %v7213_v5 = vld [vmem:[%s9343_s1 + $0x1c8] sm:$0xff]  ;;  %v7196_v7 = vld [vmem:[%s9343_s1 + $0x140] sm:$0xff] }
  0x19   :  { %4310 = vmatpush.bf16.msra.mxu3 %v7182_v24  ;;  %v7204_v8 = vld [vmem:[%s9343_s1 + $0x180] sm:$0xff]  ;;  %v7227_v10 = vld [vmem:[%s9343_s1 + $0x238] sm:$0xff]  ;;  %v7226_v14 = vld [vmem:[%s9343_s1 + $0x230] sm:$0xff] }
  0x1a   :  { %4272 = vmatpush.bf16.msra.mxu0 %v7157_v25  ;;  %v7212_v9 = vld [vmem:[%s9343_s1 + $0x1c0] sm:$0xff]  ;;  %v7235_v11 = vld [vmem:[%s9343_s1 + $0x278] sm:$0xff]  ;;  %v7234_v15 = vld [vmem:[%s9343_s1 + $0x270] sm:$0xff] }
  0x1b   :  { %4285 = vmatpush.bf16.msra.mxu1 %v7165_v26  ;;  %v7243_v12 = vld [vmem:[%s9343_s1 + $0x2b8] sm:$0xff]  ;;  %v7242_v16 = vld [vmem:[%s9343_s1 + $0x2b0] sm:$0xff]  ;;  %v7225_v18 = vld [vmem:[%s9343_s1 + $0x228] sm:$0xff] }
  0x1c   :  { %4298 = vmatpush.bf16.msra.mxu2 %v7173_v27  ;;  %v7251_v13 = vld [vmem:[%s9343_s1 + $0x2f8] sm:$0xff]  ;;  %v7250_v17 = vld [vmem:[%s9343_s1 + $0x2f0] sm:$0xff]  ;;  %v7233_v19 = vld [vmem:[%s9343_s1 + $0x268] sm:$0xff] }
  0x1d   :  { %4311 = vmatpush.bf16.msra.mxu3 %v7181_v28  ;;  %v7241_v20 = vld [vmem:[%s9343_s1 + $0x2a8] sm:$0xff]  ;;  %v7224_v22 = vld [vmem:[%s9343_s1 + $0x220] sm:$0xff]  ;;  %v7223_v26 = vld [vmem:[%s9343_s1 + $0x218] sm:$0xff] }
  0x1e   :  { %4273 = vmatpush.bf16.msra.mxu0 %v7156_v29  ;;  %v7249_v21 = vld [vmem:[%s9343_s1 + $0x2e8] sm:$0xff]  ;;  %v7232_v23 = vld [vmem:[%s9343_s1 + $0x260] sm:$0xff]  ;;  %v7231_v27 = vld [vmem:[%s9343_s1 + $0x258] sm:$0xff] }
  0x1f   :  { %4286 = vmatpush.bf16.msra.mxu1 %v7164_v30  ;;  %v7240_v24 = vld [vmem:[%s9343_s1 + $0x2a0] sm:$0xff]  ;;  %v7239_v28 = vld [vmem:[%s9343_s1 + $0x298] sm:$0xff]  ;;  %v7222_v30 = vld [vmem:[%s9343_s1 + $0x210] sm:$0xff] }
  0x20   :  { %4299 = vmatpush.bf16.msra.mxu2 %v7172_v31  ;;  %v7248_v25 = vld [vmem:[%s9343_s1 + $0x2e0] sm:$0xff]  ;;  %v7247_v29 = vld [vmem:[%s9343_s1 + $0x2d8] sm:$0xff]  ;;  %v7230_v31 = vld [vmem:[%s9343_s1 + $0x250] sm:$0xff] }
  0x21   :  { %4312 = vmatpush.bf16.msra.mxu3 %v7180_v32  ;;  %4274 = vmatmul.bf16.vlgmr.msra.gmra.mxu0 %v1052_v39  ;;  %v7238_v32 = vld [vmem:[%s9343_s1 + $0x290] sm:$0xff]  ;;  %v7228_v39 = vld [vmem:[%s9343_s1 + $0x240] sm:$0xff] }
  0x22   :  { %4318 = vmatpush.bf16.msrb.mxu0 %v7195_v33  ;;  %4287 = vmatmul.bf16.vlgmr.msra.gmra.mxu1 %v1053_v42  ;;  %v7246_v33 = vld [vmem:[%s9343_s1 + $0x2d0] sm:$0xff]  ;;  %v7259_v42 = vld [vmem:[%s9343_s1 + $0x338] sm:$0xff] }
  0x23   :  { %4331 = vmatpush.bf16.msrb.mxu1 %v7203_v34  ;;  %4300 = vmatmul.bf16.vlgmr.msra.gmra.mxu2 %v1054_v38  ;;  %v7221_v34 = vld [vmem:[%s9343_s1 + $0x208] sm:$0xff]  ;;  %v7220_v38 = vld [vmem:[%s9343_s1 + $0x200] sm:$0xff]  ;;  %v7266_v52 = vld [vmem:[%s9343_s1 + $0x370] sm:$0xff] }
  0x24   :  { %4344 = vmatpush.bf16.msrb.mxu2 %v7211_v35  ;;  %4313 = vmatmul.bf16.vlgmr.msra.gmra.mxu3 %v1055_v41  ;;  %v7229_v35 = vld [vmem:[%s9343_s1 + $0x248] sm:$0xff]  ;;  %v7244_v41 = vld [vmem:[%s9343_s1 + $0x2c0] sm:$0xff] }
  0x25   :  { %4357 = vmatpush.bf16.msrb.mxu3 %v7219_v36  ;;  %v7237_v36 = vld [vmem:[%s9343_s1 + $0x288] sm:$0xff] }
  0x26   :  { %4319 = vmatpush.bf16.msrb.mxu0 %v7194_v37  ;;  %v7245_v37 = vld [vmem:[%s9343_s1 + $0x2c8] sm:$0xff] }
  0x27   :  { %4332 = vmatpush.bf16.msrb.mxu1 %v7202_v40  ;;  %v7236_v40 = vld [vmem:[%s9343_s1 + $0x280] sm:$0xff] }
  0x28   :  { %4345 = vmatpush.bf16.msrb.mxu2 %v7210_v43  ;;  %v7267_v43 = vld [vmem:[%s9343_s1 + $0x378] sm:$0xff] }
  0x29   :  { %4358 = vmatpush.bf16.msrb.mxu3 %v7218_v44  ;;  %v16_v44 = vld [vmem:[%s9344_s0 + $0x10] sm:$0xff] }
  0x2a   :  { %4320 = vmatpush.bf16.msrb.mxu0 %v7193_v45  ;;  %v7275_v45 = vld [vmem:[%s9343_s1 + $0x3b8] sm:$0xff] }
  0x2b   :  { %4333 = vmatpush.bf16.msrb.mxu1 %v7201_v46  ;;  %v7283_v46 = vld [vmem:[%s9343_s1 + $0x3f8] sm:$0xff] }
  0x2c   :  { %4346 = vmatpush.bf16.msrb.mxu2 %v7209_v47  ;;  %v1062_v47 = vld [vmem:[#allocation1] sm:$0xff] }
  0x2d   :  { %4359 = vmatpush.bf16.msrb.mxu3 %v7217_v48  ;;  %v1064_v48 = vld [vmem:[#allocation1 + $0x12] sm:$0xff] }
  0x2e   :  { %4321 = vmatpush.bf16.msrb.mxu0 %v7192_v49  ;;  %v1063_v49 = vld [vmem:[#allocation1 + $0x9] sm:$0xff] }
  0x2f   :  { %4334 = vmatpush.bf16.msrb.mxu1 %v7200_v50  ;;  %v1065_v50 = vld [vmem:[#allocation1 + $0x1b] sm:$0xff] }
  0x30   :  { %4347 = vmatpush.bf16.msrb.mxu2 %v7208_v56  ;;  %v8016_v56 = vld [vmem:[#allocation1 + $0x36] sm:$0xff] }
  0x31   :  { %4360 = vmatpush.bf16.msrb.mxu3 %v7216_v57  ;;  %v8018_v57 = vld [vmem:[#allocation1 + $0x2d] sm:$0xff] }
  0x32   :  { %4322 = vmatpush.bf16.msrb.mxu0 %v7191_v58  ;;  %v8020_v58 = vld [vmem:[#allocation1 + $0x3f] sm:$0xff] }
  0x33   :  { %4335 = vmatpush.bf16.msrb.mxu1 %v7199_v59  ;;  %v7257_v59 = vld [vmem:[%s9343_s1 + $0x328] sm:$0xff] }
  0x34   :  { %4348 = vmatpush.bf16.msrb.mxu2 %v7207_v60  ;;  %v7265_v60 = vld [vmem:[%s9343_s1 + $0x368] sm:$0xff] }
  0x35   :  { %4361 = vmatpush.bf16.msrb.mxu3 %v7215_v61  ;;  %v7273_v61 = vld [vmem:[%s9343_s1 + $0x3a8] sm:$0xff] }
  0x36   :  { %4323 = vmatpush.bf16.msrb.mxu0 %v7190_v62  ;;  %v7281_v62 = vld [vmem:[%s9343_s1 + $0x3e8] sm:$0xff] }
  0x37   :  { %4336 = vmatpush.bf16.msrb.mxu1 %v7198_v63  ;;  %v7256_v63 = vld [vmem:[%s9343_s1 + $0x320] sm:$0xff] }
  0x38   :  { %4349 = vmatpush.bf16.msrb.mxu2 %v7206_v0  ;;  %v7264_v0 = vld [vmem:[%s9343_s1 + $0x360] sm:$0xff] }
  0x39   :  { %4362 = vmatpush.bf16.msrb.mxu3 %v7214_v1  ;;  %v7272_v1 = vld [vmem:[%s9343_s1 + $0x3a0] sm:$0xff] }
  0x3a   :  { %4324 = vmatpush.bf16.msrb.mxu0 %v7189_v2  ;;  %v7280_v2 = vld [vmem:[%s9343_s1 + $0x3e0] sm:$0xff] }
  0x3b   :  { %4337 = vmatpush.bf16.msrb.mxu1 %v7197_v3  ;;  %v7255_v3 = vld [vmem:[%s9343_s1 + $0x318] sm:$0xff] }
  0x3c   :  { %4350 = vmatpush.bf16.msrb.mxu2 %v7205_v4  ;;  %v7263_v4 = vld [vmem:[%s9343_s1 + $0x358] sm:$0xff] }
  0x3d   :  { %4363 = vmatpush.bf16.msrb.mxu3 %v7213_v5  ;;  %v7271_v5 = vld [vmem:[%s9343_s1 + $0x398] sm:$0xff] }
  0x3e   :  { %4325 = vmatpush.bf16.msrb.mxu0 %v7188_v6  ;;  %v7279_v6 = vld [vmem:[%s9343_s1 + $0x3d8] sm:$0xff] }
  0x3f   :  { %4338 = vmatpush.bf16.msrb.mxu1 %v7196_v7  ;;  %v7254_v7 = vld [vmem:[%s9343_s1 + $0x310] sm:$0xff] }
  0x40   :  { %4351 = vmatpush.bf16.msrb.mxu2 %v7204_v8  ;;  %v7262_v8 = vld [vmem:[%s9343_s1 + $0x350] sm:$0xff] }
  0x41   :  { %4364 = vmatpush.bf16.msrb.mxu3 %v7212_v9  ;;  %4326 = vmatmul.bf16.vlgmr.msrb.gmra.mxu0 %v1056_v53  ;;  %v7274_v53 = vld [vmem:[%s9343_s1 + $0x3b0] sm:$0xff] }
  0x42   :  { %4370 = vmatpush.bf16.msra.mxu0 %v7227_v10  ;;  %4339 = vmatmul.bf16.vlgmr.msrb.gmra.mxu1 %v1057_v55  ;;  %v8014_v55 = vld [vmem:[#allocation1 + $0x24] sm:$0xff]  ;;  %v7270_v9 = vld [vmem:[%s9343_s1 + $0x390] sm:$0xff] }
  0x43   :  { %4383 = vmatpush.bf16.msra.mxu1 %v7235_v11  ;;  %4352 = vmatmul.bf16.vlgmr.msrb.gmra.mxu2 %v1058_v51  ;;  %v7258_v51 = vld [vmem:[%s9343_s1 + $0x330] sm:$0xff]  ;;  %1071 = vst [vmem:[#allocation1] ss:$9 sm:$0xff] %v16_v44  ;;  %v7253_v11 = vld [vmem:[%s9343_s1 + $0x308] sm:$0xff] }
  0x44   :  { %4396 = vmatpush.bf16.msra.mxu2 %v7243_v12  ;;  %4365 = vmatmul.bf16.vlgmr.msrb.gmra.mxu3 %v1059_v54  ;;  %v7282_v54 = vld [vmem:[%s9343_s1 + $0x3f0] sm:$0xff]  ;;  %v7261_v12 = vld [vmem:[%s9343_s1 + $0x348] sm:$0xff] }
  0x45   :  { %4409 = vmatpush.bf16.msra.mxu3 %v7251_v13  ;;  %v7278_v10 = vld [vmem:[%s9343_s1 + $0x3d0] sm:$0xff]  ;;  %v7269_v13 = vld [vmem:[%s9343_s1 + $0x388] sm:$0xff] }
  0x46   :  { %4371 = vmatpush.bf16.msra.mxu0 %v7226_v14  ;;  %v7277_v14 = vld [vmem:[%s9343_s1 + $0x3c8] sm:$0xff] }
  0x47   :  { %4384 = vmatpush.bf16.msra.mxu1 %v7234_v15  ;;  %v7252_v15 = vld [vmem:[%s9343_s1 + $0x300] sm:$0xff]  ;;  %v7293_v44 = vld [vmem:[%s9343_s1 + $0x448] sm:$0xff] }
  0x48   :  { %4397 = vmatpush.bf16.msra.mxu2 %v7242_v16  ;;  %v7260_v16 = vld [vmem:[%s9343_s1 + $0x340] sm:$0xff] }
  0x49   :  { %4410 = vmatpush.bf16.msra.mxu3 %v7250_v17  ;;  %v7268_v17 = vld [vmem:[%s9343_s1 + $0x380] sm:$0xff] }
  0x4a   :  { %4372 = vmatpush.bf16.msra.mxu0 %v7225_v18  ;;  %v7276_v18 = vld [vmem:[%s9343_s1 + $0x3c0] sm:$0xff] }
  0x4b   :  { %4385 = vmatpush.bf16.msra.mxu1 %v7233_v19  ;;  %v7291_v19 = vld [vmem:[%s9343_s1 + $0x438] sm:$0xff] }
  0x4c   :  { %4398 = vmatpush.bf16.msra.mxu2 %v7241_v20  ;;  %v7299_v20 = vld [vmem:[%s9343_s1 + $0x478] sm:$0xff] }
  0x4d   :  { %4411 = vmatpush.bf16.msra.mxu3 %v7249_v21  ;;  %v7307_v21 = vld [vmem:[%s9343_s1 + $0x4b8] sm:$0xff] }
  0x4e   :  { %4373 = vmatpush.bf16.msra.mxu0 %v7224_v22  ;;  %v7315_v22 = vld [vmem:[%s9343_s1 + $0x4f8] sm:$0xff] }
  0x4f   :  { %4386 = vmatpush.bf16.msra.mxu1 %v7232_v23  ;;  %v7290_v23 = vld [vmem:[%s9343_s1 + $0x430] sm:$0xff] }
  0x50   :  { %4399 = vmatpush.bf16.msra.mxu2 %v7240_v24  ;;  %v7298_v24 = vld [vmem:[%s9343_s1 + $0x470] sm:$0xff] }
  0x51   :  { %4412 = vmatpush.bf16.msra.mxu3 %v7248_v25  ;;  %v7306_v25 = vld [vmem:[%s9343_s1 + $0x4b0] sm:$0xff] }
  0x52   :  { %4374 = vmatpush.bf16.msra.mxu0 %v7223_v26  ;;  %v7314_v26 = vld [vmem:[%s9343_s1 + $0x4f0] sm:$0xff] }
  0x53   :  { %4387 = vmatpush.bf16.msra.mxu1 %v7231_v27  ;;  %v7289_v27 = vld [vmem:[%s9343_s1 + $0x428] sm:$0xff] }
  0x54   :  { %4400 = vmatpush.bf16.msra.mxu2 %v7239_v28  ;;  %v7297_v28 = vld [vmem:[%s9343_s1 + $0x468] sm:$0xff] }
  0x55   :  { %4413 = vmatpush.bf16.msra.mxu3 %v7247_v29  ;;  %v7305_v29 = vld [vmem:[%s9343_s1 + $0x4a8] sm:$0xff] }
  0x56   :  { %4375 = vmatpush.bf16.msra.mxu0 %v7222_v30  ;;  %v7313_v30 = vld [vmem:[%s9343_s1 + $0x4e8] sm:$0xff] }
  0x57   :  { %4388 = vmatpush.bf16.msra.mxu1 %v7230_v31  ;;  %v7288_v31 = vld [vmem:[%s9343_s1 + $0x420] sm:$0xff] }
  0x58   :  { %4401 = vmatpush.bf16.msra.mxu2 %v7238_v32  ;;  %v7296_v32 = vld [vmem:[%s9343_s1 + $0x460] sm:$0xff] }
  0x59   :  { %4414 = vmatpush.bf16.msra.mxu3 %v7246_v33  ;;  %v7304_v33 = vld [vmem:[%s9343_s1 + $0x4a0] sm:$0xff] }
  0x5a   :  { %4376 = vmatpush.bf16.msra.mxu0 %v7221_v34  ;;  %v7312_v34 = vld [vmem:[%s9343_s1 + $0x4e0] sm:$0xff] }
  0x5b   :  { %4389 = vmatpush.bf16.msra.mxu1 %v7229_v35  ;;  %v7287_v35 = vld [vmem:[%s9343_s1 + $0x418] sm:$0xff] }
  0x5c   :  { %4402 = vmatpush.bf16.msra.mxu2 %v7237_v36  ;;  %v7295_v36 = vld [vmem:[%s9343_s1 + $0x458] sm:$0xff] }
  0x5d   :  { %4415 = vmatpush.bf16.msra.mxu3 %v7245_v37  ;;  %v7303_v37 = vld [vmem:[%s9343_s1 + $0x498] sm:$0xff] }
  0x5e   :  { %4377 = vmatpush.bf16.msra.mxu0 %v7220_v38  ;;  %v7311_v38 = vld [vmem:[%s9343_s1 + $0x4d8] sm:$0xff] }
  0x5f   :  { %4390 = vmatpush.bf16.msra.mxu1 %v7228_v39  ;;  %v7286_v39 = vld [vmem:[%s9343_s1 + $0x410] sm:$0xff] }
  0x60   :  { %4403 = vmatpush.bf16.msra.mxu2 %v7236_v40  ;;  %v7294_v40 = vld [vmem:[%s9343_s1 + $0x450] sm:$0xff] }
  0x61   :  { %4416 = vmatpush.bf16.msra.mxu3 %v7244_v41  ;;  %4378 = vmatmul.bf16.vlgmr.msra.gmra.mxu0 %v1062_v47  ;;  %v7302_v41 = vld [vmem:[%s9343_s1 + $0x490] sm:$0xff]  ;;  %v7284_v47 = vld [vmem:[%s9343_s1 + $0x400] sm:$0xff] }
  0x62   :  { %4422 = vmatpush.bf16.msrb.mxu0 %v7259_v42  ;;  %4391 = vmatmul.bf16.vlgmr.msra.gmra.mxu1 %v1063_v49  ;;  %v7310_v42 = vld [vmem:[%s9343_s1 + $0x4d0] sm:$0xff]  ;;  %v7300_v49 = vld [vmem:[%s9343_s1 + $0x480] sm:$0xff] }
  0x63   :  { %4435 = vmatpush.bf16.msrb.mxu1 %v7267_v43  ;;  %4404 = vmatmul.bf16.vlgmr.msra.gmra.mxu2 %v1064_v48  ;;  %v7285_v43 = vld [vmem:[%s9343_s1 + $0x408] sm:$0xff]  ;;  %v7292_v48 = vld [vmem:[%s9343_s1 + $0x440] sm:$0xff] }
  0x64   :  { %4448 = vmatpush.bf16.msrb.mxu2 %v7275_v45  ;;  %4417 = vmatmul.bf16.vlgmr.msra.gmra.mxu3 %v1065_v50  ;;  %v7301_v45 = vld [vmem:[%s9343_s1 + $0x488] sm:$0xff]  ;;  %v7308_v50 = vld [vmem:[%s9343_s1 + $0x4c0] sm:$0xff] }
  0x65   :  { %4461 = vmatpush.bf16.msrb.mxu3 %v7283_v46  ;;  %v7309_v46 = vld [vmem:[%s9343_s1 + $0x4c8] sm:$0xff] }
  0x66   :  { %4423 = vmatpush.bf16.msrb.mxu0 %v7258_v51  ;;  %v7323_v51 = vld [vmem:[%s9343_s1 + $0x538] sm:$0xff] }
  0x67   :  { %4436 = vmatpush.bf16.msrb.mxu1 %v7266_v52  ;;  %v7331_v52 = vld [vmem:[%s9343_s1 + $0x578] sm:$0xff] }
  0x68   :  { %4449 = vmatpush.bf16.msrb.mxu2 %v7274_v53  ;;  %v17_v53 = vld [vmem:[%s9344_s0 + $0x18] sm:$0xff] }
  0x69   :  { %4462 = vmatpush.bf16.msrb.mxu3 %v7282_v54  ;;  %v7339_v54 = vld [vmem:[%s9343_s1 + $0x5b8] sm:$0xff] }
  0x6a   :  { %4424 = vmatpush.bf16.msrb.mxu0 %v7257_v59  ;;  %v1075_v59 = vld [vmem:[#allocation1 + $0x1b] sm:$0xff] }
  0x6b   :  { %4437 = vmatpush.bf16.msrb.mxu1 %v7265_v60  ;;  %v7322_v60 = vld [vmem:[%s9343_s1 + $0x530] sm:$0xff] }
  0x6c   :  { %4450 = vmatpush.bf16.msrb.mxu2 %v7273_v61  ;;  %v7330_v61 = vld [vmem:[%s9343_s1 + $0x570] sm:$0xff] }
  0x6d   :  { %4463 = vmatpush.bf16.msrb.mxu3 %v7281_v62  ;;  %v7338_v62 = vld [vmem:[%s9343_s1 + $0x5b0] sm:$0xff] }
  0x6e   :  { %4425 = vmatpush.bf16.msrb.mxu0 %v7256_v63  ;;  %v7346_v63 = vld [vmem:[%s9343_s1 + $0x5f0] sm:$0xff] }
  0x6f   :  { %4438 = vmatpush.bf16.msrb.mxu1 %v7264_v0  ;;  %v8221_v0 = vld [vmem:[#allocation1 + $0x24] sm:$0xff] }
  0x70   :  { %4451 = vmatpush.bf16.msrb.mxu2 %v7272_v1  ;;  %v8223_v1 = vld [vmem:[#allocation1 + $0x36] sm:$0xff] }
  0x71   :  { %4464 = vmatpush.bf16.msrb.mxu3 %v7280_v2  ;;  %v8225_v2 = vld [vmem:[#allocation1 + $0x2d] sm:$0xff] }
  0x72   :  { %4426 = vmatpush.bf16.msrb.mxu0 %v7255_v3  ;;  %v8227_v3 = vld [vmem:[#allocation1 + $0x3f] sm:$0xff] }
  0x73   :  { %4439 = vmatpush.bf16.msrb.mxu1 %v7263_v4  ;;  %v7321_v4 = vld [vmem:[%s9343_s1 + $0x528] sm:$0xff] }
  0x74   :  { %4452 = vmatpush.bf16.msrb.mxu2 %v7271_v5  ;;  %v7329_v5 = vld [vmem:[%s9343_s1 + $0x568] sm:$0xff] }
  0x75   :  { %4465 = vmatpush.bf16.msrb.mxu3 %v7279_v6  ;;  %v7668_v6 = vld [vmem:[%s9345_s2] ss:$0 sm:$0xff] }
  0x76   :  { %4427 = vmatpush.bf16.msrb.mxu0 %v7254_v7  ;;  %v7337_v7 = vld [vmem:[%s9343_s1 + $0x5a8] sm:$0xff] }
  0x77   :  { %4440 = vmatpush.bf16.msrb.mxu1 %v7262_v8  ;;  %v7345_v8 = vld [vmem:[%s9343_s1 + $0x5e8] sm:$0xff] }
  0x78   :  { %4453 = vmatpush.bf16.msrb.mxu2 %v7270_v9 }
  0x79   :  { %4466 = vmatpush.bf16.msrb.mxu3 %v7278_v10  ;;  %v7320_v10 = vld [vmem:[%s9343_s1 + $0x520] sm:$0xff] }
  0x7a   :  { %4428 = vmatpush.bf16.msrb.mxu0 %v7253_v11  ;;  %v7328_v11 = vld [vmem:[%s9343_s1 + $0x560] sm:$0xff] }
  0x7b   :  { %4441 = vmatpush.bf16.msrb.mxu1 %v7261_v12 }
  0x7c   :  { %4454 = vmatpush.bf16.msrb.mxu2 %v7269_v13 }
  0x7d   :  { %4467 = vmatpush.bf16.msrb.mxu3 %v7277_v14  ;;  %v7336_v14 = vld [vmem:[%s9343_s1 + $0x5a0] sm:$0xff] }
  0x7e   :  { %4429 = vmatpush.bf16.msrb.mxu0 %v7252_v15  ;;  %v7344_v15 = vld [vmem:[%s9343_s1 + $0x5e0] sm:$0xff] }
  0x7f   :  { %4442 = vmatpush.bf16.msrb.mxu1 %v7260_v16 }
  0x80   :  { %4455 = vmatpush.bf16.msrb.mxu2 %v7268_v17  ;;  %v7319_v17 = vld [vmem:[%s9343_s1 + $0x518] sm:$0xff] }
  0x81   :  { %4468 = vmatpush.bf16.msrb.mxu3 %v7276_v18  ;;  %4430 = vmatmul.bf16.vlgmr.msrb.gmra.mxu0 %v8014_v55  ;;  %v7347_v55 = vld [vmem:[%s9343_s1 + $0x5f8] sm:$0xff] }
  0x82   :  { %4474 = vmatpush.bf16.msra.mxu0 %v7291_v19  ;;  %4443 = vmatmul.bf16.vlgmr.msrb.gmra.mxu1 %v8018_v57  ;;  %v1074_v57 = vld [vmem:[#allocation1 + $0x12] sm:$0xff] }
  0x83   :  { %4487 = vmatpush.bf16.msra.mxu1 %v7299_v20  ;;  %4456 = vmatmul.bf16.vlgmr.msrb.gmra.mxu2 %v8016_v56  ;;  %v1072_v56 = vld [vmem:[#allocation1] sm:$0xff]  ;;  %v7327_v18 = vld [vmem:[%s9343_s1 + $0x558] sm:$0xff] }
  0x84   :  { %4500 = vmatpush.bf16.msra.mxu2 %v7307_v21  ;;  %4469 = vmatmul.bf16.vlgmr.msrb.gmra.mxu3 %v8020_v58  ;;  %v1073_v58 = vld [vmem:[#allocation1 + $0x9] sm:$0xff]  ;;  %v7335_v19 = vld [vmem:[%s9343_s1 + $0x598] sm:$0xff] }
  0x85   :  { %4513 = vmatpush.bf16.msra.mxu3 %v7315_v22  ;;  %1081 = vst [vmem:[#allocation1] ss:$9 sm:$0xff] %v17_v53  ;;  %v7343_v20 = vld [vmem:[%s9343_s1 + $0x5d8] sm:$0xff] }
  0x86   :  { %4475 = vmatpush.bf16.msra.mxu0 %v7290_v23 }
  0x87   :  { %4488 = vmatpush.bf16.msra.mxu1 %v7298_v24 }
  0x88   :  { %4501 = vmatpush.bf16.msra.mxu2 %v7306_v25  ;;  %v7318_v25 = vld [vmem:[%s9343_s1 + $0x510] sm:$0xff] }
  0x89   :  { %4514 = vmatpush.bf16.msra.mxu3 %v7314_v26  ;;  %v7326_v26 = vld [vmem:[%s9343_s1 + $0x550] sm:$0xff] }
  0x8a   :  { %4476 = vmatpush.bf16.msra.mxu0 %v7289_v27 }
  0x8b   :  { %4489 = vmatpush.bf16.msra.mxu1 %v7297_v28 }
  0x8c   :  { %4502 = vmatpush.bf16.msra.mxu2 %v7305_v29  ;;  %v7334_v29 = vld [vmem:[%s9343_s1 + $0x590] sm:$0xff] }
  0x8d   :  { %4515 = vmatpush.bf16.msra.mxu3 %v7313_v30  ;;  %v7342_v30 = vld [vmem:[%s9343_s1 + $0x5d0] sm:$0xff] }
  0x8e   :  { %4477 = vmatpush.bf16.msra.mxu0 %v7288_v31  ;;  %v7317_v31 = vld [vmem:[%s9343_s1 + $0x508] sm:$0xff] }
  0x8f   :  { %4490 = vmatpush.bf16.msra.mxu1 %v7296_v32  ;;  %v7325_v32 = vld [vmem:[%s9343_s1 + $0x548] sm:$0xff] }
  0x90   :  { %4503 = vmatpush.bf16.msra.mxu2 %v7304_v33  ;;  %v7333_v33 = vld [vmem:[%s9343_s1 + $0x588] sm:$0xff] }
  0x91   :  { %4516 = vmatpush.bf16.msra.mxu3 %v7312_v34  ;;  %v7341_v34 = vld [vmem:[%s9343_s1 + $0x5c8] sm:$0xff] }
  0x92   :  { %4478 = vmatpush.bf16.msra.mxu0 %v7287_v35 }
  0x93   :  { %4491 = vmatpush.bf16.msra.mxu1 %v7295_v36 }
  0x94   :  { %4504 = vmatpush.bf16.msra.mxu2 %v7303_v37  ;;  %v7316_v37 = vld [vmem:[%s9343_s1 + $0x500] sm:$0xff] }
  0x95   :  { %4517 = vmatpush.bf16.msra.mxu3 %v7311_v38  ;;  %v7324_v38 = vld [vmem:[%s9343_s1 + $0x540] sm:$0xff] }
  0x96   :  { %4479 = vmatpush.bf16.msra.mxu0 %v7286_v39  ;;  %v7332_v39 = vld [vmem:[%s9343_s1 + $0x580] sm:$0xff] }
  0x97   :  { %4492 = vmatpush.bf16.msra.mxu1 %v7294_v40  ;;  %v7340_v40 = vld [vmem:[%s9343_s1 + $0x5c0] sm:$0xff] }
  0x98   :  { %4505 = vmatpush.bf16.msra.mxu2 %v7302_v41  ;;  %v7355_v41 = vld [vmem:[%s9343_s1 + $0x638] sm:$0xff] }
  0x99   :  { %4518 = vmatpush.bf16.msra.mxu3 %v7310_v42  ;;  %v7363_v42 = vld [vmem:[%s9343_s1 + $0x678] sm:$0xff] }
  0x9a   :  { %4480 = vmatpush.bf16.msra.mxu0 %v7285_v43  ;;  %v7371_v43 = vld [vmem:[%s9343_s1 + $0x6b8] sm:$0xff] }
  0x9b   :  { %4493 = vmatpush.bf16.msra.mxu1 %v7293_v44  ;;  %v7379_v44 = vld [vmem:[%s9343_s1 + $0x6f8] sm:$0xff] }
  0x9c   :  { %4506 = vmatpush.bf16.msra.mxu2 %v7301_v45  ;;  %v7354_v45 = vld [vmem:[%s9343_s1 + $0x630] sm:$0xff] }
  0x9d   :  { %4519 = vmatpush.bf16.msra.mxu3 %v7309_v46  ;;  %v7362_v46 = vld [vmem:[%s9343_s1 + $0x670] sm:$0xff] }
  0x9e   :  { %4481 = vmatpush.bf16.msra.mxu0 %v7284_v47  ;;  %v4275_v9 = vpop.f32.mrf.mxu0  ;;  %v7370_v47 = vld [vmem:[%s9343_s1 + $0x6b0] sm:$0xff] }
  0x9f   :  { %4494 = vmatpush.bf16.msra.mxu1 %v7292_v48  ;;  %v4276_v12 = vadd.f32 %v7668_v6, %v4275_v9  ;;  %v4288_v13 = vpop.f32.mrf.mxu1  ;;  %v7378_v48 = vld [vmem:[%s9343_s1 + $0x6f0] sm:$0xff] }
  0xa0   :  { %4507 = vmatpush.bf16.msra.mxu2 %v7300_v49  ;;  %v7353_v49 = vld [vmem:[%s9343_s1 + $0x628] sm:$0xff]  ;;  %v7358_v6 = vld [vmem:[%s9343_s1 + $0x650] sm:$0xff] }
  0xa1   :  { %4520 = vmatpush.bf16.msra.mxu3 %v7308_v50  ;;  %4482 = vmatmul.bf16.vlgmr.msra.gmra.mxu0 %v1072_v56  ;;  %v4289_v16 = vadd.f32 %v4288_v13, %v4276_v12  ;;  %v7361_v50 = vld [vmem:[%s9343_s1 + $0x668] sm:$0xff]  ;;  %v7366_v9 = vld [vmem:[%s9343_s1 + $0x690] sm:$0xff] }
  0xa2   :  { %4526 = vmatpush.bf16.msrb.mxu0 %v7323_v51  ;;  %4495 = vmatmul.bf16.vlgmr.msra.gmra.mxu1 %v1073_v58  ;;  %v7369_v51 = vld [vmem:[%s9343_s1 + $0x6a8] sm:$0xff]  ;;  %v7368_v58 = vld [vmem:[%s9343_s1 + $0x6a0] sm:$0xff] }
  0xa3   :  { %4539 = vmatpush.bf16.msrb.mxu1 %v7331_v52  ;;  %4508 = vmatmul.bf16.vlgmr.msra.gmra.mxu2 %v1074_v57  ;;  %v7377_v52 = vld [vmem:[%s9343_s1 + $0x6e8] sm:$0xff] }
  0xa4   :  { %4552 = vmatpush.bf16.msrb.mxu2 %v7339_v54  ;;  %4521 = vmatmul.bf16.vlgmr.msra.gmra.mxu3 %v1075_v59  ;;  %v7352_v54 = vld [vmem:[%s9343_s1 + $0x620] sm:$0xff]  ;;  %v7357_v12 = vld [vmem:[%s9343_s1 + $0x648] sm:$0xff] }
  0xa5   :  { %4565 = vmatpush.bf16.msrb.mxu3 %v7347_v55  ;;  %v7360_v55 = vld [vmem:[%s9343_s1 + $0x660] sm:$0xff]  ;;  %v7365_v13 = vld [vmem:[%s9343_s1 + $0x688] sm:$0xff] }
  0xa6   :  { %4527 = vmatpush.bf16.msrb.mxu0 %v7322_v60  ;;  %v4301_v21 = vpop.f32.mrf.mxu2  ;;  %v4277_v24 = vpop.f32.mrf.mxu0  ;;  %v7376_v59 = vld [vmem:[%s9343_s1 + $0x6e0] sm:$0xff] }
  0xa7   :  { %4540 = vmatpush.bf16.msrb.mxu1 %v7330_v61  ;;  %v4302_v22 = vadd.f32 %v4301_v21, %v4289_v16  ;;  %v4314_v23 = vpop.f32.mrf.mxu3  ;;  %v4290_v28 = vpop.f32.mrf.mxu1  ;;  %v7351_v61 = vld [vmem:[%s9343_s1 + $0x618] sm:$0xff] }
  0xa8   :  { %4553 = vmatpush.bf16.msrb.mxu2 %v7338_v62  ;;  %v7359_v62 = vld [vmem:[%s9343_s1 + $0x658] sm:$0xff]  ;;  %v1083_v28 = vld [vmem:[#allocation1 + $0x9] sm:$0xff] }
  0xa9   :  { %4566 = vmatpush.bf16.msrb.mxu3 %v7346_v63  ;;  %v4315_v27 = vadd.f32 %v4314_v23, %v4302_v22  ;;  %v7367_v63 = vld [vmem:[%s9343_s1 + $0x698] sm:$0xff]  ;;  %v18_v23 = vld [vmem:[%s9344_s0 + $0x20] sm:$0xff] }
  0xaa   :  { %4528 = vmatpush.bf16.msrb.mxu0 %v7321_v4  ;;  %v7387_v21 = vld [vmem:[%s9343_s1 + $0x738] sm:$0xff] }
  0xab   :  { %4541 = vmatpush.bf16.msrb.mxu1 %v7329_v5  ;;  %v7350_v5 = vld [vmem:[%s9343_s1 + $0x610] sm:$0xff]  ;;  %v7395_v22 = vld [vmem:[%s9343_s1 + $0x778] sm:$0xff] }
  0xac   :  { %4554 = vmatpush.bf16.msrb.mxu2 %v7337_v7  ;;  %v7403_v24 = vld [vmem:[%s9343_s1 + $0x7b8] sm:$0xff] }
  0xad   :  { %4567 = vmatpush.bf16.msrb.mxu3 %v7345_v8 }
  0xae   :  { %4529 = vmatpush.bf16.msrb.mxu0 %v7320_v10  ;;  %v4303_v35 = vpop.f32.mrf.mxu2  ;;  %v7374_v10 = vld [vmem:[%s9343_s1 + $0x6d0] sm:$0xff] }
  0xaf   :  { %4542 = vmatpush.bf16.msrb.mxu1 %v7328_v11  ;;  %v4316_v36 = vpop.f32.mrf.mxu3  ;;  %v7349_v11 = vld [vmem:[%s9343_s1 + $0x608] sm:$0xff]  ;;  %v8435_v35 = vld [vmem:[#allocation1 + $0x36] sm:$0xff] }
  0xb0   :  { %4555 = vmatpush.bf16.msrb.mxu2 %v7336_v14  ;;  %v7373_v14 = vld [vmem:[%s9343_s1 + $0x6c8] sm:$0xff] }
  0xb1   :  { %4568 = vmatpush.bf16.msrb.mxu3 %v7344_v15  ;;  %v8437_v36 = vld [vmem:[#allocation1 + $0x2d] sm:$0xff] }
  0xb2   :  { %4530 = vmatpush.bf16.msrb.mxu0 %v7319_v17  ;;  %v7348_v17 = vld [vmem:[%s9343_s1 + $0x600] sm:$0xff] }
  0xb3   :  { %4543 = vmatpush.bf16.msrb.mxu1 %v7327_v18  ;;  %v7356_v18 = vld [vmem:[%s9343_s1 + $0x640] sm:$0xff] }
  0xb4   :  { %4556 = vmatpush.bf16.msrb.mxu2 %v7335_v19  ;;  %v7364_v19 = vld [vmem:[%s9343_s1 + $0x680] sm:$0xff] }
  0xb5   :  { %4569 = vmatpush.bf16.msrb.mxu3 %v7343_v20  ;;  %v7372_v20 = vld [vmem:[%s9343_s1 + $0x6c0] sm:$0xff] }
  0xb6   :  { %4531 = vmatpush.bf16.msrb.mxu0 %v7318_v25  ;;  %v7411_v25 = vld [vmem:[%s9343_s1 + $0x7f8] sm:$0xff] }
  0xb7   :  { %4544 = vmatpush.bf16.msrb.mxu1 %v7326_v26  ;;  %v1082_v26 = vld [vmem:[#allocation1] sm:$0xff] }
  0xb8   :  { %4557 = vmatpush.bf16.msrb.mxu2 %v7334_v29  ;;  %v1085_v29 = vld [vmem:[#allocation1 + $0x1b] sm:$0xff] }
  0xb9   :  { %4570 = vmatpush.bf16.msrb.mxu3 %v7342_v30  ;;  %v7386_v30 = vld [vmem:[%s9343_s1 + $0x730] sm:$0xff] }
  0xba   :  { %4532 = vmatpush.bf16.msrb.mxu0 %v7317_v31  ;;  %v7394_v31 = vld [vmem:[%s9343_s1 + $0x770] sm:$0xff] }
  0xbb   :  { %4545 = vmatpush.bf16.msrb.mxu1 %v7325_v32  ;;  %v7402_v32 = vld [vmem:[%s9343_s1 + $0x7b0] sm:$0xff] }
  0xbc   :  { %4558 = vmatpush.bf16.msrb.mxu2 %v7333_v33  ;;  %v7410_v33 = vld [vmem:[%s9343_s1 + $0x7f0] sm:$0xff] }
  0xbd   :  { %4571 = vmatpush.bf16.msrb.mxu3 %v7341_v34  ;;  %v8433_v34 = vld [vmem:[#allocation1 + $0x24] sm:$0xff] }
  0xbe   :  { %4533 = vmatpush.bf16.msrb.mxu0 %v7316_v37  ;;  %v4327_v53 = vpop.f32.mrf.mxu0  ;;  %v8439_v37 = vld [vmem:[#allocation1 + $0x3f] sm:$0xff] }
  0xbf   :  { %4546 = vmatpush.bf16.msrb.mxu1 %v7324_v38  ;;  %v4328_v56 = vadd.f32 %v4327_v53, %v4315_v27  ;;  %v4340_v57 = vpop.f32.mrf.mxu1  ;;  %v1084_v27 = vld [vmem:[#allocation1 + $0x12] sm:$0xff]  ;;  %v7385_v38 = vld [vmem:[%s9343_s1 + $0x728] sm:$0xff] }
  0xc0   :  { %4559 = vmatpush.bf16.msrb.mxu2 %v7332_v39  ;;  %1091 = vst [vmem:[#allocation1] ss:$9 sm:$0xff] %v18_v23  ;;  %v7393_v39 = vld [vmem:[%s9343_s1 + $0x768] sm:$0xff]  ;;  %v7407_v53 = vld [vmem:[%s9343_s1 + $0x7d8] sm:$0xff] }
  0xc1   :  { %4572 = vmatpush.bf16.msrb.mxu3 %v7340_v40  ;;  %4534 = vmatmul.bf16.vlgmr.msrb.gmra.mxu0 %v8221_v0  ;;  %v4341_v60 = vadd.f32 %v4340_v57, %v4328_v56  ;;  %v7375_v0 = vld [vmem:[%s9343_s1 + $0x6d8] sm:$0xff]  ;;  %v7401_v40 = vld [vmem:[%s9343_s1 + $0x7a8] sm:$0xff] }
  0xc2   :  { %4578 = vmatpush.bf16.msra.mxu0 %v7355_v41  ;;  %4547 = vmatmul.bf16.vlgmr.msrb.gmra.mxu1 %v8225_v2  ;;  %v7409_v41 = vld [vmem:[%s9343_s1 + $0x7e8] sm:$0xff] }
  0xc3   :  { %4591 = vmatpush.bf16.msra.mxu1 %v7363_v42  ;;  %4560 = vmatmul.bf16.vlgmr.msrb.gmra.mxu2 %v8223_v1 }
  0xc4   :  { %4604 = vmatpush.bf16.msra.mxu2 %v7371_v43  ;;  %4573 = vmatmul.bf16.vlgmr.msrb.gmra.mxu3 %v8227_v3 }
  0xc5   :  { %4617 = vmatpush.bf16.msra.mxu3 %v7379_v44  ;;  %v7384_v44 = vld [vmem:[%s9343_s1 + $0x720] sm:$0xff] }
  0xc6   :  { %4579 = vmatpush.bf16.msra.mxu0 %v7354_v45  ;;  %v4353_v1 = vpop.f32.mrf.mxu2  ;;  %v4329_v4 = vpop.f32.mrf.mxu0  ;;  %v7392_v45 = vld [vmem:[%s9343_s1 + $0x760] sm:$0xff] }
  0xc7   :  { %4592 = vmatpush.bf16.msra.mxu1 %v7362_v46  ;;  %v4354_v2 = vadd.f32 %v4353_v1, %v4341_v60  ;;  %v4366_v3 = vpop.f32.mrf.mxu3  ;;  %v4342_v8 = vpop.f32.mrf.mxu1  ;;  %v7390_v60 = vld [vmem:[%s9343_s1 + $0x750] sm:$0xff]  ;;  %v7389_v1 = vld [vmem:[%s9343_s1 + $0x748] sm:$0xff] }
  0xc8   :  { %4605 = vmatpush.bf16.msra.mxu2 %v7370_v47  ;;  %v7400_v47 = vld [vmem:[%s9343_s1 + $0x7a0] sm:$0xff] }
  0xc9   :  { %4618 = vmatpush.bf16.msra.mxu3 %v7378_v48  ;;  %v8374_v7 = vadd.f32 %v4366_v3, %v4354_v2  ;;  %v7408_v48 = vld [vmem:[%s9343_s1 + $0x7e0] sm:$0xff]  ;;  %v7397_v2 = vld [vmem:[%s9343_s1 + $0x788] sm:$0xff] }
  0xca   :  { %4580 = vmatpush.bf16.msra.mxu0 %v7353_v49  ;;  %v7405_v3 = vld [vmem:[%s9343_s1 + $0x7c8] sm:$0xff]  ;;  %v7396_v8 = vld [vmem:[%s9343_s1 + $0x780] sm:$0xff] }
  0xcb   :  { %4593 = vmatpush.bf16.msra.mxu1 %v7361_v50  ;;  %v7383_v50 = vld [vmem:[%s9343_s1 + $0x718] sm:$0xff] }
  0xcc   :  { %4606 = vmatpush.bf16.msra.mxu2 %v7369_v51  ;;  %v7391_v51 = vld [vmem:[%s9343_s1 + $0x758] sm:$0xff] }
  0xcd   :  { %4619 = vmatpush.bf16.msra.mxu3 %v7377_v52  ;;  %v7399_v52 = vld [vmem:[%s9343_s1 + $0x798] sm:$0xff] }
  0xce   :  { %4581 = vmatpush.bf16.msra.mxu0 %v7352_v54  ;;  %v4355_v15 = vpop.f32.mrf.mxu2 }
  0xcf   :  { %4594 = vmatpush.bf16.msra.mxu1 %v7360_v55  ;;  %v4368_v16 = vpop.f32.mrf.mxu3  ;;  %v7426_v15 = vld [vmem:[%s9343_s1 + $0x870] sm:$0xff] }
  0xd0   :  { %4607 = vmatpush.bf16.msra.mxu2 %v7368_v58  ;;  %v7434_v16 = vld [vmem:[%s9343_s1 + $0x8b0] sm:$0xff] }
  0xd1   :  { %4620 = vmatpush.bf16.msra.mxu3 %v7376_v59  ;;  %v7382_v59 = vld [vmem:[%s9343_s1 + $0x710] sm:$0xff] }
  0xd2   :  { %4582 = vmatpush.bf16.msra.mxu0 %v7351_v61 }
  0xd3   :  { %4595 = vmatpush.bf16.msra.mxu1 %v7359_v62  ;;  %v7398_v62 = vld [vmem:[%s9343_s1 + $0x790] sm:$0xff] }
  0xd4   :  { %4608 = vmatpush.bf16.msra.mxu2 %v7367_v63  ;;  %v7406_v63 = vld [vmem:[%s9343_s1 + $0x7d0] sm:$0xff] }
  0xd5   :  { %4621 = vmatpush.bf16.msra.mxu3 %v7375_v0  ;;  %v7381_v0 = vld [vmem:[%s9343_s1 + $0x708] sm:$0xff] }
  0xd6   :  { %4583 = vmatpush.bf16.msra.mxu0 %v7350_v5 }
  0xd7   :  { %4596 = vmatpush.bf16.msra.mxu1 %v7358_v6  ;;  %v7380_v6 = vld [vmem:[%s9343_s1 + $0x700] sm:$0xff] }
  0xd8   :  { %4609 = vmatpush.bf16.msra.mxu2 %v7366_v9  ;;  %v7404_v9 = vld [vmem:[%s9343_s1 + $0x7c0] sm:$0xff] }
  0xd9   :  { %4622 = vmatpush.bf16.msra.mxu3 %v7374_v10  ;;  %v7419_v10 = vld [vmem:[%s9343_s1 + $0x838] sm:$0xff] }
  0xda   :  { %4584 = vmatpush.bf16.msra.mxu0 %v7349_v11  ;;  %v7427_v11 = vld [vmem:[%s9343_s1 + $0x878] sm:$0xff] }
  0xdb   :  { %4597 = vmatpush.bf16.msra.mxu1 %v7357_v12  ;;  %v7435_v12 = vld [vmem:[%s9343_s1 + $0x8b8] sm:$0xff] }
  0xdc   :  { %4610 = vmatpush.bf16.msra.mxu2 %v7365_v13  ;;  %v7443_v13 = vld [vmem:[%s9343_s1 + $0x8f8] sm:$0xff] }
  0xdd   :  { %4623 = vmatpush.bf16.msra.mxu3 %v7373_v14  ;;  %v7418_v14 = vld [vmem:[%s9343_s1 + $0x830] sm:$0xff] }
  0xde   :  { %4585 = vmatpush.bf16.msra.mxu0 %v7348_v17  ;;  %v4379_v42 = vpop.f32.mrf.mxu0  ;;  %v7442_v17 = vld [vmem:[%s9343_s1 + $0x8f0] sm:$0xff] }
  0xdf   :  { %4598 = vmatpush.bf16.msra.mxu1 %v7356_v18  ;;  %v4380_v43 = vadd.f32 %v4379_v42, %v8374_v7  ;;  %v4392_v46 = vpop.f32.mrf.mxu1  ;;  %v7388_v7 = vld [vmem:[%s9343_s1 + $0x740] sm:$0xff]  ;;  %v7417_v18 = vld [vmem:[%s9343_s1 + $0x828] sm:$0xff]  ;;  %v7430_v42 = vld [vmem:[%s9343_s1 + $0x890] sm:$0xff] }
  0xe0   :  { %4611 = vmatpush.bf16.msra.mxu2 %v7364_v19  ;;  %v7425_v19 = vld [vmem:[%s9343_s1 + $0x868] sm:$0xff] }
  0xe1   :  { %4624 = vmatpush.bf16.msra.mxu3 %v7372_v20  ;;  %4586 = vmatmul.bf16.vlgmr.msra.gmra.mxu0 %v1082_v26  ;;  %v4393_v49 = vadd.f32 %v4392_v46, %v4380_v43  ;;  %v7433_v20 = vld [vmem:[%s9343_s1 + $0x8a8] sm:$0xff]  ;;  %v7438_v43 = vld [vmem:[%s9343_s1 + $0x8d0] sm:$0xff] }
  0xe2   :  { %4630 = vmatpush.bf16.msrb.mxu0 %v7387_v21  ;;  %4599 = vmatmul.bf16.vlgmr.msra.gmra.mxu1 %v1083_v28  ;;  %v7441_v21 = vld [vmem:[%s9343_s1 + $0x8e8] sm:$0xff]  ;;  %v7440_v28 = vld [vmem:[%s9343_s1 + $0x8e0] sm:$0xff] }
  0xe3   :  { %4643 = vmatpush.bf16.msrb.mxu1 %v7395_v22  ;;  %4612 = vmatmul.bf16.vlgmr.msra.gmra.mxu2 %v1084_v27  ;;  %v7432_v27 = vld [vmem:[%s9343_s1 + $0x8a0] sm:$0xff]  ;;  %v7429_v46 = vld [vmem:[%s9343_s1 + $0x888] sm:$0xff] }
  0xe4   :  { %4656 = vmatpush.bf16.msrb.mxu2 %v7403_v24  ;;  %4625 = vmatmul.bf16.vlgmr.msra.gmra.mxu3 %v1085_v29  ;;  %v7416_v24 = vld [vmem:[%s9343_s1 + $0x820] sm:$0xff] }
  0xe5   :  { %4669 = vmatpush.bf16.msrb.mxu3 %v7411_v25  ;;  %v7424_v25 = vld [vmem:[%s9343_s1 + $0x860] sm:$0xff] }
  0xe6   :  { %4631 = vmatpush.bf16.msrb.mxu0 %v7386_v30  ;;  %v4405_v54 = vpop.f32.mrf.mxu2  ;;  %v4381_v57 = vpop.f32.mrf.mxu0  ;;  %v7415_v30 = vld [vmem:[%s9343_s1 + $0x818] sm:$0xff] }
  0xe7   :  { %4644 = vmatpush.bf16.msrb.mxu1 %v7394_v31  ;;  %v4406_v55 = vadd.f32 %v4405_v54, %v4393_v49  ;;  %v4418_v56 = vpop.f32.mrf.mxu3  ;;  %v4394_v61 = vpop.f32.mrf.mxu1  ;;  %v7423_v31 = vld [vmem:[%s9343_s1 + $0x858] sm:$0xff] }
  0xe8   :  { %4657 = vmatpush.bf16.msrb.mxu2 %v7402_v32  ;;  %v7431_v32 = vld [vmem:[%s9343_s1 + $0x898] sm:$0xff]  ;;  %v1093_v61 = vld [vmem:[#allocation1 + $0x9] sm:$0xff] }
  0xe9   :  { %4670 = vmatpush.bf16.msrb.mxu3 %v7410_v33  ;;  %v4419_v58 = vadd.f32 %v4418_v56, %v4406_v55  ;;  %v7439_v33 = vld [vmem:[%s9343_s1 + $0x8d8] sm:$0xff]  ;;  %v19_v56 = vld [vmem:[%s9344_s0 + $0x28] sm:$0xff] }
  0xea   :  { %4632 = vmatpush.bf16.msrb.mxu0 %v7385_v38  ;;  %v7451_v54 = vld [vmem:[%s9343_s1 + $0x938] sm:$0xff] }
  0xeb   :  { %4645 = vmatpush.bf16.msrb.mxu1 %v7393_v39  ;;  %v7414_v39 = vld [vmem:[%s9343_s1 + $0x810] sm:$0xff]  ;;  %v7459_v55 = vld [vmem:[%s9343_s1 + $0x978] sm:$0xff] }
  0xec   :  { %4658 = vmatpush.bf16.msrb.mxu2 %v7401_v40  ;;  %v7422_v40 = vld [vmem:[%s9343_s1 + $0x850] sm:$0xff]  ;;  %v7467_v57 = vld [vmem:[%s9343_s1 + $0x9b8] sm:$0xff] }
  0xed   :  { %4671 = vmatpush.bf16.msrb.mxu3 %v7409_v41 }
  0xee   :  { %4633 = vmatpush.bf16.msrb.mxu0 %v7384_v44  ;;  %v4407_v4 = vpop.f32.mrf.mxu2  ;;  %v7413_v44 = vld [vmem:[%s9343_s1 + $0x808] sm:$0xff] }
  0xef   :  { %4646 = vmatpush.bf16.msrb.mxu1 %v7392_v45  ;;  %v4420_v5 = vpop.f32.mrf.mxu3  ;;  %v7421_v45 = vld [vmem:[%s9343_s1 + $0x848] sm:$0xff]  ;;  %v8645_v4 = vld [vmem:[#allocation1 + $0x36] sm:$0xff] }
  0xf0   :  { %4659 = vmatpush.bf16.msrb.mxu2 %v7400_v47  ;;  %v7437_v47 = vld [vmem:[%s9343_s1 + $0x8c8] sm:$0xff] }
  0xf1   :  { %4672 = vmatpush.bf16.msrb.mxu3 %v7408_v48  ;;  %v8647_v5 = vld [vmem:[#allocation1 + $0x2d] sm:$0xff] }
  0xf2   :  { %4634 = vmatpush.bf16.msrb.mxu0 %v7383_v50  ;;  %v7412_v50 = vld [vmem:[%s9343_s1 + $0x800] sm:$0xff] }
  0xf3   :  { %4647 = vmatpush.bf16.msrb.mxu1 %v7391_v51  ;;  %v7420_v51 = vld [vmem:[%s9343_s1 + $0x840] sm:$0xff] }
  0xf4   :  { %4660 = vmatpush.bf16.msrb.mxu2 %v7399_v52  ;;  %v7428_v52 = vld [vmem:[%s9343_s1 + $0x880] sm:$0xff] }
  0xf5   :  { %4673 = vmatpush.bf16.msrb.mxu3 %v7407_v53  ;;  %v7436_v53 = vld [vmem:[%s9343_s1 + $0x8c0] sm:$0xff] }
  0xf6   :  { %4635 = vmatpush.bf16.msrb.mxu0 %v7382_v59  ;;  %v1092_v59 = vld [vmem:[#allocation1] sm:$0xff] }
  0xf7   :  { %4648 = vmatpush.bf16.msrb.mxu1 %v7390_v60  ;;  %v1094_v60 = vld [vmem:[#allocation1 + $0x12] sm:$0xff] }
  0xf8   :  { %4661 = vmatpush.bf16.msrb.mxu2 %v7398_v62  ;;  %v1095_v62 = vld [vmem:[#allocation1 + $0x1b] sm:$0xff] }
  0xf9   :  { %4674 = vmatpush.bf16.msrb.mxu3 %v7406_v63  ;;  %v7450_v63 = vld [vmem:[%s9343_s1 + $0x930] sm:$0xff] }
  0xfa   :  { %4636 = vmatpush.bf16.msrb.mxu0 %v7381_v0  ;;  %v7458_v0 = vld [vmem:[%s9343_s1 + $0x970] sm:$0xff] }
  0xfb   :  { %4649 = vmatpush.bf16.msrb.mxu1 %v7389_v1  ;;  %v7466_v1 = vld [vmem:[%s9343_s1 + $0x9b0] sm:$0xff] }
  0xfc   :  { %4662 = vmatpush.bf16.msrb.mxu2 %v7397_v2  ;;  %v7474_v2 = vld [vmem:[%s9343_s1 + $0x9f0] sm:$0xff] }
  0xfd   :  { %4675 = vmatpush.bf16.msrb.mxu3 %v7405_v3  ;;  %v8643_v3 = vld [vmem:[#allocation1 + $0x24] sm:$0xff] }
  0xfe   :  { %4637 = vmatpush.bf16.msrb.mxu0 %v7380_v6  ;;  %v4431_v22 = vpop.f32.mrf.mxu0  ;;  %v8649_v6 = vld [vmem:[#allocation1 + $0x3f] sm:$0xff] }
  0xff   :  { %4650 = vmatpush.bf16.msrb.mxu1 %v7388_v7  ;;  %v4432_v23 = vadd.f32 %v4431_v22, %v4419_v58  ;;  %v4444_v26 = vpop.f32.mrf.mxu1  ;;  %v7475_v58 = vld [vmem:[%s9343_s1 + $0x9f8] sm:$0xff]  ;;  %1101 = vst [vmem:[#allocation1] ss:$9 sm:$0xff] %v19_v56  ;;  %v7449_v7 = vld [vmem:[%s9343_s1 + $0x928] sm:$0xff] }
 0x100   :  { %4663 = vmatpush.bf16.msrb.mxu2 %v7396_v8  ;;  %v7457_v8 = vld [vmem:[%s9343_s1 + $0x968] sm:$0xff]  ;;  %v7471_v22 = vld [vmem:[%s9343_s1 + $0x9d8] sm:$0xff] }
 0x101   :  { %4676 = vmatpush.bf16.msrb.mxu3 %v7404_v9  ;;  %4638 = vmatmul.bf16.vlgmr.msrb.gmra.mxu0 %v8433_v34  ;;  %v4445_v29 = vadd.f32 %v4444_v26, %v4432_v23  ;;  %v7465_v9 = vld [vmem:[%s9343_s1 + $0x9a8] sm:$0xff] }
 0x102   :  { %4682 = vmatpush.bf16.msra.mxu0 %v7419_v10  ;;  %4651 = vmatmul.bf16.vlgmr.msrb.gmra.mxu1 %v8437_v36  ;;  %v7473_v10 = vld [vmem:[%s9343_s1 + $0x9e8] sm:$0xff] }
 0x103   :  { %4695 = vmatpush.bf16.msra.mxu1 %v7427_v11  ;;  %4664 = vmatmul.bf16.vlgmr.msrb.gmra.mxu2 %v8435_v35 }
 0x104   :  { %4708 = vmatpush.bf16.msra.mxu2 %v7435_v12  ;;  %4677 = vmatmul.bf16.vlgmr.msrb.gmra.mxu3 %v8439_v37 }
 0x105   :  { %4721 = vmatpush.bf16.msra.mxu3 %v7443_v13  ;;  %v7448_v13 = vld [vmem:[%s9343_s1 + $0x920] sm:$0xff] }
 0x106   :  { %4683 = vmatpush.bf16.msra.mxu0 %v7418_v14  ;;  %v4457_v34 = vpop.f32.mrf.mxu2  ;;  %v4433_v37 = vpop.f32.mrf.mxu0  ;;  %v7456_v14 = vld [vmem:[%s9343_s1 + $0x960] sm:$0xff] }
 0x107   :  { %4696 = vmatpush.bf16.msra.mxu1 %v7426_v15  ;;  %v4458_v35 = vadd.f32 %v4457_v34, %v4445_v29  ;;  %v4470_v36 = vpop.f32.mrf.mxu3  ;;  %v4446_v41 = vpop.f32.mrf.mxu1  ;;  %v7454_v29 = vld [vmem:[%s9343_s1 + $0x950] sm:$0xff]  ;;  %v7453_v34 = vld [vmem:[%s9343_s1 + $0x948] sm:$0xff] }
 0x108   :  { %4709 = vmatpush.bf16.msra.mxu2 %v7434_v16  ;;  %v7464_v16 = vld [vmem:[%s9343_s1 + $0x9a0] sm:$0xff] }
 0x109   :  { %4722 = vmatpush.bf16.msra.mxu3 %v7442_v17  ;;  %v8578_v38 = vadd.f32 %v4470_v36, %v4458_v35  ;;  %v7472_v17 = vld [vmem:[%s9343_s1 + $0x9e0] sm:$0xff]  ;;  %v7461_v35 = vld [vmem:[%s9343_s1 + $0x988] sm:$0xff] }
 0x10a   :  { %4684 = vmatpush.bf16.msra.mxu0 %v7417_v18  ;;  %v7469_v36 = vld [vmem:[%s9343_s1 + $0x9c8] sm:$0xff]  ;;  %v7460_v41 = vld [vmem:[%s9343_s1 + $0x980] sm:$0xff] }
 0x10b   :  { %4697 = vmatpush.bf16.msra.mxu1 %v7425_v19  ;;  %v7447_v19 = vld [vmem:[%s9343_s1 + $0x918] sm:$0xff] }
 0x10c   :  { %4710 = vmatpush.bf16.msra.mxu2 %v7433_v20  ;;  %v7455_v20 = vld [vmem:[%s9343_s1 + $0x958] sm:$0xff] }
 0x10d   :  { %4723 = vmatpush.bf16.msra.mxu3 %v7441_v21  ;;  %v7463_v21 = vld [vmem:[%s9343_s1 + $0x998] sm:$0xff] }
 0x10e   :  { %4685 = vmatpush.bf16.msra.mxu0 %v7416_v24  ;;  %v4459_v48 = vpop.f32.mrf.mxu2 }
 0x10f   :  { %4698 = vmatpush.bf16.msra.mxu1 %v7424_v25  ;;  %v4472_v49 = vpop.f32.mrf.mxu3  ;;  %v7490_v48 = vld [vmem:[%s9343_s1 + $0xa70] sm:$0xff] }
 0x110   :  { %4711 = vmatpush.bf16.msra.mxu2 %v7432_v27  ;;  %v7498_v49 = vld [vmem:[%s9343_s1 + $0xab0] sm:$0xff] }
 0x111   :  { %4724 = vmatpush.bf16.msra.mxu3 %v7440_v28  ;;  %v7446_v28 = vld [vmem:[%s9343_s1 + $0x910] sm:$0xff] }
 0x112   :  { %4686 = vmatpush.bf16.msra.mxu0 %v7415_v30 }
 0x113   :  { %4699 = vmatpush.bf16.msra.mxu1 %v7423_v31  ;;  %v7462_v31 = vld [vmem:[%s9343_s1 + $0x990] sm:$0xff] }
 0x114   :  { %4712 = vmatpush.bf16.msra.mxu2 %v7431_v32  ;;  %v7470_v32 = vld [vmem:[%s9343_s1 + $0x9d0] sm:$0xff] }
 0x115   :  { %4725 = vmatpush.bf16.msra.mxu3 %v7439_v33  ;;  %v7445_v33 = vld [vmem:[%s9343_s1 + $0x908] sm:$0xff] }
 0x116   :  { %4687 = vmatpush.bf16.msra.mxu0 %v7414_v39  ;;  %v7444_v39 = vld [vmem:[%s9343_s1 + $0x900] sm:$0xff] }
 0x117   :  { %4700 = vmatpush.bf16.msra.mxu1 %v7422_v40  ;;  %v7452_v40 = vld [vmem:[%s9343_s1 + $0x940] sm:$0xff] }
 0x118   :  { %4713 = vmatpush.bf16.msra.mxu2 %v7430_v42  ;;  %v7468_v42 = vld [vmem:[%s9343_s1 + $0x9c0] sm:$0xff] }
 0x119   :  { %4726 = vmatpush.bf16.msra.mxu3 %v7438_v43  ;;  %v7483_v43 = vld [vmem:[%s9343_s1 + $0xa38] sm:$0xff] }
 0x11a   :  { %4688 = vmatpush.bf16.msra.mxu0 %v7413_v44  ;;  %v7491_v44 = vld [vmem:[%s9343_s1 + $0xa78] sm:$0xff] }
 0x11b   :  { %4701 = vmatpush.bf16.msra.mxu1 %v7421_v45  ;;  %v7499_v45 = vld [vmem:[%s9343_s1 + $0xab8] sm:$0xff] }
 0x11c   :  { %4714 = vmatpush.bf16.msra.mxu2 %v7429_v46  ;;  %v7507_v46 = vld [vmem:[%s9343_s1 + $0xaf8] sm:$0xff] }
 0x11d   :  { %4727 = vmatpush.bf16.msra.mxu3 %v7437_v47  ;;  %v7482_v47 = vld [vmem:[%s9343_s1 + $0xa30] sm:$0xff] }
 0x11e   :  { %4689 = vmatpush.bf16.msra.mxu0 %v7412_v50  ;;  %v4483_v11 = vpop.f32.mrf.mxu0  ;;  %v7506_v50 = vld [vmem:[%s9343_s1 + $0xaf0] sm:$0xff] }
 0x11f   :  { %4702 = vmatpush.bf16.msra.mxu1 %v7420_v51  ;;  %v4484_v12 = vadd.f32 %v4483_v11, %v8578_v38  ;;  %v4496_v15 = vpop.f32.mrf.mxu1  ;;  %v7481_v51 = vld [vmem:[%s9343_s1 + $0xa28] sm:$0xff]  ;;  %v7494_v11 = vld [vmem:[%s9343_s1 + $0xa90] sm:$0xff] }
 0x120   :  { %4715 = vmatpush.bf16.msra.mxu2 %v7428_v52  ;;  %v7489_v52 = vld [vmem:[%s9343_s1 + $0xa68] sm:$0xff] }
 0x121   :  { %4728 = vmatpush.bf16.msra.mxu3 %v7436_v53  ;;  %4690 = vmatmul.bf16.vlgmr.msra.gmra.mxu0 %v1092_v59  ;;  %v4497_v18 = vadd.f32 %v4496_v15, %v4484_v12  ;;  %v7497_v53 = vld [vmem:[%s9343_s1 + $0xaa8] sm:$0xff]  ;;  %v7502_v12 = vld [vmem:[%s9343_s1 + $0xad0] sm:$0xff] }
 0x122   :  { %4734 = vmatpush.bf16.msrb.mxu0 %v7451_v54  ;;  %4703 = vmatmul.bf16.vlgmr.msra.gmra.mxu1 %v1093_v61  ;;  %v7505_v54 = vld [vmem:[%s9343_s1 + $0xae8] sm:$0xff]  ;;  %v7504_v61 = vld [vmem:[%s9343_s1 + $0xae0] sm:$0xff] }
 0x123   :  { %4747 = vmatpush.bf16.msrb.mxu1 %v7459_v55  ;;  %4716 = vmatmul.bf16.vlgmr.msra.gmra.mxu2 %v1094_v60  ;;  %v7496_v60 = vld [vmem:[%s9343_s1 + $0xaa0] sm:$0xff]  ;;  %v7493_v15 = vld [vmem:[%s9343_s1 + $0xa88] sm:$0xff] }
 0x124   :  { %4760 = vmatpush.bf16.msrb.mxu2 %v7467_v57  ;;  %4729 = vmatmul.bf16.vlgmr.msra.gmra.mxu3 %v1095_v62  ;;  %v7480_v57 = vld [vmem:[%s9343_s1 + $0xa20] sm:$0xff] }
 0x125   :  { %4773 = vmatpush.bf16.msrb.mxu3 %v7475_v58  ;;  %v7488_v58 = vld [vmem:[%s9343_s1 + $0xa60] sm:$0xff] }
 0x126   :  { %4735 = vmatpush.bf16.msrb.mxu0 %v7450_v63  ;;  %v4509_v23 = vpop.f32.mrf.mxu2  ;;  %v4485_v26 = vpop.f32.mrf.mxu0  ;;  %v7479_v63 = vld [vmem:[%s9343_s1 + $0xa18] sm:$0xff] }
 0x127   :  { %4748 = vmatpush.bf16.msrb.mxu1 %v7458_v0  ;;  %v4510_v24 = vadd.f32 %v4509_v23, %v4497_v18  ;;  %v4522_v25 = vpop.f32.mrf.mxu3  ;;  %v4498_v30 = vpop.f32.mrf.mxu1  ;;  %v7487_v0 = vld [vmem:[%s9343_s1 + $0xa58] sm:$0xff] }
 0x128   :  { %4761 = vmatpush.bf16.msrb.mxu2 %v7466_v1  ;;  %v7495_v1 = vld [vmem:[%s9343_s1 + $0xa98] sm:$0xff]  ;;  %v1103_v30 = vld [vmem:[#allocation1 + $0x9] sm:$0xff] }
 0x129   :  { %4774 = vmatpush.bf16.msrb.mxu3 %v7474_v2  ;;  %v4523_v27 = vadd.f32 %v4522_v25, %v4510_v24  ;;  %v7503_v2 = vld [vmem:[%s9343_s1 + $0xad8] sm:$0xff]  ;;  %v20_v25 = vld [vmem:[%s9344_s0 + $0x30] sm:$0xff] }
 0x12a   :  { %4736 = vmatpush.bf16.msrb.mxu0 %v7449_v7  ;;  %v7515_v23 = vld [vmem:[%s9343_s1 + $0xb38] sm:$0xff] }
 0x12b   :  { %4749 = vmatpush.bf16.msrb.mxu1 %v7457_v8  ;;  %v7478_v8 = vld [vmem:[%s9343_s1 + $0xa10] sm:$0xff]  ;;  %v7523_v24 = vld [vmem:[%s9343_s1 + $0xb78] sm:$0xff] }
 0x12c   :  { %4762 = vmatpush.bf16.msrb.mxu2 %v7465_v9  ;;  %v7486_v9 = vld [vmem:[%s9343_s1 + $0xa50] sm:$0xff]  ;;  %v7531_v26 = vld [vmem:[%s9343_s1 + $0xbb8] sm:$0xff] }
 0x12d   :  { %4775 = vmatpush.bf16.msrb.mxu3 %v7473_v10 }
 0x12e   :  { %4737 = vmatpush.bf16.msrb.mxu0 %v7448_v13  ;;  %v4511_v37 = vpop.f32.mrf.mxu2  ;;  %v7477_v13 = vld [vmem:[%s9343_s1 + $0xa08] sm:$0xff] }
 0x12f   :  { %4750 = vmatpush.bf16.msrb.mxu1 %v7456_v14  ;;  %v4524_v38 = vpop.f32.mrf.mxu3  ;;  %v7485_v14 = vld [vmem:[%s9343_s1 + $0xa48] sm:$0xff]  ;;  %v8855_v37 = vld [vmem:[#allocation1 + $0x36] sm:$0xff] }
 0x130   :  { %4763 = vmatpush.bf16.msrb.mxu2 %v7464_v16  ;;  %v7501_v16 = vld [vmem:[%s9343_s1 + $0xac8] sm:$0xff] }
 0x131   :  { %4776 = vmatpush.bf16.msrb.mxu3 %v7472_v17  ;;  %v8857_v38 = vld [vmem:[#allocation1 + $0x2d] sm:$0xff] }
 0x132   :  { %4738 = vmatpush.bf16.msrb.mxu0 %v7447_v19  ;;  %v7476_v19 = vld [vmem:[%s9343_s1 + $0xa00] sm:$0xff] }
 0x133   :  { %4751 = vmatpush.bf16.msrb.mxu1 %v7455_v20  ;;  %v7484_v20 = vld [vmem:[%s9343_s1 + $0xa40] sm:$0xff] }
 0x134   :  { %4764 = vmatpush.bf16.msrb.mxu2 %v7463_v21  ;;  %v7492_v21 = vld [vmem:[%s9343_s1 + $0xa80] sm:$0xff] }
 0x135   :  { %4777 = vmatpush.bf16.msrb.mxu3 %v7471_v22  ;;  %v7500_v22 = vld [vmem:[%s9343_s1 + $0xac0] sm:$0xff] }
 0x136   :  { %4739 = vmatpush.bf16.msrb.mxu0 %v7446_v28  ;;  %v1102_v28 = vld [vmem:[#allocation1] sm:$0xff] }
 0x137   :  { %4752 = vmatpush.bf16.msrb.mxu1 %v7454_v29  ;;  %v1104_v29 = vld [vmem:[#allocation1 + $0x12] sm:$0xff] }
 0x138   :  { %4765 = vmatpush.bf16.msrb.mxu2 %v7462_v31  ;;  %v1105_v31 = vld [vmem:[#allocation1 + $0x1b] sm:$0xff] }
 0x139   :  { %4778 = vmatpush.bf16.msrb.mxu3 %v7470_v32  ;;  %v7514_v32 = vld [vmem:[%s9343_s1 + $0xb30] sm:$0xff] }
 0x13a   :  { %4740 = vmatpush.bf16.msrb.mxu0 %v7445_v33  ;;  %v7522_v33 = vld [vmem:[%s9343_s1 + $0xb70] sm:$0xff] }
 0x13b   :  { %4753 = vmatpush.bf16.msrb.mxu1 %v7453_v34  ;;  %v7530_v34 = vld [vmem:[%s9343_s1 + $0xbb0] sm:$0xff] }
 0x13c   :  { %4766 = vmatpush.bf16.msrb.mxu2 %v7461_v35  ;;  %v7538_v35 = vld [vmem:[%s9343_s1 + $0xbf0] sm:$0xff] }
 0x13d   :  { %4779 = vmatpush.bf16.msrb.mxu3 %v7469_v36  ;;  %v8853_v36 = vld [vmem:[#allocation1 + $0x24] sm:$0xff] }
 0x13e   :  { %4741 = vmatpush.bf16.msrb.mxu0 %v7444_v39  ;;  %v4535_v55 = vpop.f32.mrf.mxu0  ;;  %v8859_v39 = vld [vmem:[#allocation1 + $0x3f] sm:$0xff] }
 0x13f   :  { %4754 = vmatpush.bf16.msrb.mxu1 %v7452_v40  ;;  %v4536_v56 = vadd.f32 %v4535_v55, %v4523_v27  ;;  %v4548_v59 = vpop.f32.mrf.mxu1  ;;  %v7539_v27 = vld [vmem:[%s9343_s1 + $0xbf8] sm:$0xff]  ;;  %1111 = vst [vmem:[#allocation1] ss:$9 sm:$0xff] %v20_v25  ;;  %v7513_v40 = vld [vmem:[%s9343_s1 + $0xb28] sm:$0xff] }
 0x140   :  { %4767 = vmatpush.bf16.msrb.mxu2 %v7460_v41  ;;  %v7521_v41 = vld [vmem:[%s9343_s1 + $0xb68] sm:$0xff]  ;;  %v7535_v55 = vld [vmem:[%s9343_s1 + $0xbd8] sm:$0xff] }
 0x141   :  { %4780 = vmatpush.bf16.msrb.mxu3 %v7468_v42  ;;  %4742 = vmatmul.bf16.vlgmr.msrb.gmra.mxu0 %v8643_v3  ;;  %v4549_v62 = vadd.f32 %v4548_v59, %v4536_v56  ;;  %v7529_v42 = vld [vmem:[%s9343_s1 + $0xba8] sm:$0xff] }
 0x142   :  { %4786 = vmatpush.bf16.msra.mxu0 %v7483_v43  ;;  %4755 = vmatmul.bf16.vlgmr.msrb.gmra.mxu1 %v8647_v5  ;;  %v7537_v43 = vld [vmem:[%s9343_s1 + $0xbe8] sm:$0xff] }
 0x143   :  { %4799 = vmatpush.bf16.msra.mxu1 %v7491_v44  ;;  %4768 = vmatmul.bf16.vlgmr.msrb.gmra.mxu2 %v8645_v4 }
 0x144   :  { %4812 = vmatpush.bf16.msra.mxu2 %v7499_v45  ;;  %4781 = vmatmul.bf16.vlgmr.msrb.gmra.mxu3 %v8649_v6 }
 0x145   :  { %4825 = vmatpush.bf16.msra.mxu3 %v7507_v46  ;;  %v7512_v46 = vld [vmem:[%s9343_s1 + $0xb20] sm:$0xff] }
 0x146   :  { %4787 = vmatpush.bf16.msra.mxu0 %v7482_v47  ;;  %v4561_v3 = vpop.f32.mrf.mxu2  ;;  %v4537_v6 = vpop.f32.mrf.mxu0  ;;  %v7520_v47 = vld [vmem:[%s9343_s1 + $0xb60] sm:$0xff] }
 0x147   :  { %4800 = vmatpush.bf16.msra.mxu1 %v7490_v48  ;;  %v4562_v4 = vadd.f32 %v4561_v3, %v4549_v62  ;;  %v4574_v5 = vpop.f32.mrf.mxu3  ;;  %v4550_v10 = vpop.f32.mrf.mxu1  ;;  %v7518_v62 = vld [vmem:[%s9343_s1 + $0xb50] sm:$0xff]  ;;  %v7517_v3 = vld [vmem:[%s9343_s1 + $0xb48] sm:$0xff] }
 0x148   :  { %4813 = vmatpush.bf16.msra.mxu2 %v7498_v49  ;;  %v7528_v49 = vld [vmem:[%s9343_s1 + $0xba0] sm:$0xff] }
 0x149   :  { %4826 = vmatpush.bf16.msra.mxu3 %v7506_v50  ;;  %v8788_v7 = vadd.f32 %v4574_v5, %v4562_v4  ;;  %v7536_v50 = vld [vmem:[%s9343_s1 + $0xbe0] sm:$0xff]  ;;  %v7525_v4 = vld [vmem:[%s9343_s1 + $0xb88] sm:$0xff] }
 0x14a   :  { %4788 = vmatpush.bf16.msra.mxu0 %v7481_v51  ;;  %v7533_v5 = vld [vmem:[%s9343_s1 + $0xbc8] sm:$0xff]  ;;  %v7524_v10 = vld [vmem:[%s9343_s1 + $0xb80] sm:$0xff] }
 0x14b   :  { %4801 = vmatpush.bf16.msra.mxu1 %v7489_v52  ;;  %v7511_v52 = vld [vmem:[%s9343_s1 + $0xb18] sm:$0xff] }
 0x14c   :  { %4814 = vmatpush.bf16.msra.mxu2 %v7497_v53  ;;  %v7519_v53 = vld [vmem:[%s9343_s1 + $0xb58] sm:$0xff] }
 0x14d   :  { %4827 = vmatpush.bf16.msra.mxu3 %v7505_v54  ;;  %v7527_v54 = vld [vmem:[%s9343_s1 + $0xb98] sm:$0xff] }
 0x14e   :  { %4789 = vmatpush.bf16.msra.mxu0 %v7480_v57  ;;  %v4563_v17 = vpop.f32.mrf.mxu2 }
 0x14f   :  { %4802 = vmatpush.bf16.msra.mxu1 %v7488_v58  ;;  %v4576_v18 = vpop.f32.mrf.mxu3  ;;  %v7554_v17 = vld [vmem:[%s9343_s1 + $0xc70] sm:$0xff] }
 0x150   :  { %4815 = vmatpush.bf16.msra.mxu2 %v7496_v60  ;;  %v7562_v18 = vld [vmem:[%s9343_s1 + $0xcb0] sm:$0xff] }
 0x151   :  { %4828 = vmatpush.bf16.msra.mxu3 %v7504_v61  ;;  %v7510_v61 = vld [vmem:[%s9343_s1 + $0xb10] sm:$0xff] }
 0x152   :  { %4790 = vmatpush.bf16.msra.mxu0 %v7479_v63 }
 0x153   :  { %4803 = vmatpush.bf16.msra.mxu1 %v7487_v0  ;;  %v7526_v0 = vld [vmem:[%s9343_s1 + $0xb90] sm:$0xff] }
 0x154   :  { %4816 = vmatpush.bf16.msra.mxu2 %v7495_v1  ;;  %v7534_v1 = vld [vmem:[%s9343_s1 + $0xbd0] sm:$0xff] }
 0x155   :  { %4829 = vmatpush.bf16.msra.mxu3 %v7503_v2  ;;  %v7509_v2 = vld [vmem:[%s9343_s1 + $0xb08] sm:$0xff] }
 0x156   :  { %4791 = vmatpush.bf16.msra.mxu0 %v7478_v8  ;;  %v7508_v8 = vld [vmem:[%s9343_s1 + $0xb00] sm:$0xff] }
 0x157   :  { %4804 = vmatpush.bf16.msra.mxu1 %v7486_v9  ;;  %v7516_v9 = vld [vmem:[%s9343_s1 + $0xb40] sm:$0xff] }
 0x158   :  { %4817 = vmatpush.bf16.msra.mxu2 %v7494_v11  ;;  %v7532_v11 = vld [vmem:[%s9343_s1 + $0xbc0] sm:$0xff] }
 0x159   :  { %4830 = vmatpush.bf16.msra.mxu3 %v7502_v12  ;;  %v7547_v12 = vld [vmem:[%s9343_s1 + $0xc38] sm:$0xff] }
 0x15a   :  { %4792 = vmatpush.bf16.msra.mxu0 %v7477_v13  ;;  %v7555_v13 = vld [vmem:[%s9343_s1 + $0xc78] sm:$0xff] }
 0x15b   :  { %4805 = vmatpush.bf16.msra.mxu1 %v7485_v14  ;;  %v7563_v14 = vld [vmem:[%s9343_s1 + $0xcb8] sm:$0xff] }
 0x15c   :  { %4818 = vmatpush.bf16.msra.mxu2 %v7493_v15  ;;  %v7571_v15 = vld [vmem:[%s9343_s1 + $0xcf8] sm:$0xff] }
 0x15d   :  { %4831 = vmatpush.bf16.msra.mxu3 %v7501_v16  ;;  %v7546_v16 = vld [vmem:[%s9343_s1 + $0xc30] sm:$0xff] }
 0x15e   :  { %4793 = vmatpush.bf16.msra.mxu0 %v7476_v19  ;;  %v4587_v44 = vpop.f32.mrf.mxu0  ;;  %v7570_v19 = vld [vmem:[%s9343_s1 + $0xcf0] sm:$0xff] }
 0x15f   :  { %4806 = vmatpush.bf16.msra.mxu1 %v7484_v20  ;;  %v4588_v45 = vadd.f32 %v4587_v44, %v8788_v7  ;;  %v4600_v48 = vpop.f32.mrf.mxu1  ;;  %v7545_v20 = vld [vmem:[%s9343_s1 + $0xc28] sm:$0xff]  ;;  %v7558_v44 = vld [vmem:[%s9343_s1 + $0xc90] sm:$0xff] }
 0x160   :  { %4819 = vmatpush.bf16.msra.mxu2 %v7492_v21  ;;  %v7553_v21 = vld [vmem:[%s9343_s1 + $0xc68] sm:$0xff] }
 0x161   :  { %4832 = vmatpush.bf16.msra.mxu3 %v7500_v22  ;;  %4794 = vmatmul.bf16.vlgmr.msra.gmra.mxu0 %v1102_v28  ;;  %v4601_v51 = vadd.f32 %v4600_v48, %v4588_v45  ;;  %v7561_v22 = vld [vmem:[%s9343_s1 + $0xca8] sm:$0xff]  ;;  %v7566_v45 = vld [vmem:[%s9343_s1 + $0xcd0] sm:$0xff] }
 0x162   :  { %4838 = vmatpush.bf16.msrb.mxu0 %v7515_v23  ;;  %4807 = vmatmul.bf16.vlgmr.msra.gmra.mxu1 %v1103_v30  ;;  %v7569_v23 = vld [vmem:[%s9343_s1 + $0xce8] sm:$0xff]  ;;  %v7568_v30 = vld [vmem:[%s9343_s1 + $0xce0] sm:$0xff] }
 0x163   :  { %4851 = vmatpush.bf16.msrb.mxu1 %v7523_v24  ;;  %4820 = vmatmul.bf16.vlgmr.msra.gmra.mxu2 %v1104_v29  ;;  %v7560_v29 = vld [vmem:[%s9343_s1 + $0xca0] sm:$0xff]  ;;  %v7557_v48 = vld [vmem:[%s9343_s1 + $0xc88] sm:$0xff] }
 0x164   :  { %4864 = vmatpush.bf16.msrb.mxu2 %v7531_v26  ;;  %4833 = vmatmul.bf16.vlgmr.msra.gmra.mxu3 %v1105_v31  ;;  %v7544_v26 = vld [vmem:[%s9343_s1 + $0xc20] sm:$0xff] }
 0x165   :  { %4877 = vmatpush.bf16.msrb.mxu3 %v7539_v27  ;;  %v7552_v27 = vld [vmem:[%s9343_s1 + $0xc60] sm:$0xff] }
 0x166   :  { %4839 = vmatpush.bf16.msrb.mxu0 %v7514_v32  ;;  %v4613_v56 = vpop.f32.mrf.mxu2  ;;  %v4589_v59 = vpop.f32.mrf.mxu0  ;;  %v7543_v32 = vld [vmem:[%s9343_s1 + $0xc18] sm:$0xff] }
 0x167   :  { %4852 = vmatpush.bf16.msrb.mxu1 %v7522_v33  ;;  %v4614_v57 = vadd.f32 %v4613_v56, %v4601_v51  ;;  %v4626_v58 = vpop.f32.mrf.mxu3  ;;  %v4602_v63 = vpop.f32.mrf.mxu1  ;;  %v7551_v33 = vld [vmem:[%s9343_s1 + $0xc58] sm:$0xff] }
 0x168   :  { %4865 = vmatpush.bf16.msrb.mxu2 %v7530_v34  ;;  %v7559_v34 = vld [vmem:[%s9343_s1 + $0xc98] sm:$0xff]  ;;  %v1113_v63 = vld [vmem:[#allocation1 + $0x9] sm:$0xff] }
 0x169   :  { %4878 = vmatpush.bf16.msrb.mxu3 %v7538_v35  ;;  %v4627_v60 = vadd.f32 %v4626_v58, %v4614_v57  ;;  %v7567_v35 = vld [vmem:[%s9343_s1 + $0xcd8] sm:$0xff] }
 0x16a   :  { %4840 = vmatpush.bf16.msrb.mxu0 %v7513_v40  ;;  %v7579_v56 = vld [vmem:[%s9343_s1 + $0xd38] sm:$0xff] }
 0x16b   :  { %4853 = vmatpush.bf16.msrb.mxu1 %v7521_v41  ;;  %v7542_v41 = vld [vmem:[%s9343_s1 + $0xc10] sm:$0xff]  ;;  %v7587_v57 = vld [vmem:[%s9343_s1 + $0xd78] sm:$0xff] }
 0x16c   :  { %4866 = vmatpush.bf16.msrb.mxu2 %v7529_v42  ;;  %v7550_v42 = vld [vmem:[%s9343_s1 + $0xc50] sm:$0xff]  ;;  %v21_v58 = vld [vmem:[%s9344_s0 + $0x38] sm:$0xff] }
 0x16d   :  { %4879 = vmatpush.bf16.msrb.mxu3 %v7537_v43  ;;  %v7595_v59 = vld [vmem:[%s9343_s1 + $0xdb8] sm:$0xff] }
 0x16e   :  { %4841 = vmatpush.bf16.msrb.mxu0 %v7512_v46  ;;  %v4615_v6 = vpop.f32.mrf.mxu2  ;;  %v7541_v46 = vld [vmem:[%s9343_s1 + $0xc08] sm:$0xff] }
 0x16f   :  { %4854 = vmatpush.bf16.msrb.mxu1 %v7520_v47  ;;  %v4628_v7 = vpop.f32.mrf.mxu3  ;;  %v7549_v47 = vld [vmem:[%s9343_s1 + $0xc48] sm:$0xff]  ;;  %v9065_v6 = vld [vmem:[#allocation1 + $0x36] sm:$0xff] }
 0x170   :  { %4867 = vmatpush.bf16.msrb.mxu2 %v7528_v49  ;;  %v7565_v49 = vld [vmem:[%s9343_s1 + $0xcc8] sm:$0xff] }
 0x171   :  { %4880 = vmatpush.bf16.msrb.mxu3 %v7536_v50  ;;  %v9067_v7 = vld [vmem:[#allocation1 + $0x2d] sm:$0xff] }
 0x172   :  { %4842 = vmatpush.bf16.msrb.mxu0 %v7511_v52  ;;  %v7540_v52 = vld [vmem:[%s9343_s1 + $0xc00] sm:$0xff] }
 0x173   :  { %4855 = vmatpush.bf16.msrb.mxu1 %v7519_v53  ;;  %v7548_v53 = vld [vmem:[%s9343_s1 + $0xc40] sm:$0xff] }
 0x174   :  { %4868 = vmatpush.bf16.msrb.mxu2 %v7527_v54  ;;  %v7556_v54 = vld [vmem:[%s9343_s1 + $0xc80] sm:$0xff] }
 0x175   :  { %4881 = vmatpush.bf16.msrb.mxu3 %v7535_v55  ;;  %v7564_v55 = vld [vmem:[%s9343_s1 + $0xcc0] sm:$0xff] }
 0x176   :  { %4843 = vmatpush.bf16.msrb.mxu0 %v7510_v61  ;;  %v1112_v61 = vld [vmem:[#allocation1] sm:$0xff] }
 0x177   :  { %4856 = vmatpush.bf16.msrb.mxu1 %v7518_v62  ;;  %v1114_v62 = vld [vmem:[#allocation1 + $0x12] sm:$0xff] }
 0x178   :  { %4869 = vmatpush.bf16.msrb.mxu2 %v7526_v0  ;;  %v1115_v0 = vld [vmem:[#allocation1 + $0x1b] sm:$0xff] }
 0x179   :  { %4882 = vmatpush.bf16.msrb.mxu3 %v7534_v1  ;;  %v7578_v1 = vld [vmem:[%s9343_s1 + $0xd30] sm:$0xff] }
 0x17a   :  { %4844 = vmatpush.bf16.msrb.mxu0 %v7509_v2  ;;  %v7586_v2 = vld [vmem:[%s9343_s1 + $0xd70] sm:$0xff] }
 0x17b   :  { %4857 = vmatpush.bf16.msrb.mxu1 %v7517_v3  ;;  %v7594_v3 = vld [vmem:[%s9343_s1 + $0xdb0] sm:$0xff] }
 0x17c   :  { %4870 = vmatpush.bf16.msrb.mxu2 %v7525_v4  ;;  %v7602_v4 = vld [vmem:[%s9343_s1 + $0xdf0] sm:$0xff] }
 0x17d   :  { %4883 = vmatpush.bf16.msrb.mxu3 %v7533_v5  ;;  %v9063_v5 = vld [vmem:[#allocation1 + $0x24] sm:$0xff] }
 0x17e   :  { %4845 = vmatpush.bf16.msrb.mxu0 %v7508_v8  ;;  %v4639_v24 = vpop.f32.mrf.mxu0  ;;  %v9069_v8 = vld [vmem:[#allocation1 + $0x3f] sm:$0xff] }
 0x17f   :  { %4858 = vmatpush.bf16.msrb.mxu1 %v7516_v9  ;;  %v4640_v25 = vadd.f32 %v4639_v24, %v4627_v60  ;;  %v4652_v28 = vpop.f32.mrf.mxu1  ;;  %v7603_v60 = vld [vmem:[%s9343_s1 + $0xdf8] sm:$0xff]  ;;  %1121 = vst [vmem:[#allocation1] ss:$9 sm:$0xff] %v21_v58  ;;  %v7577_v9 = vld [vmem:[%s9343_s1 + $0xd28] sm:$0xff] }
 0x180   :  { %4871 = vmatpush.bf16.msrb.mxu2 %v7524_v10  ;;  %v7585_v10 = vld [vmem:[%s9343_s1 + $0xd68] sm:$0xff]  ;;  %v7599_v24 = vld [vmem:[%s9343_s1 + $0xdd8] sm:$0xff] }
 0x181   :  { %4884 = vmatpush.bf16.msrb.mxu3 %v7532_v11  ;;  %4846 = vmatmul.bf16.vlgmr.msrb.gmra.mxu0 %v8853_v36  ;;  %v4653_v31 = vadd.f32 %v4652_v28, %v4640_v25  ;;  %v7593_v11 = vld [vmem:[%s9343_s1 + $0xda8] sm:$0xff] }
 0x182   :  { %4890 = vmatpush.bf16.msra.mxu0 %v7547_v12  ;;  %4859 = vmatmul.bf16.vlgmr.msrb.gmra.mxu1 %v8857_v38  ;;  %v7601_v12 = vld [vmem:[%s9343_s1 + $0xde8] sm:$0xff] }
 0x183   :  { %4903 = vmatpush.bf16.msra.mxu1 %v7555_v13  ;;  %4872 = vmatmul.bf16.vlgmr.msrb.gmra.mxu2 %v8855_v37 }
 0x184   :  { %4916 = vmatpush.bf16.msra.mxu2 %v7563_v14  ;;  %4885 = vmatmul.bf16.vlgmr.msrb.gmra.mxu3 %v8859_v39 }
 0x185   :  { %4929 = vmatpush.bf16.msra.mxu3 %v7571_v15  ;;  %v7576_v15 = vld [vmem:[%s9343_s1 + $0xd20] sm:$0xff] }
 0x186   :  { %4891 = vmatpush.bf16.msra.mxu0 %v7546_v16  ;;  %v4665_v36 = vpop.f32.mrf.mxu2  ;;  %v4641_v39 = vpop.f32.mrf.mxu0  ;;  %v7584_v16 = vld [vmem:[%s9343_s1 + $0xd60] sm:$0xff] }
 0x187   :  { %4904 = vmatpush.bf16.msra.mxu1 %v7554_v17  ;;  %v4666_v37 = vadd.f32 %v4665_v36, %v4653_v31  ;;  %v4678_v38 = vpop.f32.mrf.mxu3  ;;  %v4654_v43 = vpop.f32.mrf.mxu1  ;;  %v7582_v31 = vld [vmem:[%s9343_s1 + $0xd50] sm:$0xff]  ;;  %v7581_v36 = vld [vmem:[%s9343_s1 + $0xd48] sm:$0xff] }
 0x188   :  { %4917 = vmatpush.bf16.msra.mxu2 %v7562_v18  ;;  %v7592_v18 = vld [vmem:[%s9343_s1 + $0xda0] sm:$0xff] }
 0x189   :  { %4930 = vmatpush.bf16.msra.mxu3 %v7570_v19  ;;  %v8998_v40 = vadd.f32 %v4678_v38, %v4666_v37  ;;  %v7600_v19 = vld [vmem:[%s9343_s1 + $0xde0] sm:$0xff]  ;;  %v7589_v37 = vld [vmem:[%s9343_s1 + $0xd88] sm:$0xff] }
 0x18a   :  { %4892 = vmatpush.bf16.msra.mxu0 %v7545_v20  ;;  %v7597_v38 = vld [vmem:[%s9343_s1 + $0xdc8] sm:$0xff]  ;;  %v7588_v43 = vld [vmem:[%s9343_s1 + $0xd80] sm:$0xff] }
 0x18b   :  { %4905 = vmatpush.bf16.msra.mxu1 %v7553_v21  ;;  %v7575_v21 = vld [vmem:[%s9343_s1 + $0xd18] sm:$0xff] }
 0x18c   :  { %4918 = vmatpush.bf16.msra.mxu2 %v7561_v22  ;;  %v7583_v22 = vld [vmem:[%s9343_s1 + $0xd58] sm:$0xff] }
 0x18d   :  { %4931 = vmatpush.bf16.msra.mxu3 %v7569_v23  ;;  %v7591_v23 = vld [vmem:[%s9343_s1 + $0xd98] sm:$0xff] }
 0x18e   :  { %4893 = vmatpush.bf16.msra.mxu0 %v7544_v26  ;;  %v4667_v50 = vpop.f32.mrf.mxu2 }
 0x18f   :  { %4906 = vmatpush.bf16.msra.mxu1 %v7552_v27  ;;  %v4680_v51 = vpop.f32.mrf.mxu3  ;;  %v7618_v50 = vld [vmem:[%s9343_s1 + $0xe70] sm:$0xff] }
 0x190   :  { %4919 = vmatpush.bf16.msra.mxu2 %v7560_v29  ;;  %v7626_v51 = vld [vmem:[%s9343_s1 + $0xeb0] sm:$0xff] }
 0x191   :  { %4932 = vmatpush.bf16.msra.mxu3 %v7568_v30  ;;  %v7574_v30 = vld [vmem:[%s9343_s1 + $0xd10] sm:$0xff] }
 0x192   :  { %4894 = vmatpush.bf16.msra.mxu0 %v7543_v32 }
 0x193   :  { %4907 = vmatpush.bf16.msra.mxu1 %v7551_v33  ;;  %v7590_v33 = vld [vmem:[%s9343_s1 + $0xd90] sm:$0xff] }
 0x194   :  { %4920 = vmatpush.bf16.msra.mxu2 %v7559_v34  ;;  %v7598_v34 = vld [vmem:[%s9343_s1 + $0xdd0] sm:$0xff] }
 0x195   :  { %4933 = vmatpush.bf16.msra.mxu3 %v7567_v35  ;;  %v7573_v35 = vld [vmem:[%s9343_s1 + $0xd08] sm:$0xff] }
 0x196   :  { %4895 = vmatpush.bf16.msra.mxu0 %v7542_v41  ;;  %v7572_v41 = vld [vmem:[%s9343_s1 + $0xd00] sm:$0xff] }
 0x197   :  { %4908 = vmatpush.bf16.msra.mxu1 %v7550_v42  ;;  %v7580_v42 = vld [vmem:[%s9343_s1 + $0xd40] sm:$0xff] }
 0x198   :  { %4921 = vmatpush.bf16.msra.mxu2 %v7558_v44  ;;  %v7596_v44 = vld [vmem:[%s9343_s1 + $0xdc0] sm:$0xff] }
 0x199   :  { %4934 = vmatpush.bf16.msra.mxu3 %v7566_v45  ;;  %v7611_v45 = vld [vmem:[%s9343_s1 + $0xe38] sm:$0xff] }
 0x19a   :  { %4896 = vmatpush.bf16.msra.mxu0 %v7541_v46  ;;  %v7619_v46 = vld [vmem:[%s9343_s1 + $0xe78] sm:$0xff] }
 0x19b   :  { %4909 = vmatpush.bf16.msra.mxu1 %v7549_v47  ;;  %v7627_v47 = vld [vmem:[%s9343_s1 + $0xeb8] sm:$0xff] }
 0x19c   :  { %4922 = vmatpush.bf16.msra.mxu2 %v7557_v48  ;;  %v7635_v48 = vld [vmem:[%s9343_s1 + $0xef8] sm:$0xff] }
 0x19d   :  { %4935 = vmatpush.bf16.msra.mxu3 %v7565_v49  ;;  %v7610_v49 = vld [vmem:[%s9343_s1 + $0xe30] sm:$0xff] }
 0x19e   :  { %4897 = vmatpush.bf16.msra.mxu0 %v7540_v52  ;;  %v4691_v13 = vpop.f32.mrf.mxu0  ;;  %v7634_v52 = vld [vmem:[%s9343_s1 + $0xef0] sm:$0xff] }
 0x19f   :  { %4910 = vmatpush.bf16.msra.mxu1 %v7548_v53  ;;  %v4692_v14 = vadd.f32 %v4691_v13, %v8998_v40  ;;  %v4704_v17 = vpop.f32.mrf.mxu1  ;;  %v7609_v53 = vld [vmem:[%s9343_s1 + $0xe28] sm:$0xff]  ;;  %v7622_v13 = vld [vmem:[%s9343_s1 + $0xe90] sm:$0xff] }
 0x1a0   :  { %4923 = vmatpush.bf16.msra.mxu2 %v7556_v54  ;;  %v7617_v54 = vld [vmem:[%s9343_s1 + $0xe68] sm:$0xff] }
 0x1a1   :  { %4936 = vmatpush.bf16.msra.mxu3 %v7564_v55  ;;  %4898 = vmatmul.bf16.vlgmr.msra.gmra.mxu0 %v1112_v61  ;;  %v4705_v20 = vadd.f32 %v4704_v17, %v4692_v14  ;;  %v7625_v55 = vld [vmem:[%s9343_s1 + $0xea8] sm:$0xff]  ;;  %v7630_v14 = vld [vmem:[%s9343_s1 + $0xed0] sm:$0xff] }
 0x1a2   :  { %4942 = vmatpush.bf16.msrb.mxu0 %v7579_v56  ;;  %4911 = vmatmul.bf16.vlgmr.msra.gmra.mxu1 %v1113_v63  ;;  %v7633_v56 = vld [vmem:[%s9343_s1 + $0xee8] sm:$0xff]  ;;  %v7632_v63 = vld [vmem:[%s9343_s1 + $0xee0] sm:$0xff] }
 0x1a3   :  { %4955 = vmatpush.bf16.msrb.mxu1 %v7587_v57  ;;  %4924 = vmatmul.bf16.vlgmr.msra.gmra.mxu2 %v1114_v62  ;;  %v7624_v62 = vld [vmem:[%s9343_s1 + $0xea0] sm:$0xff]  ;;  %v7621_v17 = vld [vmem:[%s9343_s1 + $0xe88] sm:$0xff] }
 0x1a4   :  { %4968 = vmatpush.bf16.msrb.mxu2 %v7595_v59  ;;  %4937 = vmatmul.bf16.vlgmr.msra.gmra.mxu3 %v1115_v0  ;;  %v7608_v59 = vld [vmem:[%s9343_s1 + $0xe20] sm:$0xff] }
 0x1a5   :  { %4981 = vmatpush.bf16.msrb.mxu3 %v7603_v60  ;;  %v7616_v60 = vld [vmem:[%s9343_s1 + $0xe60] sm:$0xff] }
 0x1a6   :  { %4943 = vmatpush.bf16.msrb.mxu0 %v7578_v1  ;;  %v4717_v25 = vpop.f32.mrf.mxu2  ;;  %v4693_v28 = vpop.f32.mrf.mxu0  ;;  %v7607_v1 = vld [vmem:[%s9343_s1 + $0xe18] sm:$0xff] }
 0x1a7   :  { %4956 = vmatpush.bf16.msrb.mxu1 %v7586_v2  ;;  %v4718_v26 = vadd.f32 %v4717_v25, %v4705_v20  ;;  %v4730_v27 = vpop.f32.mrf.mxu3  ;;  %v4706_v32 = vpop.f32.mrf.mxu1  ;;  %v7615_v2 = vld [vmem:[%s9343_s1 + $0xe58] sm:$0xff] }
 0x1a8   :  { %4969 = vmatpush.bf16.msrb.mxu2 %v7594_v3  ;;  %v7623_v3 = vld [vmem:[%s9343_s1 + $0xe98] sm:$0xff] }
 0x1a9   :  { %4982 = vmatpush.bf16.msrb.mxu3 %v7602_v4  ;;  %v4731_v29 = vadd.f32 %v4730_v27, %v4718_v26  ;;  %v7631_v4 = vld [vmem:[%s9343_s1 + $0xed8] sm:$0xff] }
 0x1aa   :  { %4944 = vmatpush.bf16.msrb.mxu0 %v7577_v9  ;;  %v7643_v25 = vld [vmem:[%s9343_s1 + $0xf38] sm:$0xff] }
 0x1ab   :  { %4957 = vmatpush.bf16.msrb.mxu1 %v7585_v10  ;;  %v7606_v10 = vld [vmem:[%s9343_s1 + $0xe10] sm:$0xff]  ;;  %v7651_v26 = vld [vmem:[%s9343_s1 + $0xf78] sm:$0xff] }
 0x1ac   :  { %4970 = vmatpush.bf16.msrb.mxu2 %v7593_v11  ;;  %v7614_v11 = vld [vmem:[%s9343_s1 + $0xe50] sm:$0xff]  ;;  %v7659_v27 = vld [vmem:[%s9343_s1 + $0xfb8] sm:$0xff] }
 0x1ad   :  { %4983 = vmatpush.bf16.msrb.mxu3 %v7601_v12  ;;  %v7667_v28 = vld [vmem:[%s9343_s1 + $0xff8] sm:$0xff] }
 0x1ae   :  { %4945 = vmatpush.bf16.msrb.mxu0 %v7576_v15  ;;  %v4719_v39 = vpop.f32.mrf.mxu2  ;;  %v7605_v15 = vld [vmem:[%s9343_s1 + $0xe08] sm:$0xff]  ;;  %v1125_v32 = vld [vmem:[#allocation1 + $0x1b] sm:$0xff] }
 0x1af   :  { %4958 = vmatpush.bf16.msrb.mxu1 %v7584_v16  ;;  %v4732_v40 = vpop.f32.mrf.mxu3  ;;  %v7613_v16 = vld [vmem:[%s9343_s1 + $0xe48] sm:$0xff] }
 0x1b0   :  { %4971 = vmatpush.bf16.msrb.mxu2 %v7592_v18  ;;  %v7629_v18 = vld [vmem:[%s9343_s1 + $0xec8] sm:$0xff] }
 0x1b1   :  { %4984 = vmatpush.bf16.msrb.mxu3 %v7600_v19  ;;  %v7657_v39 = vld [vmem:[%s9343_s1 + $0xfa8] sm:$0xff] }
 0x1b2   :  { %4946 = vmatpush.bf16.msrb.mxu0 %v7575_v21  ;;  %v7604_v21 = vld [vmem:[%s9343_s1 + $0xe00] sm:$0xff]  ;;  %v7665_v40 = vld [vmem:[%s9343_s1 + $0xfe8] sm:$0xff] }
 0x1b3   :  { %4959 = vmatpush.bf16.msrb.mxu1 %v7583_v22  ;;  %v7612_v22 = vld [vmem:[%s9343_s1 + $0xe40] sm:$0xff] }
 0x1b4   :  { %4972 = vmatpush.bf16.msrb.mxu2 %v7591_v23  ;;  %v7620_v23 = vld [vmem:[%s9343_s1 + $0xe80] sm:$0xff] }
 0x1b5   :  { %4985 = vmatpush.bf16.msrb.mxu3 %v7599_v24  ;;  %v7628_v24 = vld [vmem:[%s9343_s1 + $0xec0] sm:$0xff] }
 0x1b6   :  { %4947 = vmatpush.bf16.msrb.mxu0 %v7574_v30  ;;  %v1124_v30 = vld [vmem:[#allocation1 + $0x12] sm:$0xff] }
 0x1b7   :  { %4960 = vmatpush.bf16.msrb.mxu1 %v7582_v31  ;;  %v1123_v31 = vld [vmem:[#allocation1 + $0x9] sm:$0xff] }
 0x1b8   :  { %4973 = vmatpush.bf16.msrb.mxu2 %v7590_v33  ;;  %v7642_v33 = vld [vmem:[%s9343_s1 + $0xf30] sm:$0xff] }
 0x1b9   :  { %4986 = vmatpush.bf16.msrb.mxu3 %v7598_v34  ;;  %v7650_v34 = vld [vmem:[%s9343_s1 + $0xf70] sm:$0xff] }
 0x1ba   :  { %4948 = vmatpush.bf16.msrb.mxu0 %v7573_v35  ;;  %v7658_v35 = vld [vmem:[%s9343_s1 + $0xfb0] sm:$0xff] }
 0x1bb   :  { %4961 = vmatpush.bf16.msrb.mxu1 %v7581_v36  ;;  %v7666_v36 = vld [vmem:[%s9343_s1 + $0xff0] sm:$0xff] }
 0x1bc   :  { %4974 = vmatpush.bf16.msrb.mxu2 %v7589_v37  ;;  %v7641_v37 = vld [vmem:[%s9343_s1 + $0xf28] sm:$0xff] }
 0x1bd   :  { %4987 = vmatpush.bf16.msrb.mxu3 %v7597_v38  ;;  %v7649_v38 = vld [vmem:[%s9343_s1 + $0xf68] sm:$0xff] }
 0x1be   :  { %4949 = vmatpush.bf16.msrb.mxu0 %v7572_v41  ;;  %v4743_v57 = vpop.f32.mrf.mxu0 }
 0x1bf   :  { %4962 = vmatpush.bf16.msrb.mxu1 %v7580_v42  ;;  %v4744_v58 = vadd.f32 %v4743_v57, %v4731_v29  ;;  %v4756_v61 = vpop.f32.mrf.mxu1  ;;  %v1122_v29 = vld [vmem:[#allocation1] sm:$0xff] }
 0x1c0   :  { %4975 = vmatpush.bf16.msrb.mxu2 %v7588_v43  ;;  %v7640_v43 = vld [vmem:[%s9343_s1 + $0xf20] sm:$0xff] }
 0x1c1   :  { %4988 = vmatpush.bf16.msrb.mxu3 %v7596_v44  ;;  %4950 = vmatmul.bf16.vlgmr.msrb.gmra.mxu0 %v9063_v5  ;;  %v4757_v0 = vadd.f32 %v4756_v61, %v4744_v58  ;;  %v7648_v44 = vld [vmem:[%s9343_s1 + $0xf60] sm:$0xff]  ;;  %v7638_v58 = vld [vmem:[%s9343_s1 + $0xf10] sm:$0xff] }
 0x1c2   :  { %4994 = vmatpush.bf16.msra.mxu0 %v7611_v45  ;;  %4963 = vmatmul.bf16.vlgmr.msrb.gmra.mxu1 %v9067_v7  ;;  %v7654_v61 = vld [vmem:[%s9343_s1 + $0xf90] sm:$0xff] }
 0x1c3   :  { %5007 = vmatpush.bf16.msra.mxu1 %v7619_v46  ;;  %4976 = vmatmul.bf16.vlgmr.msrb.gmra.mxu2 %v9065_v6  ;;  %v7656_v46 = vld [vmem:[%s9343_s1 + $0xfa0] sm:$0xff] }
 0x1c4   :  { %5020 = vmatpush.bf16.msra.mxu2 %v7627_v47  ;;  %4989 = vmatmul.bf16.vlgmr.msrb.gmra.mxu3 %v9069_v8  ;;  %v7664_v47 = vld [vmem:[%s9343_s1 + $0xfe0] sm:$0xff] }
 0x1c5   :  { %5033 = vmatpush.bf16.msra.mxu3 %v7635_v48 }
 0x1c6   :  { %4995 = vmatpush.bf16.msra.mxu0 %v7610_v49  ;;  %v4769_v5 = vpop.f32.mrf.mxu2  ;;  %v4745_v8 = vpop.f32.mrf.mxu0  ;;  %v7639_v49 = vld [vmem:[%s9343_s1 + $0xf18] sm:$0xff] }
 0x1c7   :  { %5008 = vmatpush.bf16.msra.mxu1 %v7618_v50  ;;  %v4770_v6 = vadd.f32 %v4769_v5, %v4757_v0  ;;  %v4782_v7 = vpop.f32.mrf.mxu3  ;;  %v4758_v12 = vpop.f32.mrf.mxu1  ;;  %v7647_v50 = vld [vmem:[%s9343_s1 + $0xf58] sm:$0xff]  ;;  %v7645_v0 = vld [vmem:[%s9343_s1 + $0xf48] sm:$0xff]  ;;  %v7636_v5 = vld [vmem:[%s9343_s1 + $0xf00] sm:$0xff] }
 0x1c8   :  { %5021 = vmatpush.bf16.msra.mxu2 %v7626_v51  ;;  %v7655_v51 = vld [vmem:[%s9343_s1 + $0xf98] sm:$0xff]  ;;  %v7660_v8 = vld [vmem:[%s9343_s1 + $0xfc0] sm:$0xff] }
 0x1c9   :  { %5034 = vmatpush.bf16.msra.mxu3 %v7634_v52  ;;  %v4783_v9 = vadd.f32 %v4782_v7, %v4770_v6  ;;  %v7663_v52 = vld [vmem:[%s9343_s1 + $0xfd8] sm:$0xff]  ;;  %v7644_v6 = vld [vmem:[%s9343_s1 + $0xf40] sm:$0xff] }
 0x1ca   :  { %4996 = vmatpush.bf16.msra.mxu0 %v7609_v53  ;;  %v7652_v7 = vld [vmem:[%s9343_s1 + $0xf80] sm:$0xff] }
 0x1cb   :  { %5009 = vmatpush.bf16.msra.mxu1 %v7617_v54  ;;  %v1129_v12 = vld [vmem:[#allocation1 + $0x3f] sm:$0xff] }
 0x1cc   :  { %5022 = vmatpush.bf16.msra.mxu2 %v7625_v55 }
 0x1cd   :  { %5035 = vmatpush.bf16.msra.mxu3 %v7633_v56 }
 0x1ce   :  { %4997 = vmatpush.bf16.msra.mxu0 %v7608_v59  ;;  %v4771_v19 = vpop.f32.mrf.mxu2  ;;  %v7646_v59 = vld [vmem:[%s9343_s1 + $0xf50] sm:$0xff] }
 0x1cf   :  { %5010 = vmatpush.bf16.msra.mxu1 %v7616_v60  ;;  %v4784_v20 = vpop.f32.mrf.mxu3 }
 0x1d0   :  { %5023 = vmatpush.bf16.msra.mxu2 %v7624_v62  ;;  %v7662_v62 = vld [vmem:[%s9343_s1 + $0xfd0] sm:$0xff] }
 0x1d1   :  { %5036 = vmatpush.bf16.msra.mxu3 %v7632_v63  ;;  %v7637_v63 = vld [vmem:[%s9343_s1 + $0xf08] sm:$0xff] }
 0x1d2   :  { %4998 = vmatpush.bf16.msra.mxu0 %v7607_v1  ;;  %v7653_v1 = vld [vmem:[%s9343_s1 + $0xf88] sm:$0xff] }
 0x1d3   :  { %5011 = vmatpush.bf16.msra.mxu1 %v7615_v2  ;;  %v7661_v2 = vld [vmem:[%s9343_s1 + $0xfc8] sm:$0xff] }
 0x1d4   :  { %5024 = vmatpush.bf16.msra.mxu2 %v7623_v3 }
 0x1d5   :  { %5037 = vmatpush.bf16.msra.mxu3 %v7631_v4 }
 0x1d6   :  { %4999 = vmatpush.bf16.msra.mxu0 %v7606_v10  ;;  %v1127_v10 = vld [vmem:[#allocation1 + $0x2d] sm:$0xff] }
 0x1d7   :  { %5012 = vmatpush.bf16.msra.mxu1 %v7614_v11  ;;  %v1128_v11 = vld [vmem:[#allocation1 + $0x36] sm:$0xff] }
 0x1d8   :  { %5025 = vmatpush.bf16.msra.mxu2 %v7622_v13 }
 0x1d9   :  { %5038 = vmatpush.bf16.msra.mxu3 %v7630_v14 }
 0x1da   :  { %5000 = vmatpush.bf16.msra.mxu0 %v7605_v15 }
 0x1db   :  { %5013 = vmatpush.bf16.msra.mxu1 %v7613_v16 }
 0x1dc   :  { %5026 = vmatpush.bf16.msra.mxu2 %v7621_v17 }
 0x1dd   :  { %5039 = vmatpush.bf16.msra.mxu3 %v7629_v18 }
 0x1de   :  { %5001 = vmatpush.bf16.msra.mxu0 %v7604_v21  ;;  %v4795_v41 = vpop.f32.mrf.mxu0 }
 0x1df   :  { %5014 = vmatpush.bf16.msra.mxu1 %v7612_v22  ;;  %v4796_v42 = vadd.f32 %v4795_v41, %v4783_v9  ;;  %v4808_v45 = vpop.f32.mrf.mxu1  ;;  %v1126_v9 = vld [vmem:[#allocation1 + $0x24] sm:$0xff] }
 0x1e0   :  { %5027 = vmatpush.bf16.msra.mxu2 %v7620_v23 }
 0x1e1   :  { %5040 = vmatpush.bf16.msra.mxu3 %v7628_v24  ;;  %5002 = vmatmul.bf16.vlgmr.msra.gmra.mxu0 %v1122_v29  ;;  %v4809_v48 = vadd.f32 %v4808_v45, %v4796_v42 }
 0x1e2   :  { %5046 = vmatpush.bf16.msrb.mxu0 %v7643_v25  ;;  %5015 = vmatmul.bf16.vlgmr.msra.gmra.mxu1 %v1123_v31 }
 0x1e3   :  { %5059 = vmatpush.bf16.msrb.mxu1 %v7651_v26  ;;  %5028 = vmatmul.bf16.vlgmr.msra.gmra.mxu2 %v1124_v30 }
 0x1e4   :  { %5072 = vmatpush.bf16.msrb.mxu2 %v7659_v27  ;;  %5041 = vmatmul.bf16.vlgmr.msra.gmra.mxu3 %v1125_v32 }
 0x1e5   :  { %5085 = vmatpush.bf16.msrb.mxu3 %v7667_v28 }
 0x1e6   :  { %5047 = vmatpush.bf16.msrb.mxu0 %v7642_v33  ;;  %v4821_v53 = vpop.f32.mrf.mxu2  ;;  %v4797_v56 = vpop.f32.mrf.mxu0 }
 0x1e7   :  { %5060 = vmatpush.bf16.msrb.mxu1 %v7650_v34  ;;  %v4822_v54 = vadd.f32 %v4821_v53, %v4809_v48  ;;  %v4834_v55 = vpop.f32.mrf.mxu3  ;;  %v4810_v60 = vpop.f32.mrf.mxu1 }
 0x1e8   :  { %5073 = vmatpush.bf16.msrb.mxu2 %v7658_v35 }
 0x1e9   :  { %5086 = vmatpush.bf16.msrb.mxu3 %v7666_v36  ;;  %v4835_v57 = vadd.f32 %v4834_v55, %v4822_v54 }
 0x1ea   :  { %5048 = vmatpush.bf16.msrb.mxu0 %v7641_v37 }
 0x1eb   :  { %5061 = vmatpush.bf16.msrb.mxu1 %v7649_v38 }
 0x1ec   :  { %5074 = vmatpush.bf16.msrb.mxu2 %v7657_v39 }
 0x1ed   :  { %5087 = vmatpush.bf16.msrb.mxu3 %v7665_v40 }
 0x1ee   :  { %5049 = vmatpush.bf16.msrb.mxu0 %v7640_v43  ;;  %v4823_v3 = vpop.f32.mrf.mxu2 }
 0x1ef   :  { %5062 = vmatpush.bf16.msrb.mxu1 %v7648_v44  ;;  %v4836_v4 = vpop.f32.mrf.mxu3 }
 0x1f0   :  { %5075 = vmatpush.bf16.msrb.mxu2 %v7656_v46 }
 0x1f1   :  { %5088 = vmatpush.bf16.msrb.mxu3 %v7664_v47 }
 0x1f2   :  { %5050 = vmatpush.bf16.msrb.mxu0 %v7639_v49 }
 0x1f3   :  { %5063 = vmatpush.bf16.msrb.mxu1 %v7647_v50 }
 0x1f4   :  { %5076 = vmatpush.bf16.msrb.mxu2 %v7655_v51 }
 0x1f5   :  { %5089 = vmatpush.bf16.msrb.mxu3 %v7663_v52 }
 0x1f6   :  { %5051 = vmatpush.bf16.msrb.mxu0 %v7638_v58 }
 0x1f7   :  { %5064 = vmatpush.bf16.msrb.mxu1 %v7646_v59 }
 0x1f8   :  { %5077 = vmatpush.bf16.msrb.mxu2 %v7654_v61 }
 0x1f9   :  { %5090 = vmatpush.bf16.msrb.mxu3 %v7662_v62 }
 0x1fa   :  { %5052 = vmatpush.bf16.msrb.mxu0 %v7637_v63 }
 0x1fb   :  { %5065 = vmatpush.bf16.msrb.mxu1 %v7645_v0 }
 0x1fc   :  { %5078 = vmatpush.bf16.msrb.mxu2 %v7653_v1 }
 0x1fd   :  { %5091 = vmatpush.bf16.msrb.mxu3 %v7661_v2 }
 0x1fe   :  { %5053 = vmatpush.bf16.msrb.mxu0 %v7636_v5  ;;  %v4847_v13 = vpop.f32.mrf.mxu0 }
 0x1ff   :  { %5066 = vmatpush.bf16.msrb.mxu1 %v7644_v6  ;;  %v4848_v14 = vadd.f32 %v4847_v13, %v4835_v57  ;;  %v4860_v15 = vpop.f32.mrf.mxu1 }
 0x200   :  { %5079 = vmatpush.bf16.msrb.mxu2 %v7652_v7 }
 0x201   :  { %5092 = vmatpush.bf16.msrb.mxu3 %v7660_v8  ;;  %5054 = vmatmul.bf16.vlgmr.msrb.gmra.mxu0 %v1126_v9  ;;  %v4861_v16 = vadd.f32 %v4860_v15, %v4848_v14 }
 0x202   :  { %5067 = vmatmul.bf16.vlgmr.msrb.gmra.mxu1 %v1127_v10 }
 0x203   :  { %5080 = vmatmul.bf16.vlgmr.msrb.gmra.mxu2 %v1128_v11 }
 0x204   :  { %5093 = vmatmul.bf16.vlgmr.msrb.gmra.mxu3 %v1129_v12 }
 0x206   :  { %v4873_v17 = vpop.f32.mrf.mxu2  ;;  %v4849_v20 = vpop.f32.mrf.mxu0 }
 0x207   :  { %v4874_v18 = vadd.f32 %v4873_v17, %v4861_v16  ;;  %v4886_v19 = vpop.f32.mrf.mxu3  ;;  %v4862_v22 = vpop.f32.mrf.mxu1 }
 0x209   :  { %v4887_v21 = vadd.f32 %v4886_v19, %v4874_v18 }
 0x20e   :  { %v4875_v23 = vpop.f32.mrf.mxu2 }
 0x20f   :  { %v4888_v24 = vpop.f32.mrf.mxu3 }
 0x21e   :  { %v4899_v25 = vpop.f32.mrf.mxu0 }
 0x21f   :  { %v4900_v26 = vadd.f32 %v4899_v25, %v4887_v21  ;;  %v4912_v27 = vpop.f32.mrf.mxu1 }
 0x221   :  { %v4913_v28 = vadd.f32 %v4912_v27, %v4900_v26 }
 0x226   :  { %v4925_v29 = vpop.f32.mrf.mxu2  ;;  %v4901_v32 = vpop.f32.mrf.mxu0 }
 0x227   :  { %v4926_v30 = vadd.f32 %v4925_v29, %v4913_v28  ;;  %v4938_v31 = vpop.f32.mrf.mxu3  ;;  %v4914_v34 = vpop.f32.mrf.mxu1 }
 0x229   :  { %v4939_v33 = vadd.f32 %v4938_v31, %v4926_v30 }
 0x22e   :  { %v4927_v35 = vpop.f32.mrf.mxu2 }
 0x22f   :  { %v4940_v36 = vpop.f32.mrf.mxu3 }
 0x23e   :  { %v4951_v37 = vpop.f32.mrf.mxu0 }
 0x23f   :  { %v4964_v38 = vpop.f32.mrf.mxu1  ;;  %v4952_v48 = vadd.f32 %v4951_v37, %v4939_v33 }
 0x241   :  { %v4965_v52 = vadd.f32 %v4964_v38, %v4952_v48 }
 0x246   :  { %v4977_v39 = vpop.f32.mrf.mxu2  ;;  %v4953_v41 = vpop.f32.mrf.mxu0 }
 0x247   :  { %v4990_v40 = vpop.f32.mrf.mxu3  ;;  %v4966_v42 = vpop.f32.mrf.mxu1  ;;  %v4978_v53 = vadd.f32 %v4977_v39, %v4965_v52 }
 0x249   :  { %v4991_v56 = vadd.f32 %v4990_v40, %v4978_v53 }
 0x24e   :  { %v4979_v43 = vpop.f32.mrf.mxu2 }
 0x24f   :  { %v4992_v44 = vpop.f32.mrf.mxu3 }
 0x25e   :  { %v5003_v45 = vpop.f32.mrf.mxu0 }
 0x25f   :  { %v5016_v46 = vpop.f32.mrf.mxu1  ;;  %v5004_v57 = vadd.f32 %v5003_v45, %v4991_v56 }
 0x261   :  { %v5017_v58 = vadd.f32 %v5016_v46, %v5004_v57 }
 0x266   :  { %v5029_v47 = vpop.f32.mrf.mxu2  ;;  %v5005_v50 = vpop.f32.mrf.mxu0 }
 0x267   :  { %v5042_v49 = vpop.f32.mrf.mxu3  ;;  %v5018_v51 = vpop.f32.mrf.mxu1  ;;  %v5030_v59 = vadd.f32 %v5029_v47, %v5017_v58 }
 0x269   :  { %v5043_v60 = vadd.f32 %v5042_v49, %v5030_v59 }
 0x26e   :  { %v5031_v54 = vpop.f32.mrf.mxu2 }
 0x26f   :  { %v5044_v55 = vpop.f32.mrf.mxu3 }
 0x27e   :  { %v5055_v61 = vpop.f32.mrf.mxu0 }
 0x27f   :  { %v5068_v62 = vpop.f32.mrf.mxu1  ;;  %v5056_v63 = vadd.f32 %v5055_v61, %v5043_v60 }
 0x281   :  { %v5069_v0 = vadd.f32 %v5068_v62, %v5056_v63 }
 0x286   :  { %v5081_v1 = vpop.f32.mrf.mxu2  ;;  %v5057_v4 = vpop.f32.mrf.mxu0 }
 0x287   :  { %v5094_v2 = vpop.f32.mrf.mxu3  ;;  %v5082_v3 = vadd.f32 %v5081_v1, %v5069_v0  ;;  %v5070_v5 = vpop.f32.mrf.mxu1 }
 0x289   :  { %v5095_v6 = vadd.f32 %v5094_v2, %v5082_v3 }
 0x28b   :  { %v5098_v7 = vsub.f32 0.0, %v5095_v6 }
 0x28d   :  { %v5099_v8 = vmul.f32 1.442695, %v5098_v7 }
 0x28e   :  { %v5083_v9 = vpop.f32.mrf.mxu2 }
 0x28f   :  { %v5096_v10 = vpop.f32.mrf.mxu3  ;;  %7669 = vpow2.f32 %v5099_v8 }
 0x295   :  { %v7670_v11 = vpop.eup %7669 }
 0x296   :  { %v5101_v12 = vadd.f32 1.0, %v7670_v11 }
 0x298   :  { %7671 = vrcp.f32 %v5101_v12 }
 0x29e   :  { %v7672_v13 = vpop.eup %7671 }
 0x29f   :  { %5103 = vst [vmem:[%s9346_s3] sm:$0x3] %v7672_v13 }

</bundles_post_ra>
